<compile_context>
chip_gen: v7x
topology: tpu7x:2x2x1
jax: 0.10.0
libtpu: 0.0.40
codegen_flags: <defaults>
</compile_context>

<pallas_src>
import functools

import jax
import jax.numpy as jnp
import numpy as np
from jax.experimental import pallas as pl
from jax.experimental.pallas import tpu as pltpu

_LANE = 128


def _round_up(x: int, m: int) -> int:
    return (x + m - 1) // m * m


def _make_squasher_kernel(n_conv: int, window: int, b_tile: int, acts_dtype):
    rows = b_tile * window

    def kernel(*refs):
        x_ref, keep_first_ref, keep_last_ref = refs[0], refs[1], refs[2]
        out_ref = refs[-1]
        wb_refs = refs[3:-1]  # interleaved (w_cat0, b0, w_cat1, b1, ...)

        keep_first = keep_first_ref[...]  # (rows, 1) f32; 0.0 at t % W == 0
        keep_last = keep_last_ref[...]    # (rows, 1) f32; 0.0 at t % W == W-1

        h = x_ref[...]                    # (rows, Cin_pad), acts_dtype
        h_f32 = None
        for li in range(n_conv):
            w_ref = wb_refs[2 * li]       # (Cin_pad, 3*Cout_pad), acts_dtype
            b_ref = wb_refs[2 * li + 1]   # (1, Cout_pad), f32
            cpad = b_ref.shape[1]

            # One fused MXU matmul for all 3 taps: z = h @ [w0 | w1 | w2].
            z = jnp.dot(h, w_ref[...], preferred_element_type=jnp.float32)

            # y[t] = z0[t-1] + z1[t] + z2[t+1]  (zero-padded at window edges).
            z_prev = pltpu.roll(z[:, :cpad], 1, axis=0) * keep_first
            z_mid = z[:, cpad:2 * cpad]
            z_next = pltpu.roll(z[:, 2 * cpad:], rows - 1, axis=0) * keep_last

            acc = z_prev + z_mid + z_next + b_ref[...]
            h_f32 = acc * jax.nn.sigmoid(acc)   # SiLU, f32
            h = h_f32.astype(acts_dtype)

        # AdaptiveMaxPool1d(1): per-window max over the time axis (per-lane).
        h3 = h_f32.reshape(b_tile, window, h_f32.shape[-1])
        out_ref[...] = jnp.max(h3, axis=1).astype(out_ref.dtype)

    return kernel


def _pack_params(params_flat, acts_dtype):
    """(3, Cin, Cout)/(Cout,) -> lane-padded (Cin_pad, 3*Cout_pad) and (1, Cout_pad)."""
    n_conv = len(params_flat) // 2
    packed = []
    for i in range(n_conv):
        w = params_flat[2 * i]            # (3, cin, cout)
        b = params_flat[2 * i + 1]        # (cout,)
        _, cin, cout = w.shape
        cin_p = _round_up(cin, _LANE)
        cout_p = _round_up(cout, _LANE)
        w_p = jnp.zeros((3, cin_p, cout_p), acts_dtype)
        w_p = w_p.at[:, :cin, :cout].set(w.astype(acts_dtype))
        w_cat = jnp.concatenate([w_p[0], w_p[1], w_p[2]], axis=1)  # (cin_p, 3*cout_p)
        b_p = jnp.zeros((1, cout_p), jnp.float32).at[0, :cout].set(b.astype(jnp.float32))
        packed += [w_cat, b_p]
    return packed


@functools.partial(jax.jit, static_argnames=("b_tile", "acts_dtype"))
def squasher_forward_batched(x, params_flat, *, b_tile: int = 256,
                             acts_dtype=jnp.float32):
    """x: (B, window, input_size) -> (B, output_size)."""
    B, W, cin = x.shape
    n_conv = len(params_flat) // 2
    out_ch = params_flat[-2].shape[-1]

    wb = _pack_params(params_flat, acts_dtype)
    cin_p = wb[0].shape[0]
    cout_p = wb[-1].shape[1]

    bt = max(8, min(_round_up(b_tile, 8), _round_up(B, 8)))
    B_pad = _round_up(B, bt)
    rows = bt * W

    x_p = jnp.zeros((B_pad, W, cin_p), acts_dtype).at[:B, :, :cin].set(x.astype(acts_dtype))
    x_flat = x_p.reshape(B_pad * W, cin_p)

    # Per-row boundary masks (same for every tile) built host-side once.
    pos = np.arange(rows) % W
    keep_first = jnp.asarray((pos != 0).astype(np.float32).reshape(rows, 1))
    keep_last = jnp.asarray((pos != W - 1).astype(np.float32).reshape(rows, 1))

    grid = (B_pad // bt,)
    in_specs = [
        pl.BlockSpec((rows, cin_p), lambda i: (i, 0)),
        pl.BlockSpec((rows, 1), lambda i: (0, 0)),
        pl.BlockSpec((rows, 1), lambda i: (0, 0)),
    ]
    for li in range(n_conv):
        in_specs.append(pl.BlockSpec(wb[2 * li].shape, lambda i: (0, 0)))
        in_specs.append(pl.BlockSpec(wb[2 * li + 1].shape, lambda i: (0, 0)))
    out_specs = pl.BlockSpec((bt, cout_p), lambda i: (i, 0))

    flops = 2 * B_pad * W * sum(int(wb[2 * i].shape[0]) * int(wb[2 * i].shape[1])
                                for i in range(n_conv))
    transcendentals = B_pad * W * sum(int(wb[2 * i + 1].shape[1]) for i in range(n_conv))
    bytes_accessed = (x_flat.size * x_flat.dtype.itemsize
                      + sum(int(a.size) * a.dtype.itemsize for a in wb)
                      + B_pad * cout_p * 4)

    kernel = _make_squasher_kernel(n_conv, W, bt, acts_dtype)
    out = pl.pallas_call(
        kernel,
        out_shape=jax.ShapeDtypeStruct((B_pad, cout_p), jnp.float32),
        grid=grid,
        in_specs=in_specs,
        out_specs=out_specs,
        compiler_params=pltpu.CompilerParams(
            dimension_semantics=("parallel",),     # shards batch tiles across v7x's 2 TCs
            vmem_limit_bytes=32 * 1024 * 1024,     # fits comfortably on v5e/v6e/v7x
        ),
        cost_estimate=pl.CostEstimate(
            flops=flops, transcendentals=transcendentals, bytes_accessed=bytes_accessed),
    )(x_flat, keep_first, keep_last, *wb)
    return out[:B, :out_ch]


def squasher_forward(x, params_flat, **kw):
    """Original module signature: (window, input_size) -> (output_size)."""
    return squasher_forward_batched(x[None], params_flat, **kw)[0]


def init_params(key, input_size, hidden_size, output_size, n_layers):
    """Deterministic PyTorch-style uniform init. Weight layout: (3, Cin, Cout)."""
    sizes = [input_size] + [hidden_size] * (n_layers - 1) + [output_size]
    params = []
    for i in range(n_layers):
        cin, cout = sizes[i], sizes[i + 1]
        key, k1, k2 = jax.random.split(key, 3)
        bound = 1.0 / float(np.sqrt(cin * 3))
        w = jax.random.uniform(k1, (3, cin, cout), jnp.float32, -bound, bound)
        b = jax.random.uniform(k2, (cout,), jnp.float32, -bound, bound)
        params += [w, b]
    return params


def ref_forward(x, params_flat):
    """Pure-JAX reference for a single window (same math, same weight layout)."""
    h = x
    n_conv = len(params_flat) // 2
    for i in range(n_conv):
        w, b = params_flat[2 * i], params_flat[2 * i + 1]
        hp = jnp.pad(h, ((1, 1), (0, 0)))
        acc = b[None, :]
        for k in range(3):
            acc = acc + hp[k:k + h.shape[0]] @ w[k]
        h = acc * jax.nn.sigmoid(acc)
    return jnp.max(h, axis=0)


if __name__ == "__main__":
    window = 8
    input_size = 16
    hidden_size = 32
    output_size = 24
    n_layers = 3
    batch = 64

    key = jax.random.PRNGKey(0)
    key, kx = jax.random.split(key)
    xb = jax.random.normal(kx, (batch, window, input_size), jnp.float32)
    params = init_params(key, input_size, hidden_size, output_size, n_layers)

    ref_b = jax.block_until_ready(jax.vmap(lambda x: ref_forward(x, params))(xb))

    # Batched f32 path (primary, asserted).
    out_b = jax.block_until_ready(squasher_forward_batched(xb, params))
    assert out_b.shape == (batch, output_size), out_b.shape
    np.testing.assert_allclose(np.asarray(out_b), np.asarray(ref_b), rtol=5e-3, atol=5e-3)

    # Single-window path (original module signature).
    x1 = xb[0]
    out_1 = jax.block_until_ready(squasher_forward(x1, params))
    assert out_1.shape == (output_size,), out_1.shape
    np.testing.assert_allclose(np.asarray(out_1), np.asarray(ref_forward(x1, params)),
                               rtol=5e-3, atol=5e-3)

    # bf16 MXU path (for v6e/v7x), loose tolerance.
    out_bf = jax.block_until_ready(
        squasher_forward_batched(xb, params, acts_dtype=jnp.bfloat16))
    np.testing.assert_allclose(np.asarray(out_bf), np.asarray(ref_b), rtol=8e-2, atol=8e-2)

    print("KERNEL_OK")
</pallas_src>

<mosaic_0001>
module attributes {stable_mosaic.version = 11 : i64} {
  func.func @kernel(%arg0: i32, %arg1: memref<512x128xf32, #tpu.memory_space<vmem>>, %arg2: memref<512x1xf32, #tpu.memory_space<vmem>>, %arg3: memref<512x1xf32, #tpu.memory_space<vmem>>, %arg4: memref<128x384xf32, #tpu.memory_space<vmem>>, %arg5: memref<1x128xf32, #tpu.memory_space<vmem>>, %arg6: memref<128x384xf32, #tpu.memory_space<vmem>>, %arg7: memref<1x128xf32, #tpu.memory_space<vmem>>, %arg8: memref<128x384xf32, #tpu.memory_space<vmem>>, %arg9: memref<1x128xf32, #tpu.memory_space<vmem>>, %arg10: memref<64x128xf32, #tpu.memory_space<vmem>>) attributes {dimension_semantics = [#tpu.dimension_semantics<parallel>], iteration_bounds = array<i64: 1>, scalar_prefetch = 0 : i64, scratch_operands = 0 : i64, tpu.core_type = #tpu.core_type<tc>, window_params = [{transform_indices = @transform_0, window_bounds = array<i64: 512, 128>}, {pipeline_mode = #tpu.pipeline_mode<synchronous>, transform_indices = @transform_1, window_bounds = array<i64: 512, 1>}, {pipeline_mode = #tpu.pipeline_mode<synchronous>, transform_indices = @transform_2, window_bounds = array<i64: 512, 1>}, {pipeline_mode = #tpu.pipeline_mode<synchronous>, transform_indices = @transform_3, window_bounds = array<i64: 128, 384>}, {pipeline_mode = #tpu.pipeline_mode<synchronous>, transform_indices = @transform_4, window_bounds = array<i64: 1, 128>}, {pipeline_mode = #tpu.pipeline_mode<synchronous>, transform_indices = @transform_5, window_bounds = array<i64: 128, 384>}, {pipeline_mode = #tpu.pipeline_mode<synchronous>, transform_indices = @transform_6, window_bounds = array<i64: 1, 128>}, {pipeline_mode = #tpu.pipeline_mode<synchronous>, transform_indices = @transform_7, window_bounds = array<i64: 128, 384>}, {pipeline_mode = #tpu.pipeline_mode<synchronous>, transform_indices = @transform_8, window_bounds = array<i64: 1, 128>}, {transform_indices = @transform_9, window_bounds = array<i64: 64, 128>}]} {
    %c0 = arith.constant 0 : index
    %c0_0 = arith.constant 0 : index
    %0 = vector.load %arg2[%c0, %c0_0] : memref<512x1xf32, #tpu.memory_space<vmem>>, vector<512x1xf32>
    %c0_1 = arith.constant 0 : index
    %c0_2 = arith.constant 0 : index
    %1 = vector.load %arg3[%c0_1, %c0_2] : memref<512x1xf32, #tpu.memory_space<vmem>>, vector<512x1xf32>
    %c0_3 = arith.constant 0 : index
    %c0_4 = arith.constant 0 : index
    %2 = vector.load %arg1[%c0_3, %c0_4] : memref<512x128xf32, #tpu.memory_space<vmem>>, vector<512x128xf32>
    %c0_5 = arith.constant 0 : index
    %c0_6 = arith.constant 0 : index
    %3 = vector.load %arg4[%c0_5, %c0_6] : memref<128x384xf32, #tpu.memory_space<vmem>>, vector<128x384xf32>
    %cst = arith.constant dense<0.000000e+00> : vector<512x384xf32>
    %4 = tpu.matmul %2, %3, %cst {dimension_numbers = #tpu.dot_dimension_numbers<[1], [0], [0], [1], [0, 0, 1, 1], [], []>} : vector<512x128xf32>, vector<128x384xf32>, vector<512x384xf32> -> vector<512x384xf32>
    %5 = vector.extract_strided_slice %4 {offsets = [0, 0], sizes = [512, 128], strides = [1, 1]} : vector<512x384xf32> to vector<512x128xf32>
    %c1_i32 = arith.constant 1 : i32
    %6 = tpu.dynamic_rotate %5 by %c1_i32 dim 0 : vector<512x128xf32>, i32 -> vector<512x128xf32>
    %7 = vector.broadcast %0 : vector<512x1xf32> to vector<512x128xf32>
    %8 = arith.mulf %6, %7 : vector<512x128xf32>
    %9 = vector.extract_strided_slice %4 {offsets = [0, 128], sizes = [512, 128], strides = [1, 1]} : vector<512x384xf32> to vector<512x128xf32>
    %10 = vector.extract_strided_slice %4 {offsets = [0, 256], sizes = [512, 128], strides = [1, 1]} : vector<512x384xf32> to vector<512x128xf32>
    %c511_i32 = arith.constant 511 : i32
    %11 = tpu.dynamic_rotate %10 by %c511_i32 dim 0 : vector<512x128xf32>, i32 -> vector<512x128xf32>
    %12 = vector.broadcast %1 : vector<512x1xf32> to vector<512x128xf32>
    %13 = arith.mulf %11, %12 : vector<512x128xf32>
    %14 = arith.addf %8, %9 : vector<512x128xf32>
    %15 = arith.addf %14, %13 : vector<512x128xf32>
    %c0_7 = arith.constant 0 : index
    %c0_8 = arith.constant 0 : index
    %16 = vector.load %arg5[%c0_7, %c0_8] : memref<1x128xf32, #tpu.memory_space<vmem>>, vector<1x128xf32>
    %17 = vector.broadcast %16 : vector<1x128xf32> to vector<512x128xf32>
    %18 = arith.addf %15, %17 : vector<512x128xf32>
    %19 = arith.negf %18 : vector<512x128xf32>
    %20 = math.exp %19 : vector<512x128xf32>
    %cst_9 = arith.constant 1.000000e+00 : f32
    %21 = vector.broadcast %cst_9 : f32 to vector<512x128xf32>
    %22 = arith.addf %21, %20 : vector<512x128xf32>
    %23 = arith.divf %21, %22 : vector<512x128xf32>
    %24 = arith.mulf %18, %23 : vector<512x128xf32>
    %c0_10 = arith.constant 0 : index
    %c0_11 = arith.constant 0 : index
    %25 = vector.load %arg6[%c0_10, %c0_11] : memref<128x384xf32, #tpu.memory_space<vmem>>, vector<128x384xf32>
    %cst_12 = arith.constant dense<0.000000e+00> : vector<512x384xf32>
    %26 = tpu.matmul %24, %25, %cst_12 {dimension_numbers = #tpu.dot_dimension_numbers<[1], [0], [0], [1], [0, 0, 1, 1], [], []>} : vector<512x128xf32>, vector<128x384xf32>, vector<512x384xf32> -> vector<512x384xf32>
    %27 = vector.extract_strided_slice %26 {offsets = [0, 0], sizes = [512, 128], strides = [1, 1]} : vector<512x384xf32> to vector<512x128xf32>
    %c1_i32_13 = arith.constant 1 : i32
    %28 = tpu.dynamic_rotate %27 by %c1_i32_13 dim 0 : vector<512x128xf32>, i32 -> vector<512x128xf32>
    %29 = vector.broadcast %0 : vector<512x1xf32> to vector<512x128xf32>
    %30 = arith.mulf %28, %29 : vector<512x128xf32>
    %31 = vector.extract_strided_slice %26 {offsets = [0, 128], sizes = [512, 128], strides = [1, 1]} : vector<512x384xf32> to vector<512x128xf32>
    %32 = vector.extract_strided_slice %26 {offsets = [0, 256], sizes = [512, 128], strides = [1, 1]} : vector<512x384xf32> to vector<512x128xf32>
    %c511_i32_14 = arith.constant 511 : i32
    %33 = tpu.dynamic_rotate %32 by %c511_i32_14 dim 0 : vector<512x128xf32>, i32 -> vector<512x128xf32>
    %34 = vector.broadcast %1 : vector<512x1xf32> to vector<512x128xf32>
    %35 = arith.mulf %33, %34 : vector<512x128xf32>
    %36 = arith.addf %30, %31 : vector<512x128xf32>
    %37 = arith.addf %36, %35 : vector<512x128xf32>
    %c0_15 = arith.constant 0 : index
    %c0_16 = arith.constant 0 : index
    %38 = vector.load %arg7[%c0_15, %c0_16] : memref<1x128xf32, #tpu.memory_space<vmem>>, vector<1x128xf32>
    %39 = vector.broadcast %38 : vector<1x128xf32> to vector<512x128xf32>
    %40 = arith.addf %37, %39 : vector<512x128xf32>
    %41 = arith.negf %40 : vector<512x128xf32>
    %42 = math.exp %41 : vector<512x128xf32>
    %cst_17 = arith.constant 1.000000e+00 : f32
    %43 = vector.broadcast %cst_17 : f32 to vector<512x128xf32>
    %44 = arith.addf %43, %42 : vector<512x128xf32>
    %45 = arith.divf %43, %44 : vector<512x128xf32>
    %46 = arith.mulf %40, %45 : vector<512x128xf32>
    %c0_18 = arith.constant 0 : index
    %c0_19 = arith.constant 0 : index
    %47 = vector.load %arg8[%c0_18, %c0_19] : memref<128x384xf32, #tpu.memory_space<vmem>>, vector<128x384xf32>
    %cst_20 = arith.constant dense<0.000000e+00> : vector<512x384xf32>
    %48 = tpu.matmul %46, %47, %cst_20 {dimension_numbers = #tpu.dot_dimension_numbers<[1], [0], [0], [1], [0, 0, 1, 1], [], []>} : vector<512x128xf32>, vector<128x384xf32>, vector<512x384xf32> -> vector<512x384xf32>
    %49 = vector.extract_strided_slice %48 {offsets = [0, 0], sizes = [512, 128], strides = [1, 1]} : vector<512x384xf32> to vector<512x128xf32>
    %c1_i32_21 = arith.constant 1 : i32
    %50 = tpu.dynamic_rotate %49 by %c1_i32_21 dim 0 : vector<512x128xf32>, i32 -> vector<512x128xf32>
    %51 = vector.broadcast %0 : vector<512x1xf32> to vector<512x128xf32>
    %52 = arith.mulf %50, %51 : vector<512x128xf32>
    %53 = vector.extract_strided_slice %48 {offsets = [0, 128], sizes = [512, 128], strides = [1, 1]} : vector<512x384xf32> to vector<512x128xf32>
    %54 = vector.extract_strided_slice %48 {offsets = [0, 256], sizes = [512, 128], strides = [1, 1]} : vector<512x384xf32> to vector<512x128xf32>
    %c511_i32_22 = arith.constant 511 : i32
    %55 = tpu.dynamic_rotate %54 by %c511_i32_22 dim 0 : vector<512x128xf32>, i32 -> vector<512x128xf32>
    %56 = vector.broadcast %1 : vector<512x1xf32> to vector<512x128xf32>
    %57 = arith.mulf %55, %56 : vector<512x128xf32>
    %58 = arith.addf %52, %53 : vector<512x128xf32>
    %59 = arith.addf %58, %57 : vector<512x128xf32>
    %c0_23 = arith.constant 0 : index
    %c0_24 = arith.constant 0 : index
    %60 = vector.load %arg9[%c0_23, %c0_24] : memref<1x128xf32, #tpu.memory_space<vmem>>, vector<1x128xf32>
    %61 = vector.broadcast %60 : vector<1x128xf32> to vector<512x128xf32>
    %62 = arith.addf %59, %61 : vector<512x128xf32>
    %63 = arith.negf %62 : vector<512x128xf32>
    %64 = math.exp %63 : vector<512x128xf32>
    %cst_25 = arith.constant 1.000000e+00 : f32
    %65 = vector.broadcast %cst_25 : f32 to vector<512x128xf32>
    %66 = arith.addf %65, %64 : vector<512x128xf32>
    %67 = arith.divf %65, %66 : vector<512x128xf32>
    %68 = arith.mulf %62, %67 : vector<512x128xf32>
    %69 = vector.shape_cast %68 : vector<512x128xf32> to vector<64x8x128xf32>
    %cst_26 = arith.constant dense<0xFF800000> : vector<64x128xf32>
    %70 = vector.multi_reduction <maximumf>, %69, %cst_26 [1] : vector<64x8x128xf32> to vector<64x128xf32>
    %c0_27 = arith.constant 0 : index
    %c0_28 = arith.constant 0 : index
    %71 = vector.load %arg10[%c0_27, %c0_28] : memref<64x128xf32, #tpu.memory_space<vmem>>, vector<64x128xf32>
    tpu.vector_store %arg10[%c0_27, %c0_28], %70 {strides = array<i32>} : memref<64x128xf32, #tpu.memory_space<vmem>>, vector<64x128xf32>,
    return
  }
  func.func @transform_0(%arg0: i32) -> (i32, i32) {
    %c0_i32 = arith.constant 0 : i32
    %c0_i32_0 = arith.constant 0 : i32
    return %arg0, %c0_i32 : i32, i32
  }
  func.func @transform_1(%arg0: i32) -> (i32, i32) {
    %c0_i32 = arith.constant 0 : i32
    %c0_i32_0 = arith.constant 0 : i32
    %c0_i32_1 = arith.constant 0 : i32
    return %c0_i32, %c0_i32_0 : i32, i32
  }
  func.func @transform_2(%arg0: i32) -> (i32, i32) {
    %c0_i32 = arith.constant 0 : i32
    %c0_i32_0 = arith.constant 0 : i32
    %c0_i32_1 = arith.constant 0 : i32
    return %c0_i32, %c0_i32_0 : i32, i32
  }
  func.func @transform_3(%arg0: i32) -> (i32, i32) {
    %c0_i32 = arith.constant 0 : i32
    %c0_i32_0 = arith.constant 0 : i32
    %c0_i32_1 = arith.constant 0 : i32
    return %c0_i32, %c0_i32_0 : i32, i32
  }
  func.func @transform_4(%arg0: i32) -> (i32, i32) {
    %c0_i32 = arith.constant 0 : i32
    %c0_i32_0 = arith.constant 0 : i32
    %c0_i32_1 = arith.constant 0 : i32
    return %c0_i32, %c0_i32_0 : i32, i32
  }
  func.func @transform_5(%arg0: i32) -> (i32, i32) {
    %c0_i32 = arith.constant 0 : i32
    %c0_i32_0 = arith.constant 0 : i32
    %c0_i32_1 = arith.constant 0 : i32
    return %c0_i32, %c0_i32_0 : i32, i32
  }
  func.func @transform_6(%arg0: i32) -> (i32, i32) {
    %c0_i32 = arith.constant 0 : i32
    %c0_i32_0 = arith.constant 0 : i32
    %c0_i32_1 = arith.constant 0 : i32
    return %c0_i32, %c0_i32_0 : i32, i32
  }
  func.func @transform_7(%arg0: i32) -> (i32, i32) {
    %c0_i32 = arith.constant 0 : i32
    %c0_i32_0 = arith.constant 0 : i32
    %c0_i32_1 = arith.constant 0 : i32
    return %c0_i32, %c0_i32_0 : i32, i32
  }
  func.func @transform_8(%arg0: i32) -> (i32, i32) {
    %c0_i32 = arith.constant 0 : i32
    %c0_i32_0 = arith.constant 0 : i32
    %c0_i32_1 = arith.constant 0 : i32
    return %c0_i32, %c0_i32_0 : i32, i32
  }
  func.func @transform_9(%arg0: i32) -> (i32, i32) {
    %c0_i32 = arith.constant 0 : i32
    %c0_i32_0 = arith.constant 0 : i32
    return %arg0, %c0_i32 : i32, i32
  }
}

</mosaic_0001>

<bundles_post_ra>
// kernel: squasher_forward_batched.1
= control target key start
LH: loop header
LB: loop body
LE: loop exit
PB: predicated region body
PF: predicated region fallthrough
CT: control target
= control target key end

     0   :  { %v8942_v0 = vmov 0   ;;  %v14961_v12 = vmov 0.0   ;;  %vm7055_vm2 = vcmask 1041409   ;;  %vm7057_vm3 = vcmask 1042434   ;;  %s14951_s1 = inlined_call_operand.vmem [shape: f32[512,1], index: 1, kind: input, shape index: {}]   ;;  %s14952_s3 = inlined_call_operand.vmem [shape: f32[128,384], index: 3, kind: input, shape index: {}]   ;;  %s14953_s2 = inlined_call_operand.vmem [shape: f32[512,1], index: 2, kind: input, shape index: {}]   ;;  %s14954_s0 = inlined_call_operand.vmem [shape: f32[512,128], index: 0, kind: input, shape index: {}]   ;;  %s14955_s5 = inlined_call_operand.vmem [shape: f32[128,384], index: 5, kind: input, shape index: {}]   ;;  %s14956_s4 = inlined_call_operand.vmem [shape: f32[1,128], index: 4, kind: input, shape index: {}]   ;;  %s14957_s7 = inlined_call_operand.vmem [shape: f32[128,384], index: 7, kind: input, shape index: {}]   ;;  %s14958_s6 = inlined_call_operand.vmem [shape: f32[1,128], index: 6, kind: input, shape index: {}]   ;;  %s14959_s8 = inlined_call_operand.vmem [shape: f32[1,128], index: 8, kind: input, shape index: {}]   ;;  %s14960_s9 = inlined_call_operand.vmem [shape: f32[64,128], index: 9, kind: output, shape index: {}]  }
   0x1   :  { %8168 = vset.pattern.permute.xlu1 %v8942_v0  ;;  %8167 = vset.pattern.permute.xlu0 %v8942_v0  ;;  %v33_v1 = vld [vmem:[%s14951_s1 + $0x8] sm:$0xff]  ;;  %v32_v2 = vld [vmem:[%s14951_s1] sm:$0xff]  ;;  %v227_v6 = vld [vmem:[%s14952_s3 + $0x18] sm:$0xff]  ;;  %vm7059_vm4 = vcmask 1043459   ;;  %vm7061_vm5 = vcmask 1044484   ;;  %vm7063_vm6 = vcmask 1045509  }
   0x2   :  { %v225_v3 = vld [vmem:[%s14952_s3 + $0x8] sm:$0xff]  ;;  %1244 = vperm.xlu1 %8168, %v33_v1   ;;  %1239 = vperm.xlu0 %8167, %v32_v2   ;;  %v228_v4 = vld [vmem:[%s14952_s3 + $0x20] sm:$0xff]  ;;  %v231_v11 = vld [vmem:[%s14952_s3 + $0x38] sm:$0xff]  ;;  %vm7065_vm7 = vcmask 1046534   ;;  %vm7067_vm8 = vcmask 1047559  }
   0x3   :  { %v224_v5 = vld [vmem:[%s14952_s3] sm:$0xff]  ;;  %v7957_v7 = vpack.c.bf16 %v228_v4, %v225_v3  ;;  %v97_v9 = vld [vmem:[%s14953_s2 + $0x8] sm:$0xff]  ;;  %336 = vmatprep.mubr.f32.mxu0 %v14961_v12  ;;  %624 = vmatprep.mubr.f32.mxu1 %v14961_v12  ;;  %v234_v13 = vld [vmem:[%s14952_s3 + $0x50] sm:$0xff] }
   0x4   :  { %v7959_v8 = vpack.c.bf16 %v227_v6, %v224_v5  ;;  %v96_v10 = vld [vmem:[%s14953_s2] sm:$0xff]  ;;  %v230_v14 = vld [vmem:[%s14952_s3 + $0x30] sm:$0xff]  ;;  %v233_v15 = vld [vmem:[%s14952_s3 + $0x48] sm:$0xff]  ;;  %v7961_v16 = vpack.c.bf16 %v234_v13, %v231_v11 }
   0x5   :  { %7958 = vmatprep.subr.bf16.mxu0 %v7957_v7  ;;  %8149 = vmatprep.subr.bf16.mxu1 %v7957_v7  ;;  %v237_v17 = vld [vmem:[%s14952_s3 + $0x68] sm:$0xff]  ;;  %v7963_v18 = vpack.c.bf16 %v233_v15, %v230_v14  ;;  %v240_v19 = vld [vmem:[%s14952_s3 + $0x80] sm:$0xff]  ;;  %v239_v21 = vld [vmem:[%s14952_s3 + $0x78] sm:$0xff] }
   0x6   :  { %7960 = vmatpush1.bf16.msra.mxu0 %v7959_v8  ;;  %8157 = vmatpush1.bf16.msra.mxu1 %v7959_v8  ;;  %v236_v20 = vld [vmem:[%s14952_s3 + $0x60] sm:$0xff]  ;;  %v98_v22 = vld [vmem:[%s14953_s2 + $0x10] sm:$0xff]  ;;  %v7965_v24 = vpack.c.bf16 %v240_v19, %v237_v17  ;;  %v243_v25 = vld [vmem:[%s14952_s3 + $0x98] sm:$0xff] }
   0x7   :  { %1757 = vperm.xlu1 %8168, %v97_v9   ;;  %1752 = vperm.xlu0 %8167, %v96_v10   ;;  %v34_v23 = vld [vmem:[%s14951_s1 + $0x10] sm:$0xff]  ;;  %v7967_v27 = vpack.c.bf16 %v239_v21, %v236_v20  ;;  %v245_v29 = vld [vmem:[%s14952_s3 + $0xa8] sm:$0xff]  ;;  %v99_v30 = vld [vmem:[%s14953_s2 + $0x18] sm:$0xff] }
   0x8   :  { %7962 = vmatprep.subr.bf16.mxu0 %v7961_v16  ;;  %8150 = vmatprep.subr.bf16.mxu1 %v7961_v16  ;;  %v246_v26 = vld [vmem:[%s14952_s3 + $0xb0] sm:$0xff]  ;;  %v35_v31 = vld [vmem:[%s14951_s1 + $0x18] sm:$0xff]  ;;  %v249_v33 = vld [vmem:[%s14952_s3 + $0xc8] sm:$0xff] }
   0x9   :  { %v242_v28 = vld [vmem:[%s14952_s3 + $0x90] sm:$0xff]  ;;  %v7969_v32 = vpack.c.bf16 %v246_v26, %v243_v25  ;;  %v252_v34 = vld [vmem:[%s14952_s3 + $0xe0] sm:$0xff]  ;;  %v251_v37 = vld [vmem:[%s14952_s3 + $0xd8] sm:$0xff] }
   0xa   :  { %7964 = vmatpush1.bf16.msra.mxu0 %v7963_v18  ;;  %8158 = vmatpush1.bf16.msra.mxu1 %v7963_v18  ;;  %v7971_v35 = vpack.c.bf16 %v245_v29, %v242_v28  ;;  %v248_v36 = vld [vmem:[%s14952_s3 + $0xc0] sm:$0xff]  ;;  %v7973_v40 = vpack.c.bf16 %v252_v34, %v249_v33  ;;  %v255_v41 = vld [vmem:[%s14952_s3 + $0xf8] sm:$0xff]  ;;  %v258_v42 = vld [vmem:[%s14952_s3 + $0x110] sm:$0xff] }
   0xb   :  { %1762 = vperm.xlu1 %8168, %v98_v22   ;;  %1249 = vperm.xlu0 %8167, %v34_v23   ;;  %v100_v38 = vld [vmem:[%s14953_s2 + $0x20] sm:$0xff]  ;;  %v7975_v43 = vpack.c.bf16 %v251_v37, %v248_v36  ;;  %v254_v44 = vld [vmem:[%s14952_s3 + $0xf0] sm:$0xff]  ;;  %v257_v45 = vld [vmem:[%s14952_s3 + $0x108] sm:$0xff]  ;;  %v7977_v48 = vpack.c.bf16 %v258_v42, %v255_v41 }
   0xc   :  { %7966 = vmatprep.subr.bf16.mxu0 %v7965_v24  ;;  %8151 = vmatprep.subr.bf16.mxu1 %v7965_v24  ;;  %v36_v39 = vld [vmem:[%s14951_s1 + $0x20] sm:$0xff]  ;;  %v101_v46 = vld [vmem:[%s14953_s2 + $0x28] sm:$0xff]  ;;  %v7979_v51 = vpack.c.bf16 %v257_v45, %v254_v44  ;;  %v263_v53 = vld [vmem:[%s14952_s3 + $0x138] sm:$0xff] }
   0xd   :  { %v37_v47 = vld [vmem:[%s14951_s1 + $0x28] sm:$0xff]  ;;  %v264_v50 = vld [vmem:[%s14952_s3 + $0x140] sm:$0xff]  ;;  %v102_v54 = vld [vmem:[%s14953_s2 + $0x30] sm:$0xff] }
   0xe   :  { %7968 = vmatpush1.bf16.msra.mxu0 %v7967_v27  ;;  %8159 = vmatpush1.bf16.msra.mxu1 %v7967_v27  ;;  %v261_v49 = vld [vmem:[%s14952_s3 + $0x128] sm:$0xff]  ;;  %v260_v52 = vld [vmem:[%s14952_s3 + $0x120] sm:$0xff]  ;;  %v38_v55 = vld [vmem:[%s14951_s1 + $0x30] sm:$0xff] }
   0xf   :  { %1767 = vperm.xlu1 %8168, %v99_v30   ;;  %1254 = vperm.xlu0 %8167, %v35_v31   ;;  %v7981_v56 = vpack.c.bf16 %v264_v50, %v261_v49  ;;  %v267_v57 = vld [vmem:[%s14952_s3 + $0x158] sm:$0xff]  ;;  %v270_v58 = vld [vmem:[%s14952_s3 + $0x170] sm:$0xff]  ;;  %v7983_v59 = vpack.c.bf16 %v263_v53, %v260_v52  ;;  %v269_v61 = vld [vmem:[%s14952_s3 + $0x168] sm:$0xff] }
  0x10   :  { %7970 = vmatprep.subr.bf16.mxu0 %v7969_v32  ;;  %8152 = vmatprep.subr.bf16.mxu1 %v7969_v32  ;;  %v266_v60 = vld [vmem:[%s14952_s3 + $0x150] sm:$0xff]  ;;  %v103_v62 = vld [vmem:[%s14953_s2 + $0x38] sm:$0xff]  ;;  %v7985_v0 = vpack.c.bf16 %v270_v58, %v267_v57  ;;  %v229_v2 = vld [vmem:[%s14952_s3 + $0x28] sm:$0xff] }
  0x11   :  { %v39_v63 = vld [vmem:[%s14951_s1 + $0x38] sm:$0xff]  ;;  %v226_v1 = vld [vmem:[%s14952_s3 + $0x10] sm:$0xff]  ;;  %v7987_v3 = vpack.c.bf16 %v269_v61, %v266_v60  ;;  %v104_v4 = vld [vmem:[%s14953_s2 + $0x40] sm:$0xff] }
  0x12   :  { %7972 = vmatpush1.bf16.msra.mxu0 %v7971_v35  ;;  %8160 = vmatpush1.bf16.msra.mxu1 %v7971_v35  ;;  %v40_v5 = vld [vmem:[%s14951_s1 + $0x40] sm:$0xff]  ;;  %v7989_v6 = vpack.c.bf16 %v229_v2, %v226_v1  ;;  %v235_v8 = vld [vmem:[%s14952_s3 + $0x58] sm:$0xff]  ;;  %v105_v11 = vld [vmem:[%s14953_s2 + $0x48] sm:$0xff] }
  0x13   :  { %1772 = vperm.xlu1 %8168, %v100_v38   ;;  %1259 = vperm.xlu0 %8167, %v36_v39   ;;  %v232_v7 = vld [vmem:[%s14952_s3 + $0x40] sm:$0xff]  ;;  %v41_v13 = vld [vmem:[%s14951_s1 + $0x48] sm:$0xff]  ;;  %v106_v17 = vld [vmem:[%s14953_s2 + $0x50] sm:$0xff] }
  0x14   :  { %7974 = vmatprep.subr.bf16.mxu0 %v7973_v40  ;;  %8153 = vmatprep.subr.bf16.mxu1 %v7973_v40  ;;  %v9161_v9 = vld [vmem:[%s14954_s0] sm:$0xff]  ;;  %v7993_v14 = vpack.c.bf16 %v235_v8, %v232_v7  ;;  %v9180_v15 = vld [vmem:[%s14954_s0 + $0x8] sm:$0xff]  ;;  %v42_v18 = vld [vmem:[%s14951_s1 + $0x50] sm:$0xff] }
  0x15   :  { %v9166_v10 = vld [vmem:[%s14954_s0 + $0x180] sm:$0xff]  ;;  %v9185_v16 = vld [vmem:[%s14954_s0 + $0x188] sm:$0xff]  ;;  %v238_v19 = vld [vmem:[%s14952_s3 + $0x70] sm:$0xff] }
  0x16   :  { %7976 = vmatpush1.bf16.msra.mxu0 %v7975_v43  ;;  %8161 = vmatpush1.bf16.msra.mxu1 %v7975_v43  ;;  %v241_v20 = vld [vmem:[%s14952_s3 + $0x88] sm:$0xff]  ;;  %v9207_v21 = vld [vmem:[%s14954_s0 + $0x10] sm:$0xff]  ;;  %v107_v23 = vld [vmem:[%s14953_s2 + $0x58] sm:$0xff] }
  0x17   :  { %1777 = vperm.xlu1 %8168, %v101_v46   ;;  %1264 = vperm.xlu0 %8167, %v37_v47   ;;  %v9212_v22 = vld [vmem:[%s14954_s0 + $0x190] sm:$0xff]  ;;  %v43_v24 = vld [vmem:[%s14951_s1 + $0x58] sm:$0xff]  ;;  %v7997_v25 = vpack.c.bf16 %v241_v20, %v238_v19  ;;  %v108_v28 = vld [vmem:[%s14953_s2 + $0x60] sm:$0xff] }
  0x18   :  { %7978 = vmatprep.subr.bf16.mxu0 %v7977_v48  ;;  %8154 = vmatprep.subr.bf16.mxu1 %v7977_v48  ;;  %v9227_v26 = vld [vmem:[%s14954_s0 + $0x18] sm:$0xff]  ;;  %v44_v29 = vld [vmem:[%s14951_s1 + $0x60] sm:$0xff]  ;;  %v109_v34 = vld [vmem:[%s14953_s2 + $0x68] sm:$0xff] }
  0x19   :  { %v9232_v27 = vld [vmem:[%s14954_s0 + $0x198] sm:$0xff]  ;;  %v244_v30 = vld [vmem:[%s14952_s3 + $0xa0] sm:$0xff]  ;;  %v45_v35 = vld [vmem:[%s14951_s1 + $0x68] sm:$0xff] }
  0x1a   :  { %7980 = vmatpush1.bf16.msra.mxu0 %v7979_v51  ;;  %8162 = vmatpush1.bf16.msra.mxu1 %v7979_v51  ;;  %v247_v31 = vld [vmem:[%s14952_s3 + $0xb8] sm:$0xff]  ;;  %v9253_v32 = vld [vmem:[%s14954_s0 + $0x20] sm:$0xff]  ;;  %v9273_v37 = vld [vmem:[%s14954_s0 + $0x28] sm:$0xff] }
  0x1b   :  { %1782 = vperm.xlu1 %8168, %v102_v54   ;;  %1269 = vperm.xlu0 %8167, %v38_v55   ;;  %v9258_v33 = vld [vmem:[%s14954_s0 + $0x1a0] sm:$0xff]  ;;  %v8001_v36 = vpack.c.bf16 %v247_v31, %v244_v30  ;;  %v9278_v38 = vld [vmem:[%s14954_s0 + $0x1a8] sm:$0xff]  ;;  %v110_v39 = vld [vmem:[%s14953_s2 + $0x70] sm:$0xff] }
  0x1c   :  { %7982 = vmatprep.subr.bf16.mxu0 %v7981_v56  ;;  %8155 = vmatprep.subr.bf16.mxu1 %v7981_v56  ;;  %v46_v40 = vld [vmem:[%s14951_s1 + $0x70] sm:$0xff]  ;;  %v253_v42 = vld [vmem:[%s14952_s3 + $0xe8] sm:$0xff]  ;;  %v111_v45 = vld [vmem:[%s14953_s2 + $0x78] sm:$0xff] }
  0x1d   :  { %v250_v41 = vld [vmem:[%s14952_s3 + $0xd0] sm:$0xff]  ;;  %v47_v46 = vld [vmem:[%s14951_s1 + $0x78] sm:$0xff]  ;;  %v112_v50 = vld [vmem:[%s14953_s2 + $0x80] sm:$0xff] }
  0x1e   :  { %7984 = vmatpush1.bf16.msra.mxu0 %v7983_v59  ;;  %8163 = vmatpush1.bf16.msra.mxu1 %v7983_v59  ;;  %v9299_v43 = vld [vmem:[%s14954_s0 + $0x30] sm:$0xff]  ;;  %v8005_v47 = vpack.c.bf16 %v253_v42, %v250_v41  ;;  %v9319_v48 = vld [vmem:[%s14954_s0 + $0x38] sm:$0xff]  ;;  %v48_v51 = vld [vmem:[%s14951_s1 + $0x80] sm:$0xff] }
  0x1f   :  { %1787 = vperm.xlu1 %8168, %v103_v62   ;;  %1274 = vperm.xlu0 %8167, %v39_v63   ;;  %v9304_v44 = vld [vmem:[%s14954_s0 + $0x1b0] sm:$0xff]  ;;  %v9324_v49 = vld [vmem:[%s14954_s0 + $0x1b8] sm:$0xff]  ;;  %v256_v52 = vld [vmem:[%s14952_s3 + $0x100] sm:$0xff] }
  0x20   :  { %7986 = vmatprep.subr.bf16.mxu0 %v7985_v0  ;;  %8156 = vmatprep.subr.bf16.mxu1 %v7985_v0  ;;  %v259_v53 = vld [vmem:[%s14952_s3 + $0x118] sm:$0xff]  ;;  %v9345_v54 = vld [vmem:[%s14954_s0 + $0x40] sm:$0xff]  ;;  %v113_v56 = vld [vmem:[%s14953_s2 + $0x88] sm:$0xff] }
  0x21   :  { %v9350_v55 = vld [vmem:[%s14954_s0 + $0x1c0] sm:$0xff]  ;;  %v49_v57 = vld [vmem:[%s14951_s1 + $0x88] sm:$0xff]  ;;  %v8009_v58 = vpack.c.bf16 %v259_v53, %v256_v52  ;;  %v114_v61 = vld [vmem:[%s14953_s2 + $0x90] sm:$0xff] }
  0x22   :  { %7988 = vmatpush1.bf16.msra.mxu0 %v7987_v3  ;;  %8164 = vmatpush1.bf16.msra.mxu1 %v7987_v3  ;;  %v9365_v59 = vld [vmem:[%s14954_s0 + $0x48] sm:$0xff]  ;;  %v50_v62 = vld [vmem:[%s14951_s1 + $0x90] sm:$0xff]  ;;  %v115_v3 = vld [vmem:[%s14953_s2 + $0x98] sm:$0xff] }
  0x23   :  { %1792 = vperm.xlu1 %8168, %v104_v4   ;;  %1279 = vperm.xlu0 %8167, %v40_v5   ;;  %v9370_v60 = vld [vmem:[%s14954_s0 + $0x1c8] sm:$0xff]  ;;  %v262_v63 = vld [vmem:[%s14952_s3 + $0x130] sm:$0xff]  ;;  %v51_v4 = vld [vmem:[%s14951_s1 + $0x98] sm:$0xff] }
  0x24   :  { %7990 = vmatprep.subr.bf16.mxu1 %v7989_v6  ;;  %v265_v0 = vld [vmem:[%s14952_s3 + $0x148] sm:$0xff]  ;;  %v9391_v1 = vld [vmem:[%s14954_s0 + $0x50] sm:$0xff]  ;;  %v9416_v7 = vld [vmem:[%s14954_s0 + $0x1d8] sm:$0xff] }
  0x25   :  { %337 = vmatmul.mubr.f32.vlgmr.msra.gmra.mrb[0].mxu0 %v9161_v9  ;;  %625 = vmatmul.mubr.f32.vlgmr.msra.gmra.mrb[0].mxu1 %v9166_v10  ;;  %v9396_v2 = vld [vmem:[%s14954_s0 + $0x1d0] sm:$0xff]  ;;  %v8013_v5 = vpack.c.bf16 %v265_v0, %v262_v63  ;;  %v116_v8 = vld [vmem:[%s14953_s2 + $0xa0] sm:$0xff]  ;;  %v117_v19 = vld [vmem:[%s14953_s2 + $0xa8] sm:$0xff] }
  0x26   :  { %7992 = vmatpush3.bf16.msra.mxu1 %v7989_v6  ;;  %342 = vmatprep.mubr.f32.mxu0 %v14961_v12  ;;  %v9411_v6 = vld [vmem:[%s14954_s0 + $0x58] sm:$0xff]  ;;  %v53_v20 = vld [vmem:[%s14951_s1 + $0xa8] sm:$0xff]  ;;  %v9477_v30 = vld [vmem:[%s14954_s0 + $0x70] sm:$0xff] }
  0x27   :  { %1797 = vperm.xlu1 %8168, %v105_v11   ;;  %1284 = vperm.xlu0 %8167, %v41_v13   ;;  %v52_v11 = vld [vmem:[%s14951_s1 + $0xa0] sm:$0xff]  ;;  %v9482_v31 = vld [vmem:[%s14954_s0 + $0x1f0] sm:$0xff]  ;;  %v2782_v42 = vld [vmem:[%s14955_s5 + $0x8] sm:$0xff] }
  0x28   :  { %630 = vmatprep.mubr.f32.mxu1 %v14961_v12  ;;  %7994 = vmatprep.subr.bf16.mxu1 %v7993_v14  ;;  %v268_v13 = vld [vmem:[%s14952_s3 + $0x160] sm:$0xff]  ;;  %v121_v52 = vld [vmem:[%s14953_s2 + $0xc8] sm:$0xff]  ;;  %v2787_v0 = vld [vmem:[%s14955_s5 + $0x30] sm:$0xff] }
  0x29   :  { %343 = vmatmul.mubr.f32.gmra.mrb[2].mxu0 %v9180_v15  ;;  %631 = vmatmul.mubr.f32.gmra.mrb[2].mxu1 %v9185_v16  ;;  %v56_v41 = vld [vmem:[%s14951_s1 + $0xc0] sm:$0xff]  ;;  %v57_v53 = vld [vmem:[%s14951_s1 + $0xc8] sm:$0xff] }
  0x2a   :  { %348 = vmatprep.mubr.f32.mxu0 %v14961_v12  ;;  %636 = vmatprep.mubr.f32.mxu1 %v14961_v12 }
  0x2b   :  { %1802 = vperm.xlu1 %8168, %v106_v17   ;;  %1289 = vperm.xlu0 %8167, %v42_v18   ;;  %v9437_v17 = vld [vmem:[%s14954_s0 + $0x60] sm:$0xff] }
  0x2c   :  { %7996 = vmatpush3.bf16.msra.mxu1 %v7993_v14  ;;  %v271_v14 = vld [vmem:[%s14952_s3 + $0x178] sm:$0xff]  ;;  %v9442_v18 = vld [vmem:[%s14954_s0 + $0x1e0] sm:$0xff] }
  0x2d   :  { %349 = vmatmul.mubr.f32.gmra.mrb[4].mxu0 %v9207_v21  ;;  %637 = vmatmul.mubr.f32.gmra.mrb[4].mxu1 %v9212_v22 }
  0x2e   :  { %354 = vmatprep.mubr.f32.mxu0 %v14961_v12  ;;  %642 = vmatprep.mubr.f32.mxu1 %v14961_v12 }
  0x2f   :  { %1807 = vperm.xlu1 %8168, %v107_v23   ;;  %1294 = vperm.xlu0 %8167, %v43_v24   ;;  %v8017_v23 = vpack.c.bf16 %v271_v14, %v268_v13  ;;  %v9457_v24 = vld [vmem:[%s14954_s0 + $0x68] sm:$0xff]  ;;  %v62_v13 = vld [vmem:[%s14951_s1 + $0xf0] sm:$0xff]  ;;  %v63_v14 = vld [vmem:[%s14951_s1 + $0xf8] sm:$0xff] }
  0x30   :  { %7998 = vmatprep.subr.bf16.mxu1 %v7997_v25 }
  0x31   :  { %355 = vmatmul.mubr.f32.gmra.mrb[6].mxu0 %v9227_v26  ;;  %643 = vmatmul.mubr.f32.gmra.mrb[6].mxu1 %v9232_v27 }
  0x32   :  { %360 = vmatprep.mubr.f32.mxu0 %v14961_v12  ;;  %648 = vmatprep.mubr.f32.mxu1 %v14961_v12 }
  0x33   :  { %1812 = vperm.xlu1 %8168, %v108_v28   ;;  %1299 = vperm.xlu0 %8167, %v44_v29   ;;  %v118_v28 = vld [vmem:[%s14953_s2 + $0xb0] sm:$0xff] }
  0x34   :  { %8000 = vmatpush3.bf16.msra.mxu1 %v7997_v25  ;;  %v9462_v25 = vld [vmem:[%s14954_s0 + $0x1e8] sm:$0xff]  ;;  %v54_v29 = vld [vmem:[%s14951_s1 + $0xb0] sm:$0xff] }
  0x35   :  { %361 = vmatmul.mubr.f32.gmra.mrb[8].mxu0 %v9253_v32  ;;  %649 = vmatmul.mubr.f32.gmra.mrb[8].mxu1 %v9258_v33 }
  0x36   :  { %366 = vmatprep.mubr.f32.mxu0 %v14961_v12  ;;  %654 = vmatprep.mubr.f32.mxu1 %v14961_v12 }
  0x37   :  { %1817 = vperm.xlu1 %8168, %v109_v34   ;;  %1304 = vperm.xlu0 %8167, %v45_v35   ;;  %v119_v34 = vld [vmem:[%s14953_s2 + $0xb8] sm:$0xff] }
  0x38   :  { %8002 = vmatprep.subr.bf16.mxu1 %v8001_v36  ;;  %v55_v35 = vld [vmem:[%s14951_s1 + $0xb8] sm:$0xff] }
  0x39   :  { %367 = vmatmul.mubr.f32.gmra.mrb[10].mxu0 %v9273_v37  ;;  %655 = vmatmul.mubr.f32.gmra.mrb[10].mxu1 %v9278_v38 }
  0x3a   :  { %372 = vmatprep.mubr.f32.mxu0 %v14961_v12  ;;  %660 = vmatprep.mubr.f32.mxu1 %v14961_v12 }
  0x3b   :  { %1822 = vperm.xlu1 %8168, %v110_v39   ;;  %1309 = vperm.xlu0 %8167, %v46_v40   ;;  %v9502_v39 = vld [vmem:[%s14954_s0 + $0x1f8] sm:$0xff]  ;;  %v120_v40 = vld [vmem:[%s14953_s2 + $0xc0] sm:$0xff] }
  0x3c   :  { %8004 = vmatpush3.bf16.msra.mxu1 %v8001_v36  ;;  %v9497_v36 = vld [vmem:[%s14954_s0 + $0x78] sm:$0xff] }
  0x3d   :  { %373 = vmatmul.mubr.f32.gmra.mrb[12].mxu0 %v9299_v43  ;;  %661 = vmatmul.mubr.f32.gmra.mrb[12].mxu1 %v9304_v44 }
  0x3e   :  { %378 = vmatprep.mubr.f32.mxu0 %v14961_v12  ;;  %666 = vmatprep.mubr.f32.mxu1 %v14961_v12 }
  0x3f   :  { %1827 = vperm.xlu1 %8168, %v111_v45   ;;  %1314 = vperm.xlu0 %8167, %v47_v46   ;;  %v2785_v45 = vld [vmem:[%s14955_s5 + $0x20] sm:$0xff] }
  0x40   :  { %8006 = vmatprep.subr.bf16.mxu1 %v8005_v47  ;;  %v8021_v46 = vpack.c.bf16 %v2785_v45, %v2782_v42 }
  0x41   :  { %379 = vmatmul.mubr.f32.gmra.mrb[14].mxu0 %v9319_v48  ;;  %667 = vmatmul.mubr.f32.gmra.mrb[14].mxu1 %v9324_v49 }
  0x42   :  { %384 = vmatprep.mubr.f32.mxu0 %v14961_v12  ;;  %672 = vmatprep.mubr.f32.mxu1 %v14961_v12 }
  0x43   :  { %1832 = vperm.xlu1 %8168, %v112_v50   ;;  %1319 = vperm.xlu0 %8167, %v48_v51   ;;  %v2784_v50 = vld [vmem:[%s14955_s5 + $0x18] sm:$0xff]  ;;  %v9529_v51 = vld [vmem:[%s14954_s0 + $0x80] sm:$0xff] }
  0x44   :  { %8008 = vmatpush3.bf16.msra.mxu1 %v8005_v47  ;;  %v2781_v47 = vld [vmem:[%s14955_s5] sm:$0xff] }
  0x45   :  { %385 = vmatmul.mubr.f32.gmra.mrb[16].mxu0 %v9345_v54  ;;  %673 = vmatmul.mubr.f32.gmra.mrb[16].mxu1 %v9350_v55 }
  0x46   :  { %390 = vmatprep.mubr.f32.mxu0 %v14961_v12  ;;  %678 = vmatprep.mubr.f32.mxu1 %v14961_v12 }
  0x47   :  { %1837 = vperm.xlu1 %8168, %v113_v56   ;;  %1324 = vperm.xlu0 %8167, %v49_v57   ;;  %v8023_v56 = vpack.c.bf16 %v2784_v50, %v2781_v47  ;;  %v122_v57 = vld [vmem:[%s14953_s2 + $0xd0] sm:$0xff] }
  0x48   :  { %8010 = vmatprep.subr.bf16.mxu1 %v8009_v58  ;;  %v130_v47 = vld [vmem:[%s14953_s2 + $0x110] sm:$0xff] }
  0x49   :  { %391 = vmatmul.mubr.f32.gmra.mrb[18].mxu0 %v9365_v59  ;;  %679 = vmatmul.mubr.f32.gmra.mrb[18].mxu1 %v9370_v60  ;;  %v66_v50 = vld [vmem:[%s14951_s1 + $0x110] sm:$0xff] }
  0x4a   :  { %396 = vmatprep.mubr.f32.mxu0 %v14961_v12  ;;  %684 = vmatprep.mubr.f32.mxu1 %v14961_v12 }
  0x4b   :  { %1842 = vperm.xlu1 %8168, %v114_v61   ;;  %1329 = vperm.xlu0 %8167, %v50_v62   ;;  %v59_v61 = vld [vmem:[%s14951_s1 + $0xd8] sm:$0xff]  ;;  %v2791_v62 = vld [vmem:[%s14955_s5 + $0x50] sm:$0xff] }
  0x4c   :  { %8012 = vmatpush3.bf16.msra.mxu1 %v8009_v58  ;;  %v58_v58 = vld [vmem:[%s14951_s1 + $0xd0] sm:$0xff] }
  0x4d   :  { %397 = vmatmul.mubr.f32.gmra.mrb[20].mxu0 %v9391_v1  ;;  %685 = vmatmul.mubr.f32.gmra.mrb[20].mxu1 %v9396_v2 }
  0x4e   :  { %402 = vmatprep.mubr.f32.mxu0 %v14961_v12  ;;  %690 = vmatprep.mubr.f32.mxu1 %v14961_v12 }
  0x4f   :  { %1847 = vperm.xlu1 %8168, %v115_v3   ;;  %1334 = vperm.xlu0 %8167, %v51_v4   ;;  %v2790_v3 = vld [vmem:[%s14955_s5 + $0x48] sm:$0xff]  ;;  %v9601_v4 = vld [vmem:[%s14954_s0 + $0xa0] sm:$0xff] }
  0x50   :  { %8014 = vmatprep.subr.bf16.mxu1 %v8013_v5 }
  0x51   :  { %403 = vmatmul.mubr.f32.gmra.mrb[22].mxu0 %v9411_v6  ;;  %691 = vmatmul.mubr.f32.gmra.mrb[22].mxu1 %v9416_v7 }
  0x52   :  { %408 = vmatprep.mubr.f32.mxu0 %v14961_v12  ;;  %696 = vmatprep.mubr.f32.mxu1 %v14961_v12 }
  0x53   :  { %1852 = vperm.xlu1 %8168, %v116_v8   ;;  %1339 = vperm.xlu0 %8167, %v52_v11   ;;  %v8027_v8 = vpack.c.bf16 %v2790_v3, %v2787_v0  ;;  %v126_v11 = vld [vmem:[%s14953_s2 + $0xf0] sm:$0xff]  ;;  %v188_v3 = vld [vmem:[%s14954_s0 + $0xe0] sm:$0xff] }
  0x54   :  { %8016 = vmatpush3.bf16.msra.mxu1 %v8013_v5  ;;  %v61_v5 = vld [vmem:[%s14951_s1 + $0xe8] sm:$0xff] }
  0x55   :  { %409 = vmatmul.mubr.f32.gmra.mrb[24].mxu0 %v9437_v17  ;;  %697 = vmatmul.mubr.f32.gmra.mrb[24].mxu1 %v9442_v18 }
  0x56   :  { %414 = vmatprep.mubr.f32.mxu0 %v14961_v12  ;;  %702 = vmatprep.mubr.f32.mxu1 %v14961_v12 }
  0x57   :  { %1857 = vperm.xlu1 %8168, %v117_v19   ;;  %1344 = vperm.xlu0 %8167, %v53_v20   ;;  %v2797_v19 = vld [vmem:[%s14955_s5 + $0x80] sm:$0xff] }
  0x58   :  { %8018 = vmatprep.subr.bf16.mxu1 %v8017_v23  ;;  %v128_v20 = vld [vmem:[%s14953_s2 + $0x100] sm:$0xff] }
  0x59   :  { %415 = vmatmul.mubr.f32.gmra.mrb[26].mxu0 %v9457_v24  ;;  %703 = vmatmul.mubr.f32.gmra.mrb[26].mxu1 %v9462_v25 }
  0x5a   :  { %420 = vmatprep.mubr.f32.mxu0 %v14961_v12  ;;  %708 = vmatprep.mubr.f32.mxu1 %v14961_v12 }
  0x5b   :  { %1862 = vperm.xlu1 %8168, %v118_v28   ;;  %1349 = vperm.xlu0 %8167, %v54_v29  }
  0x5c   :  { %8020 = vmatpush3.bf16.msra.mxu1 %v8017_v23  ;;  %v64_v23 = vld [vmem:[%s14951_s1 + $0x100] sm:$0xff] }
  0x5d   :  { %421 = vmatmul.mubr.f32.gmra.mrb[28].mxu0 %v9477_v30  ;;  %709 = vmatmul.mubr.f32.gmra.mrb[28].mxu1 %v9482_v31 }
  0x5e   :  { %426 = vmatprep.mubr.f32.mxu0 %v14961_v12  ;;  %714 = vmatprep.mubr.f32.mxu1 %v14961_v12 }
  0x5f   :  { %1867 = vperm.xlu1 %8168, %v119_v34   ;;  %1354 = vperm.xlu0 %8167, %v55_v35   ;;  %v2796_v34 = vld [vmem:[%s14955_s5 + $0x78] sm:$0xff]  ;;  %v184_v35 = vld [vmem:[%s14954_s0 + $0xc0] sm:$0xff] }
  0x60   :  { %8022 = vmatprep.subr.bf16.mxu1 %v8021_v46  ;;  %v185_v46 = vld [vmem:[%s14954_s0 + $0xc8] sm:$0xff] }
  0x61   :  { %427 = vmatmul.mubr.f32.gmra.mrb[30].mxu0 %v9497_v36  ;;  %715 = vmatmul.mubr.f32.gmra.mrb[30].mxu1 %v9502_v39 }
  0x62   :  { %432 = vmatprep.mubr.f32.mxu0 %v14961_v12  ;;  %7605 = vmatprep.mubr.f32.mxu1 %v9161_v9  ;;  %v9544_v9 = vld [vmem:[%s14954_s0 + $0x88] sm:$0xff] }
  0x63   :  { %1872 = vperm.xlu1 %8168, %v120_v40   ;;  %1359 = vperm.xlu0 %8167, %v56_v41   ;;  %v65_v40 = vld [vmem:[%s14951_s1 + $0x108] sm:$0xff] }
  0x65   :  { %433 = vmatmul.mubr.f32.gmra.mrb[32].mxu0 %v9529_v51  ;;  %7606 = vmatmul.mubr.f32.vlgmr.msra.gmra.mrb[32].mxu1 %v9180_v15  ;;  %v9559_v15 = vld [vmem:[%s14954_s0 + $0x90] sm:$0xff] }
  0x66   :  { %438 = vmatprep.mubr.f32.mxu0 %v14961_v12  ;;  %7608 = vmatprep.mubr.f32.mxu1 %v9207_v21  ;;  %v123_v21 = vld [vmem:[%s14953_s2 + $0xd8] sm:$0xff] }
  0x67   :  { %1877 = vperm.xlu1 %8168, %v121_v52   ;;  %1364 = vperm.xlu0 %8167, %v57_v53   ;;  %v186_v53 = vld [vmem:[%s14954_s0 + $0xd0] sm:$0xff] }
  0x68   :  { %8024 = vmatpush1.bf16.msra.mxu1 %v8023_v56  ;;  %v131_v56 = vld [vmem:[%s14953_s2 + $0x118] sm:$0xff] }
  0x69   :  { %439 = vmatmul.mubr.f32.gmra.mrb[34].mxu0 %v9544_v9  ;;  %7609 = vmatmul.mubr.f32.gmra.mrb[34].mxu1 %v9227_v26  ;;  %v9574_v26 = vld [vmem:[%s14954_s0 + $0x98] sm:$0xff] }
  0x6a   :  { %444 = vmatprep.mubr.f32.mxu0 %v14961_v12  ;;  %7611 = vmatprep.mubr.f32.mxu1 %v9253_v32  ;;  %v2788_v32 = vld [vmem:[%s14955_s5 + $0x38] sm:$0xff] }
  0x6b   :  { %1882 = vperm.xlu1 %8168, %v122_v57   ;;  %1369 = vperm.xlu0 %8167, %v58_v58   ;;  %v8025_v63 = vpack.c.bf16 %v2791_v62, %v2788_v32  ;;  %v68_v32 = vld [vmem:[%s14951_s1 + $0x120] sm:$0xff] }
  0x6d   :  { %445 = vmatmul.mubr.f32.gmra.mrb[36].mxu0 %v9559_v15  ;;  %7612 = vmatmul.mubr.f32.gmra.mrb[36].mxu1 %v9273_v37  ;;  %v124_v37 = vld [vmem:[%s14953_s2 + $0xe0] sm:$0xff] }
  0x6e   :  { %450 = vmatprep.mubr.f32.mxu0 %v14961_v12  ;;  %7614 = vmatprep.mubr.f32.mxu1 %v9299_v43  ;;  %v60_v43 = vld [vmem:[%s14951_s1 + $0xe0] sm:$0xff] }
  0x6f   :  { %1887 = vperm.xlu1 %8168, %v123_v21   ;;  %1374 = vperm.xlu0 %8167, %v59_v61   ;;  %v2800_v21 = vld [vmem:[%s14955_s5 + $0x98] sm:$0xff]  ;;  %v2803_v61 = vld [vmem:[%s14955_s5 + $0xb0] sm:$0xff] }
  0x70   :  { %8026 = vmatprep.subr.bf16.mxu1 %v8025_v63  ;;  %v8033_v62 = vpack.c.bf16 %v2803_v61, %v2800_v21  ;;  %v73_v21 = vld [vmem:[%s14951_s1 + $0x148] sm:$0xff] }
  0x71   :  { %451 = vmatmul.mubr.f32.gmra.mrb[38].mxu0 %v9574_v26  ;;  %7615 = vmatmul.mubr.f32.gmra.mrb[38].mxu1 %v9319_v48  ;;  %v125_v48 = vld [vmem:[%s14953_s2 + $0xe8] sm:$0xff] }
  0x72   :  { %456 = vmatprep.mubr.f32.mxu0 %v14961_v12  ;;  %7617 = vmatprep.mubr.f32.mxu1 %v9345_v54  ;;  %v9616_v54 = vld [vmem:[%s14954_s0 + $0xa8] sm:$0xff] }
  0x73   :  { %1892 = vperm.xlu1 %8168, %v124_v37   ;;  %1379 = vperm.xlu0 %8167, %v60_v43   ;;  %v2799_v37 = vld [vmem:[%s14955_s5 + $0x90] sm:$0xff]  ;;  %v2802_v43 = vld [vmem:[%s14955_s5 + $0xa8] sm:$0xff] }
  0x74   :  { %8028 = vmatpush1.bf16.msra.mxu1 %v8027_v8 }
  0x75   :  { %457 = vmatmul.mubr.f32.gmra.mrb[40].mxu0 %v9601_v4  ;;  %7618 = vmatmul.mubr.f32.gmra.mrb[40].mxu1 %v9365_v59  ;;  %v182_v59 = vld [vmem:[%s14954_s0 + $0xb0] sm:$0xff] }
  0x76   :  { %462 = vmatprep.mubr.f32.mxu0 %v14961_v12  ;;  %7620 = vmatprep.mubr.f32.mxu1 %v9391_v1  ;;  %v127_v1 = vld [vmem:[%s14953_s2 + $0xf8] sm:$0xff] }
  0x77   :  { %1897 = vperm.xlu1 %8168, %v125_v48   ;;  %1384 = vperm.xlu0 %8167, %v61_v5   ;;  %v69_v48 = vld [vmem:[%s14951_s1 + $0x128] sm:$0xff]  ;;  %v8035_v5 = vpack.c.bf16 %v2802_v43, %v2799_v37  ;;  %v196_v37 = vld [vmem:[%s14954_s0 + $0x120] sm:$0xff]  ;;  %v138_v43 = vld [vmem:[%s14953_s2 + $0x150] sm:$0xff] }
  0x79   :  { %463 = vmatmul.mubr.f32.gmra.mrb[42].mxu0 %v9616_v54  ;;  %7621 = vmatmul.mubr.f32.gmra.mrb[42].mxu1 %v9411_v6  ;;  %v183_v6 = vld [vmem:[%s14954_s0 + $0xb8] sm:$0xff] }
  0x7a   :  { %468 = vmatprep.mubr.f32.mxu0 %v14961_v12  ;;  %7623 = vmatprep.mubr.f32.mxu1 %v9437_v17  ;;  %v2794_v17 = vld [vmem:[%s14955_s5 + $0x68] sm:$0xff] }
  0x7b   :  { %1902 = vperm.xlu1 %8168, %v126_v11   ;;  %1389 = vperm.xlu0 %8167, %v62_v13   ;;  %v189_v11 = vld [vmem:[%s14954_s0 + $0xe8] sm:$0xff]  ;;  %v134_v13 = vld [vmem:[%s14953_s2 + $0x130] sm:$0xff] }
  0x7d   :  { %469 = vmatmul.mubr.f32.gmra.mrb[44].mxu0 %v182_v59  ;;  %7624 = vmatmul.mubr.f32.gmra.mrb[44].mxu1 %v9457_v24  ;;  %v8029_v24 = vpack.c.bf16 %v2797_v19, %v2794_v17  ;;  %v135_v17 = vld [vmem:[%s14953_s2 + $0x138] sm:$0xff] }
  0x7e   :  { %474 = vmatprep.mubr.f32.mxu0 %v14961_v12  ;;  %7626 = vmatprep.mubr.f32.mxu1 %v9477_v30  ;;  %v2793_v30 = vld [vmem:[%s14955_s5 + $0x60] sm:$0xff]  ;;  %v71_v19 = vld [vmem:[%s14951_s1 + $0x138] sm:$0xff] }
  0x7f   :  { %1907 = vperm.xlu1 %8168, %v127_v1   ;;  %1394 = vperm.xlu0 %8167, %v63_v14   ;;  %v8031_v41 = vpack.c.bf16 %v2796_v34, %v2793_v30  ;;  %v2806_v30 = vld [vmem:[%s14955_s5 + $0xc8] sm:$0xff]  ;;  %v2809_v34 = vld [vmem:[%s14955_s5 + $0xe0] sm:$0xff] }
  0x80   :  { %8030 = vmatprep.subr.bf16.mxu1 %v8029_v24  ;;  %v191_v24 = vld [vmem:[%s14954_s0 + $0xf8] sm:$0xff] }
  0x81   :  { %475 = vmatmul.mubr.f32.gmra.mrb[46].mxu0 %v183_v6  ;;  %7627 = vmatmul.mubr.f32.gmra.mrb[46].mxu1 %v9497_v36  ;;  %v9656_v28 = vpop.permute.xlu1 %1244  ;;  %v9658_v29 = vpop.permute.xlu0 %1239  ;;  %v129_v36 = vld [vmem:[%s14953_s2 + $0x108] sm:$0xff] }
  0x82   :  { %15199 = vst [vmem:[#allocation2_spill] sm:$0xff] %v9656_v28  ;;  %15200 = vst [vmem:[#allocation3_spill] sm:$0xff] %v9658_v29  ;;  %480 = vmatprep.mubr.f32.mxu0 %v14961_v12  ;;  %7629 = vmatprep.mubr.f32.mxu1 %v9529_v51 }
  0x83   :  { %1912 = vperm.xlu1 %8168, %v128_v20   ;;  %1399 = vperm.xlu0 %8167, %v64_v23  }
  0x84   :  { %8032 = vmatpush1.bf16.msra.mxu1 %v8031_v41  ;;  %v8037_v41 = vpack.c.bf16 %v2809_v34, %v2806_v30  ;;  %v2815_v30 = vld [vmem:[%s14955_s5 + $0x110] sm:$0xff]  ;;  %v9875_v34 = vld [vmem:[%s14954_s0 + $0x140] sm:$0xff] }
  0x85   :  { %481 = vmatmul.mubr.f32.gmra.mrb[48].mxu0 %v184_v35  ;;  %7630 = vmatmul.mubr.f32.gmra.mrb[48].mxu1 %v9544_v9  ;;  %v67_v9 = vld [vmem:[%s14951_s1 + $0x118] sm:$0xff] }
  0x86   :  { %v9678_v42 = vpop.permute.xlu1 %1757  ;;  %v9680_v45 = vpop.permute.xlu0 %1752  ;;  %486 = vmatprep.mubr.f32.mxu0 %v14961_v12  ;;  %7632 = vmatprep.mubr.f32.mxu1 %v9559_v15  ;;  %v187_v15 = vld [vmem:[%s14954_s0 + $0xd8] sm:$0xff] }
  0x87   :  { %15201 = vst [vmem:[#allocation4_spill] sm:$0xff] %v9678_v42  ;;  %15202 = vst [vmem:[#allocation5_spill] sm:$0xff] %v9680_v45  ;;  %1917 = vperm.xlu1 %8168, %v129_v36   ;;  %1404 = vperm.xlu0 %8167, %v65_v40   ;;  %v136_v36 = vld [vmem:[%s14953_s2 + $0x140] sm:$0xff] }
  0x88   :  { %8034 = vmatprep.subr.bf16.mxu1 %v8033_v62  ;;  %v72_v40 = vld [vmem:[%s14951_s1 + $0x140] sm:$0xff]  ;;  %v195_v62 = vld [vmem:[%s14954_s0 + $0x118] sm:$0xff] }
  0x89   :  { %487 = vmatmul.mubr.f32.gmra.mrb[50].mxu0 %v185_v46  ;;  %7633 = vmatmul.mubr.f32.gmra.mrb[50].mxu1 %v9574_v26  ;;  %v132_v26 = vld [vmem:[%s14953_s2 + $0x120] sm:$0xff] }
  0x8a   :  { %v9694_v51 = vpop.permute.xlu1 %1762  ;;  %v9696_v52 = vpop.permute.xlu0 %1249  ;;  %492 = vmatprep.mubr.f32.mxu0 %v14961_v12  ;;  %7635 = vmatprep.mubr.f32.mxu1 %v9601_v4  ;;  %v133_v4 = vld [vmem:[%s14953_s2 + $0x128] sm:$0xff] }
  0x8b   :  { %15203 = vst [vmem:[#allocation6_spill] sm:$0xff] %v9694_v51  ;;  %15204 = vst [vmem:[#allocation7_spill] sm:$0xff] %v9696_v52  ;;  %1922 = vperm.xlu1 %8168, %v130_v47   ;;  %1409 = vperm.xlu0 %8167, %v66_v50   ;;  %v2808_v47 = vld [vmem:[%s14955_s5 + $0xd8] sm:$0xff] }
  0x8c   :  { %8036 = vmatpush1.bf16.msra.mxu1 %v8035_v5  ;;  %v197_v5 = vld [vmem:[%s14954_s0 + $0x128] sm:$0xff] }
  0x8d   :  { %493 = vmatmul.mubr.f32.gmra.mrb[52].mxu0 %v186_v53  ;;  %7636 = vmatmul.mubr.f32.gmra.mrb[52].mxu1 %v9616_v54 }
  0x8e   :  { %v9710_v57 = vpop.permute.xlu1 %1767  ;;  %v9712_v58 = vpop.permute.xlu0 %1254  ;;  %498 = vmatprep.mubr.f32.mxu0 %v14961_v12  ;;  %7638 = vmatprep.mubr.f32.mxu1 %v182_v59  ;;  %v70_v59 = vld [vmem:[%s14951_s1 + $0x130] sm:$0xff] }
  0x8f   :  { %15205 = vst [vmem:[#allocation8_spill] sm:$0xff] %v9710_v57  ;;  %15206 = vst [vmem:[#allocation9_spill] sm:$0xff] %v9712_v58  ;;  %1927 = vperm.xlu1 %8168, %v131_v56   ;;  %1414 = vperm.xlu0 %8167, %v67_v9   ;;  %v193_v56 = vld [vmem:[%s14954_s0 + $0x108] sm:$0xff]  ;;  %v194_v9 = vld [vmem:[%s14954_s0 + $0x110] sm:$0xff] }
  0x90   :  { %8038 = vmatprep.subr.bf16.mxu1 %v8037_v41  ;;  %v2811_v41 = vld [vmem:[%s14955_s5 + $0xf0] sm:$0xff] }
  0x91   :  { %499 = vmatmul.mubr.f32.gmra.mrb[54].mxu0 %v187_v15  ;;  %7639 = vmatmul.mubr.f32.gmra.mrb[54].mxu1 %v183_v6  ;;  %v190_v6 = vld [vmem:[%s14954_s0 + $0xf0] sm:$0xff] }
  0x92   :  { %v9736_v63 = vpop.permute.xlu1 %1772  ;;  %v9738_v0 = vpop.permute.xlu0 %1259  ;;  %504 = vmatprep.mubr.f32.mxu0 %v14961_v12  ;;  %7641 = vmatprep.mubr.f32.mxu1 %v184_v35  ;;  %v192_v35 = vld [vmem:[%s14954_s0 + $0x100] sm:$0xff] }
  0x93   :  { %15207 = vst [vmem:[#allocation10_spill] sm:$0xff] %v9736_v63  ;;  %15208 = vst [vmem:[#allocation11_spill] sm:$0xff] %v9738_v0  ;;  %1932 = vperm.xlu1 %8168, %v132_v26   ;;  %1419 = vperm.xlu0 %8167, %v68_v32  }
  0x95   :  { %505 = vmatmul.mubr.f32.gmra.mrb[56].mxu0 %v188_v3  ;;  %7642 = vmatmul.mubr.f32.gmra.mrb[56].mxu1 %v185_v46  ;;  %v2805_v46 = vld [vmem:[%s14955_s5 + $0xc0] sm:$0xff] }
  0x96   :  { %v9750_v8 = vpop.permute.xlu1 %1777  ;;  %v9752_v54 = vpop.permute.xlu0 %1264  ;;  %510 = vmatprep.mubr.f32.mxu0 %v14961_v12  ;;  %7644 = vmatprep.mubr.f32.mxu1 %v186_v53  ;;  %v8039_v61 = vpack.c.bf16 %v2808_v47, %v2805_v46  ;;  %v2814_v46 = vld [vmem:[%s14955_s5 + $0x108] sm:$0xff] }
  0x97   :  { %15209 = vst [vmem:[#allocation12_spill] sm:$0xff] %v9750_v8  ;;  %15210 = vst [vmem:[#allocation13_spill] sm:$0xff] %v9752_v54  ;;  %1937 = vperm.xlu1 %8168, %v133_v4   ;;  %1424 = vperm.xlu0 %8167, %v69_v48  }
  0x98   :  { %8040 = vmatpush1.bf16.msra.mxu1 %v8039_v61  ;;  %v77_v61 = vld [vmem:[%s14951_s1 + $0x168] sm:$0xff] }
  0x99   :  { %511 = vmatmul.mubr.f32.gmra.mrb[58].mxu0 %v189_v11  ;;  %7645 = vmatmul.mubr.f32.gmra.mrb[58].mxu1 %v187_v15  ;;  %v137_v15 = vld [vmem:[%s14953_s2 + $0x148] sm:$0xff] }
  0x9a   :  { %v9764_v1 = vpop.permute.xlu1 %1782  ;;  %v9766_v14 = vpop.permute.xlu0 %1269  ;;  %516 = vmatprep.mubr.f32.mxu0 %v14961_v12  ;;  %7647 = vmatprep.mubr.f32.mxu1 %v188_v3  ;;  %v74_v3 = vld [vmem:[%s14951_s1 + $0x150] sm:$0xff] }
  0x9b   :  { %15211 = vst [vmem:[#allocation14_spill] sm:$0xff] %v9764_v1  ;;  %15212 = vst [vmem:[#allocation15_spill] sm:$0xff] %v9766_v14  ;;  %1942 = vperm.xlu1 %8168, %v134_v13   ;;  %1429 = vperm.xlu0 %8167, %v70_v59   ;;  %v139_v13 = vld [vmem:[%s14953_s2 + $0x158] sm:$0xff] }
  0x9c   :  { %v75_v59 = vld [vmem:[%s14951_s1 + $0x158] sm:$0xff] }
  0x9d   :  { %517 = vmatmul.mubr.f32.gmra.mrb[60].mxu0 %v190_v6  ;;  %7648 = vmatmul.mubr.f32.gmra.mrb[60].mxu1 %v189_v11  ;;  %v198_v11 = vld [vmem:[%s14954_s0 + $0x130] sm:$0xff] }
  0x9e   :  { %v9778_v20 = vpop.permute.xlu1 %1787  ;;  %v9780_v23 = vpop.permute.xlu0 %1274  ;;  %522 = vmatprep.mubr.f32.mxu0 %v14961_v12  ;;  %7650 = vmatprep.mubr.f32.mxu1 %v190_v6 }
  0x9f   :  { %15213 = vst [vmem:[#allocation16_spill] sm:$0xff] %v9778_v20  ;;  %15214 = vst [vmem:[#allocation17_spill] sm:$0xff] %v9780_v23  ;;  %1947 = vperm.xlu1 %8168, %v135_v17   ;;  %1434 = vperm.xlu0 %8167, %v71_v19   ;;  %v199_v19 = vld [vmem:[%s14954_s0 + $0x138] sm:$0xff] }
  0xa1   :  { %523 = vmatmul.mubr.f32.gmra.mrb[62].mxu0 %v191_v24  ;;  %7651 = vmatmul.mubr.f32.gmra.mrb[62].mxu1 %v191_v24  ;;  %v2812_v24 = vld [vmem:[%s14955_s5 + $0xf8] sm:$0xff] }
  0xa2   :  { %v9807_v50 = vpop.permute.xlu1 %1792  ;;  %v9809_v53 = vpop.permute.xlu0 %1279  ;;  %528 = vmatprep.mubr.f32.mxu0 %v14961_v12  ;;  %7653 = vmatprep.mubr.f32.mxu1 %v192_v35 }
  0xa3   :  { %15215 = vst [vmem:[#allocation18_spill] sm:$0xff] %v9807_v50  ;;  %15216 = vst [vmem:[#allocation19_spill] sm:$0xff] %v9809_v53  ;;  %1952 = vperm.xlu1 %8168, %v136_v36   ;;  %1439 = vperm.xlu0 %8167, %v72_v40   ;;  %v76_v36 = vld [vmem:[%s14951_s1 + $0x160] sm:$0xff]  ;;  %v8041_v40 = vpack.c.bf16 %v2815_v30, %v2812_v24  ;;  %v78_v24 = vld [vmem:[%s14951_s1 + $0x170] sm:$0xff] }
  0xa5   :  { %529 = vmatmul.mubr.f32.gmra.mrb[64].mxu0 %v192_v35  ;;  %7654 = vmatmul.mubr.f32.gmra.mrb[64].mxu1 %v193_v56  ;;  %v140_v35 = vld [vmem:[%s14953_s2 + $0x160] sm:$0xff] }
  0xa6   :  { %v9824_v26 = vpop.permute.xlu1 %1797  ;;  %v9826_v32 = vpop.permute.xlu0 %1284  ;;  %534 = vmatprep.mubr.f32.mxu0 %v14961_v12  ;;  %7656 = vmatprep.mubr.f32.mxu1 %v194_v9 }
  0xa7   :  { %15217 = vst [vmem:[#allocation20_spill] sm:$0xff] %v9824_v26  ;;  %15218 = vst [vmem:[#allocation21_spill] sm:$0xff] %v9826_v32  ;;  %1957 = vperm.xlu1 %8168, %v137_v15   ;;  %1444 = vperm.xlu0 %8167, %v73_v21   ;;  %v9903_v15 = vld [vmem:[%s14954_s0 + $0x150] sm:$0xff]  ;;  %v141_v21 = vld [vmem:[%s14953_s2 + $0x168] sm:$0xff] }
  0xa8   :  { %8042 = vmatprep.subr.bf16.mxu1 %v8041_v40  ;;  %v143_v40 = vld [vmem:[%s14953_s2 + $0x178] sm:$0xff] }
  0xa9   :  { %535 = vmatmul.mubr.f32.gmra.mrb[66].mxu0 %v193_v56  ;;  %7657 = vmatmul.mubr.f32.gmra.mrb[66].mxu1 %v195_v62 }
  0xaa   :  { %v9841_v4 = vpop.permute.xlu1 %1802  ;;  %v9843_v48 = vpop.permute.xlu0 %1289  ;;  %540 = vmatprep.mubr.f32.mxu0 %v14961_v12  ;;  %7659 = vmatprep.mubr.f32.mxu1 %v196_v37 }
  0xab   :  { %15219 = vst [vmem:[#allocation22_spill] sm:$0xff] %v9841_v4  ;;  %15220 = vst [vmem:[#allocation23_spill] sm:$0xff] %v9843_v48  ;;  %1962 = vperm.xlu1 %8168, %v138_v43   ;;  %1449 = vperm.xlu0 %8167, %v74_v3  }
  0xad   :  { %541 = vmatmul.mubr.f32.gmra.mrb[68].mxu0 %v194_v9  ;;  %7660 = vmatmul.mubr.f32.gmra.mrb[68].mxu1 %v197_v5  ;;  %v9898_v9 = vld [vmem:[%s14954_s0 + $0x148] sm:$0xff] }
  0xae   :  { %v9858_v6 = vpop.permute.xlu1 %1807  ;;  %v9860_v17 = vpop.permute.xlu0 %1294  ;;  %546 = vmatprep.mubr.f32.mxu0 %v14961_v12  ;;  %7662 = vmatprep.mubr.f32.mxu1 %v198_v11 }
  0xaf   :  { %15221 = vst [vmem:[#allocation24_spill] sm:$0xff] %v9858_v6  ;;  %15222 = vst [vmem:[#allocation25_spill] sm:$0xff] %v9860_v17  ;;  %1967 = vperm.xlu1 %8168, %v139_v13   ;;  %1454 = vperm.xlu0 %8167, %v75_v59   ;;  %v9921_v13 = vld [vmem:[%s14954_s0 + $0x158] sm:$0xff]  ;;  %v142_v59 = vld [vmem:[%s14953_s2 + $0x170] sm:$0xff] }
  0xb1   :  { %547 = vmatmul.mubr.f32.gmra.mrb[70].mxu0 %v195_v62  ;;  %7663 = vmatmul.mubr.f32.gmra.mrb[70].mxu1 %v199_v19  ;;  %v8043_v62 = vpack.c.bf16 %v2814_v46, %v2811_v41  ;;  %v79_v41 = vld [vmem:[%s14951_s1 + $0x178] sm:$0xff] }
  0xb2   :  { %v9889_v47 = vpop.permute.xlu1 %1812  ;;  %v9891_v56 = vpop.permute.xlu0 %1299  ;;  %552 = vmatprep.mubr.f32.mxu0 %v14961_v12  ;;  %7665 = vmatprep.mubr.f32.mxu1 %v9875_v34 }
  0xb3   :  { %15223 = vst [vmem:[#allocation26_spill] sm:$0xff] %v9889_v47  ;;  %15224 = vst [vmem:[#allocation27_spill] sm:$0xff] %v9891_v56  ;;  %1972 = vperm.xlu1 %8168, %v140_v35   ;;  %1459 = vperm.xlu0 %8167, %v76_v36   ;;  %v9944_v36 = vld [vmem:[%s14954_s0 + $0x168] sm:$0xff] }
  0xb4   :  { %8044 = vmatpush1.bf16.msra.mxu1 %v8043_v62  ;;  %v80_v62 = vld [vmem:[%s14951_s1 + $0x180] sm:$0xff] }
  0xb5   :  { %553 = vmatmul.mubr.f32.gmra.mrb[72].mxu0 %v196_v37  ;;  %7666 = vmatmul.mubr.f32.gmra.mrb[72].mxu1 %v9898_v9  ;;  %v9926_v37 = vld [vmem:[%s14954_s0 + $0x160] sm:$0xff] }
  0xb6   :  { %v9912_v43 = vpop.permute.xlu1 %1817  ;;  %v9914_v3 = vpop.permute.xlu0 %1304  ;;  %558 = vmatprep.mubr.f32.mxu0 %v14961_v12  ;;  %7668 = vmatprep.mubr.f32.mxu1 %v9903_v15 }
  0xb7   :  { %15225 = vst [vmem:[#allocation28_spill] sm:$0xff] %v9912_v43  ;;  %15226 = vst [vmem:[#allocation29_spill] sm:$0xff] %v9914_v3  ;;  %1977 = vperm.xlu1 %8168, %v141_v21   ;;  %1464 = vperm.xlu0 %8167, %v77_v61   ;;  %v9967_v61 = vld [vmem:[%s14954_s0 + $0x178] sm:$0xff] }
  0xb9   :  { %559 = vmatmul.mubr.f32.gmra.mrb[74].mxu0 %v197_v5  ;;  %7669 = vmatmul.mubr.f32.gmra.mrb[74].mxu1 %v9921_v13  ;;  %v9949_v5 = vld [vmem:[%s14954_s0 + $0x170] sm:$0xff] }
  0xba   :  { %v9935_v30 = vpop.permute.xlu1 %1822  ;;  %v9937_v35 = vpop.permute.xlu0 %1309  ;;  %564 = vmatprep.mubr.f32.mxu0 %v14961_v12  ;;  %7671 = vmatprep.mubr.f32.mxu1 %v9926_v37 }
  0xbb   :  { %15227 = vst [vmem:[#allocation30_spill] sm:$0xff] %v9935_v30  ;;  %15228 = vst [vmem:[#allocation31_spill] sm:$0xff] %v9937_v35  ;;  %1982 = vperm.xlu1 %8168, %v142_v59   ;;  %1469 = vperm.xlu0 %8167, %v78_v24   ;;  %v2783_v59 = vld [vmem:[%s14955_s5 + $0x10] sm:$0xff]  ;;  %v2786_v24 = vld [vmem:[%s14955_s5 + $0x28] sm:$0xff] }
  0xbc   :  { %v145_v30 = vld [vmem:[%s14953_s2 + $0x188] sm:$0xff] }
  0xbd   :  { %565 = vmatmul.mubr.f32.gmra.mrb[76].mxu0 %v198_v11  ;;  %7672 = vmatmul.mubr.f32.gmra.mrb[76].mxu1 %v9944_v36  ;;  %v144_v11 = vld [vmem:[%s14953_s2 + $0x180] sm:$0xff] }
  0xbe   :  { %v9958_v46 = vpop.permute.xlu1 %1827  ;;  %v9960_v21 = vpop.permute.xlu0 %1314  ;;  %570 = vmatprep.mubr.f32.mxu0 %v14961_v12  ;;  %7674 = vmatprep.mubr.f32.mxu1 %v9949_v5 }
  0xbf   :  { %15229 = vst [vmem:[#allocation32_spill] sm:$0xff] %v9958_v46  ;;  %15230 = vst [vmem:[#allocation33_spill] sm:$0xff] %v9960_v21  ;;  %1987 = vperm.xlu1 %8168, %v143_v40   ;;  %1474 = vperm.xlu0 %8167, %v79_v41   ;;  %v8053_v40 = vpack.c.bf16 %v2786_v24, %v2783_v59  ;;  %v15233_v46 = vmov 0.0   ;;  %v2789_v59 = vld [vmem:[%s14955_s5 + $0x40] sm:$0xff] }
  0xc1   :  { %571 = vmatmul.mubr.f32.gmra.mrb[78].mxu0 %v199_v19  ;;  %7675 = vmatmul.mubr.f32.gmra.mrb[78].mxu1 %v9967_v61  ;;  %v81_v19 = vld [vmem:[%s14951_s1 + $0x188] sm:$0xff] }
  0xc2   :  { %v9982_v41 = vpop.permute.xlu1 %1832  ;;  %v9984_v12 = vpop.permute.xlu0 %1319  ;;  %576 = vmatprep.mubr.f32.mxu0 %v15233_v46  ;;  %7677 = vmatprep.mubr.f32.mxu1 %v9166_v10  ;;  %v2792_v10 = vld [vmem:[%s14955_s5 + $0x58] sm:$0xff] }
  0xc3   :  { %15231 = vst [vmem:[#allocation34_spill] sm:$0xff] %v9982_v41  ;;  %15232 = vst [vmem:[#allocation35_spill] sm:$0xff] %v9984_v12  ;;  %1992 = vperm.xlu1 %8168, %v144_v11   ;;  %1479 = vperm.xlu0 %8167, %v80_v62   ;;  %v8057_v24 = vpack.c.bf16 %v2792_v10, %v2789_v59 }
  0xc4   :  { %8054 = vmatprep.subr.bf16.mxu0 %v8053_v40 }
  0xc5   :  { %577 = vmatmul.mubr.f32.gmra.mrb[80].mxu0 %v9875_v34  ;;  %7678 = vmatmul.mubr.f32.gmra.mrb[80].mxu1 %v9185_v16  ;;  %v146_v16 = vld [vmem:[%s14953_s2 + $0x190] sm:$0xff] }
  0xc6   :  { %v10002_v11 = vpop.permute.xlu1 %1837  ;;  %v10004_v62 = vpop.permute.xlu0 %1324  ;;  %582 = vmatprep.mubr.f32.mxu0 %v15233_v46  ;;  %7680 = vmatprep.mubr.f32.mxu1 %v9212_v22  ;;  %v82_v34 = vld [vmem:[%s14951_s1 + $0x190] sm:$0xff]  ;;  %v147_v22 = vld [vmem:[%s14953_s2 + $0x198] sm:$0xff] }
  0xc7   :  { %15234 = vst [vmem:[#allocation36_spill] sm:$0xff] %v10002_v11  ;;  %15235 = vst [vmem:[#allocation37_spill] sm:$0xff] %v10004_v62  ;;  %1997 = vperm.xlu1 %8168, %v145_v30   ;;  %1484 = vperm.xlu0 %8167, %v81_v19  }
  0xc8   :  { %8056 = vmatpush3.bf16.msra.mxu0 %v8053_v40 }
  0xc9   :  { %583 = vmatmul.mubr.f32.gmra.mrb[82].mxu0 %v9898_v9  ;;  %7681 = vmatmul.mubr.f32.gmra.mrb[82].mxu1 %v9232_v27  ;;  %v83_v9 = vld [vmem:[%s14951_s1 + $0x198] sm:$0xff]  ;;  %v2795_v27 = vld [vmem:[%s14955_s5 + $0x70] sm:$0xff] }
  0xca   :  { %v10016_v11 = vpop.permute.xlu1 %1842  ;;  %v10018_v41 = vpop.permute.xlu0 %1329  ;;  %588 = vmatprep.mubr.f32.mxu0 %v15233_v46  ;;  %7683 = vmatprep.mubr.f32.mxu1 %v9258_v33  ;;  %v2798_v33 = vld [vmem:[%s14955_s5 + $0x88] sm:$0xff] }
  0xcb   :  { %15236 = vst [vmem:[#allocation38_spill] sm:$0xff] %v10016_v11  ;;  %15237 = vst [vmem:[#allocation39_spill] sm:$0xff] %v10018_v41  ;;  %2002 = vperm.xlu1 %8168, %v146_v16   ;;  %1489 = vperm.xlu0 %8167, %v82_v34   ;;  %v8061_v19 = vpack.c.bf16 %v2798_v33, %v2795_v27  ;;  %v2821_v16 = vld [vmem:[%s14955_s5 + $0x140] sm:$0xff] }
  0xcc   :  { %8058 = vmatprep.subr.bf16.mxu0 %v8057_v24 }
  0xcd   :  { %589 = vmatmul.mubr.f32.gmra.mrb[84].mxu0 %v9903_v15  ;;  %7684 = vmatmul.mubr.f32.gmra.mrb[84].mxu1 %v9278_v38  ;;  %v148_v38 = vld [vmem:[%s14953_s2 + $0x1a0] sm:$0xff] }
  0xce   :  { %v10036_v30 = vpop.permute.xlu1 %1847  ;;  %v10038_v40 = vpop.permute.xlu0 %1334  ;;  %594 = vmatprep.mubr.f32.mxu0 %v15233_v46  ;;  %7686 = vmatprep.mubr.f32.mxu1 %v9304_v44  ;;  %v84_v15 = vld [vmem:[%s14951_s1 + $0x1a0] sm:$0xff]  ;;  %v2818_v44 = vld [vmem:[%s14955_s5 + $0x128] sm:$0xff] }
  0xcf   :  { %15238 = vst [vmem:[#allocation40_spill] sm:$0xff] %v10036_v30  ;;  %15239 = vst [vmem:[#allocation41_spill] sm:$0xff] %v10038_v40  ;;  %2007 = vperm.xlu1 %8168, %v147_v22   ;;  %1494 = vperm.xlu0 %8167, %v83_v9   ;;  %v8045_v34 = vpack.c.bf16 %v2821_v16, %v2818_v44  ;;  %v2820_v22 = vld [vmem:[%s14955_s5 + $0x138] sm:$0xff]  ;;  %v2827_v44 = vld [vmem:[%s14955_s5 + $0x170] sm:$0xff] }
  0xd0   :  { %8060 = vmatpush3.bf16.msra.mxu0 %v8057_v24  ;;  %v2817_v24 = vld [vmem:[%s14955_s5 + $0x120] sm:$0xff]  ;;  %v2804_v9 = vld [vmem:[%s14955_s5 + $0xb8] sm:$0xff] }
  0xd1   :  { %595 = vmatmul.mubr.f32.gmra.mrb[86].mxu0 %v9921_v13  ;;  %7687 = vmatmul.mubr.f32.gmra.mrb[86].mxu1 %v9324_v49  ;;  %v149_v49 = vld [vmem:[%s14953_s2 + $0x1a8] sm:$0xff] }
  0xd2   :  { %v10050_v59 = vpop.permute.xlu1 %1852  ;;  %v10052_v10 = vpop.permute.xlu0 %1339  ;;  %600 = vmatprep.mubr.f32.mxu0 %v15233_v46  ;;  %7689 = vmatprep.mubr.f32.mxu1 %v9350_v55  ;;  %v85_v13 = vld [vmem:[%s14951_s1 + $0x1a8] sm:$0xff]  ;;  %v2801_v55 = vld [vmem:[%s14955_s5 + $0xa0] sm:$0xff] }
  0xd3   :  { %15240 = vst [vmem:[#allocation42_spill] sm:$0xff] %v10050_v59  ;;  %15241 = vst [vmem:[#allocation43_spill] sm:$0xff] %v10052_v10  ;;  %2012 = vperm.xlu1 %8168, %v148_v38   ;;  %1499 = vperm.xlu0 %8167, %v84_v15   ;;  %v8047_v38 = vpack.c.bf16 %v2820_v22, %v2817_v24  ;;  %v8065_v15 = vpack.c.bf16 %v2804_v9, %v2801_v55 }
  0xd4   :  { %8062 = vmatprep.subr.bf16.mxu0 %v8061_v19  ;;  %8046 = vmatprep.subr.bf16.mxu1 %v8045_v34  ;;  %v87_v34 = vld [vmem:[%s14951_s1 + $0x1b8] sm:$0xff] }
  0xd5   :  { %601 = vmatmul.mubr.f32.gmra.mrb[88].mxu0 %v9926_v37  ;;  %7690 = vmatmul.mubr.f32.gmra.mrb[88].mxu1 %v9370_v60  ;;  %v150_v60 = vld [vmem:[%s14953_s2 + $0x1b0] sm:$0xff] }
  0xd6   :  { %v10082_v27 = vpop.permute.xlu1 %1857  ;;  %v10084_v33 = vpop.permute.xlu0 %1344  ;;  %606 = vmatprep.mubr.f32.mxu0 %v15233_v46  ;;  %7692 = vmatprep.mubr.f32.mxu1 %v9396_v2  ;;  %v86_v37 = vld [vmem:[%s14951_s1 + $0x1b0] sm:$0xff]  ;;  %v2824_v2 = vld [vmem:[%s14955_s5 + $0x158] sm:$0xff] }
  0xd7   :  { %15242 = vst [vmem:[#allocation44_spill] sm:$0xff] %v10082_v27  ;;  %15243 = vst [vmem:[#allocation45_spill] sm:$0xff] %v10084_v33  ;;  %2017 = vperm.xlu1 %8168, %v149_v49   ;;  %1504 = vperm.xlu0 %8167, %v85_v13   ;;  %v2810_v13 = vld [vmem:[%s14955_s5 + $0xe8] sm:$0xff]  ;;  %v8049_v55 = vpack.c.bf16 %v2827_v44, %v2824_v2 }
  0xd8   :  { %8064 = vmatpush3.bf16.msra.mxu0 %v8061_v19  ;;  %v2826_v19 = vld [vmem:[%s14955_s5 + $0x168] sm:$0xff]  ;;  %8048 = vmatpush1.bf16.msra.mxu1 %v8047_v38 }
  0xd9   :  { %607 = vmatmul.mubr.f32.gmra.mrb[90].mxu0 %v9944_v36  ;;  %7693 = vmatmul.mubr.f32.gmra.mrb[90].mxu1 %v9416_v7  ;;  %v2807_v7 = vld [vmem:[%s14955_s5 + $0xd0] sm:$0xff] }
  0xda   :  { %v10102_v16 = vpop.permute.xlu1 %1862  ;;  %v10104_v49 = vpop.permute.xlu0 %1349  ;;  %612 = vmatprep.mubr.f32.mxu0 %v15233_v46  ;;  %7695 = vmatprep.mubr.f32.mxu1 %v9442_v18  ;;  %v2823_v36 = vld [vmem:[%s14955_s5 + $0x150] sm:$0xff]  ;;  %v151_v18 = vld [vmem:[%s14953_s2 + $0x1b8] sm:$0xff] }
  0xdb   :  { %15244 = vst [vmem:[#allocation46_spill] sm:$0xff] %v10102_v16  ;;  %15245 = vst [vmem:[#allocation47_spill] sm:$0xff] %v10104_v49  ;;  %2022 = vperm.xlu1 %8168, %v150_v60   ;;  %1509 = vperm.xlu0 %8167, %v86_v37   ;;  %v8051_v9 = vpack.c.bf16 %v2826_v19, %v2823_v36  ;;  %v8069_v60 = vpack.c.bf16 %v2810_v13, %v2807_v7  ;;  %v2813_v37 = vld [vmem:[%s14955_s5 + $0x100] sm:$0xff]  ;;  %v2819_v7 = vld [vmem:[%s14955_s5 + $0x130] sm:$0xff] }
  0xdc   :  { %8066 = vmatprep.subr.bf16.mxu0 %v8065_v15  ;;  %8050 = vmatprep.subr.bf16.mxu1 %v8049_v55  ;;  %v2822_v36 = vld [vmem:[%s14955_s5 + $0x148] sm:$0xff]  ;;  %v154_v55 = vld [vmem:[%s14953_s2 + $0x1d0] sm:$0xff] }
  0xdd   :  { %613 = vmatmul.mubr.f32.gmra.mrb[92].mxu0 %v9949_v5  ;;  %7696 = vmatmul.mubr.f32.gmra.mrb[92].mxu1 %v9462_v25  ;;  %v2816_v5 = vld [vmem:[%s14955_s5 + $0x118] sm:$0xff]  ;;  %v152_v25 = vld [vmem:[%s14953_s2 + $0x1c0] sm:$0xff] }
  0xde   :  { %v10128_v24 = vpop.permute.xlu1 %1867  ;;  %v10130_v22 = vpop.permute.xlu0 %1354  ;;  %618 = vmatprep.mubr.f32.mxu0 %v15233_v46  ;;  %7698 = vmatprep.mubr.f32.mxu1 %v9482_v31  ;;  %v88_v31 = vld [vmem:[%s14951_s1 + $0x1c0] sm:$0xff]  ;;  %v8073_v38 = vpack.c.bf16 %v2816_v5, %v2813_v37 }
  0xdf   :  { %15246 = vst [vmem:[#allocation48_spill] sm:$0xff] %v10128_v24  ;;  %15247 = vst [vmem:[#allocation49_spill] sm:$0xff] %v10130_v22  ;;  %2027 = vperm.xlu1 %8168, %v151_v18   ;;  %1514 = vperm.xlu0 %8167, %v87_v34   ;;  %v2825_v18 = vld [vmem:[%s14955_s5 + $0x160] sm:$0xff]  ;;  %v2828_v34 = vld [vmem:[%s14955_s5 + $0x178] sm:$0xff] }
  0xe0   :  { %8068 = vmatpush3.bf16.msra.mxu0 %v8065_v15  ;;  %8052 = vmatpush1.bf16.msra.mxu1 %v8051_v9  ;;  %v8077_v15 = vpack.c.bf16 %v2822_v36, %v2819_v7  ;;  %v90_v9 = vld [vmem:[%s14951_s1 + $0x1d0] sm:$0xff]  ;;  %v156_v36 = vld [vmem:[%s14953_s2 + $0x1e0] sm:$0xff] }
  0xe1   :  { %619 = vmatmul.mubr.f32.gmra.mrb[94].mxu0 %v9967_v61  ;;  %7699 = vmatmul.mubr.f32.gmra.mrb[94].mxu1 %v9502_v39  ;;  %v153_v39 = vld [vmem:[%s14953_s2 + $0x1c8] sm:$0xff] }
  0xe2   :  { %v10148_v2 = vpop.permute.xlu1 %1872  ;;  %v10150_v44 = vpop.permute.xlu0 %1359  ;;  %8070 = vmatprep.subr.bf16.mxu0 %v8069_v60  ;;  %v89_v61 = vld [vmem:[%s14951_s1 + $0x1c8] sm:$0xff]  ;;  %2893 = vmatprep.mubr.f32.mxu1 %v15233_v46 }
  0xe3   :  { %15248 = vst [vmem:[#allocation50_spill] sm:$0xff] %v10148_v2  ;;  %15249 = vst [vmem:[#allocation51_spill] sm:$0xff] %v10150_v44  ;;  %2032 = vperm.xlu1 %8168, %v152_v25   ;;  %1519 = vperm.xlu0 %8167, %v88_v31   ;;  %v155_v25 = vld [vmem:[%s14953_s2 + $0x1d8] sm:$0xff] }
  0xe4   :  { %8072 = vmatpush3.bf16.msra.mxu0 %v8069_v60  ;;  %v8081_v60 = vpack.c.bf16 %v2828_v34, %v2825_v18  ;;  %v91_v31 = vld [vmem:[%s14951_s1 + $0x1d8] sm:$0xff]  ;;  %v93_v34 = vld [vmem:[%s14951_s1 + $0x1e8] sm:$0xff] }
  0xe5   :  { %8074 = vmatprep.subr.bf16.mxu0 %v8073_v38 }
  0xe6   :  { %v10165_v19 = vpop.permute.xlu1 %1877  ;;  %v10167_v13 = vpop.permute.xlu0 %1364 }
  0xe7   :  { %15250 = vst [vmem:[#allocation52_spill] sm:$0xff] %v10165_v19  ;;  %15251 = vst [vmem:[#allocation53_spill] sm:$0xff] %v10167_v13  ;;  %2037 = vperm.xlu1 %8168, %v153_v39   ;;  %1524 = vperm.xlu0 %8167, %v89_v61   ;;  %v92_v39 = vld [vmem:[%s14951_s1 + $0x1e0] sm:$0xff]  ;;  %v159_v19 = vld [vmem:[%s14953_s2 + $0x1f8] sm:$0xff] }
  0xe8   :  { %8076 = vmatpush3.bf16.msra.mxu0 %v8073_v38 }
  0xe9   :  { %8078 = vmatprep.subr.bf16.mxu0 %v8077_v15 }
  0xea   :  { %v10181_v37 = vpop.permute.xlu1 %1882  ;;  %v10183_v5 = vpop.permute.xlu0 %1369 }
  0xeb   :  { %15252 = vst [vmem:[#allocation54_spill] sm:$0xff] %v10181_v37  ;;  %15253 = vst [vmem:[#allocation55_spill] sm:$0xff] %v10183_v5  ;;  %2042 = vperm.xlu1 %8168, %v154_v55   ;;  %1529 = vperm.xlu0 %8167, %v90_v9   ;;  %v1170_v55 = vlaneseq }
  0xec   :  { %8080 = vmatpush3.bf16.msra.mxu0 %v8077_v15  ;;  %v157_v15 = vld [vmem:[%s14953_s2 + $0x1e8] sm:$0xff] }
  0xed   :  { %8082 = vmatprep.subr.bf16.mxu0 %v8081_v60 }
  0xee   :  { %v10191_v7 = vpop.permute.xlu1 %1887  ;;  %v10193_v38 = vpop.permute.xlu0 %1374 }
  0xef   :  { %15254 = vst [vmem:[#allocation56_spill] sm:$0xff] %v10191_v7  ;;  %15255 = vst [vmem:[#allocation57_spill] sm:$0xff] %v10193_v38  ;;  %2047 = vperm.xlu1 %8168, %v155_v25   ;;  %1534 = vperm.xlu0 %8167, %v91_v31   ;;  %v158_v31 = vld [vmem:[%s14953_s2 + $0x1f0] sm:$0xff] }
  0xf0   :  { %8084 = vmatpush3.bf16.msra.mxu0 %v8081_v60 }
  0xf2   :  { %v10201_v61 = vpop.permute.xlu1 %1892  ;;  %v10203_v18 = vpop.permute.xlu0 %1379 }
  0xf3   :  { %15256 = vst [vmem:[#allocation58_spill] sm:$0xff] %v10201_v61  ;;  %15257 = vst [vmem:[#allocation59_spill] sm:$0xff] %v10203_v18  ;;  %2052 = vperm.xlu1 %8168, %v156_v36   ;;  %1539 = vperm.xlu0 %8167, %v92_v39   ;;  %v94_v36 = vld [vmem:[%s14951_s1 + $0x1f0] sm:$0xff]  ;;  %v10225_v61 = vshrl.u32 %v1170_v55, 7  ;;  %v95_v55 = vld [vmem:[%s14951_s1 + $0x1f8] sm:$0xff] }
  0xf5   :  { %15261 = vst [vmem:[#allocation63_spill] sm:$0xff] %v10225_v61  ;;  %vm1172_vm0 = vcmp.lt.s32.totalorder %v10225_v61, 1  ;;  %vm1685_vm1 = vcmp.lt.s32.totalorder %v10225_v61, 7 }
  0xf6   :  { %v10211_v9 = vpop.permute.xlu1 %1897  ;;  %v10213_v25 = vpop.permute.xlu0 %1384 }
  0xf7   :  { %15258 = vst [vmem:[#allocation60_spill] sm:$0xff] %v10211_v9  ;;  %15259 = vst [vmem:[#allocation61_spill] sm:$0xff] %v10213_v25  ;;  %2057 = vperm.xlu1 %8168, %v157_v15   ;;  %1544 = vperm.xlu0 %8167, %v93_v34  }
  0xf8   :  { %v10215_v60 = vpop.f32.mrb[0].mxu1  ;;  %v10223_v39 = vpop.f32.mrb[0].mxu0 }
  0xf9   :  { %15260 = vst [vmem:[#allocation62_spill] sm:$0xff] %v10215_v60  ;;  %v10227_v7 = vpop.f32.mrb[1].mxu1  ;;  %v10229_v9 = vpop.f32.mrb[1].mxu0 }
  0xfa   :  { %15262 = vst [vmem:[#allocation64_spill] sm:$0xff] %v10227_v7  ;;  %v10231_v15 = vpop.permute.xlu0 %1389  ;;  %v10233_v34 = vpop.permute.xlu1 %1902  ;;  %v14986_v7 = vrot.slane %v10215_v60, 7 }
  0xfb   :  { %15263 = vst [vmem:[#allocation65_spill] sm:$0xff] %v10231_v15  ;;  %15264 = vst [vmem:[#allocation66_spill] sm:$0xff] %v10233_v34  ;;  %2062 = vperm.xlu1 %8168, %v158_v31   ;;  %1549 = vperm.xlu0 %8167, %v94_v36   ;;  %v14984_v31 = vrot.slane %v10223_v39, 7 }
  0xfc   :  { %v632_v37 = vpop.f32.mrb[2].mxu1  ;;  %v344_v25 = vpop.f32.mrb[2].mxu0 }
  0xfd   :  { %v1155_v2 = vrot.slane %v632_v37, 7  ;;  %v10243_v15 = vpop.f32.mrb[3].mxu1  ;;  %v1107_v36 = vrot.slane %v344_v25, 7  ;;  %v346_v34 = vpop.f32.mrb[3].mxu0 }
  0xfe   :  { %v10246_v24 = vpop.permute.xlu0 %1394 }
  0xff   :  { %15265 = vst [vmem:[#allocation67_spill] sm:$0xff] %v10246_v24  ;;  %2067 = vperm.xlu1 %8168, %v159_v19   ;;  %1554 = vperm.xlu0 %8167, %v95_v55   ;;  %v1235_v16 = vsel %vm1172_vm0, %v14984_v31, %v1107_v36  ;;  %v10256_v37 = vsel %vm1172_vm0, %v14986_v7, %v1155_v2  ;;  %v10265_v31 = vpop.permute.xlu1 %1907 }
 0x100   :  { %v638_v27 = vpop.f32.mrb[4].mxu1  ;;  %v1558_v18 = vmul.f32 %v9656_v28, %v1235_v16  ;;  %v350_v25 = vpop.f32.mrb[4].mxu0  ;;  %15267 = vst [vmem:[#allocation69_spill] sm:$0xff] %v10265_v31 }
 0x101   :  { %v1156_v59 = vrot.slane %v638_v27, 7  ;;  %v10259_v30 = vpop.f32.mrb[5].mxu1  ;;  %v1108_v19 = vrot.slane %v350_v25, 7  ;;  %v352_v55 = vpop.f32.mrb[5].mxu0 }
 0x102   :  { %v10261_v24 = vpop.permute.xlu0 %1399  ;;  %v10263_v38 = vadd.f32 %v1558_v18, %v346_v34 }
 0x103   :  { %15266 = vst [vmem:[#allocation68_spill] sm:$0xff] %v10261_v24  ;;  %v1234_v60 = vsel %vm1172_vm0, %v1107_v36, %v1108_v19  ;;  %v10271_v7 = vsel %vm1172_vm0, %v1155_v2, %v1156_v59 }
 0x104   :  { %v644_v16 = vpop.f32.mrb[6].mxu1  ;;  %v1559_v27 = vmul.f32 %v9696_v52, %v1234_v60  ;;  %v356_v28 = vpop.f32.mrb[6].mxu0 }
 0x105   :  { %v1157_v11 = vrot.slane %v644_v16, 7  ;;  %v10274_v25 = vpop.f32.mrb[7].mxu1  ;;  %v1109_v5 = vrot.slane %v356_v28, 7  ;;  %v358_v24 = vpop.f32.mrb[7].mxu0 }
 0x106   :  { %v10276_v18 = vpop.permute.xlu0 %1404  ;;  %v10278_v34 = vadd.f32 %v1559_v27, %v352_v55  ;;  %v10293_v27 = vpop.permute.xlu1 %1912 }
 0x107   :  { %15268 = vst [vmem:[#allocation70_spill] sm:$0xff] %v10276_v18  ;;  %v1233_v36 = vsel %vm1172_vm0, %v1108_v19, %v1109_v5  ;;  %v10284_v2 = vsel %vm1172_vm0, %v1156_v59, %v1157_v11  ;;  %15270 = vst [vmem:[#allocation72_spill] sm:$0xff] %v10293_v27 }
 0x108   :  { %v650_v31 = vpop.f32.mrb[8].mxu1  ;;  %v1560_v60 = vmul.f32 %v9712_v58, %v1233_v36  ;;  %v362_v52 = vpop.f32.mrb[8].mxu0 }
 0x109   :  { %v1158_v16 = vrot.slane %v650_v31, 7  ;;  %v10287_v46 = vpop.f32.mrb[9].mxu1  ;;  %v1110_v28 = vrot.slane %v362_v52, 7  ;;  %v364_v13 = vpop.f32.mrb[9].mxu0 }
 0x10a   :  { %v10289_v43 = vpop.permute.xlu0 %1409  ;;  %v10291_v55 = vadd.f32 %v1560_v60, %v358_v24 }
 0x10b   :  { %15269 = vst [vmem:[#allocation71_spill] sm:$0xff] %v10289_v43  ;;  %v1232_v19 = vsel %vm1172_vm0, %v1109_v5, %v1110_v28  ;;  %v10299_v59 = vsel %vm1172_vm0, %v1157_v11, %v1158_v16 }
 0x10c   :  { %v656_v36 = vpop.f32.mrb[10].mxu1  ;;  %v1561_v31 = vmul.f32 %v9738_v0, %v1232_v19  ;;  %v368_v58 = vpop.f32.mrb[10].mxu0 }
 0x10d   :  { %v1159_v18 = vrot.slane %v656_v36, 7  ;;  %v10302_v52 = vpop.f32.mrb[11].mxu1  ;;  %v1111_v44 = vrot.slane %v368_v58, 7  ;;  %v370_v43 = vpop.f32.mrb[11].mxu0 }
 0x10e   :  { %15271 = vst [vmem:[#allocation73_spill] sm:$0xff] %v10302_v52  ;;  %v10304_v24 = vpop.permute.xlu0 %1414  ;;  %v10306_v60 = vadd.f32 %v1561_v31, %v364_v13  ;;  %v10321_v31 = vpop.permute.xlu1 %1917 }
 0x10f   :  { %15272 = vst [vmem:[#allocation74_spill] sm:$0xff] %v10304_v24  ;;  %v1231_v5 = vsel %vm1172_vm0, %v1110_v28, %v1111_v44  ;;  %v10312_v11 = vsel %vm1172_vm0, %v1158_v16, %v1159_v18  ;;  %15275 = vst [vmem:[#allocation77_spill] sm:$0xff] %v10321_v31 }
 0x110   :  { %v662_v27 = vpop.f32.mrb[12].mxu1  ;;  %v1562_v19 = vmul.f32 %v9752_v54, %v1231_v5  ;;  %v374_v0 = vpop.f32.mrb[12].mxu0 }
 0x111   :  { %v1160_v36 = vrot.slane %v662_v27, 7  ;;  %v10315_v47 = vpop.f32.mrb[13].mxu1  ;;  %v1112_v58 = vrot.slane %v374_v0, 7  ;;  %v376_v52 = vpop.f32.mrb[13].mxu0 }
 0x112   :  { %15273 = vst [vmem:[#allocation75_spill] sm:$0xff] %v10315_v47  ;;  %v10317_v6 = vpop.permute.xlu0 %1419  ;;  %v10319_v13 = vadd.f32 %v1562_v19, %v370_v43 }
 0x113   :  { %15274 = vst [vmem:[#allocation76_spill] sm:$0xff] %v10317_v6  ;;  %v1230_v28 = vsel %vm1172_vm0, %v1111_v44, %v1112_v58  ;;  %v10327_v16 = vsel %vm1172_vm0, %v1159_v18, %v1160_v36 }
 0x114   :  { %15276 = vst [vmem:[#allocation78_spill] sm:$0xff] %v10327_v16  ;;  %v668_v5 = vpop.f32.mrb[14].mxu1  ;;  %v1563_v27 = vmul.f32 %v9766_v14, %v1230_v28  ;;  %v380_v54 = vpop.f32.mrb[14].mxu0 }
 0x115   :  { %v1161_v24 = vrot.slane %v668_v5, 7  ;;  %v10330_v0 = vpop.f32.mrb[15].mxu1  ;;  %v1113_v47 = vrot.slane %v380_v54, 7  ;;  %v382_v6 = vpop.f32.mrb[15].mxu0 }
 0x116   :  { %15277 = vst [vmem:[#allocation79_spill] sm:$0xff] %v10330_v0  ;;  %v10332_v43 = vpop.permute.xlu0 %1424  ;;  %v10334_v19 = vadd.f32 %v1563_v27, %v376_v52  ;;  %v10349_v27 = vpop.permute.xlu1 %1922 }
 0x117   :  { %15278 = vst [vmem:[#allocation80_spill] sm:$0xff] %v10332_v43  ;;  %v1229_v44 = vsel %vm1172_vm0, %v1112_v58, %v1113_v47  ;;  %v10340_v18 = vsel %vm1172_vm0, %v1160_v36, %v1161_v24  ;;  %15282 = vst [vmem:[#allocation84_spill] sm:$0xff] %v10349_v27 }
 0x118   :  { %v674_v31 = vpop.f32.mrb[16].mxu1  ;;  %v1564_v28 = vmul.f32 %v9780_v23, %v1229_v44  ;;  %v386_v14 = vpop.f32.mrb[16].mxu0 }
 0x119   :  { %v1162_v5 = vrot.slane %v674_v31, 7  ;;  %v10343_v16 = vpop.f32.mrb[17].mxu1  ;;  %v1114_v54 = vrot.slane %v386_v14, 7  ;;  %v388_v0 = vpop.f32.mrb[17].mxu0 }
 0x11a   :  { %15279 = vst [vmem:[#allocation81_spill] sm:$0xff] %v10343_v16  ;;  %v10345_v22 = vpop.permute.xlu0 %1429  ;;  %v10347_v52 = vadd.f32 %v1564_v28, %v382_v6 }
 0x11b   :  { %15280 = vst [vmem:[#allocation82_spill] sm:$0xff] %v10345_v22  ;;  %v1228_v58 = vsel %vm1172_vm0, %v1113_v47, %v1114_v54  ;;  %v10355_v36 = vsel %vm1172_vm0, %v1161_v24, %v1162_v5 }
 0x11c   :  { %15281 = vst [vmem:[#allocation83_spill] sm:$0xff] %v10347_v52  ;;  %15283 = vst [vmem:[#allocation85_spill] sm:$0xff] %v10355_v36  ;;  %v680_v44 = vpop.f32.mrb[18].mxu1  ;;  %v1565_v31 = vmul.f32 %v9809_v53, %v1228_v58  ;;  %v392_v23 = vpop.f32.mrb[18].mxu0 }
 0x11d   :  { %v1163_v43 = vrot.slane %v680_v44, 7  ;;  %v10358_v14 = vpop.f32.mrb[19].mxu1  ;;  %v1115_v16 = vrot.slane %v392_v23, 7  ;;  %v394_v22 = vpop.f32.mrb[19].mxu0 }
 0x11e   :  { %15284 = vst [vmem:[#allocation86_spill] sm:$0xff] %v10358_v14  ;;  %v10360_v6 = vpop.permute.xlu0 %1434  ;;  %v10362_v28 = vadd.f32 %v1565_v31, %v388_v0  ;;  %v10377_v31 = vpop.permute.xlu1 %1927 }
 0x11f   :  { %15285 = vst [vmem:[#allocation87_spill] sm:$0xff] %v10360_v6  ;;  %v1227_v47 = vsel %vm1172_vm0, %v1114_v54, %v1115_v16  ;;  %v10368_v24 = vsel %vm1172_vm0, %v1162_v5, %v1163_v43  ;;  %15290 = vst [vmem:[#allocation92_spill] sm:$0xff] %v10377_v31 }
 0x120   :  { %15286 = vst [vmem:[#allocation88_spill] sm:$0xff] %v10362_v28  ;;  %v686_v27 = vpop.f32.mrb[20].mxu1  ;;  %v1566_v58 = vmul.f32 %v9826_v32, %v1227_v47  ;;  %v398_v53 = vpop.f32.mrb[20].mxu0 }
 0x121   :  { %v1164_v44 = vrot.slane %v686_v27, 7  ;;  %v10371_v52 = vpop.f32.mrb[21].mxu1  ;;  %v1116_v23 = vrot.slane %v398_v53, 7  ;;  %v400_v14 = vpop.f32.mrb[21].mxu0 }
 0x122   :  { %15287 = vst [vmem:[#allocation89_spill] sm:$0xff] %v10371_v52  ;;  %v10373_v36 = vpop.permute.xlu0 %1439  ;;  %v10375_v0 = vadd.f32 %v1566_v58, %v394_v22 }
 0x123   :  { %15288 = vst [vmem:[#allocation90_spill] sm:$0xff] %v10373_v36  ;;  %v1226_v54 = vsel %vm1172_vm0, %v1115_v16, %v1116_v23  ;;  %v10383_v5 = vsel %vm1172_vm0, %v1163_v43, %v1164_v44 }
 0x124   :  { %15289 = vst [vmem:[#allocation91_spill] sm:$0xff] %v10375_v0  ;;  %v692_v47 = vpop.f32.mrb[22].mxu1  ;;  %v1567_v27 = vmul.f32 %v9843_v48, %v1226_v54  ;;  %v404_v32 = vpop.f32.mrb[22].mxu0 }
 0x125   :  { %v1165_v6 = vrot.slane %v692_v47, 7  ;;  %v10386_v53 = vpop.f32.mrb[23].mxu1  ;;  %v1117_v28 = vrot.slane %v404_v32, 7  ;;  %v406_v36 = vpop.f32.mrb[23].mxu0 }
 0x126   :  { %15291 = vst [vmem:[#allocation93_spill] sm:$0xff] %v10386_v53  ;;  %v10388_v22 = vpop.permute.xlu0 %1444  ;;  %v10390_v58 = vadd.f32 %v1567_v27, %v400_v14  ;;  %v10405_v27 = vpop.permute.xlu1 %1932 }
 0x127   :  { %15292 = vst [vmem:[#allocation94_spill] sm:$0xff] %v10388_v22  ;;  %v1225_v16 = vsel %vm1172_vm0, %v1116_v23, %v1117_v28  ;;  %v10396_v43 = vsel %vm1172_vm0, %v1164_v44, %v1165_v6  ;;  %15296 = vst [vmem:[#allocation98_spill] sm:$0xff] %v10405_v27 }
 0x128   :  { %v698_v31 = vpop.f32.mrb[24].mxu1  ;;  %v1568_v54 = vmul.f32 %v9860_v17, %v1225_v16  ;;  %v410_v48 = vpop.f32.mrb[24].mxu0 }
 0x129   :  { %v1166_v47 = vrot.slane %v698_v31, 7  ;;  %v10399_v0 = vpop.f32.mrb[25].mxu1  ;;  %v1118_v32 = vrot.slane %v410_v48, 7  ;;  %v412_v53 = vpop.f32.mrb[25].mxu0 }
 0x12a   :  { %15293 = vst [vmem:[#allocation95_spill] sm:$0xff] %v10399_v0  ;;  %v10401_v52 = vpop.permute.xlu0 %1449  ;;  %v10403_v14 = vadd.f32 %v1568_v54, %v406_v36 }
 0x12b   :  { %15294 = vst [vmem:[#allocation96_spill] sm:$0xff] %v10401_v52  ;;  %v1224_v23 = vsel %vm1172_vm0, %v1117_v28, %v1118_v32  ;;  %v10411_v44 = vsel %vm1172_vm0, %v1165_v6, %v1166_v47 }
 0x12c   :  { %15295 = vst [vmem:[#allocation97_spill] sm:$0xff] %v10403_v14  ;;  %15297 = vst [vmem:[#allocation99_spill] sm:$0xff] %v10411_v44  ;;  %v704_v16 = vpop.f32.mrb[26].mxu1  ;;  %v1569_v31 = vmul.f32 %v9891_v56, %v1224_v23  ;;  %v416_v17 = vpop.f32.mrb[26].mxu0 }
 0x12d   :  { %v1167_v22 = vrot.slane %v704_v16, 7  ;;  %v10414_v48 = vpop.f32.mrb[27].mxu1  ;;  %v1119_v0 = vrot.slane %v416_v17, 7  ;;  %v418_v52 = vpop.f32.mrb[27].mxu0 }
 0x12e   :  { %15298 = vst [vmem:[#allocation100_spill] sm:$0xff] %v10414_v48  ;;  %v10416_v36 = vpop.permute.xlu0 %1454  ;;  %v10418_v54 = vadd.f32 %v1569_v31, %v412_v53  ;;  %v10433_v31 = vpop.permute.xlu1 %1937 }
 0x12f   :  { %15299 = vst [vmem:[#allocation101_spill] sm:$0xff] %v10416_v36  ;;  %v1223_v28 = vsel %vm1172_vm0, %v1118_v32, %v1119_v0  ;;  %v10424_v6 = vsel %vm1172_vm0, %v1166_v47, %v1167_v22  ;;  %15302 = vst [vmem:[#allocation104_spill] sm:$0xff] %v10433_v31  ;;  %v15306_v31 = vrot.slane %v10223_v39, 7 }
 0x130   :  { %v710_v27 = vpop.f32.mrb[28].mxu1  ;;  %v1570_v23 = vmul.f32 %v9914_v3, %v1223_v28  ;;  %v422_v56 = vpop.f32.mrb[28].mxu0 }
 0x131   :  { %v1168_v16 = vrot.slane %v710_v27, 7  ;;  %v10427_v14 = vpop.f32.mrb[29].mxu1  ;;  %v1120_v17 = vrot.slane %v422_v56, 7  ;;  %v424_v48 = vpop.f32.mrb[29].mxu0 }
 0x132   :  { %15300 = vst [vmem:[#allocation102_spill] sm:$0xff] %v10427_v14  ;;  %v10429_v44 = vpop.permute.xlu0 %1459  ;;  %v10431_v53 = vadd.f32 %v1570_v23, %v418_v52 }
 0x133   :  { %15301 = vst [vmem:[#allocation103_spill] sm:$0xff] %v10429_v44  ;;  %v1222_v32 = vsel %vm1172_vm0, %v1119_v0, %v1120_v17  ;;  %v10439_v47 = vsel %vm1172_vm0, %v1167_v22, %v1168_v16 }
 0x134   :  { %v716_v28 = vpop.f32.mrb[30].mxu1  ;;  %v1571_v27 = vmul.f32 %v9937_v35, %v1222_v32  ;;  %v428_v3 = vpop.f32.mrb[30].mxu0 }
 0x135   :  { %v1169_v36 = vrot.slane %v716_v28, 7  ;;  %v10442_v56 = vpop.f32.mrb[31].mxu1  ;;  %v1121_v14 = vrot.slane %v428_v3, 7  ;;  %v430_v44 = vpop.f32.mrb[31].mxu0 }
 0x136   :  { %15303 = vst [vmem:[#allocation105_spill] sm:$0xff] %v10442_v56  ;;  %v10444_v52 = vadd.f32 %v1571_v27, %v424_v48  ;;  %v10446_v23 = vpop.permute.xlu0 %1464 }
 0x137   :  { %15305 = vst [vmem:[#allocation107_spill] sm:$0xff] %v10446_v23  ;;  %v1236_v0 = vsel %vm1172_vm0, %v1169_v36, %v15306_v31  ;;  %v1221_v22 = vsel %vm1172_vm0, %v1120_v17, %v1121_v14  ;;  %v10456_v32 = vsel %vm1172_vm0, %v1168_v16, %v1169_v36 }
 0x138   :  { %15304 = vst [vmem:[#allocation106_spill] sm:$0xff] %v10444_v52  ;;  %15307 = vst [vmem:[#allocation108_spill] sm:$0xff] %v10456_v32  ;;  %v1557_v28 = vmul.f32 %v9658_v29, %v1236_v0  ;;  %v1572_v3 = vmul.f32 %v9960_v21, %v1221_v22  ;;  %v434_v48 = vpop.f32.mrb[32].mxu0  ;;  %v7607_v27 = vpop.f32.mrb[32].mxu1 }
 0x139   :  { %v1122_v35 = vrot.slane %v434_v48, 7  ;;  %v1622_v23 = vrot.slane %v7607_v27, 1  ;;  %v10460_v56 = vpop.f32.mrb[33].mxu1  ;;  %v436_v39 = vpop.f32.mrb[33].mxu0 }
 0x13a   :  { %15308 = vst [vmem:[#allocation109_spill] sm:$0xff] %v10460_v56  ;;  %v10463_v31 = vadd.f32 %v1572_v3, %v430_v44  ;;  %v15052_v17 = vrot.slane %v10460_v56, 1  ;;  %v2134_v36 = vadd.f32 %v1557_v28, %v10229_v9  ;;  %v10467_v16 = vpop.permute.xlu0 %1469  ;;  %v10469_v0 = vpop.permute.xlu1 %1942 }
 0x13b   :  { %15310 = vst [vmem:[#allocation111_spill] sm:$0xff] %v10467_v16  ;;  %15311 = vst [vmem:[#allocation112_spill] sm:$0xff] %v10469_v0  ;;  %v1220_v22 = vsel %vm1172_vm0, %v1121_v14, %v1122_v35  ;;  %v10482_v0 = vld [vmem:[%s14956_s4] ss:$0 sm:$0xff] }
 0x13c   :  { %15309 = vst [vmem:[#allocation110_spill] sm:$0xff] %v10463_v31  ;;  %v1748_v48 = vsel %vm1685_vm1, %v15052_v17, %v1622_v23  ;;  %v1573_v27 = vmul.f32 %v9984_v12, %v1220_v22  ;;  %v440_v44 = vpop.f32.mrb[34].mxu0  ;;  %v7610_v3 = vpop.f32.mrb[34].mxu1 }
 0x13d   :  { %v2070_v29 = vmul.f32 %v9680_v45, %v1748_v48  ;;  %v1123_v21 = vrot.slane %v440_v44, 7  ;;  %v1624_v9 = vrot.slane %v7610_v3, 1  ;;  %v797_v28 = vpop.f32.mrb[35].mxu1  ;;  %v442_v16 = vpop.f32.mrb[35].mxu0 }
 0x13e   :  { %v10484_v14 = vadd.f32 %v1573_v27, %v436_v39  ;;  %v1623_v56 = vrot.slane %v797_v28, 1  ;;  %v10486_v31 = vpop.permute.xlu0 %1474 }
 0x13f   :  { %15313 = vst [vmem:[#allocation114_spill] sm:$0xff] %v10486_v31  ;;  %v2198_v17 = vadd.f32 %v2134_v36, %v2070_v29  ;;  %v1219_v22 = vsel %vm1172_vm0, %v1122_v35, %v1123_v21 }
 0x140   :  { %15312 = vst [vmem:[#allocation113_spill] sm:$0xff] %v10484_v14  ;;  %v1746_v48 = vsel %vm1685_vm1, %v1623_v56, %v1624_v9  ;;  %v1747_v44 = vsel %vm1685_vm1, %v1622_v23, %v1623_v56  ;;  %v1574_v3 = vmul.f32 %v10004_v62, %v1219_v22  ;;  %v446_v45 = vpop.f32.mrb[36].mxu0  ;;  %v7613_v12 = vpop.f32.mrb[36].mxu1 }
 0x141   :  { %v10496_v39 = vadd.f32 %v10482_v0, %v2198_v17  ;;  %v2071_v27 = vmul.f32 %v9678_v42, %v1747_v44  ;;  %v2072_v29 = vmul.f32 %v9694_v51, %v1746_v48  ;;  %v1124_v36 = vrot.slane %v446_v45, 7  ;;  %v807_v28 = vpop.f32.mrb[37].mxu1  ;;  %v448_v35 = vpop.f32.mrb[37].mxu0 }
 0x142   :  { %v10500_v31 = vadd.f32 %v1574_v3, %v442_v16  ;;  %v1626_v14 = vrot.slane %v7613_v12, 1  ;;  %v1625_v32 = vrot.slane %v807_v28, 1  ;;  %v10502_v52 = vpop.permute.xlu0 %1479  ;;  %v10504_v56 = vpop.permute.xlu1 %1947 }
 0x143   :  { %15314 = vst [vmem:[#allocation115_spill] sm:$0xff] %v10502_v52  ;;  %15315 = vst [vmem:[#allocation116_spill] sm:$0xff] %v10504_v56  ;;  %v7139_v23 = vmul.f32 -1.442695, %v10496_v39  ;;  %v1218_v17 = vsel %vm1172_vm0, %v1123_v21, %v1124_v36  ;;  %v2199_v22 = vadd.f32 %v10263_v38, %v2071_v27  ;;  %v2200_v48 = vadd.f32 %v10278_v34, %v2072_v29 }
 0x144   :  { %v1744_v45 = vsel %vm1685_vm1, %v1625_v32, %v1626_v14  ;;  %v1745_v12 = vsel %vm1685_vm1, %v1624_v9, %v1625_v32  ;;  %v1575_v16 = vmul.f32 %v10018_v41, %v1218_v17  ;;  %v452_v44 = vpop.f32.mrb[38].mxu0  ;;  %v7616_v3 = vpop.f32.mrb[38].mxu1 }
 0x145   :  { %8169 = vpow2.f32 %v7139_v23  ;;  %v2073_v28 = vmul.f32 %v9710_v57, %v1745_v12  ;;  %v2074_v62 = vmul.f32 %v9736_v63, %v1744_v45  ;;  %v1125_v21 = vrot.slane %v452_v44, 7  ;;  %v817_v51 = vpop.f32.mrb[39].mxu1  ;;  %v454_v38 = vpop.f32.mrb[39].mxu0 }
 0x146   :  { %v10518_v27 = vadd.f32 %v1575_v16, %v448_v35  ;;  %v1628_v34 = vrot.slane %v7616_v3, 1  ;;  %v1627_v29 = vrot.slane %v817_v51, 1  ;;  %v10520_v42 = vpop.permute.xlu0 %1484  ;;  %v10523_v32 = vadd.f32 %v10482_v0, %v2199_v22 }
 0x147   :  { %15316 = vst [vmem:[#allocation117_spill] sm:$0xff] %v10520_v42  ;;  %v1606_v9 = vmul.f32 %v10520_v42, %v10256_v37  ;;  %v1217_v23 = vsel %vm1172_vm0, %v1124_v36, %v1125_v21  ;;  %v10530_v17 = vadd.f32 %v10482_v0, %v2200_v48  ;;  %v2201_v45 = vadd.f32 %v10291_v55, %v2073_v28 }
 0x148   :  { %v1742_v35 = vsel %vm1685_vm1, %v1627_v29, %v1628_v34  ;;  %v1743_v51 = vsel %vm1685_vm1, %v1626_v14, %v1627_v29  ;;  %v1576_v22 = vmul.f32 %v10038_v40, %v1217_v23  ;;  %v458_v12 = vpop.f32.mrb[40].mxu0  ;;  %v7619_v16 = vpop.f32.mrb[40].mxu1  ;;  %v7140_v37 = vmul.f32 -1.442695, %v10523_v32 }
 0x149   :  { %v10540_v44 = vadd.f32 %v1606_v9, %v10243_v15  ;;  %v1126_v36 = vrot.slane %v458_v12, 7  ;;  %v827_v48 = vpop.f32.mrb[41].mxu1  ;;  %v460_v3 = vpop.f32.mrb[41].mxu0  ;;  %v1630_v55 = vrot.slane %v7619_v16, 1  ;;  %v7141_v15 = vmul.f32 -1.442695, %v10530_v17 }
 0x14a   :  { %v10542_v42 = vadd.f32 %v1576_v22, %v454_v38  ;;  %v1629_v28 = vrot.slane %v827_v48, 1  ;;  %v10544_v41 = vpop.permute.xlu0 %1489  ;;  %8171 = vpow2.f32 %v7140_v37  ;;  %v10546_v14 = vpop.permute.xlu1 %1952  ;;  %v10554_v9 = vadd.f32 %v10482_v0, %v2201_v45 }
 0x14b   :  { %15317 = vst [vmem:[#allocation118_spill] sm:$0xff] %v10540_v44  ;;  %15318 = vst [vmem:[#allocation119_spill] sm:$0xff] %v10544_v41  ;;  %v1607_v29 = vmul.f32 %v10544_v41, %v10271_v7  ;;  %v1216_v23 = vsel %vm1172_vm0, %v1125_v21, %v1126_v36  ;;  %v2202_v7 = vadd.f32 %v10306_v60, %v2074_v62  ;;  %8173 = vpow2.f32 %v7141_v15 }
 0x14c   :  { %15319 = vst [vmem:[#allocation120_spill] sm:$0xff] %v10546_v14  ;;  %v1740_v38 = vsel %vm1685_vm1, %v1629_v28, %v1630_v55  ;;  %v1741_v22 = vsel %vm1685_vm1, %v1628_v34, %v1629_v28  ;;  %v1577_v12 = vmul.f32 %v10052_v10, %v1216_v23  ;;  %v464_v16 = vpop.f32.mrb[42].mxu0  ;;  %v7622_v37 = vpop.f32.mrb[42].mxu1  ;;  %v2075_v48 = vmul.f32 %v9750_v8, %v1743_v51 }
 0x14d   :  { %v10564_v21 = vmul.f32 %v9764_v1, %v1742_v35  ;;  %v10567_v45 = vadd.f32 %v1607_v29, %v10259_v30  ;;  %v1127_v41 = vrot.slane %v464_v16, 7  ;;  %v837_v40 = vpop.f32.mrb[43].mxu1  ;;  %v466_v63 = vpop.f32.mrb[43].mxu0  ;;  %v1632_v34 = vrot.slane %v7622_v37, 1 }
 0x14e   :  { %v10569_v57 = vadd.f32 %v1577_v12, %v460_v3  ;;  %v1631_v28 = vrot.slane %v837_v40, 1  ;;  %v10571_v23 = vpop.permute.xlu0 %1494  ;;  %v7142_v30 = vmul.f32 -1.442695, %v10554_v9  ;;  %v10579_v35 = vadd.f32 %v10482_v0, %v2202_v7 }
 0x14f   :  { %15320 = vst [vmem:[#allocation121_spill] sm:$0xff] %v10567_v45  ;;  %15321 = vst [vmem:[#allocation122_spill] sm:$0xff] %v10571_v23  ;;  %v8170_v10 = vpop.eup %8169  ;;  %v1608_v62 = vmul.f32 %v10571_v23, %v10284_v2  ;;  %v1215_v60 = vsel %vm1172_vm0, %v1126_v36, %v1127_v41  ;;  %v10587_v2 = vmul.f32 %v9778_v20, %v1741_v22 }
 0x150   :  { %v2525_v51 = vadd.f32 1.0, %v8170_v10  ;;  %v1738_v3 = vsel %vm1685_vm1, %v1631_v28, %v1632_v34  ;;  %v1739_v40 = vsel %vm1685_vm1, %v1630_v55, %v1631_v28  ;;  %v1578_v29 = vmul.f32 %v10084_v33, %v1215_v60  ;;  %v470_v15 = vpop.f32.mrb[44].mxu0  ;;  %v7625_v12 = vpop.f32.mrb[44].mxu1 }
 0x151   :  { %v10590_v36 = vmul.f32 %v9807_v50, %v1740_v38  ;;  %v10593_v16 = vadd.f32 %v1608_v62, %v10274_v25  ;;  %v1128_v10 = vrot.slane %v470_v15, 7  ;;  %v847_v37 = vpop.f32.mrb[45].mxu1  ;;  %v472_v7 = vpop.f32.mrb[45].mxu0  ;;  %v1634_v55 = vrot.slane %v7625_v12, 1 }
 0x152   :  { %8175 = vrcp.f32 %v2525_v51  ;;  %v10595_v23 = vadd.f32 %v1578_v29, %v466_v63  ;;  %v1633_v28 = vrot.slane %v847_v37, 1  ;;  %v10597_v60 = vpop.permute.xlu0 %1499  ;;  %v10599_v33 = vpop.permute.xlu1 %1957  ;;  %v7143_v25 = vmul.f32 -1.442695, %v10579_v35 }
 0x153   :  { %15322 = vst [vmem:[#allocation123_spill] sm:$0xff] %v10593_v16  ;;  %15323 = vst [vmem:[#allocation124_spill] sm:$0xff] %v10597_v60  ;;  %v1609_v22 = vmul.f32 %v10597_v60, %v10299_v59  ;;  %v1214_v38 = vsel %vm1172_vm0, %v1127_v41, %v1128_v10  ;;  %8177 = vpow2.f32 %v7142_v30  ;;  %v2203_v37 = vadd.f32 %v10319_v13, %v2075_v48 }
 0x154   :  { %15324 = vst [vmem:[#allocation125_spill] sm:$0xff] %v10599_v33  ;;  %v8172_v62 = vpop.eup %8171  ;;  %v1736_v63 = vsel %vm1685_vm1, %v1633_v28, %v1634_v55  ;;  %v1737_v51 = vsel %vm1685_vm1, %v1632_v34, %v1633_v28  ;;  %v1579_v29 = vmul.f32 %v10104_v49, %v1214_v38  ;;  %v476_v15 = vpop.f32.mrb[46].mxu0  ;;  %v10613_v59 = vmul.f32 %v9824_v26, %v1739_v40 }
 0x155   :  { %v7628_v12 = vpop.f32.mrb[46].mxu1  ;;  %v10616_v41 = vmul.f32 %v9841_v4, %v1738_v3  ;;  %v10619_v30 = vadd.f32 %v1609_v22, %v10287_v46  ;;  %v1129_v60 = vrot.slane %v476_v15, 7  ;;  %v478_v20 = vpop.f32.mrb[47].mxu0  ;;  %v2526_v49 = vadd.f32 1.0, %v8172_v62 }
 0x156   :  { %v857_v50 = vpop.f32.mrb[47].mxu1  ;;  %v10621_v1 = vadd.f32 %v1579_v29, %v472_v7  ;;  %v1636_v34 = vrot.slane %v7628_v12, 1  ;;  %v10623_v38 = vpop.permute.xlu0 %1504  ;;  %8179 = vpow2.f32 %v7143_v25  ;;  %v10630_v46 = vadd.f32 %v10482_v0, %v2203_v37  ;;  %v15327_v7 = vld [vmem:[#allocation49_spill] sm:$0xff] }
 0x157   :  { %15325 = vst [vmem:[#allocation126_spill] sm:$0xff] %v10619_v30  ;;  %v1635_v28 = vrot.slane %v857_v50, 1  ;;  %15326 = vst [vmem:[#allocation127_spill] sm:$0xff] %v10623_v38  ;;  %v1610_v13 = vmul.f32 %v10623_v38, %v10312_v11  ;;  %v1213_v48 = vsel %vm1172_vm0, %v1128_v10, %v1129_v60  ;;  %v8174_v3 = vpop.eup %8173  ;;  %8181 = vrcp.f32 %v2526_v49  ;;  %v15328_v11 = vld [vmem:[#allocation24_spill] sm:$0xff]  ;;  %v15329_v10 = vld [vmem:[#allocation26_spill] sm:$0xff]  ;;  %v10650_v49 = vpop.permute.xlu1 %1962 }
 0x158   :  { %v1580_v22 = vmul.f32 %v15327_v7, %v1213_v48  ;;  %v482_v62 = vpop.f32.mrb[48].mxu0  ;;  %v7631_v29 = vpop.f32.mrb[48].mxu1  ;;  %v10638_v15 = vmul.f32 %v15328_v11, %v1737_v51  ;;  %v10641_v25 = vmul.f32 %v15329_v10, %v1736_v63  ;;  %v15330_v12 = vld [vmem:[#allocation73_spill] sm:$0xff]  ;;  %v2527_v7 = vadd.f32 1.0, %v8174_v3  ;;  %15333 = vst [vmem:[#allocation129_spill] sm:$0xff] %v10650_v49  ;;  %v15334_v51 = vld [vmem:[#allocation78_spill] sm:$0xff] }
 0x159   :  { %v1734_v40 = vsel %vm1685_vm1, %v1635_v28, %v1636_v34  ;;  %v1735_v50 = vsel %vm1685_vm1, %v1634_v55, %v1635_v28  ;;  %v10644_v37 = vadd.f32 %v1610_v13, %v15330_v12  ;;  %v1130_v38 = vrot.slane %v482_v62, 7  ;;  %v867_v4 = vpop.f32.mrb[49].mxu1  ;;  %v484_v26 = vpop.f32.mrb[49].mxu0 }
 0x15a   :  { %v10646_v8 = vadd.f32 %v1580_v22, %v478_v20  ;;  %v1638_v55 = vrot.slane %v7631_v29, 1  ;;  %v1637_v28 = vrot.slane %v867_v4, 1  ;;  %v10648_v48 = vpop.permute.xlu0 %1509  ;;  %v7144_v13 = vmul.f32 -1.442695, %v10630_v46  ;;  %v15335_v22 = vld [vmem:[#allocation51_spill] sm:$0xff] }
 0x15b   :  { %15331 = vst [vmem:[#allocation73_spill] sm:$0xff] %v10644_v37  ;;  %15332 = vst [vmem:[#allocation128_spill] sm:$0xff] %v10648_v48  ;;  %v1611_v11 = vmul.f32 %v10648_v48, %v15334_v51  ;;  %v1212_v63 = vsel %vm1172_vm0, %v1129_v60, %v1130_v38  ;;  %v2204_v62 = vadd.f32 %v10334_v19, %v10564_v21  ;;  %8183 = vrcp.f32 %v2527_v7  ;;  %v15336_v48 = vld [vmem:[#allocation28_spill] sm:$0xff]  ;;  %v15337_v37 = vld [vmem:[#allocation30_spill] sm:$0xff] }
 0x15c   :  { %v8176_v20 = vpop.eup %8175  ;;  %v1732_v4 = vsel %vm1685_vm1, %v1637_v28, %v1638_v55  ;;  %v1733_v3 = vsel %vm1685_vm1, %v1636_v34, %v1637_v28  ;;  %v1581_v29 = vmul.f32 %v15335_v22, %v1212_v63  ;;  %v488_v12 = vpop.f32.mrb[50].mxu0  ;;  %v10665_v60 = vmul.f32 %v15336_v48, %v1735_v50  ;;  %v15338_v19 = vld [vmem:[#allocation75_spill] sm:$0xff] }
 0x15d   :  { %v7634_v10 = vpop.f32.mrb[50].mxu1  ;;  %v8178_v51 = vpop.eup %8177  ;;  %v10668_v30 = vmul.f32 %v15337_v37, %v1734_v40  ;;  %v10671_v21 = vadd.f32 %v1611_v11, %v15338_v19  ;;  %v1131_v16 = vrot.slane %v488_v12, 7  ;;  %v2717_v7 = vmul.f32 %v8176_v20, %v10496_v39  ;;  %v15342_v12 = vld [vmem:[#allocation32_spill] sm:$0xff]  ;;  %v15343_v19 = vld [vmem:[#allocation34_spill] sm:$0xff] }
 0x15e   :  { %v877_v45 = vpop.f32.mrb[51].mxu1  ;;  %v490_v44 = vpop.f32.mrb[51].mxu0  ;;  %v10673_v52 = vadd.f32 %v1581_v29, %v484_v26  ;;  %v1640_v34 = vrot.slane %v7634_v10, 1  ;;  %v2528_v22 = vadd.f32 1.0, %v8178_v51  ;;  %8185 = vpow2.f32 %v7144_v13  ;;  %v15341_v10 = vld [vmem:[#allocation53_spill] sm:$0xff]  ;;  %v15344_v13 = vld [vmem:[#allocation79_spill] sm:$0xff] }
 0x15f   :  { %15339 = vst [vmem:[#allocation78_spill] sm:$0xff] %v10671_v21  ;;  %v1639_v28 = vrot.slane %v877_v45, 1  ;;  %v10675_v63 = vpop.permute.xlu0 %1514  ;;  %v1211_v40 = vsel %vm1172_vm0, %v1130_v38, %v1131_v16  ;;  %2894 = vmatmul.mubr.f32.vlgmr.msra.gmra.mrb[96].mxu1 %v2717_v7  ;;  %7733 = vmatprep.mubr.f32.mxu0 %v2717_v7  ;;  %v10691_v38 = vmul.f32 %v15343_v19, %v1732_v4  ;;  %v15346_v48 = vmov 0.0   ;;  %v15350_v4 = vld [vmem:[#allocation85_spill] sm:$0xff] }
 0x160   :  { %15340 = vst [vmem:[#allocation75_spill] sm:$0xff] %v10675_v63  ;;  %v1612_v50 = vmul.f32 %v10675_v63, %v10340_v18  ;;  %v1582_v45 = vmul.f32 %v15341_v10, %v1211_v40  ;;  %v494_v29 = vpop.f32.mrb[52].mxu0  ;;  %v7637_v39 = vpop.f32.mrb[52].mxu1  ;;  %v10688_v18 = vmul.f32 %v15342_v12, %v1733_v3  ;;  %2899 = vmatprep.mubr.f32.mxu1 %v15346_v48  ;;  %8187 = vrcp.f32 %v2528_v22 }
 0x161   :  { %v1730_v11 = vsel %vm1685_vm1, %v1639_v28, %v1640_v34  ;;  %v1731_v26 = vsel %vm1685_vm1, %v1638_v55, %v1639_v28  ;;  %v8180_v20 = vpop.eup %8179  ;;  %v1132_v63 = vrot.slane %v494_v29, 7  ;;  %v887_v37 = vpop.f32.mrb[53].mxu1  ;;  %v1642_v7 = vrot.slane %v7637_v39, 1 }
 0x162   :  { %v10694_v51 = vadd.f32 %v1612_v50, %v15344_v13  ;;  %v496_v55 = vpop.f32.mrb[53].mxu0  ;;  %v8182_v28 = vpop.eup %8181  ;;  %v10697_v40 = vadd.f32 %v1582_v45, %v490_v44  ;;  %v1641_v10 = vrot.slane %v887_v37, 1  ;;  %v2529_v13 = vadd.f32 1.0, %v8180_v20  ;;  %v15351_v45 = vld [vmem:[#allocation55_spill] sm:$0xff] }
 0x163   :  { %v10699_v21 = vpop.permute.xlu0 %1519  ;;  %v10701_v3 = vpop.permute.xlu1 %1967  ;;  %v1210_v50 = vsel %vm1172_vm0, %v1131_v16, %v1132_v63  ;;  %v2718_v29 = vmul.f32 %v8182_v28, %v10523_v32  ;;  %v15353_v16 = vld [vmem:[#allocation38_spill] sm:$0xff]  ;;  %v15354_v32 = vld [vmem:[#allocation81_spill] sm:$0xff] }
 0x164   :  { %15345 = vst [vmem:[#allocation79_spill] sm:$0xff] %v10694_v51  ;;  %15347 = vst [vmem:[#allocation130_spill] sm:$0xff] %v10697_v40  ;;  %v1613_v19 = vmul.f32 %v10699_v21, %v15350_v4  ;;  %v1728_v44 = vsel %vm1685_vm1, %v1641_v10, %v1642_v7  ;;  %v1729_v37 = vsel %vm1685_vm1, %v1640_v34, %v1641_v10  ;;  %v500_v22 = vpop.f32.mrb[54].mxu0  ;;  %v7640_v12 = vpop.f32.mrb[54].mxu1  ;;  %v15352_v4 = vld [vmem:[#allocation36_spill] sm:$0xff]  ;;  %8189 = vrcp.f32 %v2529_v13 }
 0x165   :  { %15348 = vst [vmem:[#allocation131_spill] sm:$0xff] %v10699_v21  ;;  %15349 = vst [vmem:[#allocation132_spill] sm:$0xff] %v10701_v3  ;;  %v1583_v39 = vmul.f32 %v15351_v45, %v1210_v50  ;;  %v10714_v51 = vadd.f32 %v10482_v0, %v2204_v62  ;;  %v10717_v21 = vmul.f32 %v15352_v4, %v1731_v26  ;;  %2900 = vmatmul.mubr.f32.gmra.mrb[98].mxu1 %v2718_v29  ;;  %v897_v34 = vpop.f32.mrb[55].mxu1  ;;  %v502_v10 = vpop.f32.mrb[55].mxu0  ;;  %v15362_v4 = vld [vmem:[#allocation86_spill] sm:$0xff] }
 0x166   :  { %v10720_v3 = vmul.f32 %v15353_v16, %v1730_v11  ;;  %v10723_v20 = vadd.f32 %v1613_v19, %v15354_v32  ;;  %7734 = vmatmul.mubr.f32.vlgmr.msra.gmra.mrb[96].mxu0 %v2718_v29  ;;  %v1133_v28 = vrot.slane %v500_v22, 7  ;;  %v8184_v50 = vpop.eup %8183  ;;  %v1644_v49 = vrot.slane %v7640_v12, 1  ;;  %2905 = vmatprep.mubr.f32.mxu1 %v15346_v48 }
 0x167   :  { %v10725_v45 = vadd.f32 %v1583_v39, %v496_v55  ;;  %v1643_v62 = vrot.slane %v897_v34, 1  ;;  %v10727_v33 = vpop.permute.xlu0 %1524  ;;  %v2719_v11 = vmul.f32 %v8184_v50, %v10530_v17  ;;  %v7145_v29 = vmul.f32 -1.442695, %v10714_v51  ;;  %v15358_v39 = vld [vmem:[#allocation57_spill] sm:$0xff]  ;;  %v15359_v17 = vld [vmem:[#allocation83_spill] sm:$0xff] }
 0x168   :  { %15355 = vst [vmem:[#allocation85_spill] sm:$0xff] %v10723_v20  ;;  %15357 = vst [vmem:[#allocation133_spill] sm:$0xff] %v10727_v33  ;;  %v1614_v26 = vmul.f32 %v10727_v33, %v10368_v24  ;;  %v1209_v19 = vsel %vm1172_vm0, %v1132_v63, %v1133_v28  ;;  %v506_v32 = vpop.f32.mrb[56].mxu0  ;;  %v7643_v13 = vpop.f32.mrb[56].mxu1  ;;  %v2205_v34 = vadd.f32 %v15359_v17, %v10587_v2  ;;  %v15360_v24 = vld [vmem:[#allocation40_spill] sm:$0xff]  ;;  %v15361_v63 = vld [vmem:[#allocation42_spill] sm:$0xff] }
 0x169   :  { %15356 = vst [vmem:[#allocation81_spill] sm:$0xff] %v10725_v45  ;;  %v1726_v55 = vsel %vm1685_vm1, %v1643_v62, %v1644_v49  ;;  %v1727_v12 = vsel %vm1685_vm1, %v1642_v7, %v1643_v62  ;;  %v1584_v22 = vmul.f32 %v15358_v39, %v1209_v19  ;;  %v8186_v50 = vpop.eup %8185  ;;  %v10744_v33 = vmul.f32 %v15360_v24, %v1729_v37  ;;  %v907_v62 = vpop.f32.mrb[57].mxu1 }
 0x16a   :  { %v10747_v16 = vmul.f32 %v15361_v63, %v1728_v44  ;;  %7736 = vmatprep.mubr.f32.mxu0 %v2719_v11  ;;  %v10750_v20 = vadd.f32 %v1614_v26, %v15362_v4  ;;  %2906 = vmatmul.mubr.f32.gmra.mrb[100].mxu1 %v2719_v11  ;;  %v1134_v7 = vrot.slane %v506_v32, 7  ;;  %v508_v19 = vpop.f32.mrb[57].mxu0  ;;  %v1646_v14 = vrot.slane %v7643_v13, 1  ;;  %v10757_v17 = vpop.permute.xlu1 %1972  ;;  %v15367_v32 = vld [vmem:[#allocation59_spill] sm:$0xff]  ;;  %v15370_v63 = vld [vmem:[#allocation89_spill] sm:$0xff] }
 0x16b   :  { %v10752_v39 = vadd.f32 %v1584_v22, %v502_v10  ;;  %v1645_v56 = vrot.slane %v907_v62, 1  ;;  %v10754_v2 = vpop.permute.xlu0 %1529  ;;  %2911 = vmatprep.mubr.f32.mxu1 %v15346_v48  ;;  %v2530_v37 = vadd.f32 1.0, %v8186_v50  ;;  %15366 = vst [vmem:[#allocation135_spill] sm:$0xff] %v10757_v17  ;;  %8191 = vpow2.f32 %v7145_v29  ;;  %v8188_v10 = vpop.eup %8187 }
 0x16c   :  { %15363 = vst [vmem:[#allocation83_spill] sm:$0xff] %v10750_v20  ;;  %15365 = vst [vmem:[#allocation134_spill] sm:$0xff] %v10754_v2  ;;  %v1615_v44 = vmul.f32 %v10754_v2, %v10383_v5  ;;  %v1208_v4 = vsel %vm1172_vm0, %v1133_v28, %v1134_v7  ;;  %v10764_v11 = vadd.f32 %v10482_v0, %v2205_v34  ;;  %v512_v50 = vpop.f32.mrb[58].mxu0  ;;  %v7646_v62 = vpop.f32.mrb[58].mxu1  ;;  %v15368_v5 = vld [vmem:[#allocation44_spill] sm:$0xff]  ;;  %v15369_v28 = vld [vmem:[#allocation46_spill] sm:$0xff] }
 0x16d   :  { %15364 = vst [vmem:[#allocation86_spill] sm:$0xff] %v10752_v39  ;;  %v1724_v26 = vsel %vm1685_vm1, %v1645_v56, %v1646_v14  ;;  %v1725_v22 = vsel %vm1685_vm1, %v1644_v49, %v1645_v56  ;;  %v1585_v13 = vmul.f32 %v15367_v32, %v1208_v4  ;;  %8193 = vrcp.f32 %v2530_v37  ;;  %v917_v20 = vpop.f32.mrb[59].mxu1  ;;  %v514_v17 = vpop.f32.mrb[59].mxu0 }
 0x16e   :  { %v10772_v2 = vmul.f32 %v15368_v5, %v1727_v12  ;;  %v10775_v29 = vmul.f32 %v15369_v28, %v1726_v55  ;;  %v2720_v34 = vmul.f32 %v8188_v10, %v10554_v9  ;;  %v10779_v24 = vadd.f32 %v1615_v44, %v15370_v63  ;;  %v15374_v9 = vld [vmem:[#allocation88_spill] sm:$0xff]  ;;  %v15375_v44 = vld [vmem:[#allocation91_spill] sm:$0xff] }
 0x16f   :  { %v10781_v39 = vadd.f32 %v1585_v13, %v508_v19  ;;  %v1135_v56 = vrot.slane %v512_v50, 7  ;;  %v1648_v49 = vrot.slane %v7646_v62, 1  ;;  %v1647_v37 = vrot.slane %v917_v20, 1  ;;  %v10783_v4 = vpop.permute.xlu0 %1534  ;;  %v8190_v19 = vpop.eup %8189 }
 0x170   :  { %15371 = vst [vmem:[#allocation89_spill] sm:$0xff] %v10779_v24  ;;  %15373 = vst [vmem:[#allocation137_spill] sm:$0xff] %v10783_v4  ;;  %7737 = vmatmul.mubr.f32.gmra.mrb[98].mxu0 %v2720_v34  ;;  %2912 = vmatmul.mubr.f32.gmra.mrb[102].mxu1 %v2720_v34  ;;  %v1616_v55 = vmul.f32 %v10783_v4, %v10396_v43  ;;  %v7146_v12 = vmul.f32 -1.442695, %v10764_v11  ;;  %v2206_v63 = vadd.f32 %v15374_v9, %v10590_v36  ;;  %v518_v50 = vpop.f32.mrb[60].mxu0  ;;  %v10799_v62 = vpop.f32.mrb[60].mxu1 }
 0x171   :  { %15372 = vst [vmem:[#allocation136_spill] sm:$0xff] %v10781_v39  ;;  %v2207_v10 = vadd.f32 %v15375_v44, %v10613_v59  ;;  %v1722_v13 = vsel %vm1685_vm1, %v1647_v37, %v1648_v49  ;;  %v1723_v20 = vsel %vm1685_vm1, %v1646_v14, %v1647_v37  ;;  %2917 = vmatprep.mubr.f32.mxu1 %v15346_v48  ;;  %v15376_v34 = vld [vmem:[#allocation48_spill] sm:$0xff]  ;;  %v15377_v44 = vld [vmem:[#allocation50_spill] sm:$0xff]  ;;  %v15378_v14 = vld [vmem:[#allocation93_spill] sm:$0xff]  ;;  %v927_v32 = vpop.f32.mrb[61].mxu1  ;;  %v520_v28 = vpop.f32.mrb[61].mxu0 }
 0x172   :  { %v1207_v43 = vsel %vm1172_vm0, %v1134_v7, %v1135_v56  ;;  %v2208_v36 = vadd.f32 %v10390_v58, %v10616_v41  ;;  %v2721_v59 = vmul.f32 %v8190_v19, %v10579_v35  ;;  %v10805_v9 = vmul.f32 %v15376_v34, %v1725_v22  ;;  %v15380_v7 = vld [vmem:[#allocation61_spill] sm:$0xff]  ;;  %v10817_v35 = vpop.permute.xlu1 %1977  ;;  %v15383_v22 = vld [vmem:[#allocation99_spill] sm:$0xff]  ;;  %v15388_v34 = vld [vmem:[#allocation52_spill] sm:$0xff] }
 0x173   :  { %v10808_v4 = vmul.f32 %v15377_v44, %v1724_v26  ;;  %v10811_v37 = vadd.f32 %v1616_v55, %v15378_v14  ;;  %v1586_v5 = vmul.f32 %v15380_v7, %v1207_v43  ;;  %8195 = vpow2.f32 %v7146_v12  ;;  %v10815_v58 = vpop.permute.xlu0 %1539  ;;  %15382 = vst [vmem:[#allocation93_spill] sm:$0xff] %v10817_v35  ;;  %v15390_v35 = vld [vmem:[#allocation65_spill] sm:$0xff] }
 0x174   :  { %v1136_v24 = vrot.slane %v518_v50, 7  ;;  %v1650_v39 = vrot.slane %v10799_v62, 1  ;;  %15381 = vst [vmem:[#allocation91_spill] sm:$0xff] %v10815_v58  ;;  %7739 = vmatprep.mubr.f32.mxu0 %v2721_v59  ;;  %2918 = vmatmul.mubr.f32.gmra.mrb[104].mxu1 %v2721_v59  ;;  %v10820_v41 = vadd.f32 %v10482_v0, %v2206_v63  ;;  %v1649_v26 = vrot.slane %v927_v32, 1  ;;  %v10832_v50 = vpop.f32.mrb[62].mxu0  ;;  %v10834_v62 = vpop.f32.mrb[62].mxu1 }
 0x175   :  { %15379 = vst [vmem:[#allocation88_spill] sm:$0xff] %v10811_v37  ;;  %v1617_v55 = vmul.f32 %v10815_v58, %v15383_v22  ;;  %v10825_v19 = vadd.f32 %v10482_v0, %v2207_v10  ;;  %v10827_v12 = vadd.f32 %v1586_v5, %v514_v17  ;;  %2923 = vmatprep.mubr.f32.mxu1 %v15346_v48  ;;  %v15385_v32 = vld [vmem:[#allocation97_spill] sm:$0xff]  ;;  %v8192_v14 = vpop.eup %8191  ;;  %v937_v58 = vpop.f32.mrb[63].mxu1 }
 0x176   :  { %v1206_v43 = vsel %vm1172_vm0, %v1135_v56, %v1136_v24  ;;  %v10837_v63 = vadd.f32 %v10482_v0, %v2208_v36  ;;  %v2209_v59 = vadd.f32 %v15385_v32, %v10638_v15  ;;  %v7147_v10 = vmul.f32 -1.442695, %v10820_v41  ;;  %v15386_v56 = vld [vmem:[#allocation95_spill] sm:$0xff]  ;;  %v526_v7 = vpop.f32.mrb[63].mxu0  ;;  %v15389_v15 = vld [vmem:[#allocation54_spill] sm:$0xff] }
 0x177   :  { %15384 = vst [vmem:[#allocation99_spill] sm:$0xff] %v10827_v12  ;;  %v1720_v17 = vsel %vm1685_vm1, %v1649_v26, %v1650_v39  ;;  %v1721_v5 = vsel %vm1685_vm1, %v1648_v49, %v1649_v26  ;;  %v10847_v22 = vadd.f32 %v1617_v55, %v15386_v56  ;;  %v8194_v44 = vpop.eup %8193  ;;  %v2531_v36 = vadd.f32 1.0, %v8192_v14  ;;  %v10856_v45 = vpop.permute.xlu0 %1544 }
 0x178   :  { %v10850_v37 = vmul.f32 %v15388_v34, %v1723_v20  ;;  %v10853_v32 = vmul.f32 %v15389_v15, %v1722_v13  ;;  %v1587_v12 = vmul.f32 %v15390_v35, %v1206_v43  ;;  %15391 = vst [vmem:[#allocation95_spill] sm:$0xff] %v10856_v45  ;;  %v2722_v40 = vmul.f32 %v8194_v44, %v10630_v46  ;;  %v10865_v13 = vpop.f32.mrb[64].mxu0  ;;  %v10867_v56 = vpop.f32.mrb[64].mxu1 }
 0x179   :  { %15387 = vst [vmem:[#allocation97_spill] sm:$0xff] %v10847_v22  ;;  %8197 = vpow2.f32 %v7147_v10  ;;  %v7148_v49 = vmul.f32 -1.442695, %v10825_v19  ;;  %v1137_v26 = vrot.slane %v10832_v50, 7  ;;  %v1652_v20 = vrot.slane %v10834_v62, 1  ;;  %v15393_v50 = vld [vmem:[#allocation67_spill] sm:$0xff] }
 0x17a   :  { %8199 = vrcp.f32 %v2531_v36  ;;  %v10861_v55 = vadd.f32 %v1587_v12, %v520_v28  ;;  %v7149_v14 = vmul.f32 -1.442695, %v10837_v63  ;;  %7740 = vmatmul.mubr.f32.gmra.mrb[100].mxu0 %v2722_v40  ;;  %2924 = vmatmul.mubr.f32.gmra.mrb[106].mxu1 %v2722_v40  ;;  %v1651_v46 = vrot.slane %v937_v58, 1  ;;  %v947_v28 = vpop.f32.mrb[65].mxu1  ;;  %v532_v12 = vpop.f32.mrb[65].mxu0  ;;  %v15400_v40 = vld [vmem:[#allocation58_spill] sm:$0xff] }
 0x17b   :  { %8201 = vpow2.f32 %v7148_v49  ;;  %v1618_v44 = vmul.f32 %v10856_v45, %v10424_v6  ;;  %v1205_v43 = vsel %vm1172_vm0, %v1136_v24, %v1137_v26  ;;  %2929 = vmatprep.mubr.f32.mxu1 %v15346_v48  ;;  %v10876_v10 = vadd.f32 %v10482_v0, %v2209_v59  ;;  %v10879_v36 = vpop.permute.xlu0 %1549  ;;  %v10881_v58 = vpop.permute.xlu1 %1982  ;;  %v15396_v49 = vld [vmem:[#allocation100_spill] sm:$0xff] }
 0x17c   :  { %15392 = vst [vmem:[#allocation138_spill] sm:$0xff] %v10861_v55  ;;  %8203 = vpow2.f32 %v7149_v14  ;;  %v1588_v62 = vmul.f32 %v15393_v50, %v1205_v43  ;;  %15394 = vst [vmem:[#allocation139_spill] sm:$0xff] %v10879_v36  ;;  %v10885_v6 = vsel %vm1685_vm1, %v1651_v46, %v1652_v20  ;;  %v1719_v24 = vsel %vm1685_vm1, %v1650_v39, %v1651_v46  ;;  %v15398_v45 = vld [vmem:[#allocation56_spill] sm:$0xff]  ;;  %v10902_v22 = vpop.f32.mrb[66].mxu0 }
 0x17d   :  { %15395 = vst [vmem:[#allocation140_spill] sm:$0xff] %v10881_v58  ;;  %v10890_v14 = vadd.f32 %v1618_v44, %v15396_v49  ;;  %v1654_v43 = vrot.slane %v10867_v56, 1  ;;  %v8196_v59 = vpop.eup %8195  ;;  %v10894_v50 = vmul.f32 %v15398_v45, %v1721_v5  ;;  %v10897_v35 = vmul.f32 %v15400_v40, %v1720_v17  ;;  %v10904_v58 = vpop.f32.mrb[66].mxu1  ;;  %v15403_v17 = vld [vmem:[#allocation60_spill] sm:$0xff] }
 0x17e   :  { %v10899_v15 = vadd.f32 %v1588_v62, %v526_v7  ;;  %v7150_v34 = vmul.f32 -1.442695, %v10876_v10  ;;  %v2532_v39 = vadd.f32 1.0, %v8196_v59  ;;  %v2210_v46 = vadd.f32 %v10418_v54, %v10641_v25  ;;  %v957_v44 = vpop.f32.mrb[67].mxu1  ;;  %v10910_v49 = vpop.f32.mrb[67].mxu0 }
 0x17f   :  { %15397 = vst [vmem:[#allocation100_spill] sm:$0xff] %v10890_v14  ;;  %15399 = vst [vmem:[#allocation141_spill] sm:$0xff] %v10894_v50  ;;  %v1653_v56 = vrot.slane %v947_v28, 1  ;;  %v1619_v5 = vmul.f32 %v10879_v36, %v10439_v47  ;;  %v10913_v7 = vmul.f32 %v15403_v17, %v1719_v24  ;;  %v15405_v62 = vrot.slane %v10865_v13, 7  ;;  %v15408_v28 = vld [vmem:[#allocation102_spill] sm:$0xff]  ;;  %v15411_v36 = vld [vmem:[#allocation72_spill] sm:$0xff]  ;;  %v10955_v55 = vpop.permute.xlu1 %1987 }
 0x180   :  { %15401 = vst [vmem:[#allocation142_spill] sm:$0xff] %v10897_v35  ;;  %15402 = vst [vmem:[#allocation143_spill] sm:$0xff] %v10899_v15  ;;  %8205 = vpow2.f32 %v7150_v34  ;;  %v2211_v59 = vadd.f32 %v10431_v53, %v10665_v60  ;;  %v10922_v54 = vadd.f32 %v10482_v0, %v2210_v46  ;;  %v10930_v34 = vpop.permute.xlu0 %1554  ;;  %v10940_v46 = vpop.f32.mrb[68].mxu1  ;;  %v15413_v14 = vld [vmem:[#allocation108_spill] sm:$0xff] }
 0x181   :  { %15404 = vst [vmem:[#allocation144_spill] sm:$0xff] %v10913_v7  ;;  %v1204_v40 = vsel %vm1172_vm0, %v1137_v26, %v15405_v62  ;;  %8207 = vrcp.f32 %v2532_v39  ;;  %v1716_v47 = vsel %vm1685_vm1, %v1653_v56, %v1654_v43  ;;  %v10928_v25 = vsel %vm1685_vm1, %v1652_v20, %v1653_v56  ;;  %15407 = vst [vmem:[#allocation146_spill] sm:$0xff] %v10930_v34  ;;  %v15410_v26 = vld [vmem:[#allocation68_spill] sm:$0xff]  ;;  %v10938_v39 = vpop.f32.mrb[68].mxu0 }
 0x182   :  { %15406 = vst [vmem:[#allocation145_spill] sm:$0xff] %v10928_v25  ;;  %v10933_v24 = vadd.f32 %v1619_v5, %v15408_v28  ;;  %v1589_v62 = vmul.f32 %v15410_v26, %v1204_v40  ;;  %v2102_v53 = vmul.f32 %v15411_v36, %v1716_v47  ;;  %v7151_v45 = vmul.f32 -1.442695, %v10922_v54  ;;  %v15412_v5 = vld [vmem:[#allocation106_spill] sm:$0xff]  ;;  %v10949_v40 = vpop.f32.mrb[69].mxu1  ;;  %v10951_v47 = vpop.f32.mrb[69].mxu0 }
 0x183   :  { %v8198_v17 = vpop.eup %8197  ;;  %v10944_v20 = vadd.f32 %v10482_v0, %v2211_v59  ;;  %v2212_v28 = vadd.f32 %v15412_v5, %v10668_v30  ;;  %v1620_v15 = vmul.f32 %v10930_v34, %v15413_v14  ;;  %15414 = vst [vmem:[#allocation106_spill] sm:$0xff] %v10955_v55  ;;  %v15423_v34 = vld [vmem:[#allocation110_spill] sm:$0xff] }
 0x184   :  { %15409 = vst [vmem:[#allocation102_spill] sm:$0xff] %v10933_v24  ;;  %v8200_v60 = vpop.eup %8199  ;;  %v2533_v36 = vadd.f32 1.0, %v8198_v17  ;;  %v2166_v26 = vadd.f32 %v1589_v62, %v532_v12  ;;  %v1655_v24 = vrot.slane %v957_v44, 1  ;;  %8209 = vpow2.f32 %v7151_v45  ;;  %v10966_v44 = vpop.f32.mrb[70].mxu0 }
 0x185   :  { %v8202_v25 = vpop.eup %8201  ;;  %v2723_v59 = vmul.f32 %v8200_v60, %v10714_v51  ;;  %v7152_v56 = vmul.f32 -1.442695, %v10944_v20  ;;  %v10960_v30 = vadd.f32 %v10482_v0, %v2212_v28  ;;  %v15415_v12 = vrot.slane %v10904_v58, 1  ;;  %v10968_v62 = vpop.f32.mrb[70].mxu1  ;;  %v15417_v60 = vld [vmem:[#allocation105_spill] sm:$0xff] }
 0x186   :  { %v8204_v5 = vpop.eup %8203  ;;  %8211 = vrcp.f32 %v2533_v36  ;;  %v2534_v7 = vadd.f32 1.0, %v8202_v25  ;;  %v2230_v17 = vadd.f32 %v2166_v26, %v2102_v53  ;;  %v1715_v36 = vsel %vm1685_vm1, %v1654_v43, %v1655_v24  ;;  %v10973_v25 = vpop.f32.mrb[71].mxu1 }
 0x187   :  { %v1714_v14 = vsel %vm1685_vm1, %v1655_v24, %v15415_v12  ;;  %7742 = vmatprep.mubr.f32.mxu0 %v2723_v59  ;;  %v2535_v51 = vadd.f32 1.0, %v8204_v5  ;;  %2930 = vmatmul.mubr.f32.gmra.mrb[108].mxu1 %v2723_v59  ;;  %8213 = vpow2.f32 %v7152_v56  ;;  %v7153_v45 = vmul.f32 -1.442695, %v10960_v30  ;;  %v10975_v26 = vpop.f32.mrb[71].mxu0  ;;  %v15421_v24 = vld [vmem:[#allocation70_spill] sm:$0xff]  ;;  %v15422_v12 = vld [vmem:[#allocation77_spill] sm:$0xff] }
 0x188   :  { %8215 = vrcp.f32 %v2534_v7  ;;  %2935 = vmatprep.mubr.f32.mxu1 %v15346_v48  ;;  %v10979_v53 = vadd.f32 %v10482_v0, %v2230_v17  ;;  %v10982_v28 = vadd.f32 %v1620_v15, %v15417_v60  ;;  %v15419_v56 = vrot.slane %v10902_v22, 7 }
 0x189   :  { %v15420_v59 = vrot.slane %v10865_v13, 7  ;;  %8217 = vrcp.f32 %v2535_v51  ;;  %v2103_v7 = vmul.f32 %v15422_v12, %v1715_v36  ;;  %v2213_v55 = vadd.f32 %v15423_v34, %v10688_v18  ;;  %v10997_v13 = vpop.f32.mrb[72].mxu0  ;;  %v15424_v18 = vld [vmem:[#allocation113_spill] sm:$0xff] }
 0x18a   :  { %15416 = vst [vmem:[#allocation108_spill] sm:$0xff] %v10979_v53  ;;  %15418 = vst [vmem:[#allocation105_spill] sm:$0xff] %v10982_v28  ;;  %v8206_v17 = vpop.eup %8205  ;;  %v7171_v35 = vmul.f32 -1.442695, %v10979_v53  ;;  %8219 = vpow2.f32 %v7153_v45  ;;  %v10999_v28 = vpop.f32.mrb[72].mxu1  ;;  %v2214_v34 = vadd.f32 %v15424_v18, %v10691_v38  ;;  %v1657_v15 = vrot.slane %v10949_v40, 1 }
 0x18b   :  { %v1203_v43 = vsel %vm1172_vm0, %v15420_v59, %v15419_v56  ;;  %v8208_v51 = vpop.eup %8207  ;;  %v2536_v56 = vadd.f32 1.0, %v8206_v17  ;;  %v11003_v36 = vadd.f32 %v10482_v0, %v2213_v55  ;;  %v11009_v45 = vpop.f32.mrb[73].mxu0  ;;  %v15425_v12 = vrot.slane %v10938_v39, 7 }
 0x18c   :  { %v1590_v5 = vmul.f32 %v15421_v24, %v1203_v43  ;;  %v11007_v43 = vpop.f32.mrb[73].mxu1  ;;  %v2724_v60 = vmul.f32 %v8208_v51, %v10764_v11  ;;  %8221 = vpow2.f32 %v7171_v35  ;;  %v15426_v17 = vrot.slane %v10902_v22, 7 }
 0x18d   :  { %8223 = vrcp.f32 %v2536_v56  ;;  %v11023_v18 = vadd.f32 %v10482_v0, %v2214_v34  ;;  %v15428_v11 = vrot.slane %v10940_v46, 1  ;;  %v15429_v22 = vrot.slane %v10904_v58, 1  ;;  %v11037_v56 = vpop.f32.mrb[74].mxu0 }
 0x18e   :  { %v2167_v59 = vadd.f32 %v1590_v5, %v10910_v49  ;;  %v1202_v55 = vsel %vm1172_vm0, %v15426_v17, %v15425_v12  ;;  %v11019_v49 = vpop.permute.xlu1 %1992  ;;  %v7154_v5 = vmul.f32 -1.442695, %v11003_v36  ;;  %7743 = vmatmul.mubr.f32.gmra.mrb[102].mxu0 %v2724_v60  ;;  %2936 = vmatmul.mubr.f32.gmra.mrb[110].mxu1 %v2724_v60  ;;  %v15430_v12 = vld [vmem:[#allocation71_spill] sm:$0xff]  ;;  %v8210_v60 = vpop.eup %8209  ;;  %v15432_v17 = vld [vmem:[#allocation84_spill] sm:$0xff]  ;;  %v2215_v24 = vadd.f32 %v10500_v31, %v10717_v21 }
 0x18f   :  { %15427 = vst [vmem:[#allocation110_spill] sm:$0xff] %v11019_v49  ;;  %v11029_v35 = vsel %vm1685_vm1, %v1657_v15, %v15428_v11  ;;  %v1713_v40 = vsel %vm1685_vm1, %v15429_v22, %v1657_v15  ;;  %2941 = vmatprep.mubr.f32.mxu1 %v15346_v48  ;;  %v7155_v58 = vmul.f32 -1.442695, %v11023_v18  ;;  %v2104_v11 = vmul.f32 %v15432_v17, %v1714_v14 }
 0x190   :  { %v2231_v38 = vadd.f32 %v2167_v59, %v2103_v7  ;;  %v1591_v7 = vmul.f32 %v15430_v12, %v1202_v55  ;;  %v11039_v59 = vpop.f32.mrb[74].mxu1  ;;  %8225 = vpow2.f32 %v7154_v5  ;;  %v11049_v55 = vpop.f32.mrb[75].mxu0  ;;  %v2537_v51 = vadd.f32 1.0, %v8210_v60 }
 0x191   :  { %v11047_v15 = vpop.f32.mrb[75].mxu1  ;;  %v8212_v22 = vpop.eup %8211  ;;  %v15132_v53 = vrot.slane %v10968_v62, 1  ;;  %8227 = vpow2.f32 %v7155_v58  ;;  %v2216_v14 = vadd.f32 %v10518_v27, %v10720_v3  ;;  %v1659_v27 = vrot.slane %v10973_v25, 1 }
 0x192   :  { %v11043_v34 = vadd.f32 %v10482_v0, %v2231_v38  ;;  %v2168_v12 = vadd.f32 %v1591_v7, %v10951_v47  ;;  %v8214_v38 = vpop.eup %8213  ;;  %v2725_v5 = vmul.f32 %v8212_v22, %v10820_v41  ;;  %8229 = vrcp.f32 %v2537_v51  ;;  %v11062_v7 = vpop.f32.mrb[76].mxu0 }
 0x193   :  { %v8216_v17 = vpop.eup %8215  ;;  %v2538_v50 = vadd.f32 1.0, %v8214_v38  ;;  %v11060_v47 = vadd.f32 %v10482_v0, %v2215_v24  ;;  %v11064_v31 = vpop.f32.mrb[76].mxu1  ;;  %v11068_v58 = vadd.f32 %v10482_v0, %v2216_v14  ;;  %v11088_v22 = vsel %vm1685_vm1, %v1659_v27, %v15132_v53 }
 0x194   :  { %15431 = vst [vmem:[#allocation113_spill] sm:$0xff] %v11043_v34  ;;  %v7172_v49 = vmul.f32 -1.442695, %v11043_v34  ;;  %v2232_v60 = vadd.f32 %v2168_v12, %v2104_v11  ;;  %v8218_v21 = vpop.eup %8217  ;;  %7745 = vmatprep.mubr.f32.mxu0 %v2725_v5  ;;  %v2726_v41 = vmul.f32 %v8216_v17, %v10825_v19  ;;  %2942 = vmatmul.mubr.f32.gmra.mrb[112].mxu1 %v2725_v5  ;;  %v11071_v3 = vpop.f32.mrb[77].mxu1  ;;  %v15436_v5 = vrot.slane %v10966_v44, 7  ;;  %v15439_v34 = vld [vmem:[#allocation74_spill] sm:$0xff] }
 0x195   :  { %v11073_v12 = vpop.f32.mrb[77].mxu0  ;;  %v8220_v24 = vpop.eup %8219  ;;  %v2727_v51 = vmul.f32 %v8218_v21, %v10837_v63  ;;  %2947 = vmatprep.mubr.f32.mxu1 %v15346_v48  ;;  %v7156_v19 = vmul.f32 -1.442695, %v11060_v47  ;;  %v7157_v25 = vmul.f32 -1.442695, %v11068_v58  ;;  %v15435_v63 = vrot.slane %v10940_v46, 1 }
 0x196   :  { %8231 = vpow2.f32 %v7172_v49  ;;  %v11078_v11 = vadd.f32 %v10482_v0, %v2232_v60  ;;  %v11081_v49 = vpop.permute.xlu1 %1997  ;;  %7746 = vmatmul.mubr.f32.gmra.mrb[104].mxu0 %v2726_v41  ;;  %v2539_v17 = vadd.f32 1.0, %v8220_v24  ;;  %v15437_v14 = vrot.slane %v10938_v39, 7  ;;  %v15438_v21 = vld [vmem:[#allocation92_spill] sm:$0xff]  ;;  %v11104_v53 = vpop.f32.mrb[78].mxu0 }
 0x197   :  { %8233 = vrcp.f32 %v2538_v50  ;;  %15434 = vst [vmem:[#allocation148_spill] sm:$0xff] %v11081_v49  ;;  %v11094_v0 = vsel %vm1685_vm1, %v15435_v63, %v1659_v27  ;;  %v8222_v50 = vpop.eup %8221  ;;  %7748 = vmatprep.mubr.f32.mxu0 %v2727_v51  ;;  %v2105_v24 = vmul.f32 %v15438_v21, %v1713_v40  ;;  %v11106_v46 = vpop.f32.mrb[78].mxu1  ;;  %v15136_v40 = vrot.slane %v10997_v13, 7 }
 0x198   :  { %15433 = vst [vmem:[#allocation147_spill] sm:$0xff] %v11078_v11  ;;  %v7173_v38 = vmul.f32 -1.442695, %v11078_v11  ;;  %8235 = vpow2.f32 %v7156_v19  ;;  %v1201_v60 = vsel %vm1172_vm0, %v15437_v14, %v15436_v5  ;;  %v8224_v27 = vpop.eup %8223  ;;  %v2557_v63 = vadd.f32 1.0, %v8222_v50  ;;  %2948 = vmatmul.mubr.f32.gmra.mrb[114].mxu1 %v2726_v41  ;;  %v11111_v49 = vpop.f32.mrb[79].mxu1 }
 0x199   :  { %8237 = vrcp.f32 %v2539_v17  ;;  %v1592_v11 = vmul.f32 %v15439_v34, %v1201_v60  ;;  %v2217_v19 = vadd.f32 %v10542_v42, %v10744_v33  ;;  %v11113_v39 = vpop.f32.mrb[79].mxu0  ;;  %v2728_v5 = vmul.f32 %v8224_v27, %v10876_v10  ;;  %2953 = vmatprep.mubr.f32.mxu1 %v15346_v48  ;;  %v11123_v42 = vld [vmem:[%s14956_s4] ss:$0 sm:$0xff]  ;;  %v11139_v27 = vpop.f32.mrb[80].mxu1 }
 0x19a   :  { %8239 = vpow2.f32 %v7173_v38  ;;  %v8226_v17 = vpop.eup %8225  ;;  %v2218_v10 = vadd.f32 %v10569_v57, %v10747_v16  ;;  %v1661_v14 = vrot.slane %v11007_v43, 1  ;;  %v11137_v60 = vpop.f32.mrb[80].mxu0  ;;  %v15441_v43 = vld [vmem:[#allocation76_spill] sm:$0xff] }
 0x19b   :  { %8241 = vrcp.f32 %v2557_v63  ;;  %v2169_v41 = vadd.f32 %v1592_v11, %v10975_v26  ;;  %v11126_v33 = vadd.f32 %v11123_v42, %v2217_v19  ;;  %7749 = vmatmul.mubr.f32.gmra.mrb[106].mxu0 %v2728_v5  ;;  %v2540_v38 = vadd.f32 1.0, %v8226_v17  ;;  %v8228_v63 = vpop.eup %8227  ;;  %v11146_v17 = vpop.f32.mrb[81].mxu1 }
 0x19c   :  { %8243 = vpow2.f32 %v7157_v25  ;;  %v15440_v26 = vrot.slane %v10966_v44, 7  ;;  %2954 = vmatmul.mubr.f32.gmra.mrb[116].mxu1 %v2727_v51  ;;  %v11143_v16 = vadd.f32 %v11123_v42, %v2218_v10  ;;  %v11148_v44 = vpop.f32.mrb[81].mxu0  ;;  %v8230_v50 = vpop.eup %8229  ;;  %v15444_v51 = vrot.slane %v10968_v62, 1  ;;  %v15447_v62 = vld [vmem:[#allocation98_spill] sm:$0xff] }
 0x19d   :  { %v2233_v19 = vadd.f32 %v2169_v41, %v2105_v24  ;;  %v7158_v57 = vmul.f32 -1.442695, %v11126_v33  ;;  %15442 = vst [vmem:[#allocation149_spill] sm:$0xff] %v11148_v44  ;;  %8245 = vrcp.f32 %v2540_v38  ;;  %2959 = vmatprep.mubr.f32.mxu1 %v15346_v48  ;;  %v2729_v38 = vmul.f32 %v8230_v50, %v10922_v54  ;;  %v11173_v34 = vpop.f32.mrb[82].mxu0  ;;  %v11175_v44 = vpop.f32.mrb[82].mxu1 }
 0x19e   :  { %v1200_v11 = vsel %vm1172_vm0, %v15440_v26, %v15136_v40  ;;  %v2541_v26 = vadd.f32 1.0, %v8228_v63  ;;  %v15443_v40 = vrot.slane %v10999_v28, 1  ;;  %v11160_v41 = vsel %vm1685_vm1, %v15444_v51, %v1661_v14 }
 0x19f   :  { %v1593_v25 = vmul.f32 %v15441_v43, %v1200_v11  ;;  %v11163_v11 = vpop.permute.xlu1 %2002  ;;  %v11167_v63 = vadd.f32 %v11123_v42, %v2233_v19  ;;  %8247 = vpow2.f32 %v7158_v57  ;;  %7751 = vmatprep.mubr.f32.mxu0 %v2729_v38  ;;  %v2219_v19 = vadd.f32 %v10595_v23, %v10772_v2  ;;  %v11181_v57 = vpop.f32.mrb[83].mxu1 }
 0x1a0   :  { %v11154_v24 = vsel %vm1685_vm1, %v1661_v14, %v15443_v40  ;;  %v8232_v10 = vpop.eup %8231  ;;  %15445 = vst [vmem:[#allocation150_spill] sm:$0xff] %v11163_v11  ;;  %v7159_v40 = vmul.f32 -1.442695, %v11143_v16  ;;  %8249 = vrcp.f32 %v2541_v26  ;;  %v2106_v14 = vmul.f32 %v15447_v62, %v11029_v35  ;;  %2960 = vmatmul.mubr.f32.gmra.mrb[118].mxu1 %v2728_v5  ;;  %v11183_v26 = vpop.f32.mrb[83].mxu0 }
 0x1a1   :  { %15446 = vst [vmem:[#allocation151_spill] sm:$0xff] %v11167_v63  ;;  %v8234_v43 = vpop.eup %8233  ;;  %v2558_v21 = vadd.f32 1.0, %v8232_v10  ;;  %v2170_v51 = vadd.f32 %v1593_v25, %v11009_v45  ;;  %v7174_v50 = vmul.f32 -1.442695, %v11167_v63  ;;  %v15137_v25 = vrot.slane %v11037_v56, 7  ;;  %2965 = vmatprep.mubr.f32.mxu1 %v15346_v48 }
 0x1a2   :  { %v2730_v54 = vmul.f32 %v8234_v43, %v10944_v20  ;;  %8251 = vpow2.f32 %v7159_v40  ;;  %v8236_v35 = vpop.eup %8235  ;;  %v15140_v10 = vrot.slane %v11039_v59, 1  ;;  %v11189_v5 = vadd.f32 %v11123_v42, %v2219_v19  ;;  %v11206_v19 = vpop.f32.mrb[84].mxu0 }
 0x1a3   :  { %8253 = vrcp.f32 %v2558_v21  ;;  %v2234_v45 = vadd.f32 %v2170_v51, %v2106_v14  ;;  %v8238_v20 = vpop.eup %8237  ;;  %v2542_v43 = vadd.f32 1.0, %v8236_v35  ;;  %v2220_v23 = vadd.f32 %v10621_v1, %v10775_v29  ;;  %v11208_v35 = vpop.f32.mrb[84].mxu1 }
 0x1a4   :  { %7752 = vmatmul.mubr.f32.gmra.mrb[108].mxu0 %v2730_v54  ;;  %8255 = vpow2.f32 %v7174_v50  ;;  %v8240_v2 = vpop.eup %8239  ;;  %v11194_v21 = vmul.f32 %v8238_v20, %v10960_v30  ;;  %v1663_v14 = vrot.slane %v11047_v15, 1  ;;  %v15449_v51 = vrot.slane %v10997_v13, 7  ;;  %2966 = vmatmul.mubr.f32.gmra.mrb[120].mxu1 %v2729_v38  ;;  %v11216_v15 = vpop.f32.mrb[85].mxu1 }
 0x1a5   :  { %v11197_v40 = vadd.f32 %v11123_v42, %v2234_v45  ;;  %v11210_v1 = vpop.eup %8241  ;;  %v2559_v29 = vadd.f32 1.0, %v8240_v2  ;;  %8257 = vrcp.f32 %v2542_v43  ;;  %v7160_v30 = vmul.f32 -1.442695, %v11189_v5  ;;  %v11218_v13 = vpop.f32.mrb[85].mxu0  ;;  %2971 = vmatprep.mubr.f32.mxu1 %v15346_v48 }
 0x1a6   :  { %v1199_v50 = vsel %vm1172_vm0, %v15449_v51, %v15137_v25  ;;  %15450 = vst [vmem:[#allocation153_spill] sm:$0xff] %v11210_v1  ;;  %v11214_v45 = vadd.f32 %v11123_v42, %v2220_v23  ;;  %15451 = vst [vmem:[#allocation154_spill] sm:$0xff] %v11218_v13  ;;  %v8244_v20 = vpop.eup %8243  ;;  %7754 = vmatprep.mubr.f32.mxu0 %v11194_v21  ;;  %v11226_v43 = vsel %vm1685_vm1, %v1663_v14, %v15140_v10  ;;  %v15453_v23 = vld [vmem:[#allocation80_spill] sm:$0xff]  ;;  %v11236_v62 = vpop.permute.xlu1 %2007 }
 0x1a7   :  { %15448 = vst [vmem:[#allocation152_spill] sm:$0xff] %v11197_v40  ;;  %v7175_v51 = vmul.f32 -1.442695, %v11197_v40  ;;  %v15452_v2 = vrot.slane %v10999_v28, 1  ;;  %v1594_v25 = vmul.f32 %v15453_v23, %v1199_v50  ;;  %15454 = vst [vmem:[#allocation155_spill] sm:$0xff] %v11236_v62  ;;  %8259 = vrcp.f32 %v2559_v29  ;;  %v15455_v1 = vld [vmem:[#allocation104_spill] sm:$0xff]  ;;  %v8246_v13 = vpop.eup %8245 }
 0x1a8   :  { %v2543_v40 = vadd.f32 1.0, %v8244_v20  ;;  %v7161_v63 = vmul.f32 -1.442695, %v11214_v45  ;;  %v2107_v10 = vmul.f32 %v15455_v1, %v11094_v0  ;;  %v11247_v23 = vpop.f32.mrb[86].mxu1  ;;  %v2732_v20 = vmul.f32 %v8246_v13, %v11003_v36  ;;  %2972 = vmatmul.mubr.f32.gmra.mrb[122].mxu1 %v2730_v54 }
 0x1a9   :  { %v11232_v38 = vsel %vm1685_vm1, %v15452_v2, %v1663_v14  ;;  %8261 = vpow2.f32 %v7175_v51  ;;  %v2171_v28 = vadd.f32 %v1594_v25, %v11049_v55  ;;  %v2221_v14 = vadd.f32 %v10646_v8, %v10805_v9  ;;  %v11245_v2 = vpop.f32.mrb[86].mxu0  ;;  %v8248_v29 = vpop.eup %8247  ;;  %2977 = vmatprep.mubr.f32.mxu1 %v15346_v48 }
 0x1aa   :  { %8263 = vrcp.f32 %v2543_v40  ;;  %v15142_v62 = vrot.slane %v11064_v31, 1  ;;  %v2222_v0 = vadd.f32 %v10673_v52, %v10808_v4  ;;  %v11253_v55 = vpop.f32.mrb[87].mxu1  ;;  %v11255_v25 = vpop.f32.mrb[87].mxu0  ;;  %v2544_v9 = vadd.f32 1.0, %v8248_v29  ;;  %7755 = vmatmul.mubr.f32.gmra.mrb[110].mxu0 %v2732_v20 }
 0x1ab   :  { %v8250_v8 = vpop.eup %8249  ;;  %8265 = vpow2.f32 %v7160_v30  ;;  %v2235_v51 = vadd.f32 %v2171_v28, %v2107_v10  ;;  %v11258_v50 = vadd.f32 %v11123_v42, %v2221_v14  ;;  %v1665_v4 = vrot.slane %v11071_v3, 1  ;;  %v11274_v28 = vpop.f32.mrb[88].mxu0 }
 0x1ac   :  { %v8252_v36 = vpop.eup %8251  ;;  %v11262_v40 = vmul.f32 %v8250_v8, %v11023_v18  ;;  %8267 = vpow2.f32 %v7161_v63  ;;  %v11265_v52 = vadd.f32 %v11123_v42, %v2222_v0  ;;  %v11276_v14 = vpop.f32.mrb[88].mxu1  ;;  %v15459_v29 = vrot.slane %v11039_v59, 1  ;;  %2978 = vmatmul.mubr.f32.gmra.mrb[124].mxu1 %v11194_v21  ;;  %v15466_v21 = vld [vmem:[#allocation130_spill] sm:$0xff] }
 0x1ad   :  { %v11268_v54 = vpop.eup %8253  ;;  %8269 = vrcp.f32 %v2544_v9  ;;  %v2545_v10 = vadd.f32 1.0, %v8252_v36  ;;  %v11271_v30 = vadd.f32 %v11123_v42, %v2235_v51  ;;  %v7162_v13 = vmul.f32 -1.442695, %v11258_v50  ;;  %v11299_v36 = vpop.f32.mrb[89].mxu1  ;;  %2983 = vmatprep.mubr.f32.mxu1 %v15346_v48 }
 0x1ae   :  { %15456 = vst [vmem:[#allocation156_spill] sm:$0xff] %v11268_v54  ;;  %v8256_v18 = vpop.eup %8255  ;;  %7757 = vmatprep.mubr.f32.mxu0 %v11262_v40  ;;  %v7163_v63 = vmul.f32 -1.442695, %v11265_v52  ;;  %v11284_v3 = vsel %vm1685_vm1, %v1665_v4, %v15142_v62  ;;  %v11290_v0 = vsel %vm1685_vm1, %v15459_v29, %v1665_v4  ;;  %v15460_v8 = vrot.slane %v11062_v7, 7  ;;  %v11301_v1 = vpop.f32.mrb[89].mxu0 }
 0x1af   :  { %15457 = vst [vmem:[#allocation157_spill] sm:$0xff] %v11271_v30  ;;  %15458 = vst [vmem:[#allocation158_spill] sm:$0xff] %v11284_v3  ;;  %v15461_v9 = vrot.slane %v11037_v56, 7  ;;  %v2560_v62 = vadd.f32 1.0, %v8256_v18  ;;  %8271 = vrcp.f32 %v2545_v10  ;;  %v7176_v59 = vmul.f32 -1.442695, %v11271_v30  ;;  %v8258_v29 = vpop.eup %8257  ;;  %v11306_v54 = vpop.permute.xlu1 %2012 }
 0x1b0   :  { %15462 = vst [vmem:[#allocation159_spill] sm:$0xff] %v11301_v1  ;;  %v15463_v3 = vld [vmem:[#allocation82_spill] sm:$0xff]  ;;  %15464 = vst [vmem:[#allocation160_spill] sm:$0xff] %v11306_v54  ;;  %8273 = vpow2.f32 %v7162_v13  ;;  %v15465_v56 = vld [vmem:[#allocation112_spill] sm:$0xff]  ;;  %v15144_v1 = vrot.slane %v11104_v53, 7  ;;  %v11314_v10 = vmul.f32 %v8258_v29, %v11060_v47  ;;  %v11320_v30 = vpop.f32.mrb[90].mxu1  ;;  %2984 = vmatmul.mubr.f32.gmra.mrb[126].mxu1 %v2732_v20 }
 0x1b1   :  { %v1198_v51 = vsel %vm1172_vm0, %v15461_v9, %v15460_v8  ;;  %v2108_v8 = vmul.f32 %v15465_v56, %v11088_v22  ;;  %v2223_v9 = vadd.f32 %v15466_v21, %v10850_v37  ;;  %8275 = vrcp.f32 %v2560_v62  ;;  %v11322_v13 = vpop.eup %8259  ;;  %v15468_v37 = vld [vmem:[#allocation81_spill] sm:$0xff]  ;;  %v11330_v62 = vpop.f32.mrb[91].mxu1  ;;  %v15471_v29 = vld [vmem:[#allocation66_spill] sm:$0xff]  ;;  %2989 = vmatprep.mubr.f32.mxu1 %v15346_v48 }
 0x1b2   :  { %v1595_v4 = vmul.f32 %v15463_v3, %v1198_v51  ;;  %v11318_v3 = vpop.f32.mrb[90].mxu0  ;;  %15467 = vst [vmem:[#allocation130_spill] sm:$0xff] %v11322_v13  ;;  %8277 = vpow2.f32 %v7176_v59  ;;  %v2224_v21 = vadd.f32 %v15468_v37, %v10853_v32  ;;  %v1667_v47 = vrot.slane %v11111_v49, 1  ;;  %15469 = vst [vmem:[#allocation81_spill] sm:$0xff] %v11330_v62  ;;  %7758 = vmatmul.mubr.f32.gmra.mrb[112].mxu0 %v11314_v10 }
 0x1b3   :  { %v11325_v22 = vadd.f32 %v11123_v42, %v2223_v9  ;;  %v11336_v51 = vmul.f32 %v15471_v29, %v10885_v6  ;;  %8279 = vpow2.f32 %v7163_v63  ;;  %v15472_v32 = vrot.slane %v11062_v7, 7  ;;  %v15478_v29 = vld [vmem:[#allocation87_spill] sm:$0xff] }
 0x1b4   :  { %v2172_v18 = vadd.f32 %v1595_v4, %v11073_v12  ;;  %v11332_v12 = vpop.f32.mrb[91].mxu0  ;;  %v8262_v4 = vpop.eup %8261  ;;  %v11348_v37 = vadd.f32 %v11123_v42, %v2224_v21  ;;  %v15473_v6 = vrot.slane %v11106_v46, 1  ;;  %v15477_v56 = vrot.slane %v11064_v31, 1  ;;  %2990 = vmatmul.mubr.f32.gmra.mrb[128].mxu1 %v11262_v40 }
 0x1b5   :  { %15470 = vst [vmem:[#allocation161_spill] sm:$0xff] %v11332_v12  ;;  %v1197_v49 = vsel %vm1172_vm0, %v15472_v32, %v15144_v1  ;;  %v8264_v20 = vpop.eup %8263  ;;  %v7164_v9 = vmul.f32 -1.442695, %v11325_v22  ;;  %v11369_v13 = vpop.f32.mrb[92].mxu0  ;;  %2995 = vmatprep.mubr.f32.mxu1 %v15346_v48 }
 0x1b6   :  { %v2236_v59 = vadd.f32 %v2172_v18, %v2108_v8  ;;  %v11354_v63 = vsel %vm1685_vm1, %v1667_v47, %v15473_v6  ;;  %v15475_v8 = vld [vmem:[#allocation116_spill] sm:$0xff]  ;;  %v8266_v18 = vpop.eup %8265  ;;  %v2735_v32 = vmul.f32 %v8264_v20, %v11068_v58  ;;  %v11366_v21 = vsel %vm1685_vm1, %v15477_v56, %v1667_v47  ;;  %15479 = vst [vmem:[#allocation164_spill] sm:$0xff] %v11369_v13  ;;  %v11371_v6 = vpop.f32.mrb[92].mxu1  ;;  %v15481_v20 = vld [vmem:[#allocation141_spill] sm:$0xff] }
 0x1b7   :  { %15474 = vst [vmem:[#allocation162_spill] sm:$0xff] %v11354_v63  ;;  %v2109_v7 = vmul.f32 %v15475_v8, %v11160_v41  ;;  %v1596_v12 = vmul.f32 %v15478_v29, %v1197_v49  ;;  %15480 = vst [vmem:[#allocation165_spill] sm:$0xff] %v11371_v6  ;;  %v8268_v63 = vpop.eup %8267  ;;  %v2561_v41 = vadd.f32 1.0, %v8262_v4  ;;  %v2546_v8 = vadd.f32 1.0, %v8266_v18  ;;  %v11377_v31 = vpop.f32.mrb[93].mxu1 }
 0x1b8   :  { %v11360_v1 = vadd.f32 %v11123_v42, %v2236_v59  ;;  %v7165_v58 = vmul.f32 -1.442695, %v11348_v37  ;;  %v15482_v59 = vld [vmem:[#allocation86_spill] sm:$0xff]  ;;  %15483 = vst [vmem:[#allocation141_spill] sm:$0xff] %v11377_v31  ;;  %v11379_v56 = vpop.f32.mrb[93].mxu0  ;;  %v8270_v47 = vpop.eup %8269  ;;  %7760 = vmatprep.mubr.f32.mxu0 %v2735_v32  ;;  %v2547_v49 = vadd.f32 1.0, %v8268_v63  ;;  %8281 = vpow2.f32 %v7164_v9  ;;  %2996 = vmatmul.mubr.f32.gmra.mrb[130].mxu1 %v11314_v10 }
 0x1b9   :  { %v2225_v62 = vadd.f32 %v15482_v59, %v15481_v20  ;;  %15484 = vst [vmem:[#allocation86_spill] sm:$0xff] %v11379_v56  ;;  %v2173_v4 = vadd.f32 %v1596_v12, %v11113_v39  ;;  %v11384_v18 = vpop.permute.xlu1 %2017  ;;  %v2736_v20 = vmul.f32 %v8270_v47, %v11126_v33  ;;  %8283 = vrcp.f32 %v2546_v8  ;;  %v8272_v56 = vpop.eup %8271  ;;  %v15486_v9 = vld [vmem:[#allocation142_spill] sm:$0xff]  ;;  %v15487_v31 = vld [vmem:[#allocation136_spill] sm:$0xff]  ;;  %3001 = vmatprep.mubr.f32.mxu1 %v15346_v48 }
 0x1ba   :  { %15476 = vst [vmem:[#allocation163_spill] sm:$0xff] %v11360_v1  ;;  %v7177_v29 = vmul.f32 -1.442695, %v11360_v1  ;;  %15485 = vst [vmem:[#allocation166_spill] sm:$0xff] %v11384_v18  ;;  %v1146_v59 = vrot.slane %v11137_v60, 7  ;;  %8285 = vrcp.f32 %v2547_v49  ;;  %v1670_v1 = vrot.slane %v11139_v27, 1  ;;  %v8274_v13 = vpop.eup %8273 }
 0x1bb   :  { %v11388_v40 = vadd.f32 %v11123_v42, %v2225_v62  ;;  %v2237_v63 = vadd.f32 %v2173_v4, %v2109_v7  ;;  %v2226_v39 = vadd.f32 %v15487_v31, %v15486_v9  ;;  %v11394_v12 = vpop.f32.mrb[94].mxu0  ;;  %v11396_v6 = vpop.f32.mrb[94].mxu1  ;;  %7761 = vmatmul.mubr.f32.gmra.mrb[114].mxu0 %v2736_v20  ;;  %v11399_v33 = vmul.f32 %v8272_v56, %v11143_v16 }
 0x1bc   :  { %8287 = vpow2.f32 %v7177_v29  ;;  %v1669_v62 = vrot.slane %v11146_v17, 1  ;;  %v11404_v27 = vpop.f32.mrb[95].mxu1  ;;  %v11406_v8 = vpop.f32.mrb[95].mxu0  ;;  %v2548_v31 = vadd.f32 1.0, %v8274_v13  ;;  %v15491_v10 = vrot.slane %v11106_v46, 1  ;;  %v15495_v46 = vld [vmem:[#allocation90_spill] sm:$0xff]  ;;  %3002 = vmatmul.mubr.f32.gmra.mrb[132].mxu1 %v2735_v32 }
 0x1bd   :  { %v7166_v60 = vmul.f32 -1.442695, %v11388_v40  ;;  %15488 = vst [vmem:[#allocation142_spill] sm:$0xff] %v11404_v27  ;;  %15489 = vst [vmem:[#allocation136_spill] sm:$0xff] %v11406_v8  ;;  %v11408_v7 = vpop.eup %8275  ;;  %8289 = vpow2.f32 %v7165_v58  ;;  %v11411_v47 = vadd.f32 %v11123_v42, %v2237_v63  ;;  %v11414_v16 = vadd.f32 %v11123_v42, %v2226_v39  ;;  %7763 = vmatprep.mubr.f32.mxu0 %v11399_v33  ;;  %v11433_v63 = vpop.permute.xlu1 %2022  ;;  %v15498_v8 = vld [vmem:[#allocation99_spill] sm:$0xff] }
 0x1be   :  { %v8278_v29 = vpop.eup %8277  ;;  %v11420_v17 = vsel %vm1685_vm1, %v1669_v62, %v1670_v1  ;;  %v11426_v13 = vsel %vm1685_vm1, %v15491_v10, %v1669_v62  ;;  %v15493_v58 = vrot.slane %v11104_v53, 7  ;;  %15494 = vst [vmem:[#allocation169_spill] sm:$0xff] %v11433_v63  ;;  %v15496_v62 = vld [vmem:[#allocation120_spill] sm:$0xff]  ;;  %3007 = vmatprep.mubr.f32.mxu1 %v15346_v48  ;;  %v1671_v32 = vrot.slane %v11181_v57, 1 }
 0x1bf   :  { %15490 = vst [vmem:[#allocation167_spill] sm:$0xff] %v11411_v47  ;;  %8291 = vpow2.f32 %v7166_v60  ;;  %15492 = vst [vmem:[#allocation168_spill] sm:$0xff] %v11426_v13  ;;  %v8280_v49 = vpop.eup %8279  ;;  %v7178_v4 = vmul.f32 -1.442695, %v11411_v47  ;;  %v7167_v39 = vmul.f32 -1.442695, %v11414_v16  ;;  %v2110_v10 = vmul.f32 %v15496_v62, %v11154_v24 }
 0x1c0   :  { %v1196_v56 = vsel %vm1172_vm0, %v15493_v58, %v1146_v59  ;;  %8293 = vrcp.f32 %v2548_v31  ;;  %v2549_v9 = vadd.f32 1.0, %v8280_v49  ;;  %v15497_v53 = vld [vmem:[#allocation144_spill] sm:$0xff]  ;;  %v1147_v58 = vrot.slane %v11173_v34, 7  ;;  %v15500_v47 = vld [vmem:[#allocation138_spill] sm:$0xff]  ;;  %v15502_v24 = vld [vmem:[#allocation69_spill] sm:$0xff]  ;;  %3008 = vmatmul.mubr.f32.gmra.mrb[134].mxu1 %v2736_v20 }
 0x1c1   :  { %8295 = vrcp.f32 %v2561_v41  ;;  %v1597_v60 = vmul.f32 %v15495_v46, %v1196_v56  ;;  %v2227_v13 = vadd.f32 %v15498_v8, %v15497_v53  ;;  %v15147_v31 = vrot.slane %v11175_v44, 1  ;;  %v15499_v41 = vld [vmem:[#allocation149_spill] sm:$0xff]  ;;  %3013 = vmatprep.mubr.f32.mxu1 %v15346_v48 }
 0x1c2   :  { %8297 = vrcp.f32 %v2549_v9  ;;  %v2228_v27 = vadd.f32 %v15500_v47, %v11336_v51  ;;  %v8282_v56 = vpop.eup %8281  ;;  %v15501_v46 = vld [vmem:[#allocation145_spill] sm:$0xff]  ;;  %v1195_v34 = vsel %vm1172_vm0, %v1146_v59, %v1147_v58  ;;  %v1699_v59 = vsel %vm1685_vm1, %v1670_v1, %v1671_v32 }
 0x1c3   :  { %v2174_v49 = vadd.f32 %v1597_v60, %v15499_v41  ;;  %v2101_v62 = vmul.f32 %v15502_v24, %v15501_v46  ;;  %8299 = vpow2.f32 %v7178_v4  ;;  %v11451_v8 = vadd.f32 %v11123_v42, %v2227_v13  ;;  %v8284_v53 = vpop.eup %8283 }
 0x1c4   :  { %v2550_v9 = vadd.f32 1.0, %v8282_v56  ;;  %8301 = vpow2.f32 %v7167_v39  ;;  %v11456_v41 = vadd.f32 %v11123_v42, %v2228_v27  ;;  %v8286_v57 = vpop.eup %8285  ;;  %v2738_v51 = vmul.f32 %v8284_v53, %v11189_v5  ;;  %v11467_v39 = vpop.permute.xlu1 %2027  ;;  %v15505_v53 = vld [vmem:[#allocation125_spill] sm:$0xff]  ;;  %3014 = vmatmul.mubr.f32.gmra.mrb[136].mxu1 %v11399_v33 }
 0x1c5   :  { %v2238_v60 = vadd.f32 %v2174_v49, %v2110_v10  ;;  %v7168_v47 = vmul.f32 -1.442695, %v11451_v8  ;;  %v1698_v13 = vsel %vm1685_vm1, %v1671_v32, %v15147_v31  ;;  %15503 = vst [vmem:[#allocation144_spill] sm:$0xff] %v11467_v39  ;;  %v2739_v20 = vmul.f32 %v8286_v57, %v11214_v45  ;;  %v15504_v32 = vld [vmem:[#allocation94_spill] sm:$0xff]  ;;  %v15506_v57 = vld [vmem:[#allocation143_spill] sm:$0xff]  ;;  %3019 = vmatprep.mubr.f32.mxu1 %v15346_v48 }
 0x1c6   :  { %v8288_v4 = vpop.eup %8287  ;;  %8303 = vrcp.f32 %v2550_v9  ;;  %v7169_v27 = vmul.f32 -1.442695, %v11456_v41  ;;  %7764 = vmatmul.mubr.f32.gmra.mrb[116].mxu0 %v2738_v51  ;;  %v2562_v10 = vadd.f32 1.0, %v8278_v29  ;;  %v1598_v56 = vmul.f32 %v15504_v32, %v1195_v34 }
 0x1c7   :  { %v11471_v5 = vadd.f32 %v11123_v42, %v2238_v60  ;;  %v8290_v46 = vpop.eup %8289  ;;  %8305 = vpow2.f32 %v7168_v47  ;;  %7766 = vmatprep.mubr.f32.mxu0 %v2739_v20  ;;  %v2111_v31 = vmul.f32 %v15505_v53, %v11232_v38  ;;  %v2229_v24 = vadd.f32 %v15506_v57, %v2101_v62 }
 0x1c8   :  { %v2551_v1 = vadd.f32 1.0, %v8290_v46  ;;  %8307 = vpow2.f32 %v7169_v27  ;;  %v1148_v29 = vrot.slane %v11206_v19, 7  ;;  %v2175_v34 = vadd.f32 %v1598_v56, %v11183_v26  ;;  %3020 = vmatmul.mubr.f32.gmra.mrb[138].mxu1 %v2738_v51 }
 0x1c9   :  { %v8292_v49 = vpop.eup %8291  ;;  %v7179_v60 = vmul.f32 -1.442695, %v11471_v5  ;;  %v1674_v38 = vrot.slane %v11208_v35, 1  ;;  %v11488_v33 = vadd.f32 %v11123_v42, %v2229_v24  ;;  %v1673_v46 = vrot.slane %v11216_v15, 1  ;;  %3025 = vmatprep.mubr.f32.mxu1 %v15346_v48 }
 0x1ca   :  { %v8294_v45 = vpop.eup %8293  ;;  %v2552_v9 = vadd.f32 1.0, %v8292_v49  ;;  %8309 = vrcp.f32 %v2551_v1  ;;  %v11491_v49 = vpop.permute.xlu1 %2032  ;;  %v2563_v19 = vadd.f32 1.0, %v8288_v4  ;;  %v2239_v57 = vadd.f32 %v2175_v34, %v2111_v31 }
 0x1cb   :  { %v11482_v47 = vpop.eup %8295  ;;  %v2740_v27 = vmul.f32 %v8294_v45, %v11258_v50  ;;  %15507 = vst [vmem:[#allocation99_spill] sm:$0xff] %v11491_v49  ;;  %v1194_v50 = vsel %vm1172_vm0, %v1147_v58, %v1148_v29  ;;  %v7170_v24 = vmul.f32 -1.442695, %v11488_v33  ;;  %v1696_v15 = vsel %vm1685_vm1, %v1673_v46, %v1674_v38  ;;  %v15509_v58 = vld [vmem:[#allocation110_spill] sm:$0xff]  ;;  %v15511_v45 = vld [vmem:[#allocation96_spill] sm:$0xff] }
 0x1cc   :  { %8311 = vrcp.f32 %v2552_v9  ;;  %v8298_v62 = vpop.eup %8297  ;;  %v15508_v1 = vrot.slane %v11175_v44, 1  ;;  %v11508_v51 = vmul.f32 %v15509_v58, %v11420_v17  ;;  %v11514_v56 = vadd.f32 %v11123_v42, %v2239_v57  ;;  %3026 = vmatmul.mubr.f32.gmra.mrb[140].mxu1 %v2739_v20 }
 0x1cd   :  { %8313 = vrcp.f32 %v2562_v10  ;;  %7767 = vmatmul.mubr.f32.gmra.mrb[118].mxu0 %v2740_v27  ;;  %v8300_v26 = vpop.eup %8299  ;;  %v11496_v35 = vmul.f32 %v8298_v62, %v11265_v52  ;;  %v15510_v52 = vld [vmem:[#allocation148_spill] sm:$0xff]  ;;  %v1599_v9 = vmul.f32 %v15511_v45, %v1194_v50  ;;  %v1149_v34 = vrot.slane %v11245_v2, 7  ;;  %3031 = vmatprep.mubr.f32.mxu1 %v15346_v48 }
 0x1ce   :  { %v1697_v10 = vsel %vm1685_vm1, %v15508_v1, %v1673_v46  ;;  %v8302_v31 = vpop.eup %8301  ;;  %8315 = vpow2.f32 %v7179_v60  ;;  %v11511_v4 = vmul.f32 %v15510_v52, %v1699_v59  ;;  %v11520_v17 = vmul.f32 %v11163_v11, %v1698_v13  ;;  %v15512_v60 = vld [vmem:[#allocation129_spill] sm:$0xff]  ;;  %v11531_v13 = vpop.permute.xlu1 %2037  ;;  %v15515_v11 = vld [vmem:[#allocation108_spill] sm:$0xff]  ;;  %v15517_v52 = vld [vmem:[#allocation155_spill] sm:$0xff] }
 0x1cf   :  { %7769 = vmatprep.mubr.f32.mxu0 %v11496_v35  ;;  %v2553_v44 = vadd.f32 1.0, %v8302_v31  ;;  %8317 = vpow2.f32 %v7170_v24  ;;  %v2112_v59 = vmul.f32 %v15512_v60, %v11226_v43  ;;  %v1676_v62 = vrot.slane %v11247_v23, 1  ;;  %v15513_v24 = vld [vmem:[#allocation154_spill] sm:$0xff]  ;;  %15514 = vst [vmem:[#allocation149_spill] sm:$0xff] %v11531_v13  ;;  %v15516_v23 = vld [vmem:[#allocation153_spill] sm:$0xff] }
 0x1d0   :  { %v8304_v46 = vpop.eup %8303  ;;  %8319 = vrcp.f32 %v2563_v19  ;;  %v2176_v50 = vadd.f32 %v1599_v9, %v15513_v24  ;;  %v1675_v2 = vrot.slane %v11253_v55, 1  ;;  %v7180_v43 = vmul.f32 -1.442695, %v11514_v56  ;;  %3032 = vmatmul.mubr.f32.gmra.mrb[142].mxu1 %v2740_v27 }
 0x1d1   :  { %v8306_v57 = vpop.eup %8305  ;;  %v11526_v1 = vmul.f32 %v8304_v46, %v11325_v22  ;;  %8321 = vrcp.f32 %v2553_v44  ;;  %v11536_v20 = vmul.f32 %v15516_v23, %v15515_v11  ;;  %v1193_v22 = vsel %vm1172_vm0, %v1148_v29, %v1149_v34  ;;  %v15518_v11 = vld [vmem:[#allocation101_spill] sm:$0xff]  ;;  %3037 = vmatprep.mubr.f32.mxu1 %v15346_v48 }
 0x1d2   :  { %v8308_v19 = vpop.eup %8307  ;;  %v2554_v31 = vadd.f32 1.0, %v8306_v57  ;;  %v2240_v9 = vadd.f32 %v2176_v50, %v2112_v59  ;;  %v1694_v55 = vsel %vm1685_vm1, %v1675_v2, %v1676_v62  ;;  %v1695_v46 = vsel %vm1685_vm1, %v1674_v38, %v1675_v2 }
 0x1d3   :  { %7770 = vmatmul.mubr.f32.gmra.mrb[120].mxu0 %v11526_v1  ;;  %v2555_v44 = vadd.f32 1.0, %v8308_v19  ;;  %v2564_v24 = vadd.f32 1.0, %v8300_v26  ;;  %v11546_v58 = vmul.f32 %v15517_v52, %v1697_v10  ;;  %v1600_v23 = vmul.f32 %v15518_v11, %v1193_v22  ;;  %v15519_v10 = vld [vmem:[#allocation132_spill] sm:$0xff]  ;;  %v15527_v52 = vld [vmem:[#allocation81_spill] sm:$0xff] }
 0x1d4   :  { %v8310_v57 = vpop.eup %8309  ;;  %8323 = vrcp.f32 %v2554_v31  ;;  %v11553_v59 = vadd.f32 %v11123_v42, %v2240_v9  ;;  %v1150_v50 = vrot.slane %v11274_v28, 7  ;;  %v2113_v27 = vmul.f32 %v15519_v10, %v11290_v0  ;;  %3038 = vmatmul.mubr.f32.gmra.mrb[144].mxu1 %v11496_v35 }
 0x1d5   :  { %v11550_v60 = vmul.f32 %v8310_v57, %v11348_v37  ;;  %8325 = vrcp.f32 %v2555_v44  ;;  %v2177_v2 = vadd.f32 %v1600_v23, %v11255_v25  ;;  %v1678_v37 = vrot.slane %v11276_v14, 1  ;;  %v15521_v14 = vld [vmem:[#allocation103_spill] sm:$0xff]  ;;  %3043 = vmatprep.mubr.f32.mxu1 %v15346_v48 }
 0x1d6   :  { %v8312_v29 = vpop.eup %8311  ;;  %8327 = vpow2.f32 %v7180_v43  ;;  %v7181_v19 = vmul.f32 -1.442695, %v11553_v59  ;;  %v1677_v28 = vrot.slane %v11299_v36, 1  ;;  %v1192_v31 = vsel %vm1172_vm0, %v1149_v34, %v1150_v50 }
 0x1d7   :  { %v11557_v38 = vpop.eup %8313  ;;  %v11560_v26 = vmul.f32 %v8312_v29, %v11388_v40  ;;  %7772 = vmatprep.mubr.f32.mxu0 %v11550_v60  ;;  %v11571_v40 = vpop.permute.xlu1 %2042  ;;  %v11575_v0 = vmul.f32 %v11306_v54, %v1696_v15  ;;  %v2241_v25 = vadd.f32 %v2177_v2, %v2113_v27  ;;  %v1601_v44 = vmul.f32 %v15521_v14, %v1192_v31  ;;  %v15522_v29 = vld [vmem:[#allocation113_spill] sm:$0xff]  ;;  %v15524_v31 = vld [vmem:[#allocation158_spill] sm:$0xff]  ;;  %v15525_v54 = vld [vmem:[#allocation135_spill] sm:$0xff] }
 0x1d8   :  { %v8316_v22 = vpop.eup %8315  ;;  %15520 = vst [vmem:[#allocation138_spill] sm:$0xff] %v11571_v40  ;;  %v1151_v43 = vrot.slane %v11318_v3, 7  ;;  %8329 = vrcp.f32 %v2564_v24  ;;  %v1692_v36 = vsel %vm1685_vm1, %v1677_v28, %v1678_v37  ;;  %v1693_v34 = vsel %vm1685_vm1, %v1676_v62, %v1677_v28  ;;  %v15523_v3 = vld [vmem:[#allocation156_spill] sm:$0xff]  ;;  %v15526_v28 = vld [vmem:[#allocation159_spill] sm:$0xff]  ;;  %3044 = vmatmul.mubr.f32.gmra.mrb[146].mxu1 %v11526_v1 }
 0x1d9   :  { %7773 = vmatmul.mubr.f32.gmra.mrb[122].mxu0 %v11560_v26  ;;  %v8318_v9 = vpop.eup %8317  ;;  %v1680_v57 = vrot.slane %v11320_v30, 1  ;;  %8331 = vpow2.f32 %v7181_v19  ;;  %v11590_v27 = vmul.f32 %v15523_v3, %v15522_v29  ;;  %v11593_v35 = vadd.f32 %v11123_v42, %v2241_v25  ;;  %3049 = vmatprep.mubr.f32.mxu1 %v15346_v48  ;;  %v15529_v1 = vld [vmem:[#allocation147_spill] sm:$0xff] }
 0x1da   :  { %v11586_v15 = vpop.eup %8319  ;;  %v2556_v23 = vadd.f32 1.0, %v8318_v9  ;;  %v2565_v2 = vadd.f32 1.0, %v8316_v22  ;;  %v2114_v62 = vmul.f32 %v15525_v54, %v15524_v31  ;;  %v2178_v30 = vadd.f32 %v1601_v44, %v15526_v28  ;;  %v15531_v3 = vld [vmem:[#allocation107_spill] sm:$0xff] }
 0x1db   :  { %v8322_v24 = vpop.eup %8321  ;;  %v1679_v14 = vrot.slane %v15527_v52, 1  ;;  %v7182_v19 = vmul.f32 -1.442695, %v11593_v35  ;;  %v1191_v9 = vsel %vm1172_vm0, %v1150_v50, %v1151_v43  ;;  %v11607_v22 = vmul.f32 %v11384_v18, %v1695_v46  ;;  %v15530_v46 = vld [vmem:[#allocation130_spill] sm:$0xff] }
 0x1dc   :  { %v11600_v10 = vmul.f32 %v8322_v24, %v11414_v16  ;;  %8333 = vrcp.f32 %v2556_v23  ;;  %v2242_v25 = vadd.f32 %v2178_v30, %v2114_v62  ;;  %v11614_v23 = vpop.permute.xlu1 %2047  ;;  %v11618_v50 = vmul.f32 %v11433_v63, %v1694_v55  ;;  %v15532_v62 = vld [vmem:[#allocation93_spill] sm:$0xff]  ;;  %3050 = vmatmul.mubr.f32.gmra.mrb[148].mxu1 %v11550_v60 }
 0x1dd   :  { %v1690_v44 = vsel %vm1685_vm1, %v1679_v14, %v1680_v57  ;;  %v1691_v52 = vsel %vm1685_vm1, %v1678_v37, %v1679_v14  ;;  %15528 = vst [vmem:[#allocation145_spill] sm:$0xff] %v11614_v23  ;;  %8335 = vpow2.f32 %v7182_v19  ;;  %v11622_v29 = vmul.f32 %v15530_v46, %v15529_v1  ;;  %v15533_v30 = vld [vmem:[#allocation161_spill] sm:$0xff]  ;;  %v15534_v1 = vld [vmem:[#allocation164_spill] sm:$0xff]  ;;  %3055 = vmatprep.mubr.f32.mxu1 %v15346_v48 }
 0x1de   :  { %v8324_v16 = vpop.eup %8323  ;;  %7775 = vmatprep.mubr.f32.mxu0 %v11600_v10  ;;  %v1602_v24 = vmul.f32 %v15531_v3, %v1191_v9  ;;  %8337 = vrcp.f32 %v2565_v2  ;;  %v11629_v14 = vadd.f32 %v11123_v42, %v2242_v25  ;;  %v2115_v28 = vmul.f32 %v15532_v62, %v11366_v21  ;;  %v15535_v63 = vld [vmem:[#allocation165_spill] sm:$0xff]  ;;  %v15545_v62 = vld [vmem:[#allocation115_spill] sm:$0xff] }
 0x1df   :  { %v8326_v31 = vpop.eup %8325  ;;  %v11626_v37 = vmul.f32 %v8324_v16, %v11451_v8  ;;  %v1152_v46 = vrot.slane %v15534_v1, 7  ;;  %v1682_v9 = vrot.slane %v15535_v63, 1  ;;  %v11642_v8 = vmul.f32 %v11467_v39, %v1693_v34  ;;  %v15537_v63 = vld [vmem:[#allocation151_spill] sm:$0xff] }
 0x1e0   :  { %v11634_v55 = vmul.f32 %v8326_v31, %v11456_v41  ;;  %v2179_v19 = vadd.f32 %v1602_v24, %v15533_v30  ;;  %v8328_v2 = vpop.eup %8327  ;;  %v11645_v25 = vmul.f32 %v11491_v49, %v1692_v36  ;;  %v7183_v21 = vmul.f32 -1.442695, %v11629_v14  ;;  %v15536_v41 = vld [vmem:[#allocation141_spill] sm:$0xff]  ;;  %3056 = vmatmul.mubr.f32.gmra.mrb[150].mxu1 %v11560_v26  ;;  %v15546_v26 = vld [vmem:[#allocation142_spill] sm:$0xff] }
 0x1e1   :  { %7776 = vmatmul.mubr.f32.gmra.mrb[124].mxu0 %v11626_v37  ;;  %v1681_v16 = vrot.slane %v15536_v41, 1  ;;  %v11653_v60 = vmul.f32 %v11408_v7, %v15537_v63  ;;  %v1190_v34 = vsel %vm1172_vm0, %v1151_v43, %v1152_v46  ;;  %v1153_v31 = vrot.slane %v11394_v12, 7  ;;  %v15538_v41 = vld [vmem:[#allocation111_spill] sm:$0xff]  ;;  %v11665_v7 = vpop.permute.xlu1 %2052  ;;  %v15540_v43 = vld [vmem:[#allocation62_spill] sm:$0xff]  ;;  %3061 = vmatprep.mubr.f32.mxu1 %v15346_v48 }
 0x1e2   :  { %7778 = vmatprep.mubr.f32.mxu0 %v11634_v55  ;;  %v2243_v24 = vadd.f32 %v2179_v19, %v2115_v28  ;;  %v11658_v36 = vpop.eup %8329  ;;  %8339 = vpow2.f32 %v7183_v21  ;;  %v1603_v49 = vmul.f32 %v15538_v41, %v1190_v34  ;;  %15539 = vst [vmem:[#allocation143_spill] sm:$0xff] %v11665_v7  ;;  %v2566_v28 = vadd.f32 1.0, %v8328_v2  ;;  %v15543_v34 = vld [vmem:[#allocation140_spill] sm:$0xff]  ;;  %v15544_v41 = vld [vmem:[#allocation86_spill] sm:$0xff] }
 0x1e3   :  { %v1688_v30 = vsel %vm1685_vm1, %v1681_v16, %v1682_v9  ;;  %v1689_v1 = vsel %vm1685_vm1, %v1680_v57, %v1681_v16  ;;  %v8332_v39 = vpop.eup %8331  ;;  %v15541_v12 = vrot.slane %v15540_v43, 7  ;;  %v1684_v63 = vrot.slane %v11396_v6, 1  ;;  %v15542_v16 = vld [vmem:[#allocation162_spill] sm:$0xff] }
 0x1e4   :  { %v11668_v19 = vadd.f32 %v11123_v42, %v2243_v24  ;;  %v11677_v57 = vmul.f32 %v11531_v13, %v1691_v52  ;;  %v2116_v18 = vmul.f32 %v15543_v34, %v15542_v16  ;;  %v2180_v2 = vadd.f32 %v1603_v49, %v15544_v41  ;;  %v15547_v13 = vld [vmem:[#allocation152_spill] sm:$0xff]  ;;  %3062 = vmatmul.mubr.f32.gmra.mrb[152].mxu1 %v11600_v10  ;;  %v15552_v10 = vld [vmem:[#allocation157_spill] sm:$0xff] }
 0x1e5   :  { %v1188_v21 = vsel %vm1172_vm0, %v1153_v31, %v15541_v12  ;;  %v2567_v3 = vadd.f32 1.0, %v8332_v39  ;;  %v11685_v12 = vmul.f32 %v11571_v40, %v1690_v44  ;;  %v1683_v54 = vrot.slane %v15546_v26, 1  ;;  %v15548_v41 = vld [vmem:[#allocation64_spill] sm:$0xff]  ;;  %3067 = vmatprep.mubr.f32.mxu1 %v15346_v48  ;;  %v15554_v26 = vld [vmem:[#allocation114_spill] sm:$0xff] }
 0x1e6   :  { %v1605_v24 = vmul.f32 %v15545_v62, %v1188_v21  ;;  %v8334_v43 = vpop.eup %8333  ;;  %v7184_v6 = vmul.f32 -1.442695, %v11668_v19  ;;  %v11694_v16 = vmul.f32 %v11482_v47, %v15547_v13  ;;  %v2244_v49 = vadd.f32 %v2180_v2, %v2116_v18  ;;  %v15549_v13 = vld [vmem:[#allocation109_spill] sm:$0xff] }
 0x1e7   :  { %v11690_v52 = vmul.f32 %v8334_v43, %v11488_v33  ;;  %v8336_v62 = vpop.eup %8335  ;;  %v11698_v39 = vmul.f32 %v11614_v23, %v1689_v1  ;;  %v11702_v44 = vsel %vm1685_vm1, %v1683_v54, %v1684_v63  ;;  %v1687_v33 = vsel %vm1685_vm1, %v1682_v9, %v1683_v54  ;;  %v11723_v54 = vpop.permute.xlu1 %2057 }
 0x1e8   :  { %v2182_v21 = vadd.f32 %v1605_v24, %v15548_v41  ;;  %8341 = vpow2.f32 %v7184_v6  ;;  %v11707_v43 = vpop.eup %8337  ;;  %v11711_v18 = vmul.f32 %v11665_v7, %v1688_v30  ;;  %v11714_v47 = vadd.f32 %v11123_v42, %v2244_v49  ;;  %15551 = vst [vmem:[#allocation154_spill] sm:$0xff] %v11723_v54  ;;  %v15553_v30 = vld [vmem:[#allocation163_spill] sm:$0xff]  ;;  %v15555_v41 = vld [vmem:[#allocation168_spill] sm:$0xff]  ;;  %3068 = vmatmul.mubr.f32.gmra.mrb[154].mxu1 %v11626_v37  ;;  %v15561_v37 = vld [vmem:[#allocation126_spill] sm:$0xff] }
 0x1e9   :  { %8343 = vrcp.f32 %v2566_v28  ;;  %7779 = vmatmul.mubr.f32.gmra.mrb[126].mxu0 %v11690_v52  ;;  %v15550_v1 = vrot.slane %v15549_v13, 1  ;;  %v11728_v9 = vmul.f32 %v11557_v38, %v15552_v10  ;;  %v11732_v28 = vmul.f32 %v11586_v15, %v15553_v30  ;;  %v15556_v13 = vld [vmem:[#allocation106_spill] sm:$0xff]  ;;  %v15558_v15 = vld [vmem:[#allocation121_spill] sm:$0xff]  ;;  %3073 = vmatprep.mubr.f32.mxu1 %v15346_v48 }
 0x1ea   :  { %7781 = vmatprep.mubr.f32.mxu0 %v11536_v20  ;;  %8345 = vrcp.f32 %v2567_v3  ;;  %v1189_v24 = vsel %vm1172_vm0, %v1152_v46, %v1153_v31  ;;  %v7185_v6 = vmul.f32 -1.442695, %v11714_v47  ;;  %v2246_v38 = vadd.f32 %v2182_v21, %v11508_v51  ;;  %v15557_v3 = vld [vmem:[#allocation118_spill] sm:$0xff]  ;;  %v15559_v46 = vld [vmem:[#allocation123_spill] sm:$0xff]  ;;  %v15562_v21 = vld [vmem:[#allocation73_spill] sm:$0xff] }
 0x1eb   :  { %v11720_v2 = vsel %vm1685_vm1, %v1684_v63, %v15550_v1  ;;  %v2568_v63 = vadd.f32 1.0, %v8336_v62  ;;  %v1604_v49 = vmul.f32 %v15554_v26, %v1189_v24  ;;  %v2117_v1 = vmul.f32 %v15556_v13, %v15555_v41  ;;  %v15560_v24 = vld [vmem:[#allocation136_spill] sm:$0xff] }
 0x1ec   :  { %v2247_v10 = vadd.f32 %v15557_v3, %v11511_v4  ;;  %v2248_v30 = vadd.f32 %v15558_v15, %v11520_v17  ;;  %v2249_v62 = vadd.f32 %v15559_v46, %v11546_v58  ;;  %v8340_v31 = vpop.eup %8339  ;;  %8347 = vpow2.f32 %v7185_v6  ;;  %3074 = vmatmul.mubr.f32.gmra.mrb[156].mxu1 %v11634_v55 }
 0x1ed   :  { %7782 = vmatmul.mubr.f32.gmra.mrb[128].mxu0 %v11590_v27  ;;  %v2181_v7 = vadd.f32 %v1604_v49, %v15560_v24  ;;  %v2250_v51 = vadd.f32 %v15561_v37, %v11575_v0  ;;  %v2251_v4 = vadd.f32 %v15562_v21, %v11607_v22  ;;  %v2569_v17 = vadd.f32 1.0, %v8340_v31  ;;  %v11769_v22 = vpop.permute.xlu1 %2062  ;;  %3079 = vmatprep.mubr.f32.mxu1 %v15346_v48  ;;  %v15566_v24 = vld [vmem:[#allocation79_spill] sm:$0xff] }
 0x1ee   :  { %7784 = vmatprep.mubr.f32.mxu0 %v11622_v29  ;;  %v11757_v41 = vadd.f32 %v11123_v42, %v2246_v38  ;;  %v11760_v58 = vadd.f32 %v11123_v42, %v2247_v10  ;;  %v11763_v6 = vadd.f32 %v11123_v42, %v2248_v30  ;;  %8349 = vrcp.f32 %v2568_v63  ;;  %15563 = vst [vmem:[#allocation108_spill] sm:$0xff] %v11769_v22 }
 0x1ef   :  { %v2131_v49 = vmul.f32 %v11723_v54, %v1687_v33  ;;  %v2245_v3 = vadd.f32 %v2181_v7, %v2117_v1  ;;  %v11767_v0 = vadd.f32 %v11123_v42, %v2249_v62  ;;  %v11776_v30 = vadd.f32 %v11123_v42, %v2250_v51  ;;  %v15564_v33 = vld [vmem:[#allocation167_spill] sm:$0xff]  ;;  %v15565_v62 = vld [vmem:[#allocation78_spill] sm:$0xff] }
 0x1f0   :  { %v7187_v38 = vmul.f32 -1.442695, %v11757_v41  ;;  %v7188_v15 = vmul.f32 -1.442695, %v11760_v58  ;;  %v7189_v10 = vmul.f32 -1.442695, %v11763_v6  ;;  %8351 = vrcp.f32 %v2569_v17  ;;  %3080 = vmatmul.mubr.f32.gmra.mrb[158].mxu1 %v11690_v52 }
 0x1f1   :  { %7785 = vmatmul.mubr.f32.gmra.mrb[130].mxu0 %v11653_v60  ;;  %v11780_v7 = vadd.f32 %v11123_v42, %v2245_v3  ;;  %v11784_v63 = vmul.f32 %v11658_v36, %v15564_v33  ;;  %v11788_v55 = vadd.f32 %v11123_v42, %v2251_v4  ;;  %v7190_v46 = vmul.f32 -1.442695, %v11767_v0  ;;  %v15567_v42 = vld [vmem:[#allocation85_spill] sm:$0xff]  ;;  %3085 = vmatprep.mubr.f32.mxu1 %v15346_v48  ;;  %v15570_v33 = vld [vmem:[#allocation88_spill] sm:$0xff] }
 0x1f2   :  { %v8342_v1 = vpop.eup %8341  ;;  %7787 = vmatprep.mubr.f32.mxu0 %v11694_v16  ;;  %8353 = vpow2.f32 %v7187_v38  ;;  %v2252_v31 = vadd.f32 %v15565_v62, %v11618_v50  ;;  %v2253_v37 = vadd.f32 %v15566_v24, %v11642_v8  ;;  %v2254_v4 = vadd.f32 %v15567_v42, %v11645_v25  ;;  %v11804_v50 = vld [vmem:[%s14956_s4] ss:$0 sm:$0xff]  ;;  %v15568_v38 = vld [vmem:[#allocation83_spill] sm:$0xff]  ;;  %v15569_v52 = vld [vmem:[#allocation89_spill] sm:$0xff]  ;;  %v11818_v62 = vpop.permute.xlu1 %2067 }
 0x1f3   :  { %v8344_v51 = vpop.eup %8343  ;;  %v2570_v36 = vadd.f32 1.0, %v8342_v1  ;;  %v7186_v21 = vmul.f32 -1.442695, %v11780_v7  ;;  %8355 = vpow2.f32 %v7188_v15  ;;  %v7191_v3 = vmul.f32 -1.442695, %v11776_v30  ;;  %15571 = vst [vmem:[#allocation153_spill] sm:$0xff] %v11818_v62 }
 0x1f4   :  { %v8346_v17 = vpop.eup %8345  ;;  %8357 = vpow2.f32 %v7189_v10  ;;  %v11807_v8 = vadd.f32 %v11804_v50, %v2252_v31  ;;  %v2255_v15 = vadd.f32 %v15568_v38, %v11677_v57  ;;  %v7192_v25 = vmul.f32 -1.442695, %v11788_v55  ;;  %3086 = vmatmul.mubr.f32.gmra.mrb[160].mxu1 %v11536_v20 }
 0x1f5   :  { %8359 = vrcp.f32 %v2570_v36  ;;  %7788 = vmatmul.mubr.f32.gmra.mrb[132].mxu0 %v11728_v9  ;;  %v2256_v10 = vadd.f32 %v15569_v52, %v11685_v12  ;;  %v2257_v1 = vadd.f32 %v15570_v33, %v11698_v39  ;;  %v2132_v31 = vmul.f32 %v11769_v22, %v11702_v44  ;;  %v15572_v44 = vld [vmem:[#allocation97_spill] sm:$0xff]  ;;  %3091 = vmatprep.mubr.f32.mxu1 %v15346_v48 }
 0x1f6   :  { %7790 = vmatprep.mubr.f32.mxu0 %v11732_v28  ;;  %8361 = vpow2.f32 %v7186_v21  ;;  %v11825_v57 = vmul.f32 %v11707_v43, %v11471_v5  ;;  %v8348_v24 = vpop.eup %8347  ;;  %v2133_v36 = vmul.f32 %v11818_v62, %v11720_v2  ;;  %v7193_v12 = vmul.f32 -1.442695, %v11807_v8  ;;  %v15573_v2 = vld [vmem:[#allocation100_spill] sm:$0xff] }
 0x1f7   :  { %8363 = vpow2.f32 %v7190_v46  ;;  %v11831_v39 = vadd.f32 %v11804_v50, %v2253_v37  ;;  %v2571_v42 = vadd.f32 1.0, %v8348_v24  ;;  %v2258_v21 = vadd.f32 %v15572_v44, %v11711_v18  ;;  %v15574_v37 = vld [vmem:[#allocation102_spill] sm:$0xff] }
 0x1f8   :  { %8365 = vpow2.f32 %v7191_v3  ;;  %v8350_v38 = vpop.eup %8349  ;;  %v11838_v5 = vmul.f32 %v8344_v51, %v11514_v56  ;;  %v11842_v43 = vadd.f32 %v11804_v50, %v2254_v4  ;;  %v2259_v46 = vadd.f32 %v15573_v2, %v2131_v49  ;;  %3092 = vmatmul.mubr.f32.gmra.mrb[162].mxu1 %v11590_v27 }
 0x1f9   :  { %7791 = vmatmul.mubr.f32.gmra.mrb[134].mxu0 %v11784_v63  ;;  %8367 = vpow2.f32 %v7192_v25  ;;  %v11847_v20 = vmul.f32 %v8346_v17, %v11553_v59  ;;  %v11850_v18 = vadd.f32 %v11804_v50, %v2255_v15  ;;  %v2260_v56 = vadd.f32 %v15574_v37, %v2132_v31  ;;  %v15575_v25 = vld [vmem:[#allocation105_spill] sm:$0xff]  ;;  %3097 = vmatprep.mubr.f32.mxu1 %v15346_v48 }
 0x1fa   :  { %8369 = vrcp.f32 %v2571_v42  ;;  %7793 = vmatprep.mubr.f32.mxu0 %v11825_v57  ;;  %v8352_v51 = vpop.eup %8351  ;;  %v7194_v3 = vmul.f32 -1.442695, %v11831_v39  ;;  %v2261_v4 = vadd.f32 %v15575_v25, %v2133_v36  ;;  %v11858_v59 = vmul.f32 %v8350_v38, %v11593_v35 }
 0x1fb   :  { %8371 = vpow2.f32 %v7193_v12  ;;  %v7195_v15 = vmul.f32 -1.442695, %v11842_v43  ;;  %v11863_v33 = vadd.f32 %v11804_v50, %v2256_v10  ;;  %v11867_v24 = vmul.f32 %v8352_v51, %v11629_v14 }
 0x1fc   :  { %v8354_v52 = vpop.eup %8353  ;;  %v7196_v27 = vmul.f32 -1.442695, %v11850_v18  ;;  %8373 = vpow2.f32 %v7194_v3  ;;  %3098 = vmatmul.mubr.f32.gmra.mrb[164].mxu1 %v11622_v29  ;;  %v11872_v42 = vadd.f32 %v11804_v50, %v2257_v1  ;;  %v11884_v3 = vadd.f32 %v11804_v50, %v2258_v21 }
 0x1fd   :  { %v8356_v49 = vpop.eup %8355  ;;  %7794 = vmatmul.mubr.f32.gmra.mrb[136].mxu0 %v11838_v5  ;;  %v2573_v17 = vadd.f32 1.0, %v8354_v52  ;;  %3103 = vmatprep.mubr.f32.mxu1 %v15346_v48  ;;  %v7197_v14 = vmul.f32 -1.442695, %v11863_v33 }
 0x1fe   :  { %v8358_v31 = vpop.eup %8357  ;;  %7796 = vmatprep.mubr.f32.mxu0 %v11847_v20  ;;  %v2574_v12 = vadd.f32 1.0, %v8356_v49 }
 0x1ff   :  { %v8360_v36 = vpop.eup %8359  ;;  %8375 = vrcp.f32 %v2573_v17  ;;  %v2575_v37 = vadd.f32 1.0, %v8358_v31  ;;  %v11892_v17 = vadd.f32 %v11804_v50, %v2259_v46  ;;  %v11901_v31 = vadd.f32 %v11804_v50, %v2261_v4 }
 0x200   :  { %v8362_v35 = vpop.eup %8361  ;;  %v11876_v38 = vmul.f32 %v8360_v36, %v11668_v19  ;;  %8377 = vpow2.f32 %v7195_v15  ;;  %3104 = vmatmul.mubr.f32.gmra.mrb[166].mxu1 %v11653_v60  ;;  %v7198_v19 = vmul.f32 -1.442695, %v11872_v42  ;;  %v11895_v15 = vadd.f32 %v11804_v50, %v2260_v56 }
 0x201   :  { %v8364_v10 = vpop.eup %8363  ;;  %v2572_v44 = vadd.f32 1.0, %v8362_v35  ;;  %7797 = vmatmul.mubr.f32.gmra.mrb[138].mxu0 %v11858_v59  ;;  %8379 = vpow2.f32 %v7196_v27  ;;  %3109 = vmatprep.mubr.f32.mxu1 %v15346_v48  ;;  %v7200_v46 = vmul.f32 -1.442695, %v11892_v17 }
 0x202   :  { %v8366_v2 = vpop.eup %8365  ;;  %7799 = vmatprep.mubr.f32.mxu0 %v11867_v24  ;;  %v2576_v1 = vadd.f32 1.0, %v8364_v10  ;;  %v7201_v36 = vmul.f32 -1.442695, %v11895_v15 }
 0x203   :  { %v8368_v29 = vpop.eup %8367  ;;  %8381 = vrcp.f32 %v2572_v44  ;;  %v2577_v49 = vadd.f32 1.0, %v8366_v2 }
 0x204   :  { %v8370_v51 = vpop.eup %8369  ;;  %8383 = vrcp.f32 %v2574_v12  ;;  %v2578_v60 = vadd.f32 1.0, %v8368_v29  ;;  %3110 = vmatmul.mubr.f32.gmra.mrb[168].mxu1 %v11694_v16  ;;  %v7202_v16 = vmul.f32 -1.442695, %v11901_v31 }
 0x205   :  { %v8372_v25 = vpop.eup %8371  ;;  %7800 = vmatmul.mubr.f32.gmra.mrb[140].mxu0 %v11876_v38  ;;  %v11888_v52 = vmul.f32 %v8370_v51, %v11714_v47  ;;  %8385 = vpow2.f32 %v7197_v14  ;;  %v7199_v47 = vmul.f32 -1.442695, %v11884_v3  ;;  %3115 = vmatprep.mubr.f32.mxu1 %v15346_v48 }
 0x206   :  { %8387 = vrcp.f32 %v2575_v37  ;;  %v2579_v21 = vadd.f32 1.0, %v8372_v25  ;;  %v8374_v27 = vpop.eup %8373 }
 0x207   :  { %7802 = vmatprep.mubr.f32.mxu0 %v11888_v52  ;;  %8389 = vrcp.f32 %v2576_v1  ;;  %v2580_v10 = vadd.f32 1.0, %v8374_v27 }
 0x208   :  { %8391 = vpow2.f32 %v7198_v19  ;;  %3116 = vmatmul.mubr.f32.gmra.mrb[170].mxu1 %v11728_v9 }
 0x209   :  { %8393 = vrcp.f32 %v2577_v49  ;;  %v8376_v56 = vpop.eup %8375  ;;  %3121 = vmatprep.mubr.f32.mxu1 %v15346_v48 }
 0x20a   :  { %8395 = vrcp.f32 %v2578_v60  ;;  %v8378_v35 = vpop.eup %8377  ;;  %v11909_v4 = vmul.f32 %v8376_v56, %v11757_v41 }
 0x20b   :  { %8397 = vrcp.f32 %v2579_v21  ;;  %v8380_v12 = vpop.eup %8379  ;;  %v2581_v2 = vadd.f32 1.0, %v8378_v35 }
 0x20c   :  { %8399 = vpow2.f32 %v7199_v47  ;;  %3122 = vmatmul.mubr.f32.gmra.mrb[172].mxu1 %v11732_v28  ;;  %v2582_v41 = vadd.f32 1.0, %v8380_v12 }
 0x20d   :  { %v8382_v50 = vpop.eup %8381  ;;  %8401 = vpow2.f32 %v7200_v46  ;;  %3127 = vmatprep.mubr.f32.mxu1 %v15346_v48 }
 0x20e   :  { %v8384_v44 = vpop.eup %8383  ;;  %v11913_v14 = vmul.f32 %v8382_v50, %v11780_v7  ;;  %8403 = vpow2.f32 %v7201_v36 }
 0x20f   :  { %v8386_v37 = vpop.eup %8385  ;;  %8405 = vpow2.f32 %v7202_v16  ;;  %v11920_v7 = vmul.f32 %v8384_v44, %v11760_v58 }
 0x210   :  { %v8388_v29 = vpop.eup %8387  ;;  %7803 = vmatmul.mubr.f32.gmra.mrb[142].mxu0 %v11913_v14  ;;  %8407 = vrcp.f32 %v2580_v10  ;;  %v2583_v51 = vadd.f32 1.0, %v8386_v37  ;;  %3128 = vmatmul.mubr.f32.gmra.mrb[174].mxu1 %v11784_v63 }
 0x211   :  { %v8390_v9 = vpop.eup %8389  ;;  %7805 = vmatprep.mubr.f32.mxu0 %v11909_v4  ;;  %8409 = vrcp.f32 %v2581_v2  ;;  %v11923_v25 = vmul.f32 %v8388_v29, %v11763_v6  ;;  %3133 = vmatprep.mubr.f32.mxu1 %v15346_v48  ;;  %v15576_v29 = vld [vmem:[#allocation2_spill] sm:$0xff] }
 0x212   :  { %v8392_v1 = vpop.eup %8391  ;;  %8411 = vrcp.f32 %v2582_v41  ;;  %v11930_v21 = vmul.f32 %v8390_v9, %v11767_v0 }
 0x213   :  { %v8394_v19 = vpop.eup %8393  ;;  %v2584_v60 = vadd.f32 1.0, %v8392_v1  ;;  %8413 = vrcp.f32 %v2583_v51 }
 0x214   :  { %v8396_v49 = vpop.eup %8395  ;;  %7806 = vmatmul.mubr.f32.gmra.mrb[144].mxu0 %v11920_v7  ;;  %v11933_v6 = vmul.f32 %v8394_v19, %v11776_v30  ;;  %3134 = vmatmul.mubr.f32.gmra.mrb[176].mxu1 %v11825_v57 }
 0x215   :  { %v8398_v28 = vpop.eup %8397  ;;  %7808 = vmatprep.mubr.f32.mxu0 %v11923_v25  ;;  %8415 = vrcp.f32 %v2584_v60  ;;  %3139 = vmatprep.mubr.f32.mxu1 %v15346_v48  ;;  %v11940_v0 = vmul.f32 %v8396_v49, %v11788_v55 }
 0x216   :  { %v8400_v58 = vpop.eup %8399  ;;  %v11943_v35 = vmul.f32 %v8398_v28, %v11807_v8 }
 0x217   :  { %v8402_v47 = vpop.eup %8401  ;;  %v2585_v27 = vadd.f32 1.0, %v8400_v58 }
 0x218   :  { %v8404_v46 = vpop.eup %8403  ;;  %7809 = vmatmul.mubr.f32.gmra.mrb[146].mxu0 %v11930_v21  ;;  %v2586_v63 = vadd.f32 1.0, %v8402_v47  ;;  %3140 = vmatmul.mubr.f32.gmra.mrb[178].mxu1 %v11838_v5 }
 0x219   :  { %7811 = vmatprep.mubr.f32.mxu0 %v11933_v6  ;;  %v8406_v56 = vpop.eup %8405  ;;  %8417 = vrcp.f32 %v2585_v27  ;;  %v2587_v36 = vadd.f32 1.0, %v8404_v46  ;;  %3145 = vmatprep.mubr.f32.mxu1 %v15346_v48 }
 0x21a   :  { %v8408_v30 = vpop.eup %8407  ;;  %8419 = vrcp.f32 %v2586_v63  ;;  %v2588_v57 = vadd.f32 1.0, %v8406_v56 }
 0x21b   :  { %v8410_v12 = vpop.eup %8409  ;;  %v11950_v55 = vmul.f32 %v8408_v30, %v11831_v39  ;;  %8421 = vrcp.f32 %v2587_v36 }
 0x21c   :  { %7812 = vmatmul.mubr.f32.gmra.mrb[148].mxu0 %v11940_v0  ;;  %v8412_v16 = vpop.eup %8411  ;;  %v11953_v50 = vmul.f32 %v8410_v12, %v11842_v43  ;;  %3146 = vmatmul.mubr.f32.gmra.mrb[180].mxu1 %v11847_v20  ;;  %8423 = vrcp.f32 %v2588_v57  ;;  %v15578_v12 = vld [vmem:[#allocation9_spill] sm:$0xff] }
 0x21d   :  { %7814 = vmatprep.mubr.f32.mxu0 %v11943_v35  ;;  %v8414_v8 = vpop.eup %8413  ;;  %3151 = vmatprep.mubr.f32.mxu1 %v15346_v48  ;;  %v11960_v5 = vmul.f32 %v8412_v16, %v11850_v18 }
 0x21e   :  { %v11963_v10 = vmul.f32 %v8414_v8, %v11863_v33  ;;  %v15579_v8 = vld [vmem:[#allocation4_spill] sm:$0xff] }
 0x21f   :  { %v8416_v39 = vpop.eup %8415 }
 0x220   :  { %7815 = vmatmul.mubr.f32.gmra.mrb[150].mxu0 %v11950_v55  ;;  %3152 = vmatmul.mubr.f32.gmra.mrb[182].mxu1 %v11858_v59  ;;  %v11970_v43 = vmul.f32 %v8416_v39, %v11872_v42 }
 0x221   :  { %7817 = vmatprep.mubr.f32.mxu0 %v11953_v50  ;;  %3157 = vmatprep.mubr.f32.mxu1 %v15346_v48 }
 0x223   :  { %v8418_v44 = vpop.eup %8417 }
 0x224   :  { %7818 = vmatmul.mubr.f32.gmra.mrb[152].mxu0 %v11960_v5  ;;  %v8420_v20 = vpop.eup %8419  ;;  %v11973_v18 = vmul.f32 %v8418_v44, %v11884_v3  ;;  %3158 = vmatmul.mubr.f32.gmra.mrb[184].mxu1 %v11867_v24  ;;  %v15580_v44 = vld [vmem:[#allocation6_spill] sm:$0xff] }
 0x225   :  { %7820 = vmatprep.mubr.f32.mxu0 %v11963_v10  ;;  %v8422_v2 = vpop.eup %8421  ;;  %3163 = vmatprep.mubr.f32.mxu1 %v15346_v48  ;;  %v11980_v59 = vmul.f32 %v8420_v20, %v11892_v17 }
 0x226   :  { %v8424_v33 = vpop.eup %8423  ;;  %v11983_v42 = vmul.f32 %v8422_v2, %v11895_v15 }
 0x227   :  { %v11990_v24 = vmul.f32 %v8424_v33, %v11901_v31 }
 0x228   :  { %7821 = vmatmul.mubr.f32.gmra.mrb[154].mxu0 %v11970_v43  ;;  %3164 = vmatmul.mubr.f32.gmra.mrb[186].mxu1 %v11876_v38 }
 0x229   :  { %7823 = vmatprep.mubr.f32.mxu0 %v11973_v18  ;;  %3169 = vmatprep.mubr.f32.mxu1 %v15346_v48 }
 0x22c   :  { %7824 = vmatmul.mubr.f32.gmra.mrb[156].mxu0 %v11980_v59  ;;  %3170 = vmatmul.mubr.f32.gmra.mrb[188].mxu1 %v11888_v52 }
 0x22d   :  { %7826 = vmatprep.mubr.f32.mxu0 %v11983_v42  ;;  %3175 = vmatprep.mubr.f32.mxu1 %v15346_v48 }
 0x230   :  { %7827 = vmatmul.mubr.f32.gmra.mrb[158].mxu0 %v11990_v24  ;;  %3176 = vmatmul.mubr.f32.gmra.mrb[190].mxu1 %v11913_v14 }
 0x231   :  { %4806 = vmatprep.mubr.f32.mxu0 %v15346_v48  ;;  %3181 = vmatprep.mubr.f32.mxu1 %v15346_v48 }
 0x232   :  { %v12000_v38 = vpop.f32.mrb[96].mxu1 }
 0x233   :  { %v12002_v3 = vpop.f32.mrb[97].mxu1  ;;  %v15164_v15 = vrot.slane %v12000_v38, 7 }
 0x234   :  { %3182 = vmatmul.mubr.f32.gmra.mrb[192].mxu1 %v11909_v4 }
 0x235   :  { %3187 = vmatprep.mubr.f32.mxu1 %v15346_v48 }
 0x238   :  { %3188 = vmatmul.mubr.f32.gmra.mrb[194].mxu1 %v11920_v7  ;;  %v2901_v52 = vpop.f32.mrb[98].mxu1 }
 0x239   :  { %3193 = vmatprep.mubr.f32.mxu1 %v15346_v48  ;;  %v12006_v17 = vpop.f32.mrb[96].mxu0  ;;  %v3664_v31 = vrot.slane %v2901_v52, 7  ;;  %v2903_v14 = vpop.f32.mrb[99].mxu1 }
 0x23a   :  { %v12010_v4 = vpop.f32.mrb[97].mxu0  ;;  %v15165_v63 = vrot.slane %v12006_v17, 1 }
 0x23b   :  { %v3789_v37 = vsel %vm1172_vm0, %v15164_v15, %v3664_v31 }
 0x23c   :  { %3194 = vmatmul.mubr.f32.gmra.mrb[196].mxu1 %v11923_v25  ;;  %v3792_v9 = vmul.f32 %v3789_v37, %v15576_v29  ;;  %v15577_v25 = vld [vmem:[#allocation7_spill] sm:$0xff] }
 0x23d   :  { %3199 = vmatprep.mubr.f32.mxu1 %v15346_v48  ;;  %v2907_v41 = vpop.f32.mrb[100].mxu1  ;;  %v15581_v37 = vld [vmem:[#allocation11_spill] sm:$0xff] }
 0x23e   :  { %v3665_v1 = vrot.slane %v2907_v41, 7  ;;  %v2909_v7 = vpop.f32.mrb[101].mxu1  ;;  %v4048_v51 = vadd.f32 %v3792_v9, %v2903_v14 }
 0x240   :  { %3200 = vmatmul.mubr.f32.gmra.mrb[198].mxu1 %v11930_v21  ;;  %v3788_v19 = vsel %vm1172_vm0, %v3664_v31, %v3665_v1 }
 0x241   :  { %3205 = vmatprep.mubr.f32.mxu1 %v15346_v48  ;;  %v3793_v49 = vmul.f32 %v3788_v19, %v15577_v25 }
 0x243   :  { %v7738_v28 = vpop.f32.mrb[98].mxu0  ;;  %v4049_v60 = vadd.f32 %v3793_v49, %v2909_v7  ;;  %v2913_v58 = vpop.f32.mrb[102].mxu1 }
 0x244   :  { %3206 = vmatmul.mubr.f32.gmra.mrb[200].mxu1 %v11933_v6  ;;  %v3858_v47 = vrot.slane %v7738_v28, 1  ;;  %v3354_v27 = vpop.f32.mrb[99].mxu0  ;;  %v3666_v21 = vrot.slane %v2913_v58, 7  ;;  %v2915_v46 = vpop.f32.mrb[103].mxu1 }
 0x245   :  { %3211 = vmatprep.mubr.f32.mxu1 %v15346_v48  ;;  %v3857_v56 = vrot.slane %v3354_v27, 1 }
 0x246   :  { %v3787_v36 = vsel %vm1172_vm0, %v3665_v1, %v3666_v21 }
 0x247   :  { %v3979_v6 = vsel %vm1685_vm1, %v3857_v56, %v3858_v47  ;;  %v3980_v30 = vsel %vm1685_vm1, %v15165_v63, %v3857_v56  ;;  %v3794_v57 = vmul.f32 %v3787_v36, %v15578_v12  ;;  %v2919_v16 = vpop.f32.mrb[104].mxu1  ;;  %v15584_v36 = vld [vmem:[#allocation10_spill] sm:$0xff] }
 0x248   :  { %3212 = vmatmul.mubr.f32.gmra.mrb[202].mxu1 %v11940_v0  ;;  %v3984_v39 = vmul.f32 %v3980_v30, %v15579_v8  ;;  %v3985_v0 = vmul.f32 %v3979_v6, %v15580_v44  ;;  %v3667_v20 = vrot.slane %v2919_v16, 7  ;;  %v2921_v2 = vpop.f32.mrb[105].mxu1 }
 0x249   :  { %3217 = vmatprep.mubr.f32.mxu1 %v15346_v48  ;;  %v4050_v33 = vadd.f32 %v3794_v57, %v2915_v46 }
 0x24a   :  { %v12040_v52 = vadd.f32 %v4048_v51, %v3984_v39  ;;  %v3786_v31 = vsel %vm1172_vm0, %v3666_v21, %v3667_v20  ;;  %v12044_v14 = vadd.f32 %v4049_v60, %v3985_v0  ;;  %v15582_v21 = vld [vmem:[#allocation13_spill] sm:$0xff] }
 0x24b   :  { %v3795_v9 = vmul.f32 %v3786_v31, %v15581_v37  ;;  %v15614_v37 = vld [vmem:[#allocation37_spill] sm:$0xff] }
 0x24c   :  { %3218 = vmatmul.mubr.f32.gmra.mrb[204].mxu1 %v11943_v35 }
 0x24d   :  { %3223 = vmatprep.mubr.f32.mxu1 %v15346_v48  ;;  %v7741_v41 = vpop.f32.mrb[100].mxu0  ;;  %v4051_v1 = vadd.f32 %v3795_v9, %v2921_v2  ;;  %v2925_v7 = vpop.f32.mrb[106].mxu1 }
 0x24e   :  { %v3860_v19 = vrot.slane %v7741_v41, 1  ;;  %v3364_v49 = vpop.f32.mrb[101].mxu0  ;;  %v3668_v28 = vrot.slane %v2925_v7, 7  ;;  %v2927_v35 = vpop.f32.mrb[107].mxu1 }
 0x24f   :  { %v3859_v51 = vrot.slane %v3364_v49, 1 }
 0x250   :  { %3224 = vmatmul.mubr.f32.gmra.mrb[206].mxu1 %v11950_v55  ;;  %v3785_v60 = vsel %vm1172_vm0, %v3667_v20, %v3668_v28  ;;  %v15583_v55 = vld [vmem:[#allocation8_spill] sm:$0xff]  ;;  %v15585_v20 = vld [vmem:[#allocation15_spill] sm:$0xff] }
 0x251   :  { %3229 = vmatprep.mubr.f32.mxu1 %v15346_v48  ;;  %v3977_v58 = vsel %vm1685_vm1, %v3859_v51, %v3860_v19  ;;  %v3978_v27 = vsel %vm1685_vm1, %v3858_v47, %v3859_v51  ;;  %v3796_v46 = vmul.f32 %v3785_v60, %v15582_v21  ;;  %v15587_v60 = vld [vmem:[#allocation12_spill] sm:$0xff]  ;;  %v15607_v21 = vld [vmem:[#allocation30_spill] sm:$0xff] }
 0x252   :  { %v3986_v56 = vmul.f32 %v3978_v27, %v15583_v55  ;;  %v3987_v6 = vmul.f32 %v3977_v58, %v15584_v36  ;;  %v15588_v27 = vld [vmem:[#allocation14_spill] sm:$0xff] }
 0x253   :  { %v4052_v30 = vadd.f32 %v3796_v46, %v2927_v35  ;;  %v15586_v35 = vld [vmem:[#allocation17_spill] sm:$0xff] }
 0x254   :  { %3230 = vmatmul.mubr.f32.gmra.mrb[208].mxu1 %v11953_v50  ;;  %v12061_v57 = vadd.f32 %v4051_v1, %v3987_v6  ;;  %v12063_v16 = vadd.f32 %v4050_v33, %v3986_v56 }
 0x255   :  { %3235 = vmatprep.mubr.f32.mxu1 %v15346_v48 }
 0x258   :  { %3236 = vmatmul.mubr.f32.gmra.mrb[210].mxu1 %v11960_v5 }
 0x259   :  { %3241 = vmatprep.mubr.f32.mxu1 %v15346_v48 }
 0x25a   :  { %v2931_v47 = vpop.f32.mrb[108].mxu1 }
 0x25b   :  { %v3669_v39 = vrot.slane %v2931_v47, 7  ;;  %v2933_v50 = vpop.f32.mrb[109].mxu1 }
 0x25c   :  { %3242 = vmatmul.mubr.f32.gmra.mrb[212].mxu1 %v11963_v10 }
 0x25d   :  { %3247 = vmatprep.mubr.f32.mxu1 %v15346_v48  ;;  %v3784_v0 = vsel %vm1172_vm0, %v3668_v28, %v3669_v39 }
 0x25e   :  { %v3797_v2 = vmul.f32 %v3784_v0, %v15585_v20 }
 0x260   :  { %3248 = vmatmul.mubr.f32.gmra.mrb[214].mxu1 %v11970_v43  ;;  %v4053_v33 = vadd.f32 %v3797_v2, %v2933_v50 }
 0x261   :  { %3253 = vmatprep.mubr.f32.mxu1 %v15346_v48  ;;  %v7744_v5 = vpop.f32.mrb[102].mxu0  ;;  %v2937_v31 = vpop.f32.mrb[110].mxu1 }
 0x262   :  { %v3862_v9 = vrot.slane %v7744_v5, 1  ;;  %v3374_v41 = vpop.f32.mrb[103].mxu0  ;;  %v3670_v1 = vrot.slane %v2937_v31, 7  ;;  %v2939_v10 = vpop.f32.mrb[111].mxu1 }
 0x263   :  { %v3861_v7 = vrot.slane %v3374_v41, 1  ;;  %v15589_v41 = vld [vmem:[#allocation19_spill] sm:$0xff] }
 0x264   :  { %3254 = vmatmul.mubr.f32.gmra.mrb[216].mxu1 %v11973_v18  ;;  %v3783_v49 = vsel %vm1172_vm0, %v3669_v39, %v3670_v1 }
 0x265   :  { %3259 = vmatprep.mubr.f32.mxu1 %v15346_v48  ;;  %v3975_v43 = vsel %vm1685_vm1, %v3861_v7, %v3862_v9  ;;  %v3976_v28 = vsel %vm1685_vm1, %v3860_v19, %v3861_v7  ;;  %v3798_v51 = vmul.f32 %v3783_v49, %v15586_v35 }
 0x266   :  { %v3988_v58 = vmul.f32 %v3976_v28, %v15587_v60  ;;  %v3989_v46 = vmul.f32 %v3975_v43, %v15588_v27  ;;  %v15590_v28 = vld [vmem:[#allocation16_spill] sm:$0xff] }
 0x267   :  { %v2943_v56 = vpop.f32.mrb[112].mxu1  ;;  %v4054_v6 = vadd.f32 %v3798_v51, %v2939_v10 }
 0x268   :  { %v3671_v18 = vrot.slane %v2943_v56, 7  ;;  %v2945_v47 = vpop.f32.mrb[113].mxu1  ;;  %3260 = vmatmul.mubr.f32.gmra.mrb[218].mxu1 %v11980_v59  ;;  %v12086_v50 = vadd.f32 %v4052_v30, %v3988_v58  ;;  %v12088_v0 = vadd.f32 %v4053_v33, %v3989_v46 }
 0x269   :  { %v7747_v39 = vpop.f32.mrb[104].mxu0  ;;  %3265 = vmatprep.mubr.f32.mxu1 %v15346_v48 }
 0x26a   :  { %v3864_v19 = vrot.slane %v7747_v39, 1  ;;  %v3384_v2 = vpop.f32.mrb[105].mxu0  ;;  %v3782_v5 = vsel %vm1172_vm0, %v3670_v1, %v3671_v18  ;;  %v15591_v1 = vld [vmem:[#allocation18_spill] sm:$0xff] }
 0x26b   :  { %v3863_v31 = vrot.slane %v3384_v2, 1  ;;  %v3799_v7 = vmul.f32 %v3782_v5, %v15589_v41  ;;  %v2949_v10 = vpop.f32.mrb[114].mxu1 }
 0x26c   :  { %v3672_v49 = vrot.slane %v2949_v10, 7  ;;  %v2951_v43 = vpop.f32.mrb[115].mxu1  ;;  %3266 = vmatmul.mubr.f32.gmra.mrb[220].mxu1 %v11983_v42  ;;  %v15592_v42 = vld [vmem:[#allocation21_spill] sm:$0xff] }
 0x26d   :  { %v3973_v59 = vsel %vm1685_vm1, %v3863_v31, %v3864_v19  ;;  %v3974_v30 = vsel %vm1685_vm1, %v3862_v9, %v3863_v31  ;;  %3271 = vmatprep.mubr.f32.mxu1 %v15346_v48  ;;  %v4055_v46 = vadd.f32 %v3799_v7, %v2945_v47  ;;  %v15593_v7 = vld [vmem:[#allocation20_spill] sm:$0xff] }
 0x26e   :  { %v7750_v33 = vpop.f32.mrb[106].mxu0  ;;  %v3990_v51 = vmul.f32 %v3974_v30, %v15590_v28  ;;  %v3991_v58 = vmul.f32 %v3973_v59, %v15591_v1  ;;  %v3781_v56 = vsel %vm1172_vm0, %v3671_v18, %v3672_v49 }
 0x26f   :  { %v3866_v39 = vrot.slane %v7750_v33, 1  ;;  %v3394_v2 = vpop.f32.mrb[107].mxu0  ;;  %v3800_v5 = vmul.f32 %v3781_v56, %v15592_v42  ;;  %v2955_v10 = vpop.f32.mrb[116].mxu1 }
 0x270   :  { %v3865_v15 = vrot.slane %v3394_v2, 1  ;;  %v12105_v63 = vadd.f32 %v4054_v6, %v3990_v51  ;;  %v12107_v9 = vadd.f32 %v4055_v46, %v3991_v58  ;;  %v2957_v31 = vpop.f32.mrb[117].mxu1  ;;  %3272 = vmatmul.mubr.f32.gmra.mrb[222].mxu1 %v11990_v24  ;;  %v3673_v41 = vrot.slane %v2955_v10, 7  ;;  %v15594_v51 = vld [vmem:[#allocation23_spill] sm:$0xff]  ;;  %v15595_v10 = vld [vmem:[#allocation22_spill] sm:$0xff] }
 0x271   :  { %v4056_v30 = vadd.f32 %v3800_v5, %v2951_v43 }
 0x272   :  { %v3971_v47 = vsel %vm1685_vm1, %v3865_v15, %v3866_v39  ;;  %v3972_v18 = vsel %vm1685_vm1, %v3864_v19, %v3865_v15  ;;  %v3780_v33 = vsel %vm1172_vm0, %v3672_v49, %v3673_v41 }
 0x273   :  { %v3992_v59 = vmul.f32 %v3972_v18, %v15593_v7  ;;  %v2961_v6 = vpop.f32.mrb[118].mxu1  ;;  %v3801_v58 = vmul.f32 %v3780_v33, %v15594_v51  ;;  %v3993_v42 = vmul.f32 %v3971_v47, %v15595_v10  ;;  %v15596_v18 = vld [vmem:[#allocation25_spill] sm:$0xff]  ;;  %v15598_v47 = vld [vmem:[#allocation24_spill] sm:$0xff]  ;;  %v15601_v10 = vld [vmem:[#allocation26_spill] sm:$0xff] }
 0x274   :  { %v3674_v46 = vrot.slane %v2961_v6, 7  ;;  %v2963_v56 = vpop.f32.mrb[119].mxu1 }
 0x275   :  { %v12118_v24 = vadd.f32 %v4056_v30, %v3992_v59  ;;  %v4057_v1 = vadd.f32 %v3801_v58, %v2957_v31  ;;  %v15599_v58 = vld [vmem:[#allocation27_spill] sm:$0xff] }
 0x276   :  { %v3779_v15 = vsel %vm1172_vm0, %v3673_v41, %v3674_v46 }
 0x277   :  { %v7753_v2 = vpop.f32.mrb[108].mxu0  ;;  %v3802_v7 = vmul.f32 %v3779_v15, %v15596_v18  ;;  %v2967_v49 = vpop.f32.mrb[120].mxu1  ;;  %v12124_v28 = vadd.f32 %v4057_v1, %v3993_v42 }
 0x278   :  { %v3868_v43 = vrot.slane %v7753_v2, 1  ;;  %v3404_v5 = vpop.f32.mrb[109].mxu0  ;;  %v3675_v33 = vrot.slane %v2967_v49, 7  ;;  %v2969_v6 = vpop.f32.mrb[121].mxu1 }
 0x279   :  { %v3867_v19 = vrot.slane %v3404_v5, 1  ;;  %15597 = vst [vmem:[#allocation113_spill] sm:$0xff] %v12124_v28  ;;  %v4058_v2 = vadd.f32 %v3802_v7, %v2963_v56 }
 0x27a   :  { %v3778_v41 = vsel %vm1172_vm0, %v3674_v46, %v3675_v33  ;;  %v15603_v46 = vld [vmem:[#allocation29_spill] sm:$0xff] }
 0x27b   :  { %v3969_v30 = vsel %vm1685_vm1, %v3867_v19, %v3868_v43  ;;  %v3970_v59 = vsel %vm1685_vm1, %v3866_v39, %v3867_v19  ;;  %v3803_v5 = vmul.f32 %v3778_v41, %v15599_v58  ;;  %v2973_v15 = vpop.f32.mrb[122].mxu1 }
 0x27c   :  { %v3994_v31 = vmul.f32 %v3970_v59, %v15598_v47  ;;  %v3676_v1 = vrot.slane %v2973_v15, 7  ;;  %v2975_v42 = vpop.f32.mrb[123].mxu1  ;;  %v3995_v51 = vmul.f32 %v3969_v30, %v15601_v10 }
 0x27d   :  { %v7756_v49 = vpop.f32.mrb[110].mxu0  ;;  %v4059_v35 = vadd.f32 %v3803_v5, %v2969_v6  ;;  %v15604_v6 = vld [vmem:[#allocation28_spill] sm:$0xff] }
 0x27e   :  { %v12134_v18 = vadd.f32 %v4058_v2, %v3994_v31  ;;  %v3870_v27 = vrot.slane %v7756_v49, 1  ;;  %v3414_v20 = vpop.f32.mrb[111].mxu0  ;;  %v3777_v39 = vsel %vm1172_vm0, %v3675_v33, %v3676_v1  ;;  %v15606_v49 = vld [vmem:[#allocation31_spill] sm:$0xff] }
 0x27f   :  { %v3869_v7 = vrot.slane %v3414_v20, 1  ;;  %v12139_v56 = vadd.f32 %v4059_v35, %v3995_v51  ;;  %v3804_v19 = vmul.f32 %v3777_v39, %v15603_v46  ;;  %v2979_v59 = vpop.f32.mrb[124].mxu1 }
 0x280   :  { %15600 = vst [vmem:[#allocation156_spill] sm:$0xff] %v12134_v18  ;;  %v3677_v41 = vrot.slane %v2979_v59, 7  ;;  %v2981_v2 = vpop.f32.mrb[125].mxu1 }
 0x281   :  { %15602 = vst [vmem:[#allocation158_spill] sm:$0xff] %v12139_v56  ;;  %v3967_v31 = vsel %vm1685_vm1, %v3869_v7, %v3870_v27  ;;  %v3968_v30 = vsel %vm1685_vm1, %v3868_v43, %v3869_v7  ;;  %v4060_v15 = vadd.f32 %v3804_v19, %v2975_v42  ;;  %v15672_v56 = vld [vmem:[#allocation98_spill] sm:$0xff] }
 0x282   :  { %v3996_v5 = vmul.f32 %v3968_v30, %v15604_v6  ;;  %v3776_v33 = vsel %vm1172_vm0, %v3676_v1, %v3677_v41  ;;  %v3997_v43 = vmul.f32 %v3967_v31, %v15607_v21 }
 0x283   :  { %v2985_v20 = vpop.f32.mrb[126].mxu1  ;;  %v3805_v39 = vmul.f32 %v3776_v33, %v15606_v49 }
 0x284   :  { %v12149_v51 = vadd.f32 %v4060_v15, %v3996_v5  ;;  %v3678_v59 = vrot.slane %v2985_v20, 7  ;;  %v2987_v46 = vpop.f32.mrb[127].mxu1  ;;  %v15609_v15 = vld [vmem:[#allocation33_spill] sm:$0xff] }
 0x285   :  { %v7759_v35 = vpop.f32.mrb[112].mxu0  ;;  %v4061_v60 = vadd.f32 %v3805_v39, %v2981_v2  ;;  %v15610_v2 = vld [vmem:[#allocation32_spill] sm:$0xff] }
 0x286   :  { %15605 = vst [vmem:[#allocation159_spill] sm:$0xff] %v12149_v51  ;;  %v3872_v10 = vrot.slane %v7759_v35, 1  ;;  %v3424_v58 = vpop.f32.mrb[113].mxu0  ;;  %v3775_v42 = vsel %vm1172_vm0, %v3677_v41, %v3678_v59 }
 0x287   :  { %v3871_v47 = vrot.slane %v3424_v58, 1  ;;  %v2991_v7 = vpop.f32.mrb[128].mxu1  ;;  %v12159_v5 = vadd.f32 %v4061_v60, %v3997_v43  ;;  %v3806_v33 = vmul.f32 %v3775_v42, %v15609_v15  ;;  %v4695_v60 = vld [vmem:[%s14957_s7 + $0x8] sm:$0xff] }
 0x288   :  { %v2993_v30 = vpop.f32.mrb[129].mxu1  ;;  %v3679_v20 = vrot.slane %v2991_v7, 7 }
 0x289   :  { %v3965_v1 = vsel %vm1685_vm1, %v3871_v47, %v3872_v10  ;;  %v3966_v19 = vsel %vm1685_vm1, %v3870_v27, %v3871_v47  ;;  %15608 = vst [vmem:[#allocation81_spill] sm:$0xff] %v12159_v5  ;;  %v4062_v31 = vadd.f32 %v3806_v33, %v2987_v46  ;;  %v4698_v27 = vld [vmem:[%s14957_s7 + $0x20] sm:$0xff]  ;;  %v15612_v46 = vld [vmem:[#allocation35_spill] sm:$0xff] }
 0x28a   :  { %v3998_v35 = vmul.f32 %v3966_v19, %v15610_v2  ;;  %v3774_v49 = vsel %vm1172_vm0, %v3678_v59, %v3679_v20  ;;  %v8085_v19 = vpack.c.bf16 %v4698_v27, %v4695_v60 }
 0x28b   :  { %v2997_v39 = vpop.f32.mrb[130].mxu1  ;;  %v3807_v42 = vmul.f32 %v3774_v49, %v15612_v46  ;;  %v15616_v46 = vld [vmem:[#allocation36_spill] sm:$0xff] }
 0x28c   :  { %v3680_v6 = vrot.slane %v2997_v39, 7  ;;  %v2999_v36 = vpop.f32.mrb[131].mxu1  ;;  %v12171_v43 = vadd.f32 %v4062_v31, %v3998_v35  ;;  %v15613_v39 = vld [vmem:[#allocation34_spill] sm:$0xff]  ;;  %8086 = vmatprep.subr.bf16.mxu0 %v8085_v19 }
 0x28d   :  { %v3999_v15 = vmul.f32 %v3965_v1, %v15613_v39  ;;  %v4063_v2 = vadd.f32 %v3807_v42, %v2993_v30  ;;  %v4694_v42 = vld [vmem:[%s14957_s7] sm:$0xff] }
 0x28e   :  { %v7762_v58 = vpop.f32.mrb[114].mxu0  ;;  %15611 = vst [vmem:[#allocation147_spill] sm:$0xff] %v12171_v43  ;;  %v3773_v7 = vsel %vm1172_vm0, %v3679_v20, %v3680_v6 }
 0x28f   :  { %v3874_v21 = vrot.slane %v7762_v58, 1  ;;  %v3434_v41 = vpop.f32.mrb[115].mxu0  ;;  %v3003_v58 = vpop.f32.mrb[132].mxu1  ;;  %v12182_v49 = vadd.f32 %v4063_v2, %v3999_v15  ;;  %v4697_v15 = vld [vmem:[%s14957_s7 + $0x18] sm:$0xff]  ;;  %v4699_v2 = vld [vmem:[%s14957_s7 + $0x28] sm:$0xff] }
 0x290   :  { %v3873_v47 = vrot.slane %v3434_v41, 1  ;;  %v3808_v41 = vmul.f32 %v3773_v7, %v15614_v37  ;;  %v3005_v35 = vpop.f32.mrb[133].mxu1  ;;  %v3681_v31 = vrot.slane %v3003_v58, 7 }
 0x291   :  { %15615 = vst [vmem:[#allocation130_spill] sm:$0xff] %v12182_v49 }
 0x292   :  { %v3963_v59 = vsel %vm1685_vm1, %v3873_v47, %v3874_v21  ;;  %v3964_v33 = vsel %vm1685_vm1, %v3872_v10, %v3873_v47  ;;  %v4064_v60 = vadd.f32 %v3808_v41, %v2999_v36  ;;  %v3772_v27 = vsel %vm1172_vm0, %v3680_v6, %v3681_v31  ;;  %v15618_v10 = vld [vmem:[#allocation39_spill] sm:$0xff]  ;;  %v4696_v36 = vld [vmem:[%s14957_s7 + $0x10] sm:$0xff] }
 0x293   :  { %v4000_v20 = vmul.f32 %v3964_v33, %v15616_v46  ;;  %v3009_v55 = vpop.f32.mrb[134].mxu1  ;;  %v3809_v47 = vmul.f32 %v3772_v27, %v15618_v10  ;;  %v8087_v6 = vpack.c.bf16 %v4697_v15, %v4694_v42  ;;  %v8117_v46 = vpack.c.bf16 %v4699_v2, %v4696_v36 }
 0x294   :  { %v3682_v1 = vrot.slane %v3009_v55, 7  ;;  %v3011_v30 = vpop.f32.mrb[135].mxu1  ;;  %v15619_v55 = vld [vmem:[#allocation38_spill] sm:$0xff] }
 0x295   :  { %v12187_v12 = vadd.f32 %v4064_v60, %v4000_v20  ;;  %v4001_v19 = vmul.f32 %v3963_v59, %v15619_v55  ;;  %v4065_v33 = vadd.f32 %v3809_v47, %v3005_v35  ;;  %v15620_v60 = vld [vmem:[#allocation41_spill] sm:$0xff]  ;;  %8088 = vmatpush1.bf16.msra.mxu0 %v8087_v6  ;;  %8118 = vmatprep.subr.bf16.mxu1 %v8117_v46  ;;  %v15622_v47 = vld [vmem:[#allocation40_spill] sm:$0xff] }
 0x296   :  { %v3771_v58 = vsel %vm1172_vm0, %v3681_v31, %v3682_v1  ;;  %8120 = vmatpush3.bf16.msra.mxu1 %v8117_v46  ;;  %v4701_v46 = vld [vmem:[%s14957_s7 + $0x38] sm:$0xff] }
 0x297   :  { %15617 = vst [vmem:[#allocation161_spill] sm:$0xff] %v12187_v12  ;;  %v3810_v27 = vmul.f32 %v3771_v58, %v15620_v60  ;;  %v3015_v10 = vpop.f32.mrb[136].mxu1  ;;  %v12206_v42 = vadd.f32 %v4065_v33, %v4001_v19  ;;  %v15623_v33 = vld [vmem:[#allocation43_spill] sm:$0xff]  ;;  %v15625_v60 = vld [vmem:[#allocation42_spill] sm:$0xff] }
 0x298   :  { %v3017_v15 = vpop.f32.mrb[137].mxu1  ;;  %v3683_v44 = vrot.slane %v3015_v10, 7 }
 0x299   :  { %v7765_v7 = vpop.f32.mrb[116].mxu0  ;;  %15621 = vst [vmem:[#allocation164_spill] sm:$0xff] %v12206_v42  ;;  %v4066_v39 = vadd.f32 %v3810_v27, %v3011_v30 }
 0x29a   :  { %v3876_v41 = vrot.slane %v7765_v7, 1  ;;  %v3444_v20 = vpop.f32.mrb[117].mxu0  ;;  %v3770_v36 = vsel %vm1172_vm0, %v3682_v1, %v3683_v44  ;;  %v4704_v1 = vld [vmem:[%s14957_s7 + $0x50] sm:$0xff] }
 0x29b   :  { %v3875_v37 = vrot.slane %v3444_v20, 1  ;;  %v3021_v6 = vpop.f32.mrb[138].mxu1  ;;  %v3811_v30 = vmul.f32 %v3770_v36, %v15623_v33  ;;  %v8089_v33 = vpack.c.bf16 %v4704_v1, %v4701_v46 }
 0x29c   :  { %v3684_v10 = vrot.slane %v3021_v6, 7  ;;  %v3023_v58 = vpop.f32.mrb[139].mxu1  ;;  %v15628_v6 = vld [vmem:[#allocation44_spill] sm:$0xff] }
 0x29d   :  { %v3961_v59 = vsel %vm1685_vm1, %v3875_v37, %v3876_v41  ;;  %v3962_v35 = vsel %vm1685_vm1, %v3874_v21, %v3875_v37  ;;  %v4067_v37 = vadd.f32 %v3811_v30, %v3017_v15  ;;  %8090 = vmatprep.subr.bf16.mxu0 %v8089_v33 }
 0x29e   :  { %v4002_v7 = vmul.f32 %v3962_v35, %v15622_v47  ;;  %v4003_v55 = vmul.f32 %v3961_v59, %v15625_v60  ;;  %v3769_v21 = vsel %vm1172_vm0, %v3683_v44, %v3684_v10 }
 0x29f   :  { %v3027_v15 = vpop.f32.mrb[140].mxu1 }
 0x2a0   :  { %v7768_v31 = vpop.f32.mrb[118].mxu0  ;;  %v12216_v27 = vadd.f32 %v4066_v39, %v4002_v7  ;;  %v12232_v7 = vadd.f32 %v4067_v37, %v4003_v55  ;;  %v3685_v44 = vrot.slane %v3027_v15, 7  ;;  %v3029_v36 = vpop.f32.mrb[141].mxu1  ;;  %v4700_v55 = vld [vmem:[%s14957_s7 + $0x30] sm:$0xff]  ;;  %v15630_v37 = vld [vmem:[#allocation47_spill] sm:$0xff] }
 0x2a1   :  { %v3878_v2 = vrot.slane %v7768_v31, 1  ;;  %v3454_v19 = vpop.f32.mrb[119].mxu0  ;;  %v15626_v31 = vld [vmem:[#allocation45_spill] sm:$0xff] }
 0x2a2   :  { %v3877_v20 = vrot.slane %v3454_v19, 1  ;;  %15624 = vst [vmem:[#allocation165_spill] sm:$0xff] %v12216_v27  ;;  %v3812_v59 = vmul.f32 %v3769_v21, %v15626_v31  ;;  %15627 = vst [vmem:[#allocation141_spill] sm:$0xff] %v12232_v7  ;;  %v3768_v47 = vsel %vm1172_vm0, %v3684_v10, %v3685_v44 }
 0x2a3   :  { %v3813_v21 = vmul.f32 %v3768_v47, %v15630_v37 }
 0x2a4   :  { %v3959_v35 = vsel %vm1685_vm1, %v3877_v20, %v3878_v2  ;;  %v3960_v39 = vsel %vm1685_vm1, %v3876_v41, %v3877_v20  ;;  %v4068_v30 = vadd.f32 %v3812_v59, %v3023_v58  ;;  %v3033_v41 = vpop.f32.mrb[142].mxu1  ;;  %v4703_v20 = vld [vmem:[%s14957_s7 + $0x48] sm:$0xff] }
 0x2a5   :  { %v4004_v19 = vmul.f32 %v3960_v39, %v15628_v6  ;;  %v3686_v46 = vrot.slane %v3033_v41, 7  ;;  %v3035_v1 = vpop.f32.mrb[143].mxu1  ;;  %v8091_v10 = vpack.c.bf16 %v4703_v20, %v4700_v55  ;;  %v15631_v39 = vld [vmem:[#allocation46_spill] sm:$0xff]  ;;  %v4069_v15 = vadd.f32 %v3813_v21, %v3029_v36  ;;  %v15633_v55 = vld [vmem:[#allocation49_spill] sm:$0xff] }
 0x2a6   :  { %v7771_v60 = vpop.f32.mrb[120].mxu0  ;;  %v4005_v59 = vmul.f32 %v3959_v35, %v15631_v39  ;;  %v4710_v36 = vld [vmem:[%s14957_s7 + $0x80] sm:$0xff]  ;;  %v15639_v39 = vld [vmem:[#allocation53_spill] sm:$0xff] }
 0x2a7   :  { %v3880_v25 = vrot.slane %v7771_v60, 1  ;;  %v3464_v8 = vpop.f32.mrb[121].mxu0  ;;  %v12237_v29 = vadd.f32 %v4068_v30, %v4004_v19  ;;  %v3767_v30 = vsel %vm1172_vm0, %v3685_v44, %v3686_v46  ;;  %v3039_v6 = vpop.f32.mrb[144].mxu1  ;;  %8092 = vmatpush1.bf16.msra.mxu0 %v8091_v10  ;;  %v4707_v44 = vld [vmem:[%s14957_s7 + $0x68] sm:$0xff] }
 0x2a8   :  { %v3879_v58 = vrot.slane %v3464_v8, 1  ;;  %v12253_v41 = vadd.f32 %v4069_v15, %v4005_v59  ;;  %v3814_v20 = vmul.f32 %v3767_v30, %v15633_v55  ;;  %v3687_v37 = vrot.slane %v3039_v6, 7  ;;  %v3041_v31 = vpop.f32.mrb[145].mxu1  ;;  %v15635_v10 = vld [vmem:[#allocation51_spill] sm:$0xff] }
 0x2a9   :  { %15629 = vst [vmem:[#allocation151_spill] sm:$0xff] %v12237_v29  ;;  %v15634_v29 = vld [vmem:[#allocation48_spill] sm:$0xff] }
 0x2aa   :  { %v3957_v60 = vsel %vm1685_vm1, %v3879_v58, %v3880_v25  ;;  %v3958_v33 = vsel %vm1685_vm1, %v3878_v2, %v3879_v58  ;;  %15632 = vst [vmem:[#allocation62_spill] sm:$0xff] %v12253_v41  ;;  %v4070_v58 = vadd.f32 %v3814_v20, %v3035_v1  ;;  %v3766_v35 = vsel %vm1172_vm0, %v3686_v46, %v3687_v37 }
 0x2ab   :  { %v4006_v2 = vmul.f32 %v3958_v33, %v15634_v29  ;;  %v3815_v33 = vmul.f32 %v3766_v35, %v15635_v10  ;;  %v3045_v1 = vpop.f32.mrb[146].mxu1  ;;  %v8093_v20 = vpack.c.bf16 %v4710_v36, %v4707_v44  ;;  %v15642_v36 = vld [vmem:[#allocation55_spill] sm:$0xff] }
 0x2ac   :  { %v7774_v19 = vpop.f32.mrb[122].mxu0  ;;  %v3688_v46 = vrot.slane %v3045_v1, 7  ;;  %v3047_v15 = vpop.f32.mrb[147].mxu1  ;;  %v15640_v1 = vld [vmem:[#allocation52_spill] sm:$0xff] }
 0x2ad   :  { %v3882_v8 = vrot.slane %v7774_v19, 1  ;;  %v3474_v47 = vpop.f32.mrb[123].mxu0  ;;  %v12270_v59 = vadd.f32 %v4070_v58, %v4006_v2  ;;  %v15637_v19 = vld [vmem:[#allocation50_spill] sm:$0xff]  ;;  %8094 = vmatprep.subr.bf16.mxu0 %v8093_v20 }
 0x2ae   :  { %v3881_v48 = vrot.slane %v3474_v47, 1  ;;  %v4007_v30 = vmul.f32 %v3957_v60, %v15637_v19  ;;  %v4071_v47 = vadd.f32 %v3815_v33, %v3041_v31  ;;  %v3765_v29 = vsel %vm1172_vm0, %v3687_v37, %v3688_v46  ;;  %v4706_v31 = vld [vmem:[%s14957_s7 + $0x60] sm:$0xff]  ;;  %v4709_v37 = vld [vmem:[%s14957_s7 + $0x78] sm:$0xff] }
 0x2af   :  { %15636 = vst [vmem:[#allocation162_spill] sm:$0xff] %v12270_v59  ;;  %v3816_v41 = vmul.f32 %v3765_v29, %v15639_v39  ;;  %v3051_v7 = vpop.f32.mrb[148].mxu1  ;;  %v8095_v44 = vpack.c.bf16 %v4709_v37, %v4706_v31 }
 0x2b0   :  { %v3955_v21 = vsel %vm1685_vm1, %v3881_v48, %v3882_v8  ;;  %v3956_v6 = vsel %vm1685_vm1, %v3880_v25, %v3881_v48  ;;  %v12275_v55 = vadd.f32 %v4071_v47, %v4007_v30  ;;  %v3689_v25 = vrot.slane %v3051_v7, 7  ;;  %v3053_v35 = vpop.f32.mrb[149].mxu1 }
 0x2b1   :  { %v4008_v10 = vmul.f32 %v3956_v6, %v15640_v1  ;;  %v4072_v59 = vadd.f32 %v3816_v41, %v3047_v15  ;;  %v4702_v41 = vld [vmem:[%s14957_s7 + $0x40] sm:$0xff]  ;;  %v4705_v6 = vld [vmem:[%s14957_s7 + $0x58] sm:$0xff]  ;;  %8096 = vmatpush1.bf16.msra.mxu0 %v8095_v44 }
 0x2b2   :  { %15638 = vst [vmem:[#allocation86_spill] sm:$0xff] %v12275_v55  ;;  %v3764_v29 = vsel %vm1172_vm0, %v3688_v46, %v3689_v25  ;;  %v8121_v31 = vpack.c.bf16 %v4705_v6, %v4702_v41  ;;  %v15647_v6 = vld [vmem:[#allocation59_spill] sm:$0xff] }
 0x2b3   :  { %v12287_v7 = vadd.f32 %v4072_v59, %v4008_v10  ;;  %v3817_v33 = vmul.f32 %v3764_v29, %v15642_v36  ;;  %v3057_v30 = vpop.f32.mrb[150].mxu1  ;;  %v15643_v59 = vld [vmem:[#allocation54_spill] sm:$0xff]  ;;  %v15645_v29 = vld [vmem:[#allocation57_spill] sm:$0xff] }
 0x2b4   :  { %v7777_v48 = vpop.f32.mrb[124].mxu0  ;;  %v3690_v47 = vrot.slane %v3057_v30, 7  ;;  %v3059_v10 = vpop.f32.mrb[151].mxu1  ;;  %v4009_v20 = vmul.f32 %v3955_v21, %v15643_v59  ;;  %8122 = vmatprep.subr.bf16.mxu1 %v8121_v31  ;;  %v15646_v30 = vld [vmem:[#allocation56_spill] sm:$0xff]  ;;  %v4713_v21 = vld [vmem:[%s14957_s7 + $0x98] sm:$0xff] }
 0x2b5   :  { %v3884_v2 = vrot.slane %v7777_v48, 1  ;;  %v3484_v58 = vpop.f32.mrb[125].mxu0  ;;  %15641 = vst [vmem:[#allocation142_spill] sm:$0xff] %v12287_v7  ;;  %v4073_v48 = vadd.f32 %v3817_v33, %v3053_v35  ;;  %8124 = vmatpush3.bf16.msra.mxu1 %v8121_v31  ;;  %v15651_v59 = vld [vmem:[#allocation61_spill] sm:$0xff] }
 0x2b6   :  { %v3883_v60 = vrot.slane %v3484_v58, 1  ;;  %v3763_v58 = vsel %vm1172_vm0, %v3689_v25, %v3690_v47  ;;  %v4716_v25 = vld [vmem:[%s14957_s7 + $0xb0] sm:$0xff] }
 0x2b7   :  { %v12303_v37 = vadd.f32 %v4073_v48, %v4009_v20  ;;  %v3818_v36 = vmul.f32 %v3763_v58, %v15645_v29  ;;  %v3063_v39 = vpop.f32.mrb[152].mxu1  ;;  %v8097_v41 = vpack.c.bf16 %v4716_v25, %v4713_v21 }
 0x2b8   :  { %v3953_v15 = vsel %vm1685_vm1, %v3883_v60, %v3884_v2  ;;  %v3954_v46 = vsel %vm1685_vm1, %v3882_v8, %v3883_v60  ;;  %v3691_v19 = vrot.slane %v3063_v39, 7  ;;  %v3065_v7 = vpop.f32.mrb[153].mxu1 }
 0x2b9   :  { %15644 = vst [vmem:[#allocation152_spill] sm:$0xff] %v12303_v37  ;;  %v4010_v44 = vmul.f32 %v3954_v46, %v15646_v30  ;;  %v4074_v33 = vadd.f32 %v3818_v36, %v3059_v10  ;;  %8098 = vmatprep.subr.bf16.mxu0 %v8097_v41 }
 0x2ba   :  { %v3762_v39 = vsel %vm1172_vm0, %v3690_v47, %v3691_v19 }
 0x2bb   :  { %v3069_v20 = vpop.f32.mrb[154].mxu1  ;;  %v12320_v31 = vadd.f32 %v4074_v33, %v4010_v44 }
 0x2bc   :  { %v7780_v1 = vpop.f32.mrb[126].mxu0  ;;  %v3692_v29 = vrot.slane %v3069_v20, 7  ;;  %v3071_v30 = vpop.f32.mrb[155].mxu1 }
 0x2bd   :  { %v3886_v8 = vrot.slane %v7780_v1, 1  ;;  %v3494_v60 = vpop.f32.mrb[127].mxu0  ;;  %v3819_v1 = vmul.f32 %v3762_v39, %v15647_v6  ;;  %15648 = vst [vmem:[#allocation64_spill] sm:$0xff] %v12320_v31 }
 0x2be   :  { %v3885_v35 = vrot.slane %v3494_v60, 1  ;;  %v15649_v60 = vld [vmem:[#allocation58_spill] sm:$0xff]  ;;  %v3761_v39 = vsel %vm1172_vm0, %v3691_v19, %v3692_v29 }
 0x2bf   :  { %v4011_v47 = vmul.f32 %v3953_v15, %v15649_v60  ;;  %v4075_v21 = vadd.f32 %v3819_v1, %v3065_v7  ;;  %v3820_v37 = vmul.f32 %v3761_v39, %v15651_v59  ;;  %v15652_v7 = vld [vmem:[#allocation60_spill] sm:$0xff] }
 0x2c0   :  { %v3951_v46 = vsel %vm1685_vm1, %v3885_v35, %v3886_v8  ;;  %v3952_v48 = vsel %vm1685_vm1, %v3884_v2, %v3885_v35  ;;  %v7783_v58 = vpop.f32.mrb[128].mxu0  ;;  %v3075_v2 = vpop.f32.mrb[156].mxu1 }
 0x2c1   :  { %v3888_v36 = vrot.slane %v7783_v58, 1  ;;  %v3504_v10 = vpop.f32.mrb[129].mxu0  ;;  %v12325_v6 = vadd.f32 %v4075_v21, %v4011_v47  ;;  %v3077_v41 = vpop.f32.mrb[157].mxu1  ;;  %v4012_v1 = vmul.f32 %v3952_v48, %v15652_v7  ;;  %v4076_v58 = vadd.f32 %v3820_v37, %v3071_v30  ;;  %v4712_v37 = vld [vmem:[%s14957_s7 + $0x90] sm:$0xff] }
 0x2c2   :  { %v3887_v25 = vrot.slane %v3504_v10, 1  ;;  %v3693_v10 = vrot.slane %v3075_v2, 7 }
 0x2c3   :  { %15650 = vst [vmem:[#allocation109_spill] sm:$0xff] %v12325_v6  ;;  %v12333_v47 = vadd.f32 %v4076_v58, %v4012_v1  ;;  %v3081_v39 = vpop.f32.mrb[158].mxu1  ;;  %v15655_v58 = vld [vmem:[#allocation66_spill] sm:$0xff] }
 0x2c4   :  { %v3949_v44 = vsel %vm1685_vm1, %v3887_v25, %v3888_v36  ;;  %v3950_v35 = vsel %vm1685_vm1, %v3886_v8, %v3887_v25  ;;  %v7786_v33 = vpop.f32.mrb[130].mxu0  ;;  %v3760_v21 = vsel %vm1172_vm0, %v3692_v29, %v3693_v10  ;;  %v3083_v48 = vpop.f32.mrb[159].mxu1  ;;  %v4715_v29 = vld [vmem:[%s14957_s7 + $0xa8] sm:$0xff]  ;;  %v4013_v7 = vmul.f32 %v3951_v46, %v15655_v58 }
 0x2c5   :  { %v3890_v20 = vrot.slane %v7786_v33, 1  ;;  %v3514_v15 = vpop.f32.mrb[131].mxu0  ;;  %15653 = vst [vmem:[#allocation157_spill] sm:$0xff] %v12333_v47  ;;  %v15654_v33 = vld [vmem:[#allocation65_spill] sm:$0xff] }
 0x2c6   :  { %v3889_v19 = vrot.slane %v3514_v15, 1  ;;  %v3821_v60 = vmul.f32 %v3760_v21, %v15654_v33  ;;  %v3694_v15 = vrot.slane %v3081_v39, 7  ;;  %v8099_v21 = vpack.c.bf16 %v4715_v29, %v4712_v37  ;;  %v4722_v37 = vld [vmem:[%s14957_s7 + $0xe0] sm:$0xff]  ;;  %v15658_v29 = vld [vmem:[#allocation69_spill] sm:$0xff] }
 0x2c8   :  { %v12339_v59 = vsel %vm1685_vm1, %v3889_v19, %v3890_v20  ;;  %v3948_v8 = vsel %vm1685_vm1, %v3888_v36, %v3889_v19  ;;  %v7789_v25 = vpop.f32.mrb[132].mxu0  ;;  %v4077_v47 = vadd.f32 %v3821_v60, %v3077_v41  ;;  %v3759_v36 = vsel %vm1172_vm0, %v3693_v10, %v3694_v15  ;;  %v3087_v19 = vpop.f32.mrb[160].mxu1  ;;  %v15657_v60 = vld [vmem:[#allocation67_spill] sm:$0xff]  ;;  %8100 = vmatpush1.bf16.msra.mxu0 %v8099_v21 }
 0x2c9   :  { %v3892_v30 = vrot.slane %v7789_v25, 1  ;;  %v3524_v2 = vpop.f32.mrb[133].mxu0  ;;  %v3089_v39 = vpop.f32.mrb[161].mxu1  ;;  %v3822_v41 = vmul.f32 %v3759_v36, %v15657_v60  ;;  %v3695_v58 = vrot.slane %v3087_v19, 7  ;;  %v4719_v10 = vld [vmem:[%s14957_s7 + $0xc8] sm:$0xff]  ;;  %v15659_v60 = vld [vmem:[#allocation68_spill] sm:$0xff] }
 0x2ca   :  { %v3891_v1 = vrot.slane %v3524_v2, 1  ;;  %v12361_v31 = vadd.f32 %v4077_v47, %v4013_v7 }
 0x2cb   :  { %v4078_v7 = vadd.f32 %v3822_v41, %v3083_v48  ;;  %v3758_v47 = vsel %vm1172_vm0, %v3694_v15, %v3695_v58 }
 0x2cc   :  { %v12355_v33 = vsel %vm1685_vm1, %v3891_v1, %v3892_v30  ;;  %v12359_v6 = vsel %vm1685_vm1, %v3890_v20, %v3891_v1  ;;  %v7792_v25 = vpop.f32.mrb[134].mxu0  ;;  %15656 = vst [vmem:[#allocation163_spill] sm:$0xff] %v12361_v31  ;;  %v4014_v1 = vmul.f32 %v3950_v35, %v15658_v29  ;;  %v8101_v31 = vpack.c.bf16 %v4722_v37, %v4719_v10  ;;  %v15661_v37 = vld [vmem:[#allocation72_spill] sm:$0xff] }
 0x2cd   :  { %v3894_v2 = vrot.slane %v7792_v25, 1  ;;  %v3534_v46 = vpop.f32.mrb[135].mxu0  ;;  %v3093_v25 = vpop.f32.mrb[162].mxu1  ;;  %v3823_v55 = vmul.f32 %v3758_v47, %v15659_v60  ;;  %v4015_v29 = vmul.f32 %v3949_v44, %v15661_v37  ;;  %v4019_v18 = vmul.f32 %v12355_v33, %v15672_v56  ;;  %v4724_v33 = vld [vmem:[%s14957_s7 + $0xf0] sm:$0xff] }
 0x2ce   :  { %v3893_v20 = vrot.slane %v3534_v46, 1  ;;  %v3095_v46 = vpop.f32.mrb[163].mxu1  ;;  %v12382_v48 = vadd.f32 %v4078_v7, %v4014_v1  ;;  %v3696_v41 = vrot.slane %v3093_v25, 7  ;;  %8102 = vmatprep.subr.bf16.mxu0 %v8101_v31 }
 0x2cf   :  { %v4079_v10 = vadd.f32 %v3823_v55, %v3089_v39  ;;  %v3099_v12 = vpop.f32.mrb[164].mxu1  ;;  %v15663_v55 = vld [vmem:[#allocation70_spill] sm:$0xff] }
 0x2d0   :  { %v12375_v36 = vsel %vm1685_vm1, %v3893_v20, %v3894_v2  ;;  %v12379_v19 = vsel %vm1685_vm1, %v3892_v30, %v3893_v20  ;;  %v7795_v21 = vpop.f32.mrb[136].mxu0  ;;  %15660 = vst [vmem:[#allocation168_spill] sm:$0xff] %v12382_v48  ;;  %v3757_v42 = vsel %vm1172_vm0, %v3695_v58, %v3696_v41  ;;  %v3101_v7 = vpop.f32.mrb[165].mxu1  ;;  %v15664_v58 = vld [vmem:[#allocation77_spill] sm:$0xff] }
 0x2d1   :  { %v3896_v27 = vrot.slane %v7795_v21, 1  ;;  %v3544_v35 = vpop.f32.mrb[137].mxu0  ;;  %v12395_v25 = vadd.f32 %v4079_v10, %v4015_v29  ;;  %v3824_v44 = vmul.f32 %v3757_v42, %v15663_v55  ;;  %v3697_v21 = vrot.slane %v3099_v12, 7  ;;  %v15667_v55 = vld [vmem:[#allocation84_spill] sm:$0xff] }
 0x2d2   :  { %v3895_v15 = vrot.slane %v3544_v35, 1  ;;  %v4016_v35 = vmul.f32 %v3948_v8, %v15664_v58  ;;  %v15666_v8 = vld [vmem:[#allocation71_spill] sm:$0xff]  ;;  %v4017_v58 = vmul.f32 %v12339_v59, %v15667_v55 }
 0x2d3   :  { %15662 = vst [vmem:[#allocation118_spill] sm:$0xff] %v12395_v25  ;;  %v4080_v60 = vadd.f32 %v3824_v44, %v3095_v46  ;;  %v3105_v37 = vpop.f32.mrb[166].mxu1  ;;  %v3756_v29 = vsel %vm1172_vm0, %v3696_v41, %v3697_v21  ;;  %v4721_v41 = vld [vmem:[%s14957_s7 + $0xd8] sm:$0xff] }
 0x2d4   :  { %v12389_v30 = vsel %vm1685_vm1, %v3895_v15, %v3896_v27  ;;  %v12393_v20 = vsel %vm1685_vm1, %v3894_v2, %v3895_v15  ;;  %v7798_v1 = vpop.f32.mrb[138].mxu0  ;;  %v3107_v10 = vpop.f32.mrb[167].mxu1  ;;  %v3825_v46 = vmul.f32 %v3756_v29, %v15666_v8  ;;  %v3698_v44 = vrot.slane %v3105_v37, 7  ;;  %v15669_v29 = vld [vmem:[#allocation74_spill] sm:$0xff] }
 0x2d5   :  { %v3898_v47 = vrot.slane %v7798_v1, 1  ;;  %v3554_v31 = vpop.f32.mrb[139].mxu0  ;;  %v12409_v12 = vadd.f32 %v4080_v60, %v4016_v35  ;;  %v4708_v35 = vld [vmem:[%s14957_s7 + $0x70] sm:$0xff] }
 0x2d6   :  { %v3897_v39 = vrot.slane %v3554_v31, 1  ;;  %v4081_v25 = vadd.f32 %v3825_v46, %v3101_v7  ;;  %v3755_v59 = vsel %vm1172_vm0, %v3697_v21, %v3698_v44  ;;  %v4711_v46 = vld [vmem:[%s14957_s7 + $0x88] sm:$0xff] }
 0x2d7   :  { %15665 = vst [vmem:[#allocation121_spill] sm:$0xff] %v12409_v12  ;;  %v3111_v49 = vpop.f32.mrb[168].mxu1  ;;  %v8125_v43 = vpack.c.bf16 %v4711_v46, %v4708_v35 }
 0x2d8   :  { %v12401_v48 = vsel %vm1685_vm1, %v3897_v39, %v3898_v47  ;;  %v12405_v2 = vsel %vm1685_vm1, %v3896_v27, %v3897_v39  ;;  %v7801_v15 = vpop.f32.mrb[140].mxu0  ;;  %v4718_v27 = vld [vmem:[%s14957_s7 + $0xc0] sm:$0xff]  ;;  %v3699_v7 = vrot.slane %v3111_v49, 7  ;;  %v3113_v39 = vpop.f32.mrb[169].mxu1  ;;  %v4728_v49 = vld [vmem:[%s14957_s7 + $0x110] sm:$0xff] }
 0x2d9   :  { %v3900_v42 = vrot.slane %v7801_v15, 1  ;;  %v3564_v1 = vpop.f32.mrb[141].mxu0  ;;  %v12433_v15 = vadd.f32 %v4081_v25, %v4017_v58  ;;  %v15670_v25 = vld [vmem:[#allocation92_spill] sm:$0xff]  ;;  %8126 = vmatprep.subr.bf16.mxu1 %v8125_v43 }
 0x2da   :  { %v3899_v31 = vrot.slane %v3564_v1, 1  ;;  %v3826_v1 = vmul.f32 %v3755_v59, %v15669_v29  ;;  %v3754_v21 = vsel %vm1172_vm0, %v3698_v44, %v3699_v7  ;;  %v4018_v58 = vmul.f32 %v12359_v6, %v15670_v25  ;;  %v15671_v29 = vld [vmem:[#allocation76_spill] sm:$0xff]  ;;  %8128 = vmatpush3.bf16.msra.mxu1 %v8125_v43 }
 0x2db   :  { %15668 = vst [vmem:[#allocation123_spill] sm:$0xff] %v12433_v15  ;;  %v3827_v8 = vmul.f32 %v3754_v21, %v15671_v29  ;;  %v3117_v55 = vpop.f32.mrb[170].mxu1 }
 0x2dc   :  { %v12422_v60 = vsel %vm1685_vm1, %v3899_v31, %v3900_v42  ;;  %v12426_v37 = vsel %vm1685_vm1, %v3898_v47, %v3899_v31  ;;  %v4725_v47 = vld [vmem:[%s14957_s7 + $0xf8] sm:$0xff]  ;;  %v8103_v31 = vpack.c.bf16 %v4721_v41, %v4718_v27  ;;  %v4082_v59 = vadd.f32 %v3826_v1, %v3107_v10  ;;  %v3119_v12 = vpop.f32.mrb[171].mxu1  ;;  %v15673_v27 = vld [vmem:[#allocation80_spill] sm:$0xff] }
 0x2dd   :  { %v3700_v15 = vrot.slane %v3117_v55, 7  ;;  %v8105_v5 = vpack.c.bf16 %v4728_v49, %v4725_v47  ;;  %v4083_v28 = vadd.f32 %v3827_v8, %v3113_v39 }
 0x2de   :  { %8104 = vmatpush1.bf16.msra.mxu0 %v8103_v31  ;;  %v12450_v51 = vadd.f32 %v4082_v59, %v4018_v58 }
 0x2df   :  { %v3753_v44 = vsel %vm1172_vm0, %v3699_v7, %v3700_v15  ;;  %8106 = vmatprep.subr.bf16.mxu0 %v8105_v5  ;;  %v12456_v10 = vadd.f32 %v4083_v28, %v4019_v18  ;;  %v3123_v41 = vpop.f32.mrb[172].mxu1  ;;  %v4727_v5 = vld [vmem:[%s14957_s7 + $0x108] sm:$0xff]  ;;  %v15674_v28 = vld [vmem:[#allocation104_spill] sm:$0xff] }
 0x2e0   :  { %v3828_v55 = vmul.f32 %v3753_v44, %v15673_v27  ;;  %v3701_v46 = vrot.slane %v3123_v41, 7  ;;  %v3125_v47 = vpop.f32.mrb[173].mxu1  ;;  %v4020_v18 = vmul.f32 %v12379_v19, %v15674_v28  ;;  %v8107_v8 = vpack.c.bf16 %v4727_v5, %v4724_v33 }
 0x2e2   :  { %v4084_v21 = vadd.f32 %v3828_v55, %v3119_v12  ;;  %v3752_v43 = vsel %vm1172_vm0, %v3700_v15, %v3701_v46  ;;  %8108 = vmatpush1.bf16.msra.mxu0 %v8107_v8 }
 0x2e3   :  { %v7804_v6 = vpop.f32.mrb[142].mxu0  ;;  %v3129_v31 = vpop.f32.mrb[174].mxu1 }
 0x2e4   :  { %v3902_v35 = vrot.slane %v7804_v6, 1  ;;  %v3574_v1 = vpop.f32.mrb[143].mxu0  ;;  %v12477_v44 = vadd.f32 %v4084_v21, %v4020_v18  ;;  %v15676_v6 = vld [vmem:[#allocation82_spill] sm:$0xff]  ;;  %v3131_v55 = vpop.f32.mrb[175].mxu1  ;;  %v3702_v41 = vrot.slane %v3129_v31, 7 }
 0x2e5   :  { %v3901_v49 = vrot.slane %v3574_v1, 1  ;;  %v3829_v19 = vmul.f32 %v3752_v43, %v15676_v6  ;;  %v15677_v1 = vld [vmem:[#allocation112_spill] sm:$0xff] }
 0x2e6   :  { %15675 = vst [vmem:[#allocation136_spill] sm:$0xff] %v12477_v44  ;;  %v4021_v33 = vmul.f32 %v12375_v36, %v15677_v1  ;;  %v3751_v18 = vsel %vm1172_vm0, %v3701_v46, %v3702_v41  ;;  %v15680_v1 = vld [vmem:[#allocation116_spill] sm:$0xff] }
 0x2e7   :  { %v12471_v7 = vsel %vm1685_vm1, %v3901_v49, %v3902_v35  ;;  %v12475_v12 = vsel %vm1685_vm1, %v3900_v42, %v3901_v49  ;;  %v7807_v39 = vpop.f32.mrb[144].mxu0  ;;  %v4085_v5 = vadd.f32 %v3829_v19, %v3125_v47  ;;  %v3135_v43 = vpop.f32.mrb[176].mxu1  ;;  %v4022_v27 = vmul.f32 %v12393_v20, %v15680_v1  ;;  %v15683_v1 = vld [vmem:[#allocation120_spill] sm:$0xff] }
 0x2e8   :  { %v3904_v58 = vrot.slane %v7807_v39, 1  ;;  %v3584_v59 = vpop.f32.mrb[145].mxu0  ;;  %v3137_v47 = vpop.f32.mrb[177].mxu1  ;;  %v3703_v6 = vrot.slane %v3135_v43, 7  ;;  %v4023_v29 = vmul.f32 %v12389_v30, %v15683_v1  ;;  %v4734_v30 = vld [vmem:[%s14957_s7 + $0x140] sm:$0xff] }
 0x2e9   :  { %v3903_v15 = vrot.slane %v3584_v59, 1  ;;  %v12492_v31 = vadd.f32 %v4085_v5, %v4021_v33  ;;  %v15679_v59 = vld [vmem:[#allocation87_spill] sm:$0xff] }
 0x2ea   :  { %v3830_v36 = vmul.f32 %v3751_v18, %v15679_v59  ;;  %v3750_v33 = vsel %vm1172_vm0, %v3702_v41, %v3703_v6 }
 0x2eb   :  { %v12484_v42 = vsel %vm1685_vm1, %v3903_v15, %v3904_v58  ;;  %v12488_v49 = vsel %vm1685_vm1, %v3902_v35, %v3903_v15  ;;  %v7810_v21 = vpop.f32.mrb[146].mxu0  ;;  %15678 = vst [vmem:[#allocation126_spill] sm:$0xff] %v12492_v31  ;;  %v3141_v5 = vpop.f32.mrb[178].mxu1 }
 0x2ec   :  { %v3906_v8 = vrot.slane %v7810_v21, 1  ;;  %v3594_v39 = vpop.f32.mrb[147].mxu0  ;;  %v4086_v28 = vadd.f32 %v3830_v36, %v3131_v55  ;;  %v15682_v55 = vld [vmem:[#allocation90_spill] sm:$0xff]  ;;  %v3704_v59 = vrot.slane %v3141_v5, 7 }
 0x2ed   :  { %v3905_v19 = vrot.slane %v3594_v39, 1  ;;  %v3143_v39 = vpop.f32.mrb[179].mxu1  ;;  %v3831_v36 = vmul.f32 %v3750_v33, %v15682_v55  ;;  %v4731_v33 = vld [vmem:[%s14957_s7 + $0x128] sm:$0xff] }
 0x2ee   :  { %v12507_v43 = vadd.f32 %v4086_v28, %v4022_v27  ;;  %v3749_v27 = vsel %vm1172_vm0, %v3703_v6, %v3704_v59 }
 0x2ef   :  { %v12499_v35 = vsel %vm1685_vm1, %v3905_v19, %v3906_v8  ;;  %v12503_v46 = vsel %vm1685_vm1, %v3904_v58, %v3905_v19  ;;  %v7813_v15 = vpop.f32.mrb[148].mxu0  ;;  %v3147_v28 = vpop.f32.mrb[180].mxu1 }
 0x2f0   :  { %v3908_v21 = vrot.slane %v7813_v15, 1  ;;  %v3604_v18 = vpop.f32.mrb[149].mxu0  ;;  %15681 = vst [vmem:[#allocation73_spill] sm:$0xff] %v12507_v43  ;;  %v4087_v15 = vadd.f32 %v3831_v36, %v3137_v47  ;;  %v3149_v55 = vpop.f32.mrb[181].mxu1  ;;  %v3832_v47 = vmul.f32 %v3749_v27, %v15504_v32  ;;  %v8109_v36 = vpack.c.bf16 %v4734_v30, %v4731_v33 }
 0x2f1   :  { %v3907_v20 = vrot.slane %v3604_v18, 1 }
 0x2f2   :  { %8110 = vmatprep.subr.bf16.mxu0 %v8109_v36 }
 0x2f3   :  { %v12514_v58 = vsel %vm1685_vm1, %v3907_v20, %v3908_v21  ;;  %v12518_v41 = vsel %vm1685_vm1, %v3906_v8, %v3907_v20  ;;  %v7816_v19 = vpop.f32.mrb[150].mxu0  ;;  %v12528_v8 = vadd.f32 %v4087_v15, %v4023_v29  ;;  %v3705_v20 = vrot.slane %v3147_v28, 7  ;;  %v3153_v43 = vpop.f32.mrb[182].mxu1 }
 0x2f4   :  { %v3910_v5 = vrot.slane %v7816_v19, 1  ;;  %v3614_v18 = vpop.f32.mrb[151].mxu0  ;;  %v4024_v29 = vmul.f32 %v12405_v2, %v15505_v53  ;;  %v4088_v15 = vadd.f32 %v3832_v47, %v3143_v39  ;;  %v3155_v28 = vpop.f32.mrb[183].mxu1  ;;  %v15686_v39 = vld [vmem:[#allocation129_spill] sm:$0xff] }
 0x2f5   :  { %v3909_v1 = vrot.slane %v3614_v18, 1  ;;  %15684 = vst [vmem:[#allocation167_spill] sm:$0xff] %v12528_v8  ;;  %v3748_v27 = vsel %vm1172_vm0, %v3704_v59, %v3705_v20  ;;  %v4025_v59 = vmul.f32 %v12401_v48, %v15686_v39  ;;  %v15694_v8 = vld [vmem:[#allocation93_spill] sm:$0xff] }
 0x2f6   :  { %v3833_v30 = vmul.f32 %v3748_v27, %v15511_v45  ;;  %v12544_v18 = vadd.f32 %v4088_v15, %v4024_v29 }
 0x2f7   :  { %v12533_v6 = vsel %vm1685_vm1, %v3909_v1, %v3910_v5  ;;  %v12537_v56 = vsel %vm1685_vm1, %v3908_v21, %v3909_v1  ;;  %v7819_v25 = vpop.f32.mrb[152].mxu0  ;;  %v3706_v1 = vrot.slane %v3153_v43, 7  ;;  %v3159_v36 = vpop.f32.mrb[184].mxu1 }
 0x2f8   :  { %v3912_v19 = vrot.slane %v7819_v25, 1  ;;  %v3624_v31 = vpop.f32.mrb[153].mxu0  ;;  %15685 = vst [vmem:[#allocation78_spill] sm:$0xff] %v12544_v18  ;;  %v4089_v47 = vadd.f32 %v3833_v30, %v3149_v55  ;;  %v3161_v43 = vpop.f32.mrb[185].mxu1  ;;  %v3707_v53 = vrot.slane %v3159_v36, 7 }
 0x2f9   :  { %v3911_v33 = vrot.slane %v3624_v31, 1  ;;  %v3747_v29 = vsel %vm1172_vm0, %v3705_v20, %v3706_v1  ;;  %v15688_v20 = vld [vmem:[#allocation132_spill] sm:$0xff] }
 0x2fa   :  { %v12558_v27 = vadd.f32 %v4089_v47, %v4025_v59  ;;  %v3834_v45 = vmul.f32 %v3747_v29, %v15518_v11  ;;  %v3746_v36 = vsel %vm1172_vm0, %v3706_v1, %v3707_v53 }
 0x2fb   :  { %v12548_v21 = vsel %vm1685_vm1, %v3911_v33, %v3912_v19  ;;  %v12552_v25 = vsel %vm1685_vm1, %v3910_v5, %v3911_v33  ;;  %v7822_v2 = vpop.f32.mrb[154].mxu0  ;;  %v3165_v33 = vpop.f32.mrb[186].mxu1 }
 0x2fc   :  { %v3914_v31 = vrot.slane %v7822_v2, 1  ;;  %v3634_v32 = vpop.f32.mrb[155].mxu0  ;;  %15687 = vst [vmem:[#allocation79_spill] sm:$0xff] %v12558_v27  ;;  %v4090_v59 = vadd.f32 %v3834_v45, %v3155_v28  ;;  %v3167_v47 = vpop.f32.mrb[187].mxu1  ;;  %v3708_v29 = vrot.slane %v3165_v33, 7  ;;  %v15690_v27 = vld [vmem:[#allocation103_spill] sm:$0xff] }
 0x2fd   :  { %v3913_v15 = vrot.slane %v3634_v32, 1  ;;  %v4026_v32 = vmul.f32 %v12426_v37, %v15688_v20  ;;  %v3835_v18 = vmul.f32 %v3746_v36, %v15690_v27  ;;  %v15691_v33 = vld [vmem:[#allocation135_spill] sm:$0xff] }
 0x2fe   :  { %v3745_v45 = vsel %vm1172_vm0, %v3707_v53, %v3708_v29  ;;  %v15692_v27 = vld [vmem:[#allocation107_spill] sm:$0xff] }
 0x2ff   :  { %v12563_v5 = vsel %vm1685_vm1, %v3913_v15, %v3914_v31  ;;  %v12567_v48 = vsel %vm1685_vm1, %v3912_v19, %v3913_v15  ;;  %v7825_v55 = vpop.f32.mrb[156].mxu0  ;;  %v12573_v11 = vadd.f32 %v4090_v59, %v4026_v32  ;;  %v3171_v28 = vpop.f32.mrb[188].mxu1  ;;  %v4091_v32 = vadd.f32 %v3835_v18, %v3161_v43 }
 0x300   :  { %v3916_v30 = vrot.slane %v7825_v55, 1  ;;  %v3644_v2 = vpop.f32.mrb[157].mxu0  ;;  %v3173_v59 = vpop.f32.mrb[189].mxu1  ;;  %v3836_v20 = vmul.f32 %v3745_v45, %v15692_v27 }
 0x301   :  { %v3915_v39 = vrot.slane %v3644_v2, 1  ;;  %15689 = vst [vmem:[#allocation85_spill] sm:$0xff] %v12573_v11  ;;  %v4027_v2 = vmul.f32 %v12422_v60, %v15691_v33  ;;  %v3709_v11 = vrot.slane %v3171_v28, 7  ;;  %v4028_v60 = vmul.f32 %v12475_v12, %v15694_v8  ;;  %v4733_v12 = vld [vmem:[%s14957_s7 + $0x138] sm:$0xff] }
 0x302   :  { %v4092_v18 = vadd.f32 %v3836_v20, %v3167_v47  ;;  %v4714_v20 = vld [vmem:[%s14957_s7 + $0xa0] sm:$0xff]  ;;  %v4029_v47 = vmul.f32 %v12471_v7, %v15543_v34  ;;  %v4030_v7 = vmul.f32 %v12488_v49, %v15556_v13  ;;  %v4723_v49 = vld [vmem:[%s14957_s7 + $0xe8] sm:$0xff] }
 0x303   :  { %v12578_v19 = vsel %vm1685_vm1, %v3915_v39, %v3916_v30  ;;  %v12582_v15 = vsel %vm1685_vm1, %v3914_v31, %v3915_v39  ;;  %v12584_v37 = vpop.f32.mrb[158].mxu0  ;;  %v12592_v39 = vadd.f32 %v4091_v32, %v4027_v2  ;;  %v3177_v43 = vpop.f32.mrb[190].mxu1  ;;  %v3744_v45 = vsel %vm1172_vm0, %v3708_v29, %v3709_v11  ;;  %v15696_v32 = vld [vmem:[#allocation111_spill] sm:$0xff] }
 0x304   :  { %v15171_v1 = vrot.slane %v12584_v37, 1  ;;  %v3654_v55 = vpop.f32.mrb[159].mxu0  ;;  %v3710_v28 = vrot.slane %v3177_v43, 7  ;;  %v12608_v2 = vadd.f32 %v4092_v18, %v4028_v60  ;;  %v3837_v27 = vmul.f32 %v3744_v45, %v15696_v32  ;;  %v4737_v18 = vld [vmem:[%s14957_s7 + $0x158] sm:$0xff]  ;;  %v4740_v43 = vld [vmem:[%s14957_s7 + $0x170] sm:$0xff] }
 0x305   :  { %v3917_v36 = vrot.slane %v3654_v55, 1  ;;  %15693 = vst [vmem:[#allocation83_spill] sm:$0xff] %v12592_v39  ;;  %v3179_v55 = vpop.f32.mrb[191].mxu1  ;;  %v8113_v33 = vpack.c.bf16 %v4740_v43, %v4737_v18 }
 0x306   :  { %15695 = vst [vmem:[#allocation89_spill] sm:$0xff] %v12608_v2  ;;  %v4093_v29 = vadd.f32 %v3837_v27, %v3173_v59  ;;  %v4739_v59 = vld [vmem:[%s14957_s7 + $0x168] sm:$0xff]  ;;  %v15701_v2 = vld [vmem:[#allocation117_spill] sm:$0xff] }
 0x307   :  { %v12598_v53 = vsel %vm1685_vm1, %v3917_v36, %v15171_v1  ;;  %v12602_v31 = vsel %vm1685_vm1, %v3916_v30, %v3917_v36  ;;  %v3743_v1 = vsel %vm1172_vm0, %v3709_v11, %v3710_v28  ;;  %v4730_v30 = vld [vmem:[%s14957_s7 + $0x120] sm:$0xff]  ;;  %v3183_v60 = vpop.f32.mrb[192].mxu1  ;;  %v4717_v11 = vld [vmem:[%s14957_s7 + $0xb8] sm:$0xff] }
 0x308   :  { %v3838_v36 = vmul.f32 %v3743_v1, %v15554_v26  ;;  %v3711_v45 = vrot.slane %v3183_v60, 7  ;;  %v3185_v32 = vpop.f32.mrb[193].mxu1  ;;  %v12634_v8 = vadd.f32 %v4093_v29, %v4029_v47  ;;  %v4736_v1 = vld [vmem:[%s14957_s7 + $0x150] sm:$0xff]  ;;  %v8111_v34 = vpack.c.bf16 %v4733_v12, %v4730_v30  ;;  %v15699_v30 = vld [vmem:[#allocation115_spill] sm:$0xff] }
 0x309   :  { %v8129_v60 = vpack.c.bf16 %v4717_v11, %v4714_v20  ;;  %v4720_v47 = vld [vmem:[%s14957_s7 + $0xd0] sm:$0xff]  ;;  %v8115_v18 = vpack.c.bf16 %v4739_v59, %v4736_v1 }
 0x30a   :  { %15697 = vst [vmem:[#allocation88_spill] sm:$0xff] %v12634_v8  ;;  %v4094_v27 = vadd.f32 %v3838_v36, %v3179_v55  ;;  %v3742_v26 = vsel %vm1172_vm0, %v3710_v28, %v3711_v45  ;;  %v4726_v36 = vld [vmem:[%s14957_s7 + $0x100] sm:$0xff]  ;;  %v4729_v28 = vld [vmem:[%s14957_s7 + $0x118] sm:$0xff]  ;;  %8112 = vmatpush1.bf16.msra.mxu0 %v8111_v34  ;;  %v8133_v43 = vpack.c.bf16 %v4723_v49, %v4720_v47  ;;  %v4732_v34 = vld [vmem:[%s14957_s7 + $0x130] sm:$0xff] }
 0x30b   :  { %v3189_v29 = vpop.f32.mrb[194].mxu1  ;;  %v3839_v12 = vmul.f32 %v3742_v26, %v15699_v30  ;;  %8130 = vmatprep.subr.bf16.mxu1 %v8129_v60  ;;  %8114 = vmatprep.subr.bf16.mxu0 %v8113_v33  ;;  %v8137_v8 = vpack.c.bf16 %v4729_v28, %v4726_v36  ;;  %v4735_v26 = vld [vmem:[%s14957_s7 + $0x148] sm:$0xff]  ;;  %v15702_v1 = vld [vmem:[#allocation148_spill] sm:$0xff]  ;;  %v15704_v28 = vld [vmem:[#allocation150_spill] sm:$0xff] }
 0x30c   :  { %v12652_v55 = vadd.f32 %v4094_v27, %v4030_v7  ;;  %v3712_v20 = vrot.slane %v3189_v29, 7  ;;  %v3191_v11 = vpop.f32.mrb[195].mxu1  ;;  %8132 = vmatpush3.bf16.msra.mxu1 %v8129_v60  ;;  %v15700_v7 = vld [vmem:[#allocation110_spill] sm:$0xff]  ;;  %v8141_v47 = vpack.c.bf16 %v4735_v26, %v4732_v34 }
 0x30d   :  { %v4031_v27 = vmul.f32 %v12484_v42, %v15700_v7  ;;  %v4095_v13 = vadd.f32 %v3839_v12, %v3185_v32  ;;  %8134 = vmatprep.subr.bf16.mxu1 %v8133_v43  ;;  %v4033_v12 = vmul.f32 %v12499_v35, %v15704_v28  ;;  %v15749_v7 = vld [vmem:[#allocation86_spill] sm:$0xff] }
 0x30e   :  { %15698 = vst [vmem:[#allocation97_spill] sm:$0xff] %v12652_v55  ;;  %v3741_v55 = vsel %vm1172_vm0, %v3711_v45, %v3712_v20  ;;  %8116 = vmatpush1.bf16.msra.mxu0 %v8115_v18  ;;  %v4032_v45 = vmul.f32 %v12503_v46, %v15702_v1  ;;  %v15746_v1 = vld [vmem:[#allocation62_spill] sm:$0xff] }
 0x30f   :  { %v3840_v39 = vmul.f32 %v3741_v55, %v15701_v2  ;;  %v3195_v44 = vpop.f32.mrb[196].mxu1  ;;  %v12672_v33 = vadd.f32 %v4095_v13, %v4031_v27  ;;  %v15703_v55 = vld [vmem:[#allocation119_spill] sm:$0xff]  ;;  %v4738_v13 = vld [vmem:[%s14957_s7 + $0x160] sm:$0xff] }
 0x310   :  { %v3713_v42 = vrot.slane %v3195_v44, 7  ;;  %v3197_v32 = vpop.f32.mrb[197].mxu1  ;;  %8136 = vmatpush3.bf16.msra.mxu1 %v8133_v43  ;;  %v4741_v44 = vld [vmem:[%s14957_s7 + $0x178] sm:$0xff]  ;;  %v15705_v27 = vld [vmem:[#allocation122_spill] sm:$0xff] }
 0x311   :  { %v4096_v59 = vadd.f32 %v3840_v39, %v3191_v11  ;;  %8138 = vmatprep.subr.bf16.mxu1 %v8137_v8  ;;  %v8145_v18 = vpack.c.bf16 %v4741_v44, %v4738_v13 }
 0x312   :  { %v3740_v60 = vsel %vm1172_vm0, %v3712_v20, %v3713_v42 }
 0x313   :  { %v12678_v49 = vadd.f32 %v4096_v59, %v4032_v45  ;;  %v3841_v29 = vmul.f32 %v3740_v60, %v15703_v55  ;;  %v3201_v36 = vpop.f32.mrb[198].mxu1  ;;  %v15706_v60 = vld [vmem:[#allocation155_spill] sm:$0xff] }
 0x314   :  { %v3714_v46 = vrot.slane %v3201_v36, 7  ;;  %v3203_v39 = vpop.f32.mrb[199].mxu1  ;;  %8140 = vmatpush3.bf16.msra.mxu1 %v8137_v8  ;;  %v4034_v36 = vmul.f32 %v12518_v41, %v15706_v60 }
 0x315   :  { %v4097_v20 = vadd.f32 %v3841_v29, %v3197_v32  ;;  %8142 = vmatprep.subr.bf16.mxu1 %v8141_v47 }
 0x316   :  { %v3739_v11 = vsel %vm1172_vm0, %v3713_v42, %v3714_v46  ;;  %v15707_v42 = vld [vmem:[#allocation124_spill] sm:$0xff] }
 0x317   :  { %v12691_v43 = vadd.f32 %v4097_v20, %v4033_v12  ;;  %v3842_v34 = vmul.f32 %v3739_v11, %v15705_v27  ;;  %v3207_v26 = vpop.f32.mrb[200].mxu1  ;;  %v15708_v12 = vld [vmem:[#allocation160_spill] sm:$0xff]  ;;  %v15745_v27 = vld [vmem:[#allocation151_spill] sm:$0xff] }
 0x318   :  { %v3715_v45 = vrot.slane %v3207_v26, 7  ;;  %v3209_v59 = vpop.f32.mrb[201].mxu1  ;;  %8144 = vmatpush3.bf16.msra.mxu1 %v8141_v47  ;;  %v4035_v20 = vmul.f32 %v12514_v58, %v15708_v12  ;;  %v15713_v12 = vld [vmem:[#allocation75_spill] sm:$0xff] }
 0x319   :  { %v4098_v55 = vadd.f32 %v3842_v34, %v3203_v39  ;;  %8146 = vmatprep.subr.bf16.mxu1 %v8145_v18  ;;  %v15709_v39 = vld [vmem:[#allocation127_spill] sm:$0xff] }
 0x31a   :  { %v3738_v35 = vsel %vm1172_vm0, %v3714_v46, %v3715_v45 }
 0x31b   :  { %v12698_v8 = vadd.f32 %v4098_v55, %v4034_v36  ;;  %v3843_v32 = vmul.f32 %v3738_v35, %v15707_v42  ;;  %v3213_v29 = vpop.f32.mrb[202].mxu1  ;;  %v15710_v36 = vld [vmem:[#allocation166_spill] sm:$0xff] }
 0x31c   :  { %v3716_v13 = vrot.slane %v3213_v29, 7  ;;  %v3215_v44 = vpop.f32.mrb[203].mxu1  ;;  %8148 = vmatpush3.bf16.msra.mxu1 %v8145_v18  ;;  %v4036_v35 = vmul.f32 %v12537_v56, %v15710_v36 }
 0x31d   :  { %v4099_v11 = vadd.f32 %v3843_v32, %v3209_v59  ;;  %v15711_v59 = vld [vmem:[#allocation128_spill] sm:$0xff] }
 0x31e   :  { %v3737_v41 = vsel %vm1172_vm0, %v3715_v45, %v3716_v13 }
 0x31f   :  { %v12705_v47 = vadd.f32 %v4099_v11, %v4035_v20  ;;  %v3844_v46 = vmul.f32 %v3737_v41, %v15709_v39  ;;  %v3219_v34 = vpop.f32.mrb[204].mxu1  ;;  %v15712_v11 = vld [vmem:[#allocation169_spill] sm:$0xff] }
 0x320   :  { %v3717_v55 = vrot.slane %v3219_v34, 7  ;;  %v3221_v26 = vpop.f32.mrb[205].mxu1  ;;  %v4037_v41 = vmul.f32 %v12533_v6, %v15712_v11  ;;  %v15715_v6 = vld [vmem:[#allocation131_spill] sm:$0xff] }
 0x321   :  { %v4100_v29 = vadd.f32 %v3844_v46, %v3215_v44 }
 0x322   :  { %v3736_v42 = vsel %vm1172_vm0, %v3716_v13, %v3717_v55 }
 0x323   :  { %v12712_v58 = vadd.f32 %v4100_v29, %v4036_v35  ;;  %v3225_v18 = vpop.f32.mrb[206].mxu1  ;;  %v3845_v32 = vmul.f32 %v3736_v42, %v15711_v59  ;;  %v15714_v29 = vld [vmem:[#allocation144_spill] sm:$0xff] }
 0x324   :  { %v3718_v45 = vrot.slane %v3225_v18, 7  ;;  %v3227_v20 = vpop.f32.mrb[207].mxu1  ;;  %v4038_v36 = vmul.f32 %v12552_v25, %v15714_v29  ;;  %v15717_v25 = vld [vmem:[#allocation133_spill] sm:$0xff] }
 0x325   :  { %v4101_v39 = vadd.f32 %v3845_v32, %v3221_v26 }
 0x326   :  { %v3735_v34 = vsel %vm1172_vm0, %v3717_v55, %v3718_v45 }
 0x327   :  { %v3846_v56 = vmul.f32 %v3735_v34, %v15713_v12  ;;  %v3231_v44 = vpop.f32.mrb[208].mxu1  ;;  %v12720_v46 = vadd.f32 %v4101_v39, %v4037_v41  ;;  %v15716_v34 = vld [vmem:[#allocation99_spill] sm:$0xff] }
 0x328   :  { %v3719_v13 = vrot.slane %v3231_v44, 7  ;;  %v3233_v35 = vpop.f32.mrb[209].mxu1  ;;  %v4039_v39 = vmul.f32 %v12548_v21, %v15716_v34  ;;  %v15719_v21 = vld [vmem:[#allocation134_spill] sm:$0xff] }
 0x329   :  { %v4102_v42 = vadd.f32 %v3846_v56, %v3227_v20 }
 0x32a   :  { %v3734_v18 = vsel %vm1172_vm0, %v3718_v45, %v3719_v13 }
 0x32b   :  { %v12726_v59 = vadd.f32 %v4102_v42, %v4038_v36  ;;  %v3847_v26 = vmul.f32 %v3734_v18, %v15715_v6  ;;  %v3237_v32 = vpop.f32.mrb[210].mxu1  ;;  %v15718_v42 = vld [vmem:[#allocation149_spill] sm:$0xff] }
 0x32c   :  { %v3720_v55 = vrot.slane %v3237_v32, 7  ;;  %v3239_v11 = vpop.f32.mrb[211].mxu1  ;;  %v4040_v18 = vmul.f32 %v12567_v48, %v15718_v42  ;;  %v15720_v48 = vld [vmem:[#allocation137_spill] sm:$0xff] }
 0x32d   :  { %v4103_v41 = vadd.f32 %v3847_v26, %v3233_v35 }
 0x32e   :  { %v3733_v44 = vsel %vm1172_vm0, %v3719_v13, %v3720_v55 }
 0x32f   :  { %v12733_v12 = vadd.f32 %v4103_v41, %v4039_v39  ;;  %v3848_v20 = vmul.f32 %v3733_v44, %v15717_v25  ;;  %v3243_v56 = vpop.f32.mrb[212].mxu1  ;;  %v4041_v41 = vmul.f32 %v12563_v5, %v11571_v40  ;;  %v15721_v5 = vld [vmem:[#allocation91_spill] sm:$0xff]  ;;  %v15742_v40 = vld [vmem:[#allocation164_spill] sm:$0xff] }
 0x330   :  { %v3721_v45 = vrot.slane %v3243_v56, 7  ;;  %v3245_v36 = vpop.f32.mrb[213].mxu1 }
 0x331   :  { %v4104_v6 = vadd.f32 %v3848_v20, %v3239_v11 }
 0x332   :  { %v3732_v32 = vsel %vm1172_vm0, %v3720_v55, %v3721_v45 }
 0x333   :  { %v12740_v29 = vadd.f32 %v4104_v6, %v4040_v18  ;;  %v3849_v35 = vmul.f32 %v3732_v32, %v15719_v21  ;;  %v3249_v26 = vpop.f32.mrb[214].mxu1  ;;  %v4042_v18 = vmul.f32 %v12582_v15, %v11614_v23  ;;  %v3855_v23 = vrot.slane %v12010_v4, 1 }
 0x334   :  { %v3722_v13 = vrot.slane %v3249_v26, 7  ;;  %v3251_v39 = vpop.f32.mrb[215].mxu1 }
 0x335   :  { %v4105_v44 = vadd.f32 %v3849_v35, %v3245_v36 }
 0x336   :  { %v3731_v56 = vsel %vm1172_vm0, %v3721_v45, %v3722_v13 }
 0x337   :  { %v12747_v25 = vadd.f32 %v4105_v44, %v4041_v41  ;;  %v3850_v11 = vmul.f32 %v3731_v56, %v15720_v48  ;;  %v3255_v20 = vpop.f32.mrb[216].mxu1  ;;  %v12760_v44 = vld [vmem:[%s14958_s6] ss:$0 sm:$0xff]  ;;  %v15722_v56 = vld [vmem:[#allocation143_spill] sm:$0xff]  ;;  %v15741_v48 = vld [vmem:[#allocation161_spill] sm:$0xff] }
 0x338   :  { %v3723_v55 = vrot.slane %v3255_v20, 7  ;;  %v3257_v6 = vpop.f32.mrb[217].mxu1  ;;  %v4043_v20 = vmul.f32 %v12578_v19, %v15722_v56  ;;  %v4044_v19 = vmul.f32 %v12602_v31, %v11723_v54  ;;  %v12788_v4 = vadd.f32 %v12760_v44, %v12061_v57 }
 0x339   :  { %v4106_v32 = vadd.f32 %v3850_v11, %v3251_v39  ;;  %v15723_v11 = vld [vmem:[#allocation95_spill] sm:$0xff]  ;;  %v12906_v28 = vadd.f32 %v12760_v44, %v15745_v27 }
 0x33a   :  { %v3730_v26 = vsel %vm1172_vm0, %v3722_v13, %v3723_v55 }
 0x33b   :  { %v12754_v21 = vadd.f32 %v4106_v32, %v4042_v18  ;;  %v3851_v36 = vmul.f32 %v3730_v26, %v15721_v5  ;;  %v3261_v35 = vpop.f32.mrb[218].mxu1  ;;  %v12771_v26 = vadd.f32 %v12760_v44, %v12040_v52 }
 0x33c   :  { %v3724_v45 = vrot.slane %v3261_v35, 7  ;;  %v3263_v41 = vpop.f32.mrb[219].mxu1 }
 0x33d   :  { %v4107_v15 = vadd.f32 %v3851_v36, %v3257_v6  ;;  %v12780_v36 = vadd.f32 %v12760_v44, %v12044_v14  ;;  %v4045_v14 = vmul.f32 %v12598_v53, %v11769_v22 }
 0x33e   :  { %v3729_v39 = vsel %vm1172_vm0, %v3723_v55, %v3724_v45 }
 0x33f   :  { %v12766_v13 = vadd.f32 %v4107_v15, %v4043_v20  ;;  %v3852_v18 = vmul.f32 %v3729_v39, %v15723_v11  ;;  %v3267_v32 = vpop.f32.mrb[220].mxu1  ;;  %v15725_v15 = vld [vmem:[#allocation139_spill] sm:$0xff]  ;;  %v15740_v11 = vld [vmem:[#allocation130_spill] sm:$0xff] }
 0x340   :  { %v3725_v35 = vrot.slane %v3267_v32, 7  ;;  %v3269_v5 = vpop.f32.mrb[221].mxu1  ;;  %v7205_v32 = vmul.f32 -1.442695, %v12771_v26 }
 0x341   :  { %v4108_v6 = vadd.f32 %v3852_v18, %v3263_v41  ;;  %v15726_v18 = vrot.slane %v12006_v17, 1  ;;  %v12805_v17 = vadd.f32 %v12760_v44, %v12063_v16  ;;  %v12820_v16 = vadd.f32 %v12760_v44, %v12086_v50 }
 0x342   :  { %v3728_v55 = vsel %vm1172_vm0, %v3724_v45, %v3725_v35  ;;  %8425 = vpow2.f32 %v7205_v32 }
 0x343   :  { %v12782_v20 = vadd.f32 %v4108_v6, %v4044_v19  ;;  %v3853_v52 = vmul.f32 %v3728_v55, %v15725_v15  ;;  %v3273_v39 = vpop.f32.mrb[222].mxu1  ;;  %v3981_v45 = vsel %vm1685_vm1, %v3855_v23, %v15726_v18  ;;  %v15727_v6 = vrot.slane %v12000_v38, 7  ;;  %v15730_v38 = vld [vmem:[#allocation3_spill] sm:$0xff]  ;;  %v15731_v15 = vld [vmem:[#allocation146_spill] sm:$0xff] }
 0x344   :  { %v3726_v31 = vrot.slane %v3273_v39, 7  ;;  %v3275_v41 = vpop.f32.mrb[223].mxu1  ;;  %v7206_v39 = vmul.f32 -1.442695, %v12780_v36  ;;  %v15728_v18 = vrot.slane %v12584_v37, 1 }
 0x345   :  { %15724 = vst [vmem:[#allocation100_spill] sm:$0xff] %v12782_v20  ;;  %v4109_v19 = vadd.f32 %v3853_v52, %v3269_v5  ;;  %v7207_v32 = vmul.f32 -1.442695, %v12805_v17  ;;  %v7209_v50 = vmul.f32 -1.442695, %v12820_v16 }
 0x346   :  { %v3790_v55 = vsel %vm1172_vm0, %v3726_v31, %v15727_v6  ;;  %v3727_v57 = vsel %vm1172_vm0, %v3725_v35, %v3726_v31  ;;  %v3982_v53 = vsel %vm1685_vm1, %v15728_v18, %v3855_v23  ;;  %v7208_v35 = vmul.f32 -1.442695, %v12788_v4  ;;  %v15732_v31 = vld [vmem:[#allocation5_spill] sm:$0xff] }
 0x347   :  { %v12811_v5 = vadd.f32 %v4109_v19, %v4045_v14  ;;  %v3791_v52 = vmul.f32 %v3790_v55, %v15730_v38  ;;  %v3854_v6 = vmul.f32 %v3727_v57, %v15731_v15  ;;  %v3983_v22 = vmul.f32 %v3981_v45, %v15732_v31  ;;  %v15734_v18 = vld [vmem:[#allocation113_spill] sm:$0xff] }
 0x348   :  { %v4046_v37 = vmul.f32 %v3982_v53, %v11818_v62  ;;  %v12825_v14 = vadd.f32 %v12760_v44, %v12088_v0  ;;  %8427 = vpow2.f32 %v7206_v39  ;;  %v12836_v45 = vadd.f32 %v12760_v44, %v12105_v63 }
 0x349   :  { %15729 = vst [vmem:[#allocation102_spill] sm:$0xff] %v12811_v5  ;;  %v4047_v54 = vadd.f32 %v3791_v52, %v12002_v3  ;;  %v4110_v23 = vadd.f32 %v3854_v6, %v3275_v41  ;;  %8429 = vpow2.f32 %v7208_v35  ;;  %v12847_v39 = vadd.f32 %v12760_v44, %v12118_v24  ;;  %v15763_v5 = vld [vmem:[#allocation167_spill] sm:$0xff] }
 0x34a   :  { %v7210_v41 = vmul.f32 -1.442695, %v12825_v14  ;;  %8431 = vpow2.f32 %v7207_v32  ;;  %v7211_v57 = vmul.f32 -1.442695, %v12836_v45  ;;  %v12852_v53 = vadd.f32 %v12760_v44, %v15734_v18 }
 0x34b   :  { %v4111_v19 = vadd.f32 %v4047_v54, %v3983_v22  ;;  %v12828_v55 = vadd.f32 %v4110_v23, %v4046_v37  ;;  %v12841_v54 = vadd.f32 %v12760_v44, %v12107_v9  ;;  %v7213_v35 = vmul.f32 -1.442695, %v12847_v39  ;;  %v15735_v23 = vld [vmem:[#allocation156_spill] sm:$0xff] }
 0x34c   :  { %v8426_v0 = vpop.eup %8425  ;;  %v7214_v37 = vmul.f32 -1.442695, %v12852_v53  ;;  %v12858_v24 = vadd.f32 %v12760_v44, %v15735_v23 }
 0x34d   :  { %15733 = vst [vmem:[#allocation105_spill] sm:$0xff] %v12828_v55  ;;  %v12831_v3 = vadd.f32 %v12760_v44, %v4111_v19  ;;  %v7212_v63 = vmul.f32 -1.442695, %v12841_v54  ;;  %v4439_v52 = vadd.f32 1.0, %v8426_v0  ;;  %v15737_v0 = vld [vmem:[#allocation159_spill] sm:$0xff] }
 0x34e   :  { %v7215_v18 = vmul.f32 -1.442695, %v12858_v24  ;;  %v15755_v55 = vld [vmem:[#allocation163_spill] sm:$0xff] }
 0x34f   :  { %v7204_v22 = vmul.f32 -1.442695, %v12831_v3 }
 0x351   :  { %8433 = vpow2.f32 %v7204_v22 }
 0x352   :  { %8435 = vpow2.f32 %v7209_v50  ;;  %v8428_v9 = vpop.eup %8427 }
 0x353   :  { %8437 = vpow2.f32 %v7210_v41  ;;  %v8430_v6 = vpop.eup %8429  ;;  %v4440_v19 = vadd.f32 1.0, %v8428_v9  ;;  %v15736_v41 = vld [vmem:[#allocation158_spill] sm:$0xff] }
 0x354   :  { %8439 = vpow2.f32 %v7211_v57  ;;  %v8432_v32 = vpop.eup %8431  ;;  %v4442_v50 = vadd.f32 1.0, %v8430_v6  ;;  %v12862_v22 = vadd.f32 %v12760_v44, %v15736_v41  ;;  %v12866_v57 = vadd.f32 %v12760_v44, %v15737_v0  ;;  %v15738_v6 = vld [vmem:[#allocation81_spill] sm:$0xff]  ;;  %v15739_v0 = vld [vmem:[#allocation147_spill] sm:$0xff] }
 0x355   :  { %8441 = vpow2.f32 %v7212_v63  ;;  %v4441_v9 = vadd.f32 1.0, %v8432_v32  ;;  %v12872_v41 = vadd.f32 %v12760_v44, %v15738_v6  ;;  %v12877_v62 = vadd.f32 %v12760_v44, %v15739_v0 }
 0x356   :  { %8443 = vrcp.f32 %v4439_v52  ;;  %v7216_v52 = vmul.f32 -1.442695, %v12862_v22  ;;  %v12882_v6 = vadd.f32 %v12760_v44, %v15740_v11  ;;  %v12887_v0 = vadd.f32 %v12760_v44, %v15741_v48  ;;  %v15743_v48 = vld [vmem:[#allocation165_spill] sm:$0xff] }
 0x357   :  { %8445 = vpow2.f32 %v7213_v35  ;;  %v7217_v35 = vmul.f32 -1.442695, %v12866_v57  ;;  %v7219_v56 = vmul.f32 -1.442695, %v12877_v62  ;;  %v12892_v11 = vadd.f32 %v12760_v44, %v15742_v40 }
 0x358   :  { %8447 = vpow2.f32 %v7214_v37  ;;  %v7221_v42 = vmul.f32 -1.442695, %v12887_v0  ;;  %v12897_v34 = vadd.f32 %v12760_v44, %v15743_v48 }
 0x359   :  { %8449 = vrcp.f32 %v4440_v19 }
 0x35a   :  { %8451 = vrcp.f32 %v4442_v50  ;;  %v7218_v50 = vmul.f32 -1.442695, %v12872_v41 }
 0x35b   :  { %v8434_v63 = vpop.eup %8433 }
 0x35c   :  { %v8436_v15 = vpop.eup %8435  ;;  %v4438_v23 = vadd.f32 1.0, %v8434_v63 }
 0x35d   :  { %v8438_v38 = vpop.eup %8437  ;;  %v4443_v37 = vadd.f32 1.0, %v8436_v15 }
 0x35e   :  { %8453 = vrcp.f32 %v4438_v23  ;;  %v8440_v63 = vpop.eup %8439  ;;  %v4444_v19 = vadd.f32 1.0, %v8438_v38 }
 0x35f   :  { %8455 = vpow2.f32 %v7215_v18  ;;  %v8442_v32 = vpop.eup %8441  ;;  %v4445_v18 = vadd.f32 1.0, %v8440_v63 }
 0x360   :  { %8457 = vrcp.f32 %v4441_v9  ;;  %v8444_v15 = vpop.eup %8443  ;;  %v4446_v23 = vadd.f32 1.0, %v8442_v32 }
 0x361   :  { %8459 = vpow2.f32 %v7216_v52  ;;  %v8446_v38 = vpop.eup %8445  ;;  %v7220_v52 = vmul.f32 -1.442695, %v12882_v6 }
 0x362   :  { %8461 = vpow2.f32 %v7217_v35  ;;  %v8448_v9 = vpop.eup %8447  ;;  %v4447_v63 = vadd.f32 1.0, %v8446_v38  ;;  %v4631_v38 = vmul.f32 %v8444_v15, %v12771_v26  ;;  %v7225_v26 = vmul.f32 -1.442695, %v12906_v28  ;;  %v15748_v15 = vld [vmem:[#allocation162_spill] sm:$0xff] }
 0x363   :  { %8463 = vrcp.f32 %v4443_v37  ;;  %v8450_v35 = vpop.eup %8449  ;;  %v4448_v60 = vadd.f32 1.0, %v8448_v9 }
 0x364   :  { %8465 = vrcp.f32 %v4444_v19  ;;  %v8452_v37 = vpop.eup %8451  ;;  %v15744_v19 = vld [vmem:[#allocation141_spill] sm:$0xff]  ;;  %v4632_v9 = vmul.f32 %v8450_v35, %v12780_v36 }
 0x365   :  { %8467 = vpow2.f32 %v7218_v50  ;;  %v12901_v32 = vadd.f32 %v12760_v44, %v15744_v19 }
 0x366   :  { %8469 = vpow2.f32 %v7219_v56  ;;  %v7222_v56 = vmul.f32 -1.442695, %v12892_v11 }
 0x367   :  { %8471 = vrcp.f32 %v4445_v18  ;;  %v7223_v18 = vmul.f32 -1.442695, %v12897_v34 }
 0x368   :  { %v8454_v50 = vpop.eup %8453  ;;  %8473 = vrcp.f32 %v4446_v23  ;;  %v7224_v23 = vmul.f32 -1.442695, %v12901_v32 }
 0x369   :  { %v8456_v40 = vpop.eup %8455  ;;  %8475 = vpow2.f32 %v7220_v52  ;;  %v4630_v48 = vmul.f32 %v8454_v50, %v12831_v3  ;;  %v12915_v3 = vadd.f32 %v12760_v44, %v15746_v1 }
 0x36a   :  { %v8458_v2 = vpop.eup %8457  ;;  %8477 = vpow2.f32 %v7221_v42  ;;  %v4449_v27 = vadd.f32 1.0, %v8456_v40  ;;  %v15747_v42 = vmov 0.0  }
 0x36b   :  { %v8460_v19 = vpop.eup %8459  ;;  %8479 = vrcp.f32 %v4447_v63  ;;  %4807 = vmatmul.mubr.f32.vlgmr.msra.gmra.mrb[160].mxu0 %v4630_v48  ;;  %7861 = vmatprep.mubr.f32.mxu1 %v4630_v48  ;;  %v12921_v63 = vadd.f32 %v12760_v44, %v15748_v15  ;;  %v4634_v48 = vmul.f32 %v8452_v37, %v12788_v4  ;;  %v12928_v15 = vadd.f32 %v12760_v44, %v15749_v7 }
 0x36c   :  { %v8462_v52 = vpop.eup %8461  ;;  %8481 = vrcp.f32 %v4448_v60  ;;  %7862 = vmatmul.mubr.f32.vlgmr.msra.gmra.mrb[224].mxu1 %v4631_v38  ;;  %4812 = vmatprep.mubr.f32.mxu0 %v15747_v42  ;;  %v4450_v35 = vadd.f32 1.0, %v8460_v19  ;;  %v4633_v60 = vmul.f32 %v8458_v2, %v12805_v17  ;;  %v15750_v17 = vld [vmem:[#allocation142_spill] sm:$0xff] }
 0x36d   :  { %v8464_v50 = vpop.eup %8463  ;;  %8483 = vpow2.f32 %v7222_v56  ;;  %7864 = vmatprep.mubr.f32.mxu1 %v4632_v9  ;;  %v4451_v1 = vadd.f32 1.0, %v8462_v52  ;;  %v7226_v56 = vmul.f32 -1.442695, %v12915_v3  ;;  %v7227_v2 = vmul.f32 -1.442695, %v12921_v63 }
 0x36e   :  { %v8466_v36 = vpop.eup %8465  ;;  %8485 = vpow2.f32 %v7223_v18  ;;  %v12937_v19 = vmul.f32 %v8464_v50, %v12820_v16 }
 0x36f   :  { %v8468_v40 = vpop.eup %8467  ;;  %8487 = vpow2.f32 %v7224_v23  ;;  %4813 = vmatmul.mubr.f32.gmra.mrb[162].mxu0 %v4631_v38  ;;  %v12934_v38 = vadd.f32 %v12760_v44, %v15750_v17  ;;  %v12940_v52 = vmul.f32 %v8466_v36, %v12825_v14  ;;  %v15751_v17 = vld [vmem:[#allocation152_spill] sm:$0xff] }
 0x370   :  { %v8470_v30 = vpop.eup %8469  ;;  %8489 = vrcp.f32 %v4449_v27  ;;  %7865 = vmatmul.mubr.f32.gmra.mrb[226].mxu1 %v4633_v60  ;;  %4818 = vmatprep.mubr.f32.mxu0 %v15747_v42  ;;  %v4452_v37 = vadd.f32 1.0, %v8468_v40  ;;  %v12945_v31 = vadd.f32 %v12760_v44, %v15751_v17 }
 0x371   :  { %v8472_v18 = vpop.eup %8471  ;;  %8491 = vpow2.f32 %v7225_v26  ;;  %7867 = vmatprep.mubr.f32.mxu1 %v4634_v48  ;;  %v4453_v23 = vadd.f32 1.0, %v8470_v30  ;;  %v7228_v26 = vmul.f32 -1.442695, %v12928_v15  ;;  %v7229_v30 = vmul.f32 -1.442695, %v12934_v38 }
 0x372   :  { %v8474_v4 = vpop.eup %8473  ;;  %8493 = vrcp.f32 %v4450_v35  ;;  %v12956_v35 = vmul.f32 %v8472_v18, %v12836_v45  ;;  %v7230_v17 = vmul.f32 -1.442695, %v12945_v31  ;;  %v15753_v18 = vld [vmem:[#allocation109_spill] sm:$0xff] }
 0x373   :  { %v8476_v7 = vpop.eup %8475  ;;  %8495 = vrcp.f32 %v4451_v1  ;;  %4819 = vmatmul.mubr.f32.gmra.mrb[164].mxu0 %v4632_v9  ;;  %v15752_v9 = vld [vmem:[#allocation64_spill] sm:$0xff] }
 0x374   :  { %v8478_v27 = vpop.eup %8477  ;;  %8497 = vpow2.f32 %v7226_v56  ;;  %7868 = vmatmul.mubr.f32.gmra.mrb[228].mxu1 %v12937_v19  ;;  %4824 = vmatprep.mubr.f32.mxu0 %v15747_v42  ;;  %v12952_v14 = vadd.f32 %v12760_v44, %v15752_v9  ;;  %v4454_v36 = vadd.f32 1.0, %v8476_v7  ;;  %v12959_v56 = vmul.f32 %v8474_v4, %v12841_v54 }
 0x375   :  { %v8480_v16 = vpop.eup %8479  ;;  %8499 = vpow2.f32 %v7227_v2  ;;  %7870 = vmatprep.mubr.f32.mxu1 %v12940_v52  ;;  %v4455_v1 = vadd.f32 1.0, %v8478_v27  ;;  %v12967_v7 = vadd.f32 %v12760_v44, %v15753_v18 }
 0x376   :  { %v8482_v50 = vpop.eup %8481  ;;  %8501 = vrcp.f32 %v4452_v37  ;;  %v7231_v45 = vmul.f32 -1.442695, %v12952_v14  ;;  %v12971_v4 = vmul.f32 %v8480_v16, %v12847_v39 }
 0x377   :  { %v8484_v40 = vpop.eup %8483  ;;  %8503 = vrcp.f32 %v4453_v23  ;;  %4825 = vmatmul.mubr.f32.gmra.mrb[166].mxu0 %v4633_v60  ;;  %v12978_v9 = vmul.f32 %v8482_v50, %v12852_v53  ;;  %v7232_v16 = vmul.f32 -1.442695, %v12967_v7 }
 0x378   :  { %v8486_v2 = vpop.eup %8485  ;;  %8505 = vpow2.f32 %v7228_v26  ;;  %7871 = vmatmul.mubr.f32.gmra.mrb[230].mxu1 %v12956_v35  ;;  %4830 = vmatprep.mubr.f32.mxu0 %v15747_v42  ;;  %v4456_v60 = vadd.f32 1.0, %v8484_v40  ;;  %v15754_v26 = vld [vmem:[#allocation157_spill] sm:$0xff] }
 0x379   :  { %v8488_v37 = vpop.eup %8487  ;;  %8507 = vpow2.f32 %v7229_v30  ;;  %7873 = vmatprep.mubr.f32.mxu1 %v12959_v56  ;;  %v4457_v27 = vadd.f32 1.0, %v8486_v2  ;;  %v12975_v30 = vadd.f32 %v12760_v44, %v15754_v26 }
 0x37a   :  { %v8490_v54 = vpop.eup %8489  ;;  %8509 = vrcp.f32 %v4454_v36  ;;  %v4458_v61 = vadd.f32 1.0, %v8488_v37  ;;  %v12982_v36 = vadd.f32 %v12760_v44, %v15755_v55 }
 0x37b   :  { %v8492_v23 = vpop.eup %8491  ;;  %8511 = vrcp.f32 %v4455_v1  ;;  %4831 = vmatmul.mubr.f32.gmra.mrb[168].mxu0 %v4634_v48  ;;  %v12989_v50 = vmul.f32 %v8490_v54, %v12858_v24  ;;  %v7233_v55 = vmul.f32 -1.442695, %v12975_v30  ;;  %v15756_v1 = vld [vmem:[#allocation168_spill] sm:$0xff] }
 0x37c   :  { %v8494_v18 = vpop.eup %8493  ;;  %8513 = vpow2.f32 %v7230_v17  ;;  %7874 = vmatmul.mubr.f32.gmra.mrb[232].mxu1 %v12971_v4  ;;  %4836 = vmatprep.mubr.f32.mxu0 %v15747_v42  ;;  %v4459_v53 = vadd.f32 1.0, %v8492_v23  ;;  %v12994_v2 = vadd.f32 %v12760_v44, %v15756_v1 }
 0x37d   :  { %v8496_v39 = vpop.eup %8495  ;;  %8515 = vpow2.f32 %v7231_v45  ;;  %7876 = vmatprep.mubr.f32.mxu1 %v12978_v9  ;;  %v12998_v17 = vmul.f32 %v8494_v18, %v12862_v22  ;;  %v7234_v45 = vmul.f32 -1.442695, %v12982_v36  ;;  %v15758_v18 = vld [vmem:[#allocation121_spill] sm:$0xff] }
 0x37e   :  { %v8498_v48 = vpop.eup %8497  ;;  %8517 = vrcp.f32 %v4456_v60  ;;  %v15757_v60 = vld [vmem:[#allocation118_spill] sm:$0xff]  ;;  %v7235_v26 = vmul.f32 -1.442695, %v12994_v2  ;;  %v13014_v1 = vadd.f32 %v12760_v44, %v15758_v18  ;;  %v13034_v18 = vadd.f32 %v12760_v44, %v12450_v51 }
 0x37f   :  { %v8500_v40 = vpop.eup %8499  ;;  %8519 = vrcp.f32 %v4457_v27  ;;  %4837 = vmatmul.mubr.f32.gmra.mrb[170].mxu0 %v12937_v19  ;;  %v13003_v24 = vadd.f32 %v12760_v44, %v15757_v60  ;;  %v4460_v23 = vadd.f32 1.0, %v8498_v48 }
 0x380   :  { %v8502_v37 = vpop.eup %8501  ;;  %8521 = vrcp.f32 %v4458_v61  ;;  %7877 = vmatmul.mubr.f32.gmra.mrb[234].mxu1 %v12989_v50  ;;  %4842 = vmatprep.mubr.f32.mxu0 %v15747_v42  ;;  %v4461_v22 = vadd.f32 1.0, %v8500_v40  ;;  %v13009_v61 = vmul.f32 %v8496_v39, %v12866_v57  ;;  %v15759_v40 = vld [vmem:[#allocation123_spill] sm:$0xff]  ;;  %v7237_v60 = vmul.f32 -1.442695, %v13014_v1 }
 0x381   :  { %v8504_v54 = vpop.eup %8503  ;;  %8523 = vpow2.f32 %v7232_v16  ;;  %7879 = vmatprep.mubr.f32.mxu1 %v12998_v17  ;;  %v13018_v16 = vmul.f32 %v8502_v37, %v12872_v41  ;;  %v13023_v57 = vadd.f32 %v12760_v44, %v15759_v40  ;;  %v15761_v40 = vld [vmem:[#allocation126_spill] sm:$0xff] }
 0x382   :  { %v8506_v19 = vpop.eup %8505  ;;  %8525 = vrcp.f32 %v4459_v53  ;;  %v7236_v53 = vmul.f32 -1.442695, %v13003_v24  ;;  %v13029_v37 = vmul.f32 %v8504_v54, %v12877_v62  ;;  %v13043_v62 = vadd.f32 %v12760_v44, %v12456_v10 }
 0x383   :  { %v8508_v27 = vpop.eup %8507  ;;  %8527 = vpow2.f32 %v7233_v55  ;;  %4843 = vmatmul.mubr.f32.gmra.mrb[172].mxu0 %v12940_v52  ;;  %v4462_v55 = vadd.f32 1.0, %v8506_v19 }
 0x384   :  { %v8510_v48 = vpop.eup %8509  ;;  %8529 = vpow2.f32 %v7234_v45  ;;  %7880 = vmatmul.mubr.f32.gmra.mrb[236].mxu1 %v13009_v61  ;;  %4848 = vmatprep.mubr.f32.mxu0 %v15747_v42  ;;  %v4463_v41 = vadd.f32 1.0, %v8508_v27  ;;  %v15760_v27 = vld [vmem:[#allocation136_spill] sm:$0xff] }
 0x385   :  { %v8512_v39 = vpop.eup %8511  ;;  %8531 = vrcp.f32 %v4460_v23  ;;  %7882 = vmatprep.mubr.f32.mxu1 %v13018_v16  ;;  %v13038_v23 = vmul.f32 %v8510_v48, %v12882_v6 }
 0x386   :  { %v8514_v52 = vpop.eup %8513  ;;  %8533 = vrcp.f32 %v4461_v22  ;;  %v7238_v22 = vmul.f32 -1.442695, %v13023_v57  ;;  %v13053_v48 = vmul.f32 %v8512_v39, %v12887_v0 }
 0x387   :  { %v8516_v45 = vpop.eup %8515  ;;  %8535 = vpow2.f32 %v7235_v26  ;;  %4849 = vmatmul.mubr.f32.gmra.mrb[174].mxu0 %v12956_v35  ;;  %v4464_v51 = vadd.f32 1.0, %v8514_v52  ;;  %v13049_v35 = vadd.f32 %v12760_v44, %v15760_v27 }
 0x388   :  { %v8518_v19 = vpop.eup %8517  ;;  %8537 = vpow2.f32 %v7236_v53  ;;  %7883 = vmatmul.mubr.f32.gmra.mrb[238].mxu1 %v13029_v37  ;;  %4854 = vmatprep.mubr.f32.mxu0 %v15747_v42  ;;  %v4465_v26 = vadd.f32 1.0, %v8516_v45  ;;  %v7239_v53 = vmul.f32 -1.442695, %v13034_v18 }
 0x389   :  { %v8520_v54 = vpop.eup %8519  ;;  %8539 = vrcp.f32 %v4462_v55  ;;  %7885 = vmatprep.mubr.f32.mxu1 %v13038_v23  ;;  %v13058_v55 = vadd.f32 %v12760_v44, %v15761_v40  ;;  %v13062_v52 = vmul.f32 %v8518_v19, %v12892_v11  ;;  %v7241_v39 = vmul.f32 -1.442695, %v13049_v35 }
 0x38a   :  { %v8522_v6 = vpop.eup %8521  ;;  %8541 = vrcp.f32 %v4463_v41  ;;  %v7240_v41 = vmul.f32 -1.442695, %v13043_v62  ;;  %v13074_v19 = vmul.f32 %v8520_v54, %v12897_v34 }
 0x38b   :  { %v8524_v10 = vpop.eup %8523  ;;  %8543 = vpow2.f32 %v7237_v60  ;;  %4855 = vmatmul.mubr.f32.gmra.mrb[176].mxu0 %v12959_v56  ;;  %v15762_v60 = vld [vmem:[#allocation73_spill] sm:$0xff]  ;;  %v7242_v40 = vmul.f32 -1.442695, %v13058_v55 }
 0x38c   :  { %v8526_v27 = vpop.eup %8525  ;;  %8545 = vpow2.f32 %v7238_v22  ;;  %7886 = vmatmul.mubr.f32.gmra.mrb[240].mxu1 %v13053_v48  ;;  %4860 = vmatprep.mubr.f32.mxu0 %v15747_v42  ;;  %v4466_v56 = vadd.f32 1.0, %v8524_v10  ;;  %v13071_v11 = vadd.f32 %v12760_v44, %v15762_v60  ;;  %v15766_v60 = vld [vmem:[#allocation79_spill] sm:$0xff] }
 0x38d   :  { %v8528_v0 = vpop.eup %8527  ;;  %8547 = vrcp.f32 %v4464_v51  ;;  %7888 = vmatprep.mubr.f32.mxu1 %v13062_v52  ;;  %v13079_v51 = vadd.f32 %v12760_v44, %v15763_v5 }
 0x38e   :  { %v8530_v45 = vpop.eup %8529  ;;  %8549 = vrcp.f32 %v4465_v26  ;;  %v13083_v26 = vmul.f32 %v8522_v6, %v12901_v32  ;;  %v4467_v20 = vadd.f32 1.0, %v8528_v0  ;;  %v7243_v5 = vmul.f32 -1.442695, %v13071_v11 }
 0x38f   :  { %v8532_v22 = vpop.eup %8531  ;;  %8551 = vpow2.f32 %v7239_v53  ;;  %4861 = vmatmul.mubr.f32.gmra.mrb[178].mxu0 %v12971_v4  ;;  %v4468_v54 = vadd.f32 1.0, %v8530_v45  ;;  %v15764_v4 = vld [vmem:[#allocation78_spill] sm:$0xff]  ;;  %v13094_v6 = vmul.f32 %v8526_v27, %v12906_v28  ;;  %v7244_v0 = vmul.f32 -1.442695, %v13079_v51 }
 0x390   :  { %v8534_v10 = vpop.eup %8533  ;;  %8553 = vpow2.f32 %v7240_v41  ;;  %7889 = vmatmul.mubr.f32.gmra.mrb[242].mxu1 %v13074_v19  ;;  %4866 = vmatprep.mubr.f32.mxu0 %v15747_v42  ;;  %v13091_v32 = vadd.f32 %v12760_v44, %v15764_v4  ;;  %v13103_v45 = vmul.f32 %v8532_v22, %v12915_v3 }
 0x391   :  { %v8536_v34 = vpop.eup %8535  ;;  %8555 = vpow2.f32 %v7241_v39  ;;  %7891 = vmatprep.mubr.f32.mxu1 %v13083_v26  ;;  %15765 = vst [vmem:[#allocation113_spill] sm:$0xff] %v13094_v6  ;;  %v13099_v39 = vadd.f32 %v12760_v44, %v15766_v60 }
 0x392   :  { %v8538_v53 = vpop.eup %8537  ;;  %8557 = vrcp.f32 %v4466_v56  ;;  %v4469_v4 = vadd.f32 1.0, %v8536_v34  ;;  %v7245_v60 = vmul.f32 -1.442695, %v13091_v32 }
 0x393   :  { %v8540_v41 = vpop.eup %8539  ;;  %8559 = vpow2.f32 %v7242_v40  ;;  %4867 = vmatmul.mubr.f32.gmra.mrb[180].mxu0 %v12978_v9  ;;  %v4470_v27 = vadd.f32 1.0, %v8538_v53  ;;  %v15767_v9 = vld [vmem:[#allocation85_spill] sm:$0xff]  ;;  %v7246_v34 = vmul.f32 -1.442695, %v13099_v39 }
 0x394   :  { %v8542_v56 = vpop.eup %8541  ;;  %8561 = vrcp.f32 %v4467_v20  ;;  %7892 = vmatmul.mubr.f32.gmra.mrb[244].mxu1 %v13094_v6  ;;  %4872 = vmatprep.mubr.f32.mxu0 %v15747_v42  ;;  %v13111_v3 = vadd.f32 %v12760_v44, %v15767_v9  ;;  %v13114_v20 = vmul.f32 %v8534_v10, %v12921_v63  ;;  %v15768_v6 = vld [vmem:[#allocation83_spill] sm:$0xff]  ;;  %v13123_v53 = vmul.f32 %v8540_v41, %v12928_v15 }
 0x395   :  { %v8544_v28 = vpop.eup %8543  ;;  %8563 = vrcp.f32 %v4468_v54  ;;  %7894 = vmatprep.mubr.f32.mxu1 %v13103_v45  ;;  %v13119_v54 = vadd.f32 %v12760_v44, %v15768_v6 }
 0x396   :  { %v8546_v40 = vpop.eup %8545  ;;  %8565 = vpow2.f32 %v7243_v5  ;;  %15769 = vst [vmem:[#allocation156_spill] sm:$0xff] %v13123_v53  ;;  %v4471_v9 = vadd.f32 1.0, %v8544_v28  ;;  %v7247_v6 = vmul.f32 -1.442695, %v13111_v3 }
 0x397   :  { %v8548_v22 = vpop.eup %8547  ;;  %8567 = vpow2.f32 %v7244_v0  ;;  %4873 = vmatmul.mubr.f32.gmra.mrb[182].mxu0 %v12989_v50  ;;  %v4472_v10 = vadd.f32 1.0, %v8546_v40  ;;  %v13130_v50 = vmul.f32 %v8542_v56, %v12934_v38  ;;  %v7248_v41 = vmul.f32 -1.442695, %v13119_v54 }
 0x398   :  { %v8550_v5 = vpop.eup %8549  ;;  %8569 = vrcp.f32 %v4469_v4  ;;  %7895 = vmatmul.mubr.f32.gmra.mrb[246].mxu1 %v13114_v20  ;;  %4878 = vmatprep.mubr.f32.mxu0 %v15747_v42  ;;  %v15770_v4 = vld [vmem:[#allocation89_spill] sm:$0xff] }
 0x399   :  { %v8552_v63 = vpop.eup %8551  ;;  %8571 = vrcp.f32 %v4470_v27  ;;  %7897 = vmatprep.mubr.f32.mxu1 %v13123_v53  ;;  %v13135_v28 = vadd.f32 %v12760_v44, %v15770_v4  ;;  %v13139_v27 = vmul.f32 %v8548_v22, %v12945_v31  ;;  %v15772_v31 = vld [vmem:[#allocation97_spill] sm:$0xff] }
 0x39a   :  { %v8554_v0 = vpop.eup %8553  ;;  %8573 = vpow2.f32 %v7245_v60  ;;  %v4473_v60 = vadd.f32 1.0, %v8552_v63  ;;  %v13150_v22 = vadd.f32 %v12760_v44, %v15772_v31  ;;  %v13191_v31 = vadd.f32 %v12760_v44, %v12698_v8 }
 0x39b   :  { %v8556_v15 = vpop.eup %8555  ;;  %8575 = vpow2.f32 %v7246_v34  ;;  %4879 = vmatmul.mubr.f32.gmra.mrb[184].mxu0 %v12998_v17  ;;  %v4474_v56 = vadd.f32 1.0, %v8554_v0  ;;  %v15771_v34 = vld [vmem:[#allocation88_spill] sm:$0xff] }
 0x39c   :  { %v8558_v40 = vpop.eup %8557  ;;  %8577 = vrcp.f32 %v4471_v9  ;;  %7898 = vmatmul.mubr.f32.gmra.mrb[248].mxu1 %v13130_v50  ;;  %4884 = vmatprep.mubr.f32.mxu0 %v15747_v42  ;;  %v13145_v53 = vadd.f32 %v12760_v44, %v15771_v34  ;;  %v4475_v4 = vadd.f32 1.0, %v8556_v15  ;;  %v13153_v9 = vmul.f32 %v8550_v5, %v12952_v14 }
 0x39d   :  { %v8560_v38 = vpop.eup %8559  ;;  %8579 = vrcp.f32 %v4472_v10  ;;  %7900 = vmatprep.mubr.f32.mxu1 %v13139_v27  ;;  %v7249_v10 = vmul.f32 -1.442695, %v13135_v28  ;;  %v13158_v0 = vmul.f32 %v8558_v40, %v12967_v7  ;;  %v13165_v5 = vadd.f32 %v12760_v44, %v12672_v33 }
 0x39e   :  { %v8562_v17 = vpop.eup %8561  ;;  %8581 = vpow2.f32 %v7247_v6  ;;  %v4476_v15 = vadd.f32 1.0, %v8560_v38  ;;  %v7250_v14 = vmul.f32 -1.442695, %v13145_v53  ;;  %v7251_v7 = vmul.f32 -1.442695, %v13150_v22 }
 0x39f   :  { %v8564_v63 = vpop.eup %8563  ;;  %8583 = vpow2.f32 %v7248_v41  ;;  %4885 = vmatmul.mubr.f32.gmra.mrb[186].mxu0 %v13009_v61  ;;  %v13171_v41 = vadd.f32 %v12760_v44, %v12678_v49  ;;  %v13174_v40 = vmul.f32 %v8562_v17, %v12975_v30  ;;  %v7252_v30 = vmul.f32 -1.442695, %v13165_v5 }
 0x3a0   :  { %v8566_v34 = vpop.eup %8565  ;;  %8585 = vrcp.f32 %v4473_v60  ;;  %7901 = vmatmul.mubr.f32.gmra.mrb[250].mxu1 %v13153_v9  ;;  %4890 = vmatprep.mubr.f32.mxu0 %v15747_v42  ;;  %v13178_v33 = vmul.f32 %v8564_v63, %v12982_v36  ;;  %v13185_v17 = vadd.f32 %v12760_v44, %v12691_v43 }
 0x3a1   :  { %v8568_v6 = vpop.eup %8567  ;;  %8587 = vrcp.f32 %v4474_v56  ;;  %7903 = vmatprep.mubr.f32.mxu1 %v13158_v0  ;;  %v4477_v38 = vadd.f32 1.0, %v8566_v34  ;;  %v7253_v36 = vmul.f32 -1.442695, %v13171_v41 }
 0x3a2   :  { %v8570_v61 = vpop.eup %8569  ;;  %8589 = vrcp.f32 %v4475_v4  ;;  %v4478_v4 = vadd.f32 1.0, %v8568_v6 }
 0x3a3   :  { %v8572_v60 = vpop.eup %8571  ;;  %8591 = vpow2.f32 %v7249_v10  ;;  %4891 = vmatmul.mubr.f32.gmra.mrb[188].mxu0 %v13018_v16  ;;  %v13194_v63 = vmul.f32 %v8570_v61, %v12994_v2  ;;  %v7254_v2 = vmul.f32 -1.442695, %v13185_v17  ;;  %v7255_v61 = vmul.f32 -1.442695, %v13191_v31 }
 0x3a4   :  { %v8574_v56 = vpop.eup %8573  ;;  %8593 = vrcp.f32 %v4476_v15  ;;  %7904 = vmatmul.mubr.f32.gmra.mrb[252].mxu1 %v13174_v40  ;;  %4896 = vmatprep.mubr.f32.mxu0 %v15747_v42  ;;  %v13198_v43 = vmul.f32 %v8572_v60, %v13003_v24 }
 0x3a5   :  { %v8576_v49 = vpop.eup %8575  ;;  %8595 = vpow2.f32 %v7250_v14  ;;  %7906 = vmatprep.mubr.f32.mxu1 %v13178_v33  ;;  %v4479_v34 = vadd.f32 1.0, %v8574_v56  ;;  %v13205_v14 = vadd.f32 %v12760_v44, %v12705_v47 }
 0x3a6   :  { %v8578_v16 = vpop.eup %8577  ;;  %8597 = vpow2.f32 %v7251_v7  ;;  %v4480_v6 = vadd.f32 1.0, %v8576_v49  ;;  %v13214_v7 = vadd.f32 %v12760_v44, %v12712_v58  ;;  %v13225_v49 = vadd.f32 %v12760_v44, %v12720_v46 }
 0x3a7   :  { %v8580_v10 = vpop.eup %8579  ;;  %8599 = vrcp.f32 %v4477_v38  ;;  %4897 = vmatmul.mubr.f32.gmra.mrb[190].mxu0 %v13029_v37  ;;  %v13209_v24 = vmul.f32 %v8578_v16, %v13014_v1  ;;  %v7256_v58 = vmul.f32 -1.442695, %v13205_v14 }
 0x3a8   :  { %v8582_v15 = vpop.eup %8581  ;;  %8601 = vrcp.f32 %v4478_v4  ;;  %7907 = vmatmul.mubr.f32.gmra.mrb[254].mxu1 %v13194_v63  ;;  %4902 = vmatprep.mubr.f32.mxu0 %v15747_v42  ;;  %v13218_v47 = vmul.f32 %v8580_v10, %v13023_v57 }
 0x3a9   :  { %v8584_v8 = vpop.eup %8583  ;;  %8603 = vpow2.f32 %v7252_v30  ;;  %7909 = vmatprep.mubr.f32.mxu1 %v13198_v43  ;;  %v4481_v38 = vadd.f32 1.0, %v8582_v15  ;;  %v7257_v30 = vmul.f32 -1.442695, %v13214_v7  ;;  %v7258_v15 = vmul.f32 -1.442695, %v13225_v49 }
 0x3aa   :  { %v8586_v37 = vpop.eup %8585  ;;  %8605 = vpow2.f32 %v7253_v36  ;;  %v4482_v4 = vadd.f32 1.0, %v8584_v8 }
 0x3ab   :  { %v8588_v60 = vpop.eup %8587  ;;  %8607 = vrcp.f32 %v4479_v34  ;;  %4903 = vmatmul.mubr.f32.gmra.mrb[192].mxu0 %v13038_v23  ;;  %v13229_v57 = vmul.f32 %v8586_v37, %v13034_v18  ;;  %v13238_v34 = vadd.f32 %v12760_v44, %v12726_v59 }
 0x3ac   :  { %v8590_v56 = vpop.eup %8589  ;;  %8609 = vrcp.f32 %v4480_v6  ;;  %7910 = vmatmul.mubr.f32.gmra.mrb[0].mxu1 %v13209_v24  ;;  %4908 = vmatprep.mubr.f32.mxu0 %v15747_v42  ;;  %v13234_v36 = vmul.f32 %v8588_v60, %v13043_v62  ;;  %v13258_v60 = vadd.f32 %v12760_v44, %v12740_v29 }
 0x3ad   :  { %v8592_v1 = vpop.eup %8591  ;;  %8611 = vpow2.f32 %v7254_v2  ;;  %7912 = vmatprep.mubr.f32.mxu1 %v13218_v47  ;;  %v13249_v6 = vmul.f32 %v8590_v56, %v13049_v35 }
 0x3ae   :  { %v8594_v23 = vpop.eup %8593  ;;  %8613 = vpow2.f32 %v7255_v61  ;;  %v4483_v46 = vadd.f32 1.0, %v8592_v1 }
 0x3af   :  { %v8596_v16 = vpop.eup %8595  ;;  %8615 = vrcp.f32 %v4481_v38  ;;  %4909 = vmatmul.mubr.f32.gmra.mrb[194].mxu0 %v13053_v48  ;;  %v13245_v48 = vadd.f32 %v12760_v44, %v12733_v12  ;;  %v13253_v37 = vmul.f32 %v8594_v23, %v13058_v55  ;;  %v7259_v12 = vmul.f32 -1.442695, %v13238_v34 }
 0x3b0   :  { %v8598_v10 = vpop.eup %8597  ;;  %8617 = vrcp.f32 %v4482_v4  ;;  %7913 = vmatmul.mubr.f32.gmra.mrb[2].mxu1 %v13229_v57  ;;  %4914 = vmatprep.mubr.f32.mxu0 %v15747_v42  ;;  %v4484_v59 = vadd.f32 1.0, %v8596_v16  ;;  %v13265_v55 = vadd.f32 %v12760_v44, %v12747_v25  ;;  %v7261_v25 = vmul.f32 -1.442695, %v13258_v60  ;;  %v8939_v44 = vld [vmem:[%s14958_s6] ss:$0 sm:$0xff] }
 0x3b1   :  { %v8600_v18 = vpop.eup %8599  ;;  %8619 = vpow2.f32 %v7256_v58  ;;  %7915 = vmatprep.mubr.f32.mxu1 %v13234_v36  ;;  %v4485_v2 = vadd.f32 1.0, %v8598_v10  ;;  %v7260_v38 = vmul.f32 -1.442695, %v13245_v48 }
 0x3b2   :  { %v8602_v62 = vpop.eup %8601  ;;  %8621 = vpow2.f32 %v7257_v30  ;;  %v13269_v56 = vmul.f32 %v8600_v18, %v13071_v11  ;;  %v13280_v11 = vadd.f32 %v8939_v44, %v12754_v21 }
 0x3b3   :  { %v8604_v8 = vpop.eup %8603  ;;  %4915 = vmatmul.mubr.f32.gmra.mrb[196].mxu0 %v13062_v52  ;;  %8623 = vrcp.f32 %v4483_v46  ;;  %v13273_v58 = vmul.f32 %v8602_v62, %v13079_v51  ;;  %v13286_v51 = vadd.f32 %v8939_v44, %v12766_v13 }
 0x3b4   :  { %v8606_v61 = vpop.eup %8605  ;;  %7916 = vmatmul.mubr.f32.gmra.mrb[4].mxu1 %v13249_v6  ;;  %4920 = vmatprep.mubr.f32.mxu0 %v15747_v42  ;;  %8625 = vpow2.f32 %v7258_v15  ;;  %v4486_v29 = vadd.f32 1.0, %v8604_v8  ;;  %v7263_v13 = vmul.f32 -1.442695, %v13280_v11 }
 0x3b5   :  { %v8608_v35 = vpop.eup %8607  ;;  %7918 = vmatprep.mubr.f32.mxu1 %v13253_v37  ;;  %8627 = vrcp.f32 %v4484_v59  ;;  %v4487_v1 = vadd.f32 1.0, %v8606_v61  ;;  %v15773_v59 = vld [vmem:[#allocation100_spill] sm:$0xff] }
 0x3b6   :  { %v8610_v52 = vpop.eup %8609  ;;  %8629 = vrcp.f32 %v4485_v2  ;;  %v13290_v10 = vmul.f32 %v8608_v35, %v13091_v32  ;;  %v13298_v8 = vadd.f32 %v8939_v44, %v15773_v59  ;;  %v7264_v32 = vmul.f32 -1.442695, %v13286_v51  ;;  %v15774_v2 = vld [vmem:[#allocation102_spill] sm:$0xff] }
 0x3b7   :  { %v8612_v4 = vpop.eup %8611  ;;  %4921 = vmatmul.mubr.f32.gmra.mrb[198].mxu0 %v13074_v19  ;;  %8631 = vpow2.f32 %v7259_v12  ;;  %v7262_v19 = vmul.f32 -1.442695, %v13265_v55  ;;  %v13294_v15 = vmul.f32 %v8610_v52, %v13099_v39  ;;  %v13304_v61 = vadd.f32 %v8939_v44, %v15774_v2  ;;  %v15775_v52 = vld [vmem:[#allocation113_spill] sm:$0xff] }
 0x3b8   :  { %v8614_v23 = vpop.eup %8613  ;;  %7919 = vmatmul.mubr.f32.gmra.mrb[6].mxu1 %v13269_v56  ;;  %4926 = vmatprep.mubr.f32.mxu0 %v15747_v42  ;;  %8633 = vpow2.f32 %v7260_v38  ;;  %v4488_v21 = vadd.f32 1.0, %v8612_v4 }
 0x3b9   :  { %v8616_v30 = vpop.eup %8615  ;;  %7921 = vmatprep.mubr.f32.mxu1 %v13273_v58  ;;  %8635 = vrcp.f32 %v4486_v29  ;;  %v4489_v18 = vadd.f32 1.0, %v8614_v23  ;;  %v15776_v23 = vld [vmem:[#allocation105_spill] sm:$0xff] }
 0x3ba   :  { %v8618_v16 = vpop.eup %8617  ;;  %8637 = vrcp.f32 %v4487_v1  ;;  %v13308_v39 = vmul.f32 %v8616_v30, %v13111_v3  ;;  %v7265_v1 = vmul.f32 -1.442695, %v13298_v8  ;;  %v7266_v30 = vmul.f32 -1.442695, %v13304_v61 }
 0x3bb   :  { %v8620_v46 = vpop.eup %8619  ;;  %4927 = vmatmul.mubr.f32.gmra.mrb[200].mxu0 %v13083_v26  ;;  %8639 = vpow2.f32 %v7261_v25  ;;  %v13312_v29 = vmul.f32 %v8618_v16, %v13119_v54  ;;  %v13316_v25 = vadd.f32 %v8939_v44, %v15776_v23 }
 0x3bc   :  { %v8622_v62 = vpop.eup %8621  ;;  %7922 = vmatmul.mubr.f32.gmra.mrb[8].mxu1 %v13290_v10  ;;  %4932 = vmatprep.mubr.f32.mxu0 %v15747_v42  ;;  %8641 = vpow2.f32 %v7262_v19  ;;  %v4490_v12 = vadd.f32 1.0, %v8620_v46 }
 0x3bd   :  { %7924 = vmatprep.mubr.f32.mxu1 %v13294_v15  ;;  %v8624_v26 = vpop.eup %8623  ;;  %8643 = vrcp.f32 %v4488_v21  ;;  %v4491_v38 = vadd.f32 1.0, %v8622_v62 }
 0x3be   :  { %v8626_v35 = vpop.eup %8625  ;;  %8645 = vrcp.f32 %v4489_v18  ;;  %v13323_v54 = vmul.f32 %v8624_v26, %v13135_v28  ;;  %v7267_v18 = vmul.f32 -1.442695, %v13316_v25 }
 0x3bf   :  { %4933 = vmatmul.mubr.f32.gmra.mrb[202].mxu0 %v15775_v52  ;;  %v8628_v4 = vpop.eup %8627  ;;  %8647 = vpow2.f32 %v7263_v13  ;;  %v4492_v16 = vadd.f32 1.0, %v8626_v35 }
 0x3c0   :  { %7925 = vmatmul.mubr.f32.gmra.mrb[10].mxu1 %v13308_v39  ;;  %4938 = vmatprep.mubr.f32.mxu0 %v15747_v42  ;;  %v8630_v3 = vpop.eup %8629  ;;  %8649 = vpow2.f32 %v7264_v32  ;;  %v13327_v44 = vmul.f32 %v8628_v4, %v13145_v53 }
 0x3c1   :  { %7927 = vmatprep.mubr.f32.mxu1 %v13312_v29  ;;  %v8632_v19 = vpop.eup %8631  ;;  %8651 = vrcp.f32 %v4490_v12  ;;  %v13334_v59 = vmul.f32 %v8630_v3, %v13150_v22 }
 0x3c2   :  { %v8634_v21 = vpop.eup %8633  ;;  %8653 = vrcp.f32 %v4491_v38  ;;  %v4493_v28 = vadd.f32 1.0, %v8632_v19 }
 0x3c3   :  { %4939 = vmatmul.mubr.f32.gmra.mrb[204].mxu0 %v13103_v45  ;;  %v8636_v46 = vpop.eup %8635  ;;  %8655 = vpow2.f32 %v7265_v1  ;;  %v4494_v45 = vadd.f32 1.0, %v8634_v21 }
 0x3c4   :  { %7928 = vmatmul.mubr.f32.gmra.mrb[12].mxu1 %v13323_v54  ;;  %4944 = vmatprep.mubr.f32.mxu0 %v15747_v42  ;;  %v8638_v62 = vpop.eup %8637  ;;  %8657 = vpow2.f32 %v7266_v30  ;;  %v13338_v32 = vmul.f32 %v8636_v46, %v13165_v5  ;;  %v15777_v5 = vld [vmem:[#allocation156_spill] sm:$0xff] }
 0x3c5   :  { %7930 = vmatprep.mubr.f32.mxu1 %v13327_v44  ;;  %v8640_v13 = vpop.eup %8639  ;;  %8659 = vrcp.f32 %v4492_v16  ;;  %v13344_v35 = vmul.f32 %v8638_v62, %v13171_v41 }
 0x3c6   :  { %v8642_v53 = vpop.eup %8641  ;;  %8661 = vpow2.f32 %v7267_v18  ;;  %v4495_v12 = vadd.f32 1.0, %v8640_v13 }
 0x3c7   :  { %4945 = vmatmul.mubr.f32.gmra.mrb[206].mxu0 %v13114_v20  ;;  %v8644_v2 = vpop.eup %8643  ;;  %8663 = vrcp.f32 %v4493_v28  ;;  %v4496_v20 = vadd.f32 1.0, %v8642_v53 }
 0x3c8   :  { %7931 = vmatmul.mubr.f32.gmra.mrb[14].mxu1 %v13334_v59  ;;  %4950 = vmatprep.mubr.f32.mxu0 %v15747_v42  ;;  %v8646_v26 = vpop.eup %8645  ;;  %8665 = vrcp.f32 %v4494_v45  ;;  %v13348_v52 = vmul.f32 %v8644_v2, %v13185_v17 }
 0x3c9   :  { %7933 = vmatprep.mubr.f32.mxu1 %v13338_v32  ;;  %v8648_v22 = vpop.eup %8647  ;;  %8667 = vrcp.f32 %v4495_v12  ;;  %v13354_v3 = vmul.f32 %v8646_v26, %v13191_v31 }
 0x3ca   :  { %v8650_v38 = vpop.eup %8649  ;;  %v4497_v23 = vadd.f32 1.0, %v8648_v22  ;;  %8669 = vrcp.f32 %v4496_v20  ;;  %v15783_v20 = vld [vmem:[#allocation4_spill] sm:$0xff] }
 0x3cb   :  { %4951 = vmatmul.mubr.f32.gmra.mrb[208].mxu0 %v15777_v5  ;;  %v8652_v4 = vpop.eup %8651  ;;  %v4498_v30 = vadd.f32 1.0, %v8650_v38 }
 0x3cc   :  { %7934 = vmatmul.mubr.f32.gmra.mrb[16].mxu1 %v13344_v35  ;;  %4956 = vmatprep.mubr.f32.mxu0 %v15747_v42  ;;  %v8654_v1 = vpop.eup %8653  ;;  %v13358_v17 = vmul.f32 %v8652_v4, %v13205_v14  ;;  %8671 = vrcp.f32 %v4497_v23 }
 0x3cd   :  { %7936 = vmatprep.mubr.f32.mxu1 %v13348_v52  ;;  %v8656_v41 = vpop.eup %8655  ;;  %v13364_v31 = vmul.f32 %v8654_v1, %v13214_v7  ;;  %8673 = vrcp.f32 %v4498_v30 }
 0x3ce   :  { %v8658_v19 = vpop.eup %8657  ;;  %v4499_v21 = vadd.f32 1.0, %v8656_v41  ;;  %v15784_v41 = vld [vmem:[#allocation7_spill] sm:$0xff] }
 0x3cf   :  { %4957 = vmatmul.mubr.f32.gmra.mrb[210].mxu0 %v13130_v50  ;;  %v8660_v16 = vpop.eup %8659  ;;  %v4500_v18 = vadd.f32 1.0, %v8658_v19 }
 0x3d0   :  { %7937 = vmatmul.mubr.f32.gmra.mrb[18].mxu1 %v13354_v3  ;;  %4962 = vmatprep.mubr.f32.mxu0 %v15747_v42  ;;  %v8662_v46 = vpop.eup %8661  ;;  %v13368_v50 = vmul.f32 %v8660_v16, %v13225_v49  ;;  %8675 = vrcp.f32 %v4499_v21 }
 0x3d1   :  { %7939 = vmatprep.mubr.f32.mxu1 %v13358_v17  ;;  %v8664_v62 = vpop.eup %8663  ;;  %v4501_v28 = vadd.f32 1.0, %v8662_v46  ;;  %8677 = vrcp.f32 %v4500_v18 }
 0x3d2   :  { %v8666_v14 = vpop.eup %8665  ;;  %v13374_v7 = vmul.f32 %v8664_v62, %v13238_v34 }
 0x3d3   :  { %4963 = vmatmul.mubr.f32.gmra.mrb[212].mxu0 %v13139_v27  ;;  %v8668_v13 = vpop.eup %8667  ;;  %v13378_v27 = vmul.f32 %v8666_v14, %v13245_v48  ;;  %8679 = vrcp.f32 %v4501_v28 }
 0x3d4   :  { %7940 = vmatmul.mubr.f32.gmra.mrb[20].mxu1 %v13364_v31  ;;  %4968 = vmatprep.mubr.f32.mxu0 %v15747_v42  ;;  %v8670_v49 = vpop.eup %8669  ;;  %v13384_v45 = vmul.f32 %v8668_v13, %v13258_v60 }
 0x3d5   :  { %7942 = vmatprep.mubr.f32.mxu1 %v13368_v50  ;;  %v13388_v53 = vmul.f32 %v8670_v49, %v13265_v55  ;;  %v15786_v49 = vld [vmem:[#allocation9_spill] sm:$0xff] }
 0x3d6   :  { %v8672_v34 = vpop.eup %8671 }
 0x3d7   :  { %4969 = vmatmul.mubr.f32.gmra.mrb[214].mxu0 %v13153_v9  ;;  %v8674_v9 = vpop.eup %8673  ;;  %v13394_v48 = vmul.f32 %v8672_v34, %v13280_v11 }
 0x3d8   :  { %7943 = vmatmul.mubr.f32.gmra.mrb[22].mxu1 %v13374_v7  ;;  %4974 = vmatprep.mubr.f32.mxu0 %v15747_v42  ;;  %v13398_v60 = vmul.f32 %v8674_v9, %v13286_v51 }
 0x3d9   :  { %7945 = vmatprep.mubr.f32.mxu1 %v13378_v27 }
 0x3da   :  { %v8676_v2 = vpop.eup %8675 }
 0x3db   :  { %4975 = vmatmul.mubr.f32.gmra.mrb[216].mxu0 %v13158_v0  ;;  %v8678_v0 = vpop.eup %8677  ;;  %v13404_v55 = vmul.f32 %v8676_v2, %v13298_v8 }
 0x3dc   :  { %7946 = vmatmul.mubr.f32.gmra.mrb[24].mxu1 %v13384_v45  ;;  %4980 = vmatprep.mubr.f32.mxu0 %v15747_v42  ;;  %v13408_v11 = vmul.f32 %v8678_v0, %v13304_v61 }
 0x3dd   :  { %7948 = vmatprep.mubr.f32.mxu1 %v13388_v53  ;;  %v8680_v26 = vpop.eup %8679 }
 0x3df   :  { %4981 = vmatmul.mubr.f32.gmra.mrb[218].mxu0 %v13174_v40  ;;  %v13414_v40 = vmul.f32 %v8680_v26, %v13316_v25 }
 0x3e0   :  { %7949 = vmatmul.mubr.f32.gmra.mrb[26].mxu1 %v13394_v48  ;;  %4986 = vmatprep.mubr.f32.mxu0 %v15747_v42 }
 0x3e1   :  { %7951 = vmatprep.mubr.f32.mxu1 %v13398_v60 }
 0x3e3   :  { %4987 = vmatmul.mubr.f32.gmra.mrb[220].mxu0 %v13178_v33 }
 0x3e4   :  { %7952 = vmatmul.mubr.f32.gmra.mrb[28].mxu1 %v13404_v55  ;;  %4992 = vmatprep.mubr.f32.mxu0 %v15747_v42 }
 0x3e5   :  { %7954 = vmatprep.mubr.f32.mxu1 %v13408_v11 }
 0x3e7   :  { %4993 = vmatmul.mubr.f32.gmra.mrb[222].mxu0 %v13194_v63 }
 0x3e8   :  { %7955 = vmatmul.mubr.f32.gmra.mrb[30].mxu1 %v13414_v40  ;;  %4998 = vmatprep.mubr.f32.mxu0 %v15747_v42 }
 0x3eb   :  { %4999 = vmatmul.mubr.f32.gmra.mrb[224].mxu0 %v13198_v43 }
 0x3ec   :  { %5004 = vmatprep.mubr.f32.mxu0 %v15747_v42 }
 0x3ef   :  { %5005 = vmatmul.mubr.f32.gmra.mrb[226].mxu0 %v13209_v24 }
 0x3f0   :  { %5010 = vmatprep.mubr.f32.mxu0 %v15747_v42 }
 0x3f3   :  { %5011 = vmatmul.mubr.f32.gmra.mrb[228].mxu0 %v13218_v47 }
 0x3f4   :  { %5016 = vmatprep.mubr.f32.mxu0 %v15747_v42 }
 0x3f7   :  { %5017 = vmatmul.mubr.f32.gmra.mrb[230].mxu0 %v13229_v57 }
 0x3f8   :  { %5022 = vmatprep.mubr.f32.mxu0 %v15747_v42 }
 0x3fb   :  { %5023 = vmatmul.mubr.f32.gmra.mrb[232].mxu0 %v13234_v36 }
 0x3fc   :  { %5028 = vmatprep.mubr.f32.mxu0 %v15747_v42 }
 0x3ff   :  { %5029 = vmatmul.mubr.f32.gmra.mrb[234].mxu0 %v13249_v6 }
 0x400   :  { %5034 = vmatprep.mubr.f32.mxu0 %v15747_v42 }
 0x403   :  { %5035 = vmatmul.mubr.f32.gmra.mrb[236].mxu0 %v13253_v37  ;;  %v16000_v37 = vld [vmem:[#allocation146_spill] sm:$0xff] }
 0x404   :  { %5040 = vmatprep.mubr.f32.mxu0 %v15747_v42 }
 0x407   :  { %5041 = vmatmul.mubr.f32.gmra.mrb[238].mxu0 %v13269_v56 }
 0x408   :  { %5046 = vmatprep.mubr.f32.mxu0 %v15747_v42 }
 0x40b   :  { %5047 = vmatmul.mubr.f32.gmra.mrb[240].mxu0 %v13273_v58 }
 0x40c   :  { %5052 = vmatprep.mubr.f32.mxu0 %v15747_v42 }
 0x40f   :  { %5053 = vmatmul.mubr.f32.gmra.mrb[242].mxu0 %v13290_v10 }
 0x410   :  { %5058 = vmatprep.mubr.f32.mxu0 %v15747_v42 }
 0x413   :  { %5059 = vmatmul.mubr.f32.gmra.mrb[244].mxu0 %v13294_v15 }
 0x414   :  { %5064 = vmatprep.mubr.f32.mxu0 %v15747_v42 }
 0x417   :  { %5065 = vmatmul.mubr.f32.gmra.mrb[246].mxu0 %v13308_v39 }
 0x418   :  { %5070 = vmatprep.mubr.f32.mxu0 %v15747_v42 }
 0x41b   :  { %5071 = vmatmul.mubr.f32.gmra.mrb[248].mxu0 %v13312_v29  ;;  %v15782_v29 = vld [vmem:[#allocation2_spill] sm:$0xff] }
 0x41c   :  { %5076 = vmatprep.mubr.f32.mxu0 %v15747_v42 }
 0x41f   :  { %5077 = vmatmul.mubr.f32.gmra.mrb[250].mxu0 %v13323_v54 }
 0x420   :  { %5082 = vmatprep.mubr.f32.mxu0 %v15747_v42 }
 0x423   :  { %5083 = vmatmul.mubr.f32.gmra.mrb[252].mxu0 %v13327_v44 }
 0x424   :  { %5088 = vmatprep.mubr.f32.mxu0 %v15747_v42 }
 0x427   :  { %5089 = vmatmul.mubr.f32.gmra.mrb[254].mxu0 %v13334_v59 }
 0x428   :  { %5094 = vmatprep.mubr.f32.mxu0 %v15747_v42 }
 0x42b   :  { %5095 = vmatmul.mubr.f32.gmra.mrb[0].mxu0 %v13338_v32 }
 0x42c   :  { %5100 = vmatprep.mubr.f32.mxu0 %v15747_v42 }
 0x42f   :  { %5101 = vmatmul.mubr.f32.gmra.mrb[2].mxu0 %v13344_v35 }
 0x430   :  { %5106 = vmatprep.mubr.f32.mxu0 %v15747_v42 }
 0x433   :  { %5107 = vmatmul.mubr.f32.gmra.mrb[4].mxu0 %v13348_v52 }
 0x434   :  { %5112 = vmatprep.mubr.f32.mxu0 %v15747_v42 }
 0x437   :  { %5113 = vmatmul.mubr.f32.gmra.mrb[6].mxu0 %v13354_v3 }
 0x438   :  { %5118 = vmatprep.mubr.f32.mxu0 %v15747_v42 }
 0x43b   :  { %5119 = vmatmul.mubr.f32.gmra.mrb[8].mxu0 %v13358_v17 }
 0x43c   :  { %5124 = vmatprep.mubr.f32.mxu0 %v15747_v42 }
 0x43e   :  { %v13461_v33 = vpop.f32.mrb[160].mxu0 }
 0x43f   :  { %15778 = vst [vmem:[#allocation158_spill] sm:$0xff] %v13461_v33  ;;  %v13463_v63 = vpop.f32.mrb[161].mxu0  ;;  %5125 = vmatmul.mubr.f32.gmra.mrb[10].mxu0 %v13364_v31  ;;  %v7863_v43 = vpop.f32.mrb[224].mxu1  ;;  %v15184_v6 = vrot.slane %v13461_v33, 7  ;;  %v15785_v31 = vld [vmem:[#allocation6_spill] sm:$0xff] }
 0x440   :  { %15779 = vst [vmem:[#allocation159_spill] sm:$0xff] %v13463_v63  ;;  %v5769_v24 = vrot.slane %v7863_v43, 1  ;;  %v13466_v47 = vpop.f32.mrb[225].mxu1  ;;  %5130 = vmatprep.mubr.f32.mxu0 %v15747_v42 }
 0x441   :  { %15780 = vst [vmem:[#allocation81_spill] sm:$0xff] %v13466_v47  ;;  %v15185_v57 = vrot.slane %v13466_v47, 1 }
 0x442   :  { %v4814_v36 = vpop.f32.mrb[162].mxu0 }
 0x443   :  { %v13475_v56 = vsel %vm1685_vm1, %v15185_v57, %v5769_v24  ;;  %v5577_v58 = vrot.slane %v4814_v36, 7  ;;  %v4816_v51 = vpop.f32.mrb[163].mxu0  ;;  %5131 = vmatmul.mubr.f32.gmra.mrb[12].mxu0 %v13368_v50  ;;  %v7866_v10 = vpop.f32.mrb[226].mxu1 }
 0x444   :  { %v5771_v15 = vrot.slane %v7866_v10, 1  ;;  %v5267_v8 = vpop.f32.mrb[227].mxu1  ;;  %5136 = vmatprep.mubr.f32.mxu0 %v15747_v42 }
 0x445   :  { %v5702_v61 = vsel %vm1172_vm0, %v15184_v6, %v5577_v58  ;;  %v5770_v39 = vrot.slane %v5267_v8, 1 }
 0x446   :  { %v5705_v25 = vmul.f32 %v5702_v61, %v15782_v29  ;;  %v4820_v54 = vpop.f32.mrb[164].mxu0 }
 0x447   :  { %v5892_v44 = vsel %vm1685_vm1, %v5770_v39, %v5771_v15  ;;  %v5893_v59 = vsel %vm1685_vm1, %v5769_v24, %v5770_v39  ;;  %v5578_v32 = vrot.slane %v4820_v54, 7  ;;  %v4822_v12 = vpop.f32.mrb[165].mxu0  ;;  %5137 = vmatmul.mubr.f32.gmra.mrb[14].mxu0 %v13374_v7  ;;  %v7869_v22 = vpop.f32.mrb[228].mxu1  ;;  %v15787_v24 = vld [vmem:[#allocation8_spill] sm:$0xff]  ;;  %v15788_v39 = vld [vmem:[#allocation11_spill] sm:$0xff] }
 0x448   :  { %v5961_v35 = vadd.f32 %v5705_v25, %v4816_v51  ;;  %v5897_v38 = vmul.f32 %v5893_v59, %v15783_v20  ;;  %v5773_v5 = vrot.slane %v7869_v22, 1  ;;  %v5277_v52 = vpop.f32.mrb[229].mxu1  ;;  %5142 = vmatprep.mubr.f32.mxu0 %v15747_v42  ;;  %v5898_v18 = vmul.f32 %v5892_v44, %v15785_v31 }
 0x449   :  { %v5701_v4 = vsel %vm1172_vm0, %v5577_v58, %v5578_v32  ;;  %v5772_v1 = vrot.slane %v5277_v52, 1 }
 0x44a   :  { %v13493_v23 = vadd.f32 %v5961_v35, %v5897_v38  ;;  %v5706_v3 = vmul.f32 %v5701_v4, %v15784_v41  ;;  %v4826_v30 = vpop.f32.mrb[166].mxu0 }
 0x44b   :  { %v5890_v19 = vsel %vm1685_vm1, %v5772_v1, %v5773_v5  ;;  %v5891_v17 = vsel %vm1685_vm1, %v5771_v15, %v5772_v1  ;;  %v5579_v16 = vrot.slane %v4826_v30, 7  ;;  %v4828_v21 = vpop.f32.mrb[167].mxu0  ;;  %5143 = vmatmul.mubr.f32.gmra.mrb[16].mxu0 %v13378_v27  ;;  %v7872_v46 = vpop.f32.mrb[230].mxu1  ;;  %v15790_v1 = vld [vmem:[#allocation13_spill] sm:$0xff] }
 0x44c   :  { %v5962_v62 = vadd.f32 %v5706_v3, %v4822_v12  ;;  %v5775_v50 = vrot.slane %v7872_v46, 1  ;;  %v5287_v14 = vpop.f32.mrb[231].mxu1  ;;  %5148 = vmatprep.mubr.f32.mxu0 %v15747_v42  ;;  %v5899_v36 = vmul.f32 %v5891_v17, %v15787_v24  ;;  %v15789_v12 = vld [vmem:[#allocation10_spill] sm:$0xff] }
 0x44d   :  { %v5700_v28 = vsel %vm1172_vm0, %v5578_v32, %v5579_v16  ;;  %v5774_v7 = vrot.slane %v5287_v14, 1  ;;  %v5900_v22 = vmul.f32 %v5890_v19, %v15789_v12  ;;  %v15795_v12 = vld [vmem:[#allocation16_spill] sm:$0xff] }
 0x44e   :  { %v13505_v13 = vadd.f32 %v5962_v62, %v5898_v18  ;;  %v5707_v34 = vmul.f32 %v5700_v28, %v15786_v49  ;;  %v4832_v9 = vpop.f32.mrb[168].mxu0 }
 0x44f   :  { %v5888_v27 = vsel %vm1685_vm1, %v5774_v7, %v5775_v50  ;;  %v5889_v2 = vsel %vm1685_vm1, %v5773_v5, %v5774_v7  ;;  %v5580_v0 = vrot.slane %v4832_v9, 7  ;;  %v4834_v26 = vpop.f32.mrb[169].mxu0  ;;  %5149 = vmatmul.mubr.f32.gmra.mrb[18].mxu0 %v13384_v45  ;;  %v7875_v43 = vpop.f32.mrb[232].mxu1  ;;  %v15792_v7 = vld [vmem:[#allocation15_spill] sm:$0xff] }
 0x450   :  { %v5963_v58 = vadd.f32 %v5707_v34, %v4828_v21  ;;  %v5777_v51 = vrot.slane %v7875_v43, 1  ;;  %v5297_v10 = vpop.f32.mrb[233].mxu1  ;;  %5154 = vmatprep.mubr.f32.mxu0 %v15747_v42  ;;  %v15791_v21 = vld [vmem:[#allocation12_spill] sm:$0xff]  ;;  %v15793_v43 = vld [vmem:[#allocation14_spill] sm:$0xff] }
 0x451   :  { %v5699_v15 = vsel %vm1172_vm0, %v5579_v16, %v5580_v0  ;;  %v5776_v8 = vrot.slane %v5297_v10, 1  ;;  %v5901_v46 = vmul.f32 %v5889_v2, %v15791_v21  ;;  %v5902_v24 = vmul.f32 %v5888_v27, %v15793_v43 }
 0x452   :  { %v13517_v61 = vadd.f32 %v5963_v58, %v5899_v36  ;;  %v5708_v29 = vmul.f32 %v5699_v15, %v15788_v39  ;;  %v4838_v25 = vpop.f32.mrb[170].mxu0  ;;  %v15794_v39 = vld [vmem:[#allocation17_spill] sm:$0xff] }
 0x453   :  { %v13522_v45 = vsel %vm1685_vm1, %v5776_v8, %v5777_v51  ;;  %v5887_v54 = vsel %vm1685_vm1, %v5775_v50, %v5776_v8  ;;  %v5581_v44 = vrot.slane %v4838_v25, 7  ;;  %v4840_v59 = vpop.f32.mrb[171].mxu0  ;;  %5155 = vmatmul.mubr.f32.gmra.mrb[20].mxu0 %v13388_v53  ;;  %v7878_v32 = vpop.f32.mrb[234].mxu1 }
 0x454   :  { %v5964_v35 = vadd.f32 %v5708_v29, %v4834_v26  ;;  %v5779_v20 = vrot.slane %v7878_v32, 1  ;;  %v5307_v38 = vpop.f32.mrb[235].mxu1  ;;  %5160 = vmatprep.mubr.f32.mxu0 %v15747_v42 }
 0x455   :  { %v5698_v5 = vsel %vm1172_vm0, %v5580_v0, %v5581_v44  ;;  %v5778_v52 = vrot.slane %v5307_v38, 1 }
 0x456   :  { %v13531_v4 = vadd.f32 %v5964_v35, %v5900_v22  ;;  %v5709_v41 = vmul.f32 %v5698_v5, %v15790_v1  ;;  %v4844_v3 = vpop.f32.mrb[172].mxu0  ;;  %v5903_v22 = vmul.f32 %v5887_v54, %v15795_v12 }
 0x457   :  { %v13536_v53 = vsel %vm1685_vm1, %v5778_v52, %v5779_v20  ;;  %v13540_v30 = vsel %vm1685_vm1, %v5777_v51, %v5778_v52  ;;  %v5582_v19 = vrot.slane %v4844_v3, 7  ;;  %v4846_v17 = vpop.f32.mrb[173].mxu0  ;;  %5161 = vmatmul.mubr.f32.gmra.mrb[22].mxu0 %v13394_v48  ;;  %v7881_v16 = vpop.f32.mrb[236].mxu1 }
 0x458   :  { %v5965_v31 = vadd.f32 %v5709_v41, %v4840_v59  ;;  %v5781_v18 = vrot.slane %v7881_v16, 1  ;;  %v5317_v62 = vpop.f32.mrb[237].mxu1  ;;  %5166 = vmatprep.mubr.f32.mxu0 %v15747_v42  ;;  %v15796_v41 = vld [vmem:[#allocation19_spill] sm:$0xff] }
 0x459   :  { %v5697_v50 = vsel %vm1172_vm0, %v5581_v44, %v5582_v19  ;;  %v5780_v14 = vrot.slane %v5317_v62, 1 }
 0x45a   :  { %v13547_v28 = vadd.f32 %v5965_v31, %v5901_v46  ;;  %v5710_v49 = vmul.f32 %v5697_v50, %v15792_v7  ;;  %v4850_v34 = vpop.f32.mrb[174].mxu0  ;;  %v13594_v46 = vld [vmem:[%s14959_s8] ss:$0 sm:$0xff] }
 0x45b   :  { %v13552_v48 = vsel %vm1685_vm1, %v5780_v14, %v5781_v18  ;;  %v13556_v9 = vsel %vm1685_vm1, %v5779_v20, %v5780_v14  ;;  %v5583_v2 = vrot.slane %v4850_v34, 7  ;;  %v4852_v0 = vpop.f32.mrb[175].mxu0  ;;  %5167 = vmatmul.mubr.f32.gmra.mrb[24].mxu0 %v13398_v60  ;;  %v7884_v26 = vpop.f32.mrb[238].mxu1  ;;  %v15797_v31 = vld [vmem:[#allocation18_spill] sm:$0xff] }
 0x45c   :  { %v5966_v36 = vadd.f32 %v5710_v49, %v4846_v17  ;;  %v5783_v58 = vrot.slane %v7884_v26, 1  ;;  %v5327_v51 = vpop.f32.mrb[239].mxu1  ;;  %5172 = vmatprep.mubr.f32.mxu0 %v15747_v42  ;;  %v13604_v26 = vadd.f32 %v13594_v46, %v13493_v23 }
 0x45d   :  { %v5696_v10 = vsel %vm1172_vm0, %v5582_v19, %v5583_v2  ;;  %v5782_v15 = vrot.slane %v5327_v51, 1  ;;  %v15800_v51 = vld [vmem:[#allocation20_spill] sm:$0xff] }
 0x45e   :  { %v13563_v8 = vadd.f32 %v5966_v36, %v5902_v24  ;;  %v5711_v29 = vmul.f32 %v5696_v10, %v15794_v39  ;;  %v4856_v25 = vpop.f32.mrb[176].mxu0  ;;  %15799 = vst [vmem:[#allocation147_spill] sm:$0xff] %v13604_v26  ;;  %v5905_v23 = vmul.f32 %v13540_v30, %v15800_v51 }
 0x45f   :  { %v13568_v60 = vsel %vm1685_vm1, %v5782_v15, %v5783_v58  ;;  %v13572_v27 = vsel %vm1685_vm1, %v5781_v18, %v5782_v15  ;;  %v5584_v44 = vrot.slane %v4856_v25, 7  ;;  %v4858_v59 = vpop.f32.mrb[177].mxu0  ;;  %5173 = vmatmul.mubr.f32.gmra.mrb[26].mxu0 %v13404_v55  ;;  %v7887_v32 = vpop.f32.mrb[240].mxu1  ;;  %v5904_v18 = vmul.f32 %v13522_v45, %v15797_v31 }
 0x460   :  { %v5967_v35 = vadd.f32 %v5711_v29, %v4852_v0  ;;  %v5785_v20 = vrot.slane %v7887_v32, 1  ;;  %v5337_v38 = vpop.f32.mrb[241].mxu1  ;;  %5178 = vmatprep.mubr.f32.mxu0 %v15747_v42  ;;  %v15801_v32 = vld [vmem:[#allocation23_spill] sm:$0xff] }
 0x461   :  { %v5695_v5 = vsel %vm1172_vm0, %v5583_v2, %v5584_v44  ;;  %v5784_v52 = vrot.slane %v5337_v38, 1 }
 0x462   :  { %v13579_v1 = vadd.f32 %v5967_v35, %v5903_v22  ;;  %v5712_v3 = vmul.f32 %v5695_v5, %v15796_v41  ;;  %v4862_v19 = vpop.f32.mrb[178].mxu0  ;;  %v7270_v22 = vmul.f32 -1.442695, %v13604_v26 }
 0x463   :  { %v13584_v55 = vsel %vm1685_vm1, %v5784_v52, %v5785_v20  ;;  %v13588_v54 = vsel %vm1685_vm1, %v5783_v58, %v5784_v52  ;;  %v5585_v17 = vrot.slane %v4862_v19, 7  ;;  %v4864_v16 = vpop.f32.mrb[179].mxu0  ;;  %5179 = vmatmul.mubr.f32.gmra.mrb[28].mxu0 %v13408_v11  ;;  %v7890_v21 = vpop.f32.mrb[242].mxu1  ;;  %v15798_v11 = vld [vmem:[#allocation21_spill] sm:$0xff]  ;;  %v13635_v52 = vadd.f32 %v13594_v46, %v13505_v13  ;;  %v15803_v19 = vld [vmem:[#allocation22_spill] sm:$0xff] }
 0x464   :  { %v5968_v62 = vadd.f32 %v5712_v3, %v4858_v59  ;;  %v5787_v50 = vrot.slane %v7890_v21, 1  ;;  %v5347_v14 = vpop.f32.mrb[243].mxu1  ;;  %5184 = vmatprep.mubr.f32.mxu0 %v15747_v42 }
 0x465   :  { %v5694_v7 = vsel %vm1172_vm0, %v5584_v44, %v5585_v17  ;;  %v5786_v49 = vrot.slane %v5347_v14, 1  ;;  %15802 = vst [vmem:[#allocation130_spill] sm:$0xff] %v13635_v52 }
 0x466   :  { %v6032_v34 = vadd.f32 %v5968_v62, %v5904_v18  ;;  %v5713_v2 = vmul.f32 %v5694_v7, %v15798_v11  ;;  %v4868_v0 = vpop.f32.mrb[180].mxu0  ;;  %v15804_v62 = vld [vmem:[#allocation25_spill] sm:$0xff] }
 0x467   :  { %v13608_v45 = vsel %vm1685_vm1, %v5786_v49, %v5787_v50  ;;  %v13612_v43 = vsel %vm1685_vm1, %v5785_v20, %v5786_v49  ;;  %v5586_v42 = vrot.slane %v4868_v0, 7  ;;  %v4870_v24 = vpop.f32.mrb[181].mxu0  ;;  %5185 = vmatmul.mubr.f32.gmra.mrb[30].mxu0 %v13414_v40  ;;  %v7893_v36 = vpop.f32.mrb[244].mxu1 }
 0x468   :  { %v13616_v58 = vadd.f32 %v13594_v46, %v6032_v34  ;;  %v5969_v10 = vadd.f32 %v5713_v2, %v4864_v16  ;;  %v5357_v15 = vpop.f32.mrb[245].mxu1  ;;  %v5789_v29 = vrot.slane %v7893_v36, 1  ;;  %v7271_v2 = vmul.f32 -1.442695, %v13635_v52 }
 0x469   :  { %v5693_v39 = vsel %vm1172_vm0, %v5585_v17, %v5586_v42  ;;  %v5788_v25 = vrot.slane %v5357_v15, 1  ;;  %v5906_v17 = vmul.f32 %v13536_v53, %v15803_v19 }
 0x46a   :  { %v7277_v44 = vmul.f32 -1.442695, %v13616_v58  ;;  %v6033_v59 = vadd.f32 %v5969_v10, %v5905_v23  ;;  %v5714_v12 = vmul.f32 %v5693_v39, %v15801_v32  ;;  %v4874_v40 = vpop.f32.mrb[182].mxu0 }
 0x46b   :  { %v13627_v35 = vsel %vm1685_vm1, %v5788_v25, %v5789_v29  ;;  %v13631_v30 = vsel %vm1685_vm1, %v5787_v50, %v5788_v25  ;;  %v5587_v20 = vrot.slane %v4874_v40, 7  ;;  %v4876_v38 = vpop.f32.mrb[183].mxu0  ;;  %v7896_v5 = vpop.f32.mrb[246].mxu1 }
 0x46c   :  { %8681 = vpow2.f32 %v7277_v44  ;;  %v13638_v41 = vadd.f32 %v13594_v46, %v6033_v59  ;;  %v5367_v3 = vpop.f32.mrb[247].mxu1  ;;  %v5970_v16 = vadd.f32 %v5714_v12, %v4870_v24  ;;  %v5791_v31 = vrot.slane %v7896_v5, 1  ;;  %v15806_v12 = vld [vmem:[#allocation27_spill] sm:$0xff]  ;;  %v15808_v5 = vld [vmem:[#allocation26_spill] sm:$0xff] }
 0x46d   :  { %v5692_v21 = vsel %vm1172_vm0, %v5586_v42, %v5587_v20  ;;  %8683 = vpow2.f32 %v7270_v22  ;;  %v5790_v7 = vrot.slane %v5367_v3, 1  ;;  %v15805_v42 = vld [vmem:[#allocation24_spill] sm:$0xff] }
 0x46e   :  { %v7278_v18 = vmul.f32 -1.442695, %v13638_v41  ;;  %v5715_v50 = vmul.f32 %v5692_v21, %v15804_v62  ;;  %v4880_v14 = vpop.f32.mrb[184].mxu0  ;;  %v6034_v13 = vadd.f32 %v5970_v16, %v5906_v17  ;;  %v5907_v24 = vmul.f32 %v13556_v9, %v15805_v42 }
 0x46f   :  { %v5588_v49 = vrot.slane %v4880_v14, 7  ;;  %v4882_v34 = vpop.f32.mrb[185].mxu0  ;;  %v13646_v11 = vpop.f32.mrb[248].mxu1  ;;  %v13656_v51 = vsel %vm1685_vm1, %v5790_v7, %v5791_v31  ;;  %v13660_v23 = vsel %vm1685_vm1, %v5789_v29, %v5790_v7 }
 0x470   :  { %8685 = vpow2.f32 %v7278_v18  ;;  %v5377_v53 = vpop.f32.mrb[249].mxu1  ;;  %v13650_v0 = vadd.f32 %v13594_v46, %v6034_v13  ;;  %v5971_v36 = vadd.f32 %v5715_v50, %v4876_v38  ;;  %v5793_v29 = vrot.slane %v13646_v11, 1 }
 0x471   :  { %v5691_v25 = vsel %vm1172_vm0, %v5587_v20, %v5588_v49  ;;  %8687 = vpow2.f32 %v7271_v2  ;;  %v13676_v38 = vadd.f32 %v13594_v46, %v13517_v61  ;;  %v5908_v20 = vmul.f32 %v13552_v48, %v15808_v5 }
 0x472   :  { %v13662_v10 = vpop.f32.mrb[186].mxu0  ;;  %v7279_v15 = vmul.f32 -1.442695, %v13650_v0  ;;  %v6035_v39 = vadd.f32 %v5971_v36, %v5907_v24  ;;  %v5716_v40 = vmul.f32 %v5691_v25, %v15806_v12  ;;  %v5792_v21 = vrot.slane %v5377_v53, 1 }
 0x473   :  { %v4888_v44 = vpop.f32.mrb[187].mxu0  ;;  %v13667_v59 = vpop.f32.mrb[250].mxu1  ;;  %15807 = vst [vmem:[#allocation161_spill] sm:$0xff] %v13676_v38  ;;  %v13689_v50 = vadd.f32 %v13594_v46, %v13531_v4  ;;  %v7272_v11 = vmul.f32 -1.442695, %v13676_v38  ;;  %v5589_v42 = vrot.slane %v13662_v10, 7  ;;  %v13721_v10 = vadd.f32 %v13594_v46, %v13547_v28 }
 0x474   :  { %v5387_v9 = vpop.f32.mrb[251].mxu1  ;;  %v13670_v32 = vadd.f32 %v13594_v46, %v6035_v39  ;;  %8689 = vpow2.f32 %v7279_v15  ;;  %v5972_v16 = vadd.f32 %v5716_v40, %v4882_v34  ;;  %v13695_v13 = vsel %vm1685_vm1, %v5792_v21, %v5793_v29 }
 0x475   :  { %15809 = vst [vmem:[#allocation164_spill] sm:$0xff] %v13689_v50  ;;  %v13699_v7 = vsel %vm1685_vm1, %v5791_v31, %v5792_v21  ;;  %v5795_v24 = vrot.slane %v13667_v59, 1  ;;  %v7273_v31 = vmul.f32 -1.442695, %v13689_v50  ;;  %v5690_v12 = vsel %vm1172_vm0, %v5588_v49, %v5589_v42  ;;  %15810 = vst [vmem:[#allocation165_spill] sm:$0xff] %v13721_v10  ;;  %v15811_v59 = vld [vmem:[#allocation29_spill] sm:$0xff] }
 0x476   :  { %v8682_v22 = vpop.eup %8681  ;;  %v13680_v3 = vpop.f32.mrb[188].mxu0  ;;  %v7280_v17 = vmul.f32 -1.442695, %v13670_v32  ;;  %v6036_v48 = vadd.f32 %v5972_v16, %v5908_v20  ;;  %v5794_v40 = vrot.slane %v5387_v9, 1  ;;  %v5717_v5 = vmul.f32 %v5690_v12, %v15811_v59 }
 0x477   :  { %v6359_v19 = vadd.f32 1.0, %v8682_v22  ;;  %v13683_v18 = vpop.f32.mrb[189].mxu0  ;;  %v13685_v62 = vpop.f32.mrb[252].mxu1  ;;  %v5590_v9 = vrot.slane %v13680_v3, 7 }
 0x478   :  { %v13691_v61 = vpop.f32.mrb[253].mxu1  ;;  %v8684_v14 = vpop.eup %8683  ;;  %v13705_v53 = vadd.f32 %v13594_v46, %v6036_v48  ;;  %v13732_v49 = vsel %vm1685_vm1, %v5793_v29, %v5794_v40 }
 0x479   :  { %8691 = vrcp.f32 %v6359_v19  ;;  %v6352_v22 = vadd.f32 1.0, %v8684_v14  ;;  %v15812_v14 = vld [vmem:[#allocation5_spill] sm:$0xff]  ;;  %v5689_v12 = vsel %vm1172_vm0, %v5589_v42, %v5590_v9 }
 0x47a   :  { %v8686_v34 = vpop.eup %8685  ;;  %8693 = vpow2.f32 %v7280_v17  ;;  %v13702_v2 = vpop.f32.mrb[190].mxu0  ;;  %v7281_v25 = vmul.f32 -1.442695, %v13705_v53  ;;  %v13728_v17 = vsel %vm1685_vm1, %v5794_v40, %v5795_v24  ;;  %v13741_v48 = vmul.f32 %v13475_v56, %v15812_v14 }
 0x47b   :  { %v6360_v4 = vadd.f32 1.0, %v8686_v34  ;;  %v13709_v36 = vpop.f32.mrb[191].mxu0  ;;  %v13711_v15 = vpop.f32.mrb[254].mxu1  ;;  %v13745_v34 = vadd.f32 %v13594_v46, %v13563_v8  ;;  %v15186_v40 = vrot.slane %v13685_v62, 1  ;;  %v7274_v56 = vmul.f32 -1.442695, %v13721_v10 }
 0x47c   :  { %v13714_v39 = vpop.f32.mrb[255].mxu1  ;;  %v8688_v19 = vpop.eup %8687  ;;  %15813 = vst [vmem:[#allocation141_spill] sm:$0xff] %v13741_v48  ;;  %v15817_v8 = vld [vmem:[#allocation31_spill] sm:$0xff]  ;;  %v15190_v42 = vrot.slane %v13702_v2, 7  ;;  %v5799_v50 = vrot.slane %v13711_v15, 1 }
 0x47d   :  { %8695 = vrcp.f32 %v6360_v4  ;;  %15814 = vst [vmem:[#allocation151_spill] sm:$0xff] %v13745_v34  ;;  %v5718_v59 = vmul.f32 %v5689_v12, %v15817_v8  ;;  %v13768_v6 = vadd.f32 1.0, %v8688_v19  ;;  %v15819_v8 = vld [vmem:[#allocation30_spill] sm:$0xff] }
 0x47e   :  { %8697 = vpow2.f32 %v7272_v11  ;;  %v13724_v20 = vpop.f32.mrb[192].mxu0  ;;  %v8690_v21 = vpop.eup %8689  ;;  %v15815_v11 = vld [vmem:[#allocation28_spill] sm:$0xff]  ;;  %v5910_v57 = vmul.f32 %v13568_v60, %v15819_v8  ;;  %v5688_v8 = vsel %vm1172_vm0, %v5590_v9, %v15190_v42  ;;  %v15822_v9 = vld [vmem:[#allocation33_spill] sm:$0xff] }
 0x47f   :  { %8699 = vpow2.f32 %v7281_v25  ;;  %v13735_v16 = vpop.f32.mrb[193].mxu0  ;;  %v13737_v28 = vpop.f32.mrb[0].mxu1  ;;  %v5909_v29 = vmul.f32 %v13572_v27, %v15815_v11  ;;  %v6361_v3 = vadd.f32 1.0, %v8690_v21  ;;  %v5973_v25 = vadd.f32 %v5717_v5, %v4888_v44  ;;  %15818 = vst [vmem:[#allocation162_spill] sm:$0xff] %v13768_v6 }
 0x480   :  { %8701 = vpow2.f32 %v7273_v31  ;;  %v13749_v4 = vpop.f32.mrb[1].mxu1  ;;  %v13757_v31 = vadd.f32 %v13594_v46, %v13579_v1  ;;  %v5796_v44 = vrot.slane %v13691_v61, 1  ;;  %v7275_v1 = vmul.f32 -1.442695, %v13745_v34  ;;  %v15821_v34 = vld [vmem:[#allocation32_spill] sm:$0xff] }
 0x481   :  { %8703 = vrcp.f32 %v6352_v22  ;;  %v6037_v21 = vadd.f32 %v5973_v25, %v5909_v29  ;;  %v5974_v25 = vadd.f32 %v5718_v59, %v13683_v18  ;;  %v5719_v42 = vmul.f32 %v5688_v8, %v15822_v9 }
 0x482   :  { %15816 = vst [vmem:[#allocation62_spill] sm:$0xff] %v13757_v31  ;;  %v13760_v14 = vpop.f32.mrb[194].mxu0  ;;  %8705 = vrcp.f32 %v6361_v3  ;;  %v13784_v19 = vsel %vm1685_vm1, %v5796_v44, %v15186_v40  ;;  %v13789_v60 = vsel %vm1685_vm1, %v5795_v24, %v5796_v44 }
 0x483   :  { %v8692_v27 = vpop.eup %8691  ;;  %v13764_v5 = vpop.f32.mrb[195].mxu0  ;;  %v13777_v61 = vadd.f32 %v13594_v46, %v6037_v21  ;;  %8707 = vpow2.f32 %v7274_v56  ;;  %v6038_v59 = vadd.f32 %v5974_v25, %v5910_v57 }
 0x484   :  { %v13766_v22 = vpop.f32.mrb[2].mxu1  ;;  %v8694_v11 = vpop.eup %8693  ;;  %v6551_v12 = vmul.f32 %v8692_v27, %v13616_v58  ;;  %v7276_v58 = vmul.f32 -1.442695, %v13757_v31 }
 0x485   :  { %v13774_v3 = vpop.f32.mrb[3].mxu1  ;;  %v6362_v29 = vadd.f32 1.0, %v8694_v11  ;;  %v7282_v18 = vmul.f32 -1.442695, %v13777_v61  ;;  %v13810_v25 = vadd.f32 %v13594_v46, %v6038_v59 }
 0x486   :  { %v6655_v27 = vrot.slane %v6551_v12, 4  ;;  %v13791_v11 = vpop.f32.mrb[196].mxu0 }
 0x487   :  { %v8696_v21 = vpop.eup %8695  ;;  %8709 = vrcp.f32 %v6362_v29  ;;  %v13798_v56 = vpop.f32.mrb[197].mxu0  ;;  %v5911_v29 = vmul.f32 %v13588_v54, %v15821_v34  ;;  %v7283_v54 = vmul.f32 -1.442695, %v13810_v25  ;;  %v5975_v34 = vadd.f32 %v5719_v42, %v13709_v36 }
 0x488   :  { %v13800_v40 = vpop.f32.mrb[4].mxu1  ;;  %v13802_v31 = vpop.eup %8697  ;;  %8711 = vpow2.f32 %v7275_v1  ;;  %v6656_v24 = vmax.f32 %v6551_v12, %v6655_v27  ;;  %v6552_v44 = vmul.f32 %v8696_v21, %v13638_v41  ;;  %v5798_v21 = vrot.slane %v13714_v39, 1 }
 0x489   :  { %15820 = vst [vmem:[#allocation86_spill] sm:$0xff] %v13802_v31  ;;  %v13807_v10 = vpop.f32.mrb[5].mxu1  ;;  %v8700_v57 = vpop.eup %8699  ;;  %8713 = vpow2.f32 %v7282_v18  ;;  %v5592_v18 = vrot.slane %v13724_v20, 7  ;;  %v6039_v36 = vadd.f32 %v5975_v34, %v5911_v29  ;;  %v15827_v20 = vrot.slane %v13685_v62, 1  ;;  %v15835_v31 = vld [vmem:[#allocation37_spill] sm:$0xff] }
 0x48a   :  { %v13814_v38 = vpop.eup %8701  ;;  %8715 = vpow2.f32 %v7276_v58  ;;  %v6657_v1 = vrot.slane %v6656_v24, 2  ;;  %v6661_v12 = vrot.slane %v6552_v44, 4  ;;  %v6363_v41 = vadd.f32 1.0, %v8700_v57  ;;  %v13816_v27 = vpop.f32.mrb[198].mxu0  ;;  %v15825_v57 = vld [vmem:[#allocation34_spill] sm:$0xff] }
 0x48b   :  { %15823 = vst [vmem:[#allocation142_spill] sm:$0xff] %v13814_v38  ;;  %v13822_v59 = vpop.f32.mrb[199].mxu0  ;;  %v13824_v15 = vpop.f32.mrb[6].mxu1  ;;  %v5912_v52 = vmul.f32 %v13584_v55, %v15825_v57  ;;  %v13834_v39 = vsel %vm1685_vm1, %v5798_v21, %v5799_v50  ;;  %v13840_v42 = vsel %vm1685_vm1, %v15827_v20, %v5798_v21  ;;  %v15829_v55 = vrot.slane %v13702_v2, 7 }
 0x48c   :  { %v13826_v8 = vpop.eup %8703  ;;  %v6658_v58 = vmax.f32 %v6656_v24, %v6657_v1  ;;  %v6662_v9 = vmax.f32 %v6552_v44, %v6661_v12  ;;  %8717 = vrcp.f32 %v6363_v41  ;;  %v13830_v26 = vpop.f32.mrb[7].mxu1  ;;  %15826 = vst [vmem:[#allocation64_spill] sm:$0xff] %v13834_v39  ;;  %15828 = vst [vmem:[#allocation109_spill] sm:$0xff] %v13840_v42  ;;  %v13850_v41 = vadd.f32 %v13594_v46, %v6039_v36  ;;  %v15855_v39 = vld [vmem:[#allocation44_spill] sm:$0xff] }
 0x48d   :  { %15824 = vst [vmem:[#allocation152_spill] sm:$0xff] %v13826_v8  ;;  %v8706_v6 = vpop.eup %8705  ;;  %8719 = vpow2.f32 %v7283_v54  ;;  %v5687_v12 = vsel %vm1172_vm0, %v15829_v55, %v5592_v18  ;;  %v15830_v54 = vld [vmem:[#allocation35_spill] sm:$0xff]  ;;  %v5801_v34 = vrot.slane %v13737_v28, 1  ;;  %v5800_v21 = vrot.slane %v13749_v4, 1 }
 0x48e   :  { %v6659_v24 = vrot.slane %v6658_v58, 1  ;;  %v6663_v44 = vrot.slane %v6662_v9, 2  ;;  %v6553_v1 = vmul.f32 %v8706_v6, %v13650_v0  ;;  %v13847_v29 = vpop.f32.mrb[200].mxu0  ;;  %v5720_v62 = vmul.f32 %v5687_v12, %v15830_v54  ;;  %v13859_v6 = vpop.eup %8707 }
 0x48f   :  { %v13855_v57 = vpop.f32.mrb[201].mxu0  ;;  %v13857_v20 = vpop.f32.mrb[8].mxu1  ;;  %15831 = vst [vmem:[#allocation157_spill] sm:$0xff] %v13859_v6  ;;  %v15196_v8 = vrot.slane %v13760_v14, 7  ;;  %v7284_v12 = vmul.f32 -1.442695, %v13850_v41  ;;  %v13868_v4 = vsel %vm1685_vm1, %v5800_v21, %v5801_v34  ;;  %v13872_v54 = vsel %vm1685_vm1, %v5799_v50, %v5800_v21 }
 0x490   :  { %v6660_v0 = vmax.f32 %v6658_v58, %v6659_v24  ;;  %v6664_v2 = vmax.f32 %v6662_v9, %v6663_v44  ;;  %v6667_v55 = vrot.slane %v6553_v1, 4  ;;  %v13862_v38 = vpop.f32.mrb[9].mxu1  ;;  %v5976_v28 = vadd.f32 %v5720_v62, %v13735_v16  ;;  %15832 = vst [vmem:[#allocation163_spill] sm:$0xff] %v13868_v4  ;;  %15833 = vst [vmem:[#allocation168_spill] sm:$0xff] %v13872_v54  ;;  %v15836_v50 = vld [vmem:[#allocation36_spill] sm:$0xff] }
 0x491   :  { %v8710_v36 = vpop.eup %8709  ;;  %v5686_v6 = vsel %vm1172_vm0, %v5592_v18, %v15196_v8  ;;  %8721 = vpow2.f32 %v7284_v12  ;;  %v5913_v21 = vmul.f32 %v13612_v43, %v15836_v50  ;;  %v5803_v43 = vrot.slane %v13766_v22, 1 }
 0x492   :  { %v13874_v58 = vpop.eup %8711  ;;  %v6665_v9 = vrot.slane %v6664_v2, 1  ;;  %v6668_v24 = vmax.f32 %v6553_v1, %v6667_v55  ;;  %v6554_v44 = vmul.f32 %v8710_v36, %v13670_v32  ;;  %v13881_v16 = vpop.f32.mrb[202].mxu0  ;;  %v6040_v48 = vadd.f32 %v5976_v28, %v5912_v52 }
 0x493   :  { %15834 = vst [vmem:[#allocation118_spill] sm:$0xff] %v13874_v58  ;;  %v8714_v62 = vpop.eup %8713  ;;  %v5721_v63 = vmul.f32 %v5686_v6, %v15835_v31  ;;  %v13886_v58 = vpop.f32.mrb[203].mxu0  ;;  %v5802_v6 = vrot.slane %v13774_v3, 1 }
 0x494   :  { %v13888_v1 = vpop.f32.mrb[10].mxu1  ;;  %v13890_v32 = vpop.eup %8715  ;;  %v6666_v55 = vmax.f32 %v6664_v2, %v6665_v9  ;;  %v6669_v36 = vrot.slane %v6668_v24, 2  ;;  %v6673_v33 = vrot.slane %v6554_v44, 4  ;;  %v6364_v18 = vadd.f32 1.0, %v8714_v62 }
 0x495   :  { %15837 = vst [vmem:[#allocation121_spill] sm:$0xff] %v13890_v32  ;;  %v13892_v8 = vpop.f32.mrb[11].mxu1  ;;  %v13895_v52 = vadd.f32 %v13594_v46, %v6040_v48  ;;  %v5977_v31 = vadd.f32 %v5721_v63, %v13764_v5  ;;  %v13907_v63 = vsel %vm1685_vm1, %v5802_v6, %v5803_v43 }
 0x496   :  { %v8718_v12 = vpop.eup %8717  ;;  %v7069_v28 = vsel %vm7055_vm2, %v6666_v55, %v6660_v0  ;;  %v6670_v50 = vmax.f32 %v6668_v24, %v6669_v36  ;;  %v6674_v2 = vmax.f32 %v6554_v44, %v6673_v33  ;;  %8723 = vrcp.f32 %v6364_v18  ;;  %v13901_v9 = vpop.f32.mrb[204].mxu0  ;;  %15838 = vst [vmem:[#allocation123_spill] sm:$0xff] %v13907_v63 }
 0x497   :  { %v8720_v62 = vpop.eup %8719  ;;  %v6555_v32 = vmul.f32 %v8718_v12, %v13705_v53  ;;  %v7285_v48 = vmul.f32 -1.442695, %v13895_v52  ;;  %v6041_v4 = vadd.f32 %v5977_v31, %v5913_v21  ;;  %v13909_v5 = vpop.f32.mrb[205].mxu0  ;;  %v13915_v24 = vsel %vm1685_vm1, %v5801_v34, %v5802_v6  ;;  %v15840_v31 = vld [vmem:[#allocation38_spill] sm:$0xff] }
 0x498   :  { %v13911_v22 = vpop.f32.mrb[12].mxu1  ;;  %v6671_v3 = vrot.slane %v6670_v50, 1  ;;  %v6675_v0 = vrot.slane %v6674_v2, 2  ;;  %v6365_v33 = vadd.f32 1.0, %v8720_v62  ;;  %15839 = vst [vmem:[#allocation136_spill] sm:$0xff] %v13915_v24  ;;  %v5594_v55 = vrot.slane %v13791_v11, 7 }
 0x499   :  { %v13917_v44 = vpop.f32.mrb[13].mxu1  ;;  %v6679_v53 = vrot.slane %v6555_v32, 4  ;;  %8725 = vpow2.f32 %v7285_v48  ;;  %v13920_v21 = vadd.f32 %v13594_v46, %v6041_v4  ;;  %v5914_v12 = vmul.f32 %v13608_v45, %v15840_v31  ;;  %v15842_v45 = vld [vmem:[#allocation39_spill] sm:$0xff]  ;;  %v15843_v31 = vld [vmem:[#allocation40_spill] sm:$0xff] }
 0x49a   :  { %v6672_v36 = vmax.f32 %v6670_v50, %v6671_v3  ;;  %v6676_v18 = vmax.f32 %v6674_v2, %v6675_v0  ;;  %8727 = vrcp.f32 %v6365_v33  ;;  %v13925_v62 = vpop.f32.mrb[206].mxu0  ;;  %v15841_v63 = vrot.slane %v13760_v14, 7 }
 0x49b   :  { %v6680_v34 = vmax.f32 %v6555_v32, %v6679_v53  ;;  %v7286_v6 = vmul.f32 -1.442695, %v13920_v21  ;;  %v5805_v48 = vrot.slane %v13800_v40, 1  ;;  %v13933_v11 = vpop.f32.mrb[207].mxu0  ;;  %v13935_v50 = vpop.f32.mrb[14].mxu1  ;;  %v5804_v32 = vrot.slane %v13807_v10, 1 }
 0x49c   :  { %v5685_v4 = vsel %vm1172_vm0, %v15841_v63, %v5594_v55  ;;  %v7070_v2 = vsel %vm7057_vm3, %v6672_v36, %v7069_v28  ;;  %v6677_v3 = vrot.slane %v6676_v18, 1  ;;  %v13940_v33 = vpop.f32.mrb[15].mxu1  ;;  %v8722_v53 = vpop.eup %8721  ;;  %v5595_v63 = vrot.slane %v13816_v27, 7 }
 0x49d   :  { %v5722_v0 = vmul.f32 %v5685_v4, %v15842_v45  ;;  %v6681_v14 = vrot.slane %v6680_v34, 2  ;;  %8729 = vpow2.f32 %v7286_v6  ;;  %v5915_v40 = vmul.f32 %v13631_v30, %v15843_v31 }
 0x49e   :  { %v6678_v24 = vmax.f32 %v6676_v18, %v6677_v3  ;;  %v6366_v47 = vadd.f32 1.0, %v8722_v53  ;;  %v13948_v28 = vsel %vm1685_vm1, %v5804_v32, %v5805_v48  ;;  %v13950_v36 = vpop.f32.mrb[208].mxu0  ;;  %v13954_v4 = vsel %vm1685_vm1, %v5803_v43, %v5804_v32 }
 0x49f   :  { %v5978_v54 = vadd.f32 %v5722_v0, %v13798_v56  ;;  %15844 = vst [vmem:[#allocation126_spill] sm:$0xff] %v13948_v28  ;;  %v6682_v10 = vmax.f32 %v6680_v34, %v6681_v14  ;;  %15845 = vst [vmem:[#allocation73_spill] sm:$0xff] %v13954_v4  ;;  %v5684_v27 = vsel %vm1172_vm0, %v5594_v55, %v5595_v63  ;;  %v5807_v30 = vrot.slane %v13824_v15, 1  ;;  %v13959_v18 = vpop.f32.mrb[209].mxu0  ;;  %v13961_v6 = vpop.f32.mrb[16].mxu1  ;;  %v15846_v0 = vld [vmem:[#allocation41_spill] sm:$0xff] }
 0x4a0   :  { %v8724_v56 = vpop.eup %8723  ;;  %v7071_v3 = vsel %vm7059_vm4, %v6678_v24, %v7070_v2  ;;  %8731 = vrcp.f32 %v6366_v47  ;;  %v5723_v34 = vmul.f32 %v5684_v27, %v15846_v0  ;;  %v13965_v53 = vpop.f32.mrb[17].mxu1  ;;  %v5806_v55 = vrot.slane %v13830_v26, 1  ;;  %v15847_v28 = vld [vmem:[#allocation42_spill] sm:$0xff] }
 0x4a1   :  { %v6042_v45 = vadd.f32 %v5978_v54, %v5914_v12  ;;  %v6683_v43 = vrot.slane %v6682_v10, 1  ;;  %v6556_v32 = vmul.f32 %v8724_v56, %v13777_v61  ;;  %v5596_v15 = vrot.slane %v13847_v29, 7 }
 0x4a2   :  { %v5979_v31 = vadd.f32 %v5723_v34, %v13822_v59  ;;  %v5916_v47 = vmul.f32 %v13627_v35, %v15847_v28  ;;  %v13977_v24 = vpop.f32.mrb[210].mxu0  ;;  %v13981_v26 = vsel %vm1685_vm1, %v5806_v55, %v5807_v30  ;;  %v13985_v61 = vsel %vm1685_vm1, %v5805_v48, %v5806_v55  ;;  %v15850_v55 = vld [vmem:[#allocation43_spill] sm:$0xff] }
 0x4a3   :  { %v13971_v14 = vadd.f32 %v13594_v46, %v6042_v45  ;;  %v8726_v12 = vpop.eup %8725  ;;  %v6684_v2 = vmax.f32 %v6682_v10, %v6683_v43  ;;  %v6685_v27 = vrot.slane %v6556_v32, 4  ;;  %15848 = vst [vmem:[#allocation167_spill] sm:$0xff] %v13981_v26  ;;  %15849 = vst [vmem:[#allocation78_spill] sm:$0xff] %v13985_v61  ;;  %v13987_v29 = vpop.f32.mrb[211].mxu0  ;;  %v5683_v10 = vsel %vm1172_vm0, %v5595_v63, %v5596_v15 }
 0x4a4   :  { %v13989_v59 = vpop.f32.mrb[18].mxu1  ;;  %v8728_v35 = vpop.eup %8727  ;;  %v6367_v28 = vadd.f32 1.0, %v8726_v12  ;;  %v6043_v45 = vadd.f32 %v5979_v31, %v5915_v40  ;;  %v5724_v54 = vmul.f32 %v5683_v10, %v15850_v55  ;;  %v5808_v12 = vrot.slane %v13862_v38, 1  ;;  %v15854_v55 = vld [vmem:[#allocation45_spill] sm:$0xff] }
 0x4a5   :  { %v7287_v56 = vmul.f32 -1.442695, %v13971_v14  ;;  %v13994_v0 = vpop.f32.mrb[19].mxu1  ;;  %v7072_v34 = vsel %vm7061_vm5, %v6684_v2, %v7071_v3  ;;  %v6686_v43 = vmax.f32 %v6556_v32, %v6685_v27  ;;  %v6557_v48 = vmul.f32 %v8728_v35, %v13810_v25 }
 0x4a6   :  { %8733 = vrcp.f32 %v6367_v28  ;;  %v14000_v26 = vadd.f32 %v13594_v46, %v6043_v45  ;;  %v5597_v40 = vrot.slane %v13881_v16, 7  ;;  %v14004_v31 = vpop.f32.mrb[212].mxu0  ;;  %v5980_v3 = vadd.f32 %v5724_v54, %v13855_v57 }
 0x4a7   :  { %v8730_v63 = vpop.eup %8729  ;;  %v6687_v61 = vrot.slane %v6686_v43, 2  ;;  %v6691_v4 = vrot.slane %v6557_v48, 4  ;;  %8735 = vpow2.f32 %v7287_v56  ;;  %v14007_v32 = vpop.f32.mrb[213].mxu0  ;;  %v15851_v38 = vrot.slane %v13857_v20, 1 }
 0x4a8   :  { %v14009_v25 = vpop.f32.mrb[20].mxu1  ;;  %v6368_v2 = vadd.f32 1.0, %v8730_v63  ;;  %v7288_v27 = vmul.f32 -1.442695, %v14000_v26  ;;  %v14020_v35 = vsel %vm1685_vm1, %v5807_v30, %v5808_v12  ;;  %v6044_v56 = vadd.f32 %v5980_v3, %v5916_v47 }
 0x4a9   :  { %v14016_v16 = vsel %vm1685_vm1, %v5808_v12, %v15851_v38  ;;  %15853 = vst [vmem:[#allocation85_spill] sm:$0xff] %v14020_v35  ;;  %v14022_v28 = vpop.f32.mrb[21].mxu1  ;;  %v6688_v57 = vmax.f32 %v6686_v43, %v6687_v61  ;;  %v6692_v54 = vmax.f32 %v6557_v48, %v6691_v4  ;;  %v5682_v45 = vsel %vm1172_vm0, %v5596_v15, %v5597_v40 }
 0x4aa   :  { %15852 = vst [vmem:[#allocation79_spill] sm:$0xff] %v14016_v16  ;;  %v8732_v10 = vpop.eup %8731  ;;  %8737 = vrcp.f32 %v6368_v2  ;;  %v5725_v63 = vmul.f32 %v5682_v45, %v15854_v55  ;;  %v5917_v38 = vmul.f32 %v13660_v23, %v15855_v39  ;;  %v5811_v16 = vrot.slane %v13888_v1, 1  ;;  %v14030_v42 = vpop.f32.mrb[214].mxu0 }
 0x4ab   :  { %v6689_v30 = vrot.slane %v6688_v57, 1  ;;  %v6693_v12 = vrot.slane %v6692_v54, 2  ;;  %v6558_v61 = vmul.f32 %v8732_v10, %v13850_v41  ;;  %8739 = vpow2.f32 %v7288_v27  ;;  %v14033_v4 = vpop.f32.mrb[215].mxu0  ;;  %v14035_v47 = vpop.f32.mrb[22].mxu1  ;;  %v15856_v41 = vld [vmem:[#allocation46_spill] sm:$0xff] }
 0x4ac   :  { %v14038_v15 = vadd.f32 %v13594_v46, %v6044_v56  ;;  %v5981_v43 = vadd.f32 %v5725_v63, %v13886_v58  ;;  %v5810_v23 = vrot.slane %v13892_v8, 1  ;;  %v5598_v39 = vrot.slane %v13901_v9, 7  ;;  %v14043_v1 = vpop.f32.mrb[23].mxu1 }
 0x4ad   :  { %v6690_v48 = vmax.f32 %v6688_v57, %v6689_v30  ;;  %v6694_v3 = vmax.f32 %v6692_v54, %v6693_v12  ;;  %v6697_v2 = vrot.slane %v6558_v61, 4  ;;  %v5918_v27 = vmul.f32 %v13656_v51, %v15856_v41  ;;  %v15860_v12 = vld [vmem:[#allocation47_spill] sm:$0xff] }
 0x4ae   :  { %v7289_v45 = vmul.f32 -1.442695, %v14038_v15  ;;  %v6045_v10 = vadd.f32 %v5981_v43, %v5917_v38  ;;  %v14050_v56 = vsel %vm1685_vm1, %v5810_v23, %v5811_v16  ;;  %v15858_v8 = vrot.slane %v13857_v20, 1  ;;  %v14058_v9 = vpop.f32.mrb[216].mxu0 }
 0x4af   :  { %15857 = vst [vmem:[#allocation83_spill] sm:$0xff] %v14050_v56  ;;  %v7073_v57 = vsel %vm7063_vm6, %v6690_v48, %v7072_v34  ;;  %v6695_v54 = vrot.slane %v6694_v3, 1  ;;  %v6698_v51 = vmax.f32 %v6558_v61, %v6697_v2  ;;  %v5681_v55 = vsel %vm1172_vm0, %v5597_v40, %v5598_v39  ;;  %v14063_v63 = vpop.f32.mrb[217].mxu0  ;;  %v14065_v38 = vpop.f32.mrb[24].mxu1 }
 0x4b0   :  { %v14056_v58 = vsel %vm1685_vm1, %v15858_v8, %v5810_v23  ;;  %v8734_v30 = vpop.eup %8733  ;;  %8741 = vpow2.f32 %v7289_v45  ;;  %v14068_v20 = vadd.f32 %v13594_v46, %v6045_v10  ;;  %v5726_v43 = vmul.f32 %v5681_v55, %v15860_v12  ;;  %v14072_v41 = vpop.f32.mrb[25].mxu1 }
 0x4b1   :  { %15859 = vst [vmem:[#allocation89_spill] sm:$0xff] %v14056_v58  ;;  %v5813_v23 = vrot.slane %v13911_v22, 1  ;;  %v8736_v34 = vpop.eup %8735  ;;  %v6696_v61 = vmax.f32 %v6694_v3, %v6695_v54  ;;  %v6699_v48 = vrot.slane %v6698_v51, 2  ;;  %v6559_v40 = vmul.f32 %v8734_v30, %v13895_v52 }
 0x4b2   :  { %v5812_v2 = vrot.slane %v13917_v44, 1  ;;  %v6369_v8 = vadd.f32 1.0, %v8736_v34  ;;  %v7290_v56 = vmul.f32 -1.442695, %v14068_v20  ;;  %v5982_v45 = vadd.f32 %v5726_v43, %v13909_v5  ;;  %v14079_v58 = vpop.f32.mrb[218].mxu0 }
 0x4b3   :  { %v5599_v10 = vrot.slane %v13925_v62, 7  ;;  %v7074_v22 = vsel %vm7065_vm7, %v6696_v61, %v7073_v57  ;;  %v6700_v55 = vmax.f32 %v6698_v51, %v6699_v48  ;;  %v6703_v12 = vrot.slane %v6559_v40, 4  ;;  %v14086_v52 = vpop.f32.mrb[219].mxu0  ;;  %v14088_v44 = vpop.f32.mrb[26].mxu1 }
 0x4b4   :  { %v14084_v3 = vsel %vm1685_vm1, %v5812_v2, %v5813_v23  ;;  %15862 = vst [vmem:[#allocation97_spill] sm:$0xff] %v14086_v52  ;;  %v8738_v54 = vpop.eup %8737  ;;  %8743 = vrcp.f32 %v6369_v8  ;;  %v6046_v30 = vadd.f32 %v5982_v45, %v5918_v27  ;;  %v14092_v5 = vsel %vm1685_vm1, %v5811_v16, %v5812_v2  ;;  %v14096_v57 = vpop.f32.mrb[27].mxu1  ;;  %v15864_v27 = vld [vmem:[#allocation49_spill] sm:$0xff]  ;;  %v15865_v45 = vld [vmem:[#allocation48_spill] sm:$0xff] }
 0x4b5   :  { %15861 = vst [vmem:[#allocation88_spill] sm:$0xff] %v14084_v3  ;;  %15863 = vst [vmem:[#allocation100_spill] sm:$0xff] %v14092_v5  ;;  %v5680_v62 = vsel %vm1172_vm0, %v5598_v39, %v5599_v10  ;;  %v8740_v51 = vpop.eup %8739  ;;  %v6701_v43 = vrot.slane %v6700_v55, 1  ;;  %v6704_v34 = vmax.f32 %v6559_v40, %v6703_v12  ;;  %v6560_v61 = vmul.f32 %v8738_v54, %v13920_v21 }
 0x4b6   :  { %8745 = vpow2.f32 %v7290_v56  ;;  %v6370_v48 = vadd.f32 1.0, %v8740_v51  ;;  %v14100_v3 = vadd.f32 %v13594_v46, %v6046_v30  ;;  %v5727_v8 = vmul.f32 %v5680_v62, %v15864_v27  ;;  %v14105_v2 = vpop.f32.mrb[220].mxu0 }
 0x4b7   :  { %v5919_v16 = vmul.f32 %v13699_v7, %v15865_v45  ;;  %v6702_v39 = vmax.f32 %v6700_v55, %v6701_v43  ;;  %v6705_v5 = vrot.slane %v6704_v34, 2  ;;  %v6709_v35 = vrot.slane %v6560_v61, 4  ;;  %v14108_v40 = vpop.f32.mrb[221].mxu0  ;;  %v14110_v21 = vpop.f32.mrb[28].mxu1 }
 0x4b8   :  { %v5815_v52 = vrot.slane %v13935_v50, 1  ;;  %8747 = vrcp.f32 %v6370_v48  ;;  %v7291_v56 = vmul.f32 -1.442695, %v14100_v3  ;;  %v5983_v12 = vadd.f32 %v5727_v8, %v13933_v11  ;;  %v14115_v30 = vpop.f32.mrb[29].mxu1  ;;  %v15867_v8 = vld [vmem:[#allocation51_spill] sm:$0xff] }
 0x4b9   :  { %v5814_v54 = vrot.slane %v13940_v33, 1  ;;  %v7075_v7 = vsel %vm7067_vm8, %v6702_v39, %v7074_v22  ;;  %v6706_v55 = vmax.f32 %v6704_v34, %v6705_v5  ;;  %v6710_v62 = vmax.f32 %v6560_v61, %v6709_v35 }
 0x4ba   :  { %v5600_v51 = vrot.slane %v13950_v36, 7  ;;  %v8742_v50 = vpop.eup %8741  ;;  %7127 = vst [vmem:[%s14960_s9 + $0x8] sm:$0xff] %v7075_v7  ;;  %8749 = vpow2.f32 %v7291_v56  ;;  %v6047_v43 = vadd.f32 %v5983_v12, %v5919_v16  ;;  %v14130_v22 = vpop.f32.mrb[222].mxu0  ;;  %v15868_v16 = vld [vmem:[#allocation50_spill] sm:$0xff]  ;;  %v5817_v39 = vrot.slane %v13961_v6, 1 }
 0x4bb   :  { %v14124_v11 = vsel %vm1685_vm1, %v5814_v54, %v5815_v52  ;;  %v14128_v33 = vsel %vm1685_vm1, %v5813_v23, %v5814_v54  ;;  %v6707_v35 = vrot.slane %v6706_v55, 1  ;;  %v6711_v5 = vrot.slane %v6710_v62, 2  ;;  %v14134_v61 = vpop.f32.mrb[223].mxu0  ;;  %v14136_v48 = vpop.f32.mrb[30].mxu1 }
 0x4bc   :  { %15866 = vst [vmem:[#allocation102_spill] sm:$0xff] %v14124_v11  ;;  %v6371_v36 = vadd.f32 1.0, %v8742_v50  ;;  %v5679_v34 = vsel %vm1172_vm0, %v5599_v10, %v5600_v51  ;;  %v14139_v27 = vadd.f32 %v13594_v46, %v6047_v43  ;;  %v5920_v23 = vmul.f32 %v13695_v13, %v15868_v16  ;;  %v14145_v56 = vpop.f32.mrb[31].mxu1 }
 0x4bd   :  { %v5728_v45 = vmul.f32 %v5679_v34, %v15867_v8  ;;  %v6708_v12 = vmax.f32 %v6706_v55, %v6707_v35  ;;  %v6712_v54 = vmax.f32 %v6710_v62, %v6711_v5  ;;  %v5816_v10 = vrot.slane %v13965_v53, 1  ;;  %v15869_v34 = vld [vmem:[#allocation52_spill] sm:$0xff] }
 0x4be   :  { %8751 = vrcp.f32 %v6371_v36  ;;  %v8744_v7 = vpop.eup %8743  ;;  %v7292_v50 = vmul.f32 -1.442695, %v14139_v27  ;;  %v5601_v11 = vrot.slane %v13977_v24, 7  ;;  %v5921_v8 = vmul.f32 %v13732_v49, %v15869_v34  ;;  %v14153_v13 = vpop.f32.mrb[224].mxu0 }
 0x4bf   :  { %v5984_v43 = vadd.f32 %v5728_v45, %v13959_v18  ;;  %v6713_v16 = vrot.slane %v6712_v54, 1  ;;  %v6561_v55 = vmul.f32 %v8744_v7, %v13971_v14  ;;  %v14158_v62 = vsel %vm1685_vm1, %v5816_v10, %v5817_v39  ;;  %v14164_v18 = vpop.f32.mrb[225].mxu0  ;;  %v15871_v45 = vld [vmem:[#allocation53_spill] sm:$0xff] }
 0x4c0   :  { %v8746_v6 = vpop.eup %8745  ;;  %15870 = vst [vmem:[#allocation113_spill] sm:$0xff] %v14158_v62  ;;  %v14162_v53 = vsel %vm1685_vm1, %v5815_v52, %v5816_v10  ;;  %8753 = vpow2.f32 %v7292_v50  ;;  %v5678_v49 = vsel %vm1172_vm0, %v5600_v51, %v5601_v11  ;;  %v5819_v7 = vrot.slane %v13989_v59, 1 }
 0x4c1   :  { %v6372_v24 = vadd.f32 1.0, %v8746_v6  ;;  %v6048_v35 = vadd.f32 %v5984_v43, %v5920_v23  ;;  %v6714_v5 = vmax.f32 %v6712_v54, %v6713_v16  ;;  %v6715_v36 = vrot.slane %v6561_v55, 4 }
 0x4c2   :  { %v5729_v14 = vmul.f32 %v5678_v49, %v15871_v45  ;;  %v8748_v34 = vpop.eup %8747  ;;  %v5818_v52 = vrot.slane %v13994_v0, 1  ;;  %v5602_v10 = vrot.slane %v14004_v31, 7  ;;  %v14175_v50 = vpop.f32.mrb[226].mxu0  ;;  %v5821_v45 = vrot.slane %v14009_v25, 1 }
 0x4c3   :  { %8755 = vrcp.f32 %v6372_v24  ;;  %v14171_v62 = vadd.f32 %v13594_v46, %v6048_v35  ;;  %v7076_v23 = vsel %vm7055_vm2, %v6714_v5, %v6708_v12  ;;  %v6716_v51 = vmax.f32 %v6561_v55, %v6715_v36  ;;  %v14180_v6 = vpop.f32.mrb[227].mxu0  ;;  %v15873_v35 = vld [vmem:[#allocation55_spill] sm:$0xff]  ;;  %v15874_v5 = vld [vmem:[#allocation54_spill] sm:$0xff] }
 0x4c4   :  { %v6562_v54 = vmul.f32 %v8748_v34, %v14000_v26  ;;  %v5985_v43 = vadd.f32 %v5729_v14, %v13987_v29  ;;  %v8750_v59 = vpop.eup %8749  ;;  %v14185_v24 = vsel %vm1685_vm1, %v5818_v52, %v5819_v7  ;;  %v14189_v0 = vsel %vm1685_vm1, %v5817_v39, %v5818_v52 }
 0x4c5   :  { %v7293_v16 = vmul.f32 -1.442695, %v14171_v62  ;;  %15872 = vst [vmem:[#allocation105_spill] sm:$0xff] %v14185_v24  ;;  %v5677_v31 = vsel %vm1172_vm0, %v5601_v11, %v5602_v10  ;;  %v6717_v12 = vrot.slane %v6716_v51, 2  ;;  %v6373_v55 = vadd.f32 1.0, %v8750_v59 }
 0x4c6   :  { %v6721_v26 = vrot.slane %v6562_v54, 4  ;;  %v6049_v29 = vadd.f32 %v5985_v43, %v5921_v8  ;;  %v5730_v49 = vmul.f32 %v5677_v31, %v15873_v35  ;;  %v5922_v36 = vmul.f32 %v13728_v17, %v15874_v5  ;;  %v14197_v14 = vpop.f32.mrb[228].mxu0  ;;  %v14226_v5 = vld [vmem:[%s14959_s8] ss:$0 sm:$0xff] }
 0x4c7   :  { %8757 = vpow2.f32 %v7293_v16  ;;  %v6718_v39 = vmax.f32 %v6716_v51, %v6717_v12  ;;  %v14202_v24 = vpop.f32.mrb[229].mxu0  ;;  %v5820_v59 = vrot.slane %v14022_v28, 1  ;;  %v5603_v17 = vrot.slane %v14030_v42, 7  ;;  %v15875_v51 = vld [vmem:[#allocation56_spill] sm:$0xff] }
 0x4c8   :  { %v8752_v34 = vpop.eup %8751  ;;  %v6722_v52 = vmax.f32 %v6562_v54, %v6721_v26  ;;  %8759 = vrcp.f32 %v6373_v55  ;;  %v14200_v11 = vadd.f32 %v13594_v46, %v6049_v29  ;;  %v5986_v43 = vadd.f32 %v5730_v49, %v14007_v32 }
 0x4c9   :  { %v6563_v8 = vmul.f32 %v8752_v34, %v14038_v15  ;;  %v6719_v25 = vrot.slane %v6718_v39, 1  ;;  %v5923_v54 = vmul.f32 %v13789_v60, %v15875_v51  ;;  %v14213_v55 = vsel %vm1685_vm1, %v5820_v59, %v5821_v45 }
 0x4ca   :  { %v6723_v16 = vrot.slane %v6722_v52, 2  ;;  %v7294_v31 = vmul.f32 -1.442695, %v14200_v11  ;;  %v8754_v12 = vpop.eup %8753  ;;  %v6050_v26 = vadd.f32 %v5986_v43, %v5922_v36  ;;  %v14217_v32 = vsel %vm1685_vm1, %v5819_v7, %v5820_v59  ;;  %v14219_v28 = vpop.f32.mrb[230].mxu0 }
 0x4cb   :  { %v6727_v46 = vrot.slane %v6563_v8, 4  ;;  %v6720_v42 = vmax.f32 %v6718_v39, %v6719_v25  ;;  %v6374_v29 = vadd.f32 1.0, %v8754_v12  ;;  %v14221_v35 = vpop.f32.mrb[231].mxu0  ;;  %v5676_v7 = vsel %vm1172_vm0, %v5602_v10, %v5603_v17  ;;  %v15876_v25 = vld [vmem:[#allocation57_spill] sm:$0xff] }
 0x4cc   :  { %v6724_v15 = vmax.f32 %v6722_v52, %v6723_v16  ;;  %8761 = vpow2.f32 %v7294_v31  ;;  %v14229_v36 = vadd.f32 %v14226_v5, %v6050_v26  ;;  %v5823_v34 = vrot.slane %v14035_v47, 1  ;;  %v15877_v47 = vld [vmem:[#allocation58_spill] sm:$0xff] }
 0x4cd   :  { %v8756_v60 = vpop.eup %8755  ;;  %v6728_v49 = vmax.f32 %v6563_v8, %v6727_v46  ;;  %v7077_v39 = vsel %vm7057_vm3, %v6720_v42, %v7076_v23  ;;  %8763 = vrcp.f32 %v6374_v29  ;;  %v5731_v16 = vmul.f32 %v5676_v7, %v15876_v25 }
 0x4ce   :  { %v6725_v52 = vrot.slane %v6724_v15, 1  ;;  %v6564_v43 = vmul.f32 %v8756_v60, %v14068_v20  ;;  %v7295_v59 = vmul.f32 -1.442695, %v14229_v36  ;;  %v5822_v31 = vrot.slane %v14043_v1, 1  ;;  %v14239_v51 = vpop.f32.mrb[232].mxu0 }
 0x4cf   :  { %v6729_v8 = vrot.slane %v6728_v49, 2  ;;  %v5604_v10 = vrot.slane %v14058_v9, 7  ;;  %v5924_v23 = vmul.f32 %v13784_v19, %v15877_v47  ;;  %v14244_v26 = vpop.f32.mrb[233].mxu0  ;;  %v5987_v29 = vadd.f32 %v5731_v16, %v14033_v4  ;;  %v15879_v16 = vld [vmem:[#allocation59_spill] sm:$0xff] }
 0x4d0   :  { %v6726_v12 = vmax.f32 %v6724_v15, %v6725_v52  ;;  %v6733_v46 = vrot.slane %v6564_v43, 4  ;;  %8765 = vpow2.f32 %v7295_v59  ;;  %v14249_v60 = vsel %vm1685_vm1, %v5822_v31, %v5823_v34 }
 0x4d1   :  { %v8758_v20 = vpop.eup %8757  ;;  %v6730_v42 = vmax.f32 %v6728_v49, %v6729_v8  ;;  %15878 = vst [vmem:[#allocation156_spill] sm:$0xff] %v14249_v60  ;;  %v14254_v9 = vsel %vm1685_vm1, %v5821_v45, %v5822_v31  ;;  %v6051_v49 = vadd.f32 %v5987_v29, %v5923_v54  ;;  %v5675_v4 = vsel %vm1172_vm0, %v5603_v17, %v5604_v10  ;;  %v15880_v29 = vld [vmem:[#allocation60_spill] sm:$0xff] }
 0x4d2   :  { %v8760_v1 = vpop.eup %8759  ;;  %v7078_v15 = vsel %vm7059_vm4, %v6726_v12, %v7077_v39  ;;  %v6734_v7 = vmax.f32 %v6564_v43, %v6733_v46  ;;  %v6375_v52 = vadd.f32 1.0, %v8758_v20  ;;  %v14259_v8 = vpop.f32.mrb[234].mxu0  ;;  %v5732_v47 = vmul.f32 %v5675_v4, %v15879_v16 }
 0x4d3   :  { %v6731_v19 = vrot.slane %v6730_v42, 1  ;;  %v6565_v25 = vmul.f32 %v8760_v1, %v14100_v3  ;;  %v5825_v39 = vrot.slane %v14065_v38, 1  ;;  %v14263_v43 = vpop.f32.mrb[235].mxu0  ;;  %v14266_v31 = vadd.f32 %v14226_v5, %v6051_v49  ;;  %v15881_v1 = vld [vmem:[#allocation109_spill] sm:$0xff] }
 0x4d4   :  { %v6735_v59 = vrot.slane %v6734_v7, 2  ;;  %8767 = vrcp.f32 %v6375_v52  ;;  %v5824_v3 = vrot.slane %v14072_v41, 1  ;;  %v5988_v17 = vadd.f32 %v5732_v47, %v14063_v63 }
 0x4d5   :  { %v6732_v12 = vmax.f32 %v6730_v42, %v6731_v19  ;;  %v6739_v45 = vrot.slane %v6565_v25, 4  ;;  %v5605_v20 = vrot.slane %v14079_v58, 7  ;;  %v5925_v52 = vmul.f32 %v15881_v1, %v15880_v29 }
 0x4d6   :  { %v8762_v54 = vpop.eup %8761  ;;  %v6736_v46 = vmax.f32 %v6734_v7, %v6735_v59  ;;  %v7296_v42 = vmul.f32 -1.442695, %v14266_v31  ;;  %v14275_v19 = vpop.f32.mrb[236].mxu0  ;;  %v6052_v41 = vadd.f32 %v5988_v17, %v5924_v23  ;;  %v14279_v7 = vsel %vm1685_vm1, %v5824_v3, %v5825_v39 }
 0x4d7   :  { %v7079_v38 = vsel %vm7061_vm5, %v6732_v12, %v7078_v15  ;;  %v6740_v4 = vmax.f32 %v6565_v25, %v6739_v45  ;;  %v6376_v16 = vadd.f32 1.0, %v8762_v54  ;;  %v8764_v49 = vpop.eup %8763  ;;  %15882 = vst [vmem:[#allocation63_spill] sm:$0xff] %v14279_v7  ;;  %v14283_v58 = vsel %vm1685_vm1, %v5823_v34, %v5824_v3  ;;  %v14285_v63 = vpop.f32.mrb[237].mxu0  ;;  %v15884_v12 = vld [vmem:[#allocation61_spill] sm:$0xff] }
 0x4d8   :  { %v6737_v60 = vrot.slane %v6736_v46, 1  ;;  %15883 = vst [vmem:[#allocation2_spill] sm:$0xff] %v14283_v58  ;;  %v6566_v25 = vmul.f32 %v8764_v49, %v14139_v27  ;;  %v5674_v59 = vsel %vm1172_vm0, %v5604_v10, %v5605_v20  ;;  %v14291_v23 = vadd.f32 %v14226_v5, %v6052_v41 }
 0x4d9   :  { %v6741_v15 = vrot.slane %v6740_v4, 2  ;;  %8769 = vrcp.f32 %v6376_v16  ;;  %v5733_v45 = vmul.f32 %v5674_v59, %v15884_v12  ;;  %v5827_v3 = vrot.slane %v14088_v44, 1  ;;  %v15888_v59 = vld [vmem:[#allocation66_spill] sm:$0xff] }
 0x4da   :  { %v6738_v47 = vmax.f32 %v6736_v46, %v6737_v60  ;;  %8771 = vpow2.f32 %v7296_v42  ;;  %v8766_v54 = vpop.eup %8765  ;;  %v6745_v34 = vrot.slane %v6566_v25, 4  ;;  %v5826_v29 = vrot.slane %v14096_v57, 1  ;;  %v14296_v1 = vpop.f32.mrb[238].mxu0  ;;  %v15885_v60 = vld [vmem:[#allocation97_spill] sm:$0xff] }
 0x4db   :  { %v6742_v17 = vmax.f32 %v6740_v4, %v6741_v15  ;;  %v6377_v16 = vadd.f32 1.0, %v8766_v54  ;;  %v7297_v10 = vmul.f32 -1.442695, %v14291_v23  ;;  %v5989_v46 = vadd.f32 %v5733_v45, %v15885_v60  ;;  %v14301_v42 = vpop.f32.mrb[239].mxu0 }
 0x4dc   :  { %v7080_v27 = vsel %vm7063_vm6, %v6738_v47, %v7079_v38  ;;  %v6746_v41 = vmax.f32 %v6566_v25, %v6745_v34  ;;  %v14305_v4 = vsel %vm1685_vm1, %v5826_v29, %v5827_v3  ;;  %v14309_v44 = vsel %vm1685_vm1, %v5825_v39, %v5826_v29  ;;  %v15889_v47 = vld [vmem:[#allocation64_spill] sm:$0xff] }
 0x4dd   :  { %v6743_v49 = vrot.slane %v6742_v17, 1  ;;  %15886 = vst [vmem:[#allocation4_spill] sm:$0xff] %v14305_v4  ;;  %15887 = vst [vmem:[#allocation7_spill] sm:$0xff] %v14309_v44  ;;  %8773 = vrcp.f32 %v6377_v16  ;;  %v6053_v38 = vadd.f32 %v5989_v46, %v5925_v52  ;;  %v5606_v15 = vrot.slane %v14105_v2, 7 }
 0x4de   :  { %v8768_v57 = vpop.eup %8767  ;;  %v5926_v12 = vmul.f32 %v15889_v47, %v15888_v59  ;;  %v6747_v54 = vrot.slane %v6746_v41, 2  ;;  %8775 = vpow2.f32 %v7297_v10  ;;  %v14315_v34 = vpop.f32.mrb[240].mxu0  ;;  %v5829_v52 = vrot.slane %v14110_v21, 1  ;;  %v15894_v47 = vld [vmem:[#allocation168_spill] sm:$0xff] }
 0x4df   :  { %v6744_v45 = vmax.f32 %v6742_v17, %v6743_v49  ;;  %v6567_v25 = vmul.f32 %v8768_v57, %v14171_v62  ;;  %v14318_v60 = vadd.f32 %v14226_v5, %v6053_v38  ;;  %v5673_v39 = vsel %vm1172_vm0, %v5605_v20, %v5606_v15  ;;  %v14324_v29 = vpop.f32.mrb[241].mxu0  ;;  %v15890_v62 = vld [vmem:[#allocation65_spill] sm:$0xff] }
 0x4e0   :  { %v5828_v2 = vrot.slane %v14115_v30, 1  ;;  %v6748_v16 = vmax.f32 %v6746_v41, %v6747_v54  ;;  %v5734_v10 = vmul.f32 %v5673_v39, %v15890_v62  ;;  %v5607_v21 = vrot.slane %v14130_v22, 7  ;;  %v15893_v41 = vld [vmem:[#allocation69_spill] sm:$0xff] }
 0x4e1   :  { %v7081_v17 = vsel %vm7065_vm7, %v6744_v45, %v7080_v27  ;;  %v6751_v46 = vrot.slane %v6567_v25, 4  ;;  %v7298_v49 = vmul.f32 -1.442695, %v14318_v60  ;;  %v5927_v45 = vmul.f32 %v15894_v47, %v15893_v41  ;;  %v15896_v47 = vld [vmem:[#allocation81_spill] sm:$0xff] }
 0x4e2   :  { %v14331_v57 = vsel %vm1685_vm1, %v5828_v2, %v5829_v52  ;;  %v14335_v20 = vsel %vm1685_vm1, %v5827_v3, %v5828_v2  ;;  %v6749_v38 = vrot.slane %v6748_v16, 1  ;;  %v5990_v27 = vadd.f32 %v5734_v10, %v14108_v40  ;;  %v14341_v54 = vpop.f32.mrb[242].mxu0 }
 0x4e3   :  { %15891 = vst [vmem:[#allocation6_spill] sm:$0xff] %v14331_v57  ;;  %15892 = vst [vmem:[#allocation9_spill] sm:$0xff] %v14335_v20  ;;  %v8770_v30 = vpop.eup %8769  ;;  %v6752_v59 = vmax.f32 %v6567_v25, %v6751_v46  ;;  %8777 = vpow2.f32 %v7298_v49  ;;  %v5672_v3 = vsel %vm1172_vm0, %v5606_v15, %v5607_v21  ;;  %v5831_v2 = vrot.slane %v14136_v48, 1  ;;  %v14347_v22 = vpop.f32.mrb[243].mxu0  ;;  %v15895_v20 = vld [vmem:[#allocation67_spill] sm:$0xff] }
 0x4e4   :  { %v8772_v39 = vpop.eup %8771  ;;  %v6568_v62 = vmul.f32 %v8770_v30, %v14200_v11  ;;  %v6750_v57 = vmax.f32 %v6748_v16, %v6749_v38  ;;  %v6054_v40 = vadd.f32 %v5990_v27, %v5926_v12  ;;  %v5735_v41 = vmul.f32 %v5672_v3, %v15895_v20 }
 0x4e5   :  { %v6753_v25 = vrot.slane %v6752_v59, 2  ;;  %v6378_v46 = vadd.f32 1.0, %v8772_v39  ;;  %v15897_v4 = vrot.slane %v15896_v47, 1  ;;  %v5830_v49 = vrot.slane %v14145_v56, 1 }
 0x4e6   :  { %v6757_v10 = vrot.slane %v6568_v62, 4  ;;  %v7082_v15 = vsel %vm7067_vm8, %v6750_v57, %v7081_v17  ;;  %v14359_v16 = vadd.f32 %v14226_v5, %v6054_v40  ;;  %v14361_v30 = vpop.f32.mrb[244].mxu0 }
 0x4e7   :  { %v14354_v11 = vsel %vm1685_vm1, %v5831_v2, %v15897_v4  ;;  %v6754_v48 = vmax.f32 %v6752_v59, %v6753_v25  ;;  %8779 = vrcp.f32 %v6378_v46  ;;  %v8774_v12 = vpop.eup %8773  ;;  %7128 = vst [vmem:[%s14960_s9 + $0x10] sm:$0xff] %v7082_v15  ;;  %v5991_v4 = vadd.f32 %v5735_v41, %v14134_v61  ;;  %v14375_v57 = vpop.f32.mrb[245].mxu0  ;;  %v15901_v46 = vld [vmem:[#allocation72_spill] sm:$0xff] }
 0x4e8   :  { %15898 = vst [vmem:[#allocation8_spill] sm:$0xff] %v14354_v11  ;;  %v6758_v20 = vmax.f32 %v6568_v62, %v6757_v10  ;;  %v14369_v56 = vsel %vm1685_vm1, %v5830_v49, %v5831_v2  ;;  %v14373_v17 = vsel %vm1685_vm1, %v5829_v52, %v5830_v49  ;;  %v8776_v38 = vpop.eup %8775  ;;  %v6569_v27 = vmul.f32 %v8774_v12, %v14229_v36  ;;  %v15902_v2 = vld [vmem:[#allocation163_spill] sm:$0xff] }
 0x4e9   :  { %15899 = vst [vmem:[#allocation11_spill] sm:$0xff] %v14369_v56  ;;  %15900 = vst [vmem:[#allocation10_spill] sm:$0xff] %v14373_v17  ;;  %v6755_v59 = vrot.slane %v6754_v48, 1  ;;  %v7299_v39 = vmul.f32 -1.442695, %v14359_v16  ;;  %v5608_v62 = vrot.slane %v14153_v13, 7  ;;  %v6055_v25 = vadd.f32 %v5991_v4, %v5927_v45 }
 0x4ea   :  { %v6759_v3 = vrot.slane %v6758_v20, 2  ;;  %v6379_v61 = vadd.f32 1.0, %v8776_v38  ;;  %v5928_v40 = vmul.f32 %v15902_v2, %v15901_v46  ;;  %v6763_v41 = vrot.slane %v6569_v27, 4  ;;  %v14384_v47 = vpop.f32.mrb[246].mxu0  ;;  %v15903_v13 = vld [vmem:[#allocation68_spill] sm:$0xff] }
 0x4eb   :  { %v6756_v10 = vmax.f32 %v6754_v48, %v6755_v59  ;;  %8781 = vpow2.f32 %v7299_v39  ;;  %v5671_v52 = vsel %vm1172_vm0, %v5607_v21, %v5608_v62  ;;  %v14387_v36 = vadd.f32 %v14226_v5, %v6055_v25  ;;  %v14390_v12 = vpop.f32.mrb[247].mxu0  ;;  %v15904_v48 = vld [vmem:[#allocation77_spill] sm:$0xff]  ;;  %v15905_v38 = vld [vmem:[#allocation136_spill] sm:$0xff]  ;;  %v15907_v25 = vld [vmem:[#allocation123_spill] sm:$0xff] }
 0x4ec   :  { %v6760_v49 = vmax.f32 %v6758_v20, %v6759_v3  ;;  %8783 = vrcp.f32 %v6379_v61  ;;  %v5736_v15 = vmul.f32 %v5671_v52, %v15903_v13  ;;  %v6764_v45 = vmax.f32 %v6569_v27, %v6763_v41  ;;  %v15906_v61 = vld [vmem:[#allocation84_spill] sm:$0xff] }
 0x4ed   :  { %v5609_v4 = vrot.slane %v14175_v50, 7  ;;  %v5929_v59 = vmul.f32 %v15905_v38, %v15904_v48  ;;  %v5610_v39 = vrot.slane %v14197_v14, 7  ;;  %v8778_v21 = vpop.eup %8777  ;;  %v7300_v20 = vmul.f32 -1.442695, %v14387_v36  ;;  %v15908_v38 = vld [vmem:[#allocation70_spill] sm:$0xff] }
 0x4ee   :  { %v6761_v46 = vrot.slane %v6760_v49, 1  ;;  %v5992_v3 = vadd.f32 %v5736_v15, %v14164_v18  ;;  %v5930_v2 = vmul.f32 %v15907_v25, %v15906_v61  ;;  %v6765_v52 = vrot.slane %v6764_v45, 2  ;;  %v14404_v41 = vpop.f32.mrb[248].mxu0  ;;  %v15909_v61 = vld [vmem:[#allocation71_spill] sm:$0xff] }
 0x4ef   :  { %v6380_v13 = vadd.f32 1.0, %v8778_v21  ;;  %v5670_v27 = vsel %vm1172_vm0, %v5608_v62, %v5609_v4  ;;  %v5669_v50 = vsel %vm1172_vm0, %v5609_v4, %v5610_v39  ;;  %8785 = vpow2.f32 %v7300_v20  ;;  %v14407_v56 = vpop.f32.mrb[249].mxu0  ;;  %v15910_v20 = vld [vmem:[#allocation92_spill] sm:$0xff] }
 0x4f0   :  { %v6762_v14 = vmax.f32 %v6760_v49, %v6761_v46  ;;  %v6056_v48 = vadd.f32 %v5992_v3, %v5928_v40  ;;  %v5737_v11 = vmul.f32 %v5670_v27, %v15908_v38  ;;  %v6766_v15 = vmax.f32 %v6764_v45, %v6765_v52  ;;  %v15911_v3 = vld [vmem:[#allocation73_spill] sm:$0xff]  ;;  %v15912_v27 = vld [vmem:[#allocation74_spill] sm:$0xff] }
 0x4f1   :  { %v8780_v18 = vpop.eup %8779  ;;  %8787 = vrcp.f32 %v6380_v13  ;;  %v5738_v21 = vmul.f32 %v5669_v50, %v15909_v61  ;;  %v5611_v25 = vrot.slane %v14219_v28, 7  ;;  %v5931_v52 = vmul.f32 %v15911_v3, %v15910_v20  ;;  %v15913_v38 = vld [vmem:[#allocation98_spill] sm:$0xff] }
 0x4f2   :  { %v7083_v62 = vsel %vm7055_vm2, %v6762_v14, %v6756_v10  ;;  %v6570_v4 = vmul.f32 %v8780_v18, %v14266_v31  ;;  %v14414_v17 = vadd.f32 %v14226_v5, %v6056_v48  ;;  %v5993_v40 = vadd.f32 %v5737_v11, %v14180_v6  ;;  %v14422_v13 = vpop.f32.mrb[250].mxu0 }
 0x4f3   :  { %v6767_v49 = vrot.slane %v6766_v15, 1  ;;  %v5994_v46 = vadd.f32 %v5738_v21, %v14202_v24  ;;  %v5668_v45 = vsel %vm1172_vm0, %v5610_v39, %v5611_v25  ;;  %v14426_v14 = vpop.f32.mrb[251].mxu0  ;;  %v5612_v24 = vrot.slane %v14239_v51, 7  ;;  %v15914_v39 = vld [vmem:[#allocation126_spill] sm:$0xff] }
 0x4f4   :  { %v6769_v28 = vrot.slane %v6570_v4, 4  ;;  %v7301_v10 = vmul.f32 -1.442695, %v14414_v17  ;;  %v6057_v31 = vadd.f32 %v5993_v40, %v5929_v59  ;;  %v5739_v50 = vmul.f32 %v5668_v45, %v15912_v27 }
 0x4f5   :  { %v8782_v6 = vpop.eup %8781  ;;  %v6768_v11 = vmax.f32 %v6766_v15, %v6767_v49  ;;  %v6058_v48 = vadd.f32 %v5994_v46, %v5930_v2  ;;  %v5932_v18 = vmul.f32 %v15914_v39, %v15913_v38  ;;  %v5667_v49 = vsel %vm1172_vm0, %v5611_v25, %v5612_v24 }
 0x4f6   :  { %v8784_v61 = vpop.eup %8783  ;;  %v6770_v21 = vmax.f32 %v6570_v4, %v6769_v28  ;;  %v6381_v20 = vadd.f32 1.0, %v8782_v6  ;;  %8789 = vpow2.f32 %v7301_v10  ;;  %v14432_v3 = vadd.f32 %v14226_v5, %v6057_v31  ;;  %v14440_v51 = vpop.f32.mrb[252].mxu0  ;;  %v15915_v10 = vld [vmem:[#allocation76_spill] sm:$0xff] }
 0x4f7   :  { %v7084_v59 = vsel %vm7057_vm3, %v6768_v11, %v7083_v62  ;;  %v6571_v40 = vmul.f32 %v8784_v61, %v14291_v23  ;;  %v14437_v45 = vadd.f32 %v14226_v5, %v6058_v48  ;;  %v5995_v2 = vadd.f32 %v5739_v50, %v14221_v35  ;;  %v14445_v46 = vpop.f32.mrb[253].mxu0  ;;  %v15916_v50 = vld [vmem:[#allocation104_spill] sm:$0xff]  ;;  %v15917_v11 = vld [vmem:[#allocation78_spill] sm:$0xff] }
 0x4f8   :  { %v6771_v15 = vrot.slane %v6770_v21, 2  ;;  %8791 = vrcp.f32 %v6381_v20  ;;  %v7302_v4 = vmul.f32 -1.442695, %v14432_v3  ;;  %v5740_v31 = vmul.f32 %v5667_v49, %v15915_v10  ;;  %v15918_v49 = vld [vmem:[#allocation80_spill] sm:$0xff] }
 0x4f9   :  { %v6775_v28 = vrot.slane %v6571_v40, 4  ;;  %v7303_v62 = vmul.f32 -1.442695, %v14437_v45  ;;  %v6059_v23 = vadd.f32 %v5995_v2, %v5931_v52  ;;  %v8786_v27 = vpop.eup %8785  ;;  %v5613_v35 = vrot.slane %v14259_v8, 7 }
 0x4fa   :  { %v6772_v6 = vmax.f32 %v6770_v21, %v6771_v15  ;;  %8793 = vpow2.f32 %v7302_v4  ;;  %v5933_v48 = vmul.f32 %v15917_v11, %v15916_v50  ;;  %v6382_v61 = vadd.f32 1.0, %v8786_v27  ;;  %v14455_v20 = vpop.f32.mrb[254].mxu0 }
 0x4fb   :  { %v8788_v38 = vpop.eup %8787  ;;  %v6776_v39 = vmax.f32 %v6571_v40, %v6775_v28  ;;  %8795 = vpow2.f32 %v7303_v62  ;;  %v14453_v25 = vadd.f32 %v14226_v5, %v6059_v23  ;;  %v5996_v21 = vadd.f32 %v5740_v31, %v14244_v26  ;;  %v14461_v15 = vpop.f32.mrb[255].mxu0  ;;  %v15920_v31 = vld [vmem:[#allocation167_spill] sm:$0xff] }
 0x4fc   :  { %v6773_v52 = vrot.slane %v6772_v6, 1  ;;  %v6572_v2 = vmul.f32 %v8788_v38, %v14318_v60  ;;  %v5666_v8 = vsel %vm1172_vm0, %v5612_v24, %v5613_v35  ;;  %8797 = vrcp.f32 %v6382_v61  ;;  %v15919_v60 = vld [vmem:[#allocation112_spill] sm:$0xff] }
 0x4fd   :  { %v6777_v4 = vrot.slane %v6776_v39, 2  ;;  %v7304_v40 = vmul.f32 -1.442695, %v14453_v25  ;;  %v5741_v28 = vmul.f32 %v5666_v8, %v15918_v49  ;;  %v6060_v10 = vadd.f32 %v5996_v21, %v5932_v18 }
 0x4fe   :  { %v6774_v62 = vmax.f32 %v6772_v6, %v6773_v52  ;;  %v6781_v23 = vrot.slane %v6572_v2, 4  ;;  %v5614_v27 = vrot.slane %v14275_v19, 7  ;;  %v5934_v24 = vmul.f32 %v15920_v31, %v15919_v60  ;;  %v14469_v11 = vpop.f32.mrb[0].mxu0  ;;  %v15921_v52 = vld [vmem:[#allocation82_spill] sm:$0xff] }
 0x4ff   :  { %v6778_v50 = vmax.f32 %v6776_v39, %v6777_v4  ;;  %8799 = vpow2.f32 %v7304_v40  ;;  %v5997_v26 = vadd.f32 %v5741_v28, %v14263_v43  ;;  %v14473_v8 = vadd.f32 %v14226_v5, %v6060_v10  ;;  %v14477_v19 = vpop.f32.mrb[1].mxu0  ;;  %v15923_v28 = vld [vmem:[#allocation85_spill] sm:$0xff] }
 0x500   :  { %v8790_v38 = vpop.eup %8789  ;;  %v7085_v61 = vsel %vm7059_vm4, %v6774_v62, %v7084_v59  ;;  %v6782_v44 = vmax.f32 %v6572_v2, %v6781_v23  ;;  %v5665_v18 = vsel %vm1172_vm0, %v5613_v35, %v5614_v27  ;;  %v5615_v59 = vrot.slane %v14296_v1, 7  ;;  %v15922_v2 = vld [vmem:[#allocation116_spill] sm:$0xff] }
 0x501   :  { %v6779_v6 = vrot.slane %v6778_v50, 1  ;;  %v6383_v39 = vadd.f32 1.0, %v8790_v38  ;;  %v6061_v43 = vadd.f32 %v5997_v26, %v5933_v48  ;;  %v5742_v21 = vmul.f32 %v5665_v18, %v15921_v52 }
 0x502   :  { %v8792_v4 = vpop.eup %8791  ;;  %v6783_v40 = vrot.slane %v6782_v44, 2  ;;  %v7305_v49 = vmul.f32 -1.442695, %v14473_v8  ;;  %v5935_v62 = vmul.f32 %v15923_v28, %v15922_v2  ;;  %v14488_v60 = vpop.f32.mrb[2].mxu0  ;;  %v5664_v1 = vsel %vm1172_vm0, %v5614_v27, %v5615_v59  ;;  %v15924_v2 = vld [vmem:[#allocation87_spill] sm:$0xff]  ;;  %v15925_v27 = vld [vmem:[#allocation120_spill] sm:$0xff] }
 0x503   :  { %v6780_v23 = vmax.f32 %v6778_v50, %v6779_v6  ;;  %v6573_v10 = vmul.f32 %v8792_v4, %v14359_v16  ;;  %8801 = vrcp.f32 %v6383_v39  ;;  %v14486_v35 = vadd.f32 %v14226_v5, %v6061_v43  ;;  %v14493_v38 = vpop.f32.mrb[3].mxu0 }
 0x504   :  { %v8794_v48 = vpop.eup %8793  ;;  %v6784_v26 = vmax.f32 %v6782_v44, %v6783_v40  ;;  %8803 = vpow2.f32 %v7305_v49  ;;  %v5998_v31 = vadd.f32 %v5742_v21, %v14285_v63  ;;  %v5743_v44 = vmul.f32 %v5664_v1, %v15924_v2  ;;  %v15926_v21 = vld [vmem:[#allocation79_spill] sm:$0xff] }
 0x505   :  { %v8796_v18 = vpop.eup %8795  ;;  %v7086_v50 = vsel %vm7061_vm5, %v6780_v23, %v7085_v61  ;;  %v6787_v16 = vrot.slane %v6573_v10, 4  ;;  %v6384_v6 = vadd.f32 1.0, %v8794_v48  ;;  %v7306_v39 = vmul.f32 -1.442695, %v14486_v35 }
 0x506   :  { %v6785_v43 = vrot.slane %v6784_v26, 1  ;;  %v6385_v52 = vadd.f32 1.0, %v8796_v18  ;;  %v6062_v4 = vadd.f32 %v5998_v31, %v5934_v24  ;;  %v8798_v40 = vpop.eup %8797  ;;  %v5616_v63 = vrot.slane %v14315_v34, 7  ;;  %v14501_v7 = vpop.f32.mrb[4].mxu0 }
 0x507   :  { %v6788_v49 = vmax.f32 %v6573_v10, %v6787_v16  ;;  %8805 = vrcp.f32 %v6384_v6  ;;  %v5936_v28 = vmul.f32 %v15926_v21, %v15925_v27  ;;  %v6574_v23 = vmul.f32 %v8798_v40, %v14387_v36  ;;  %v14507_v24 = vpop.f32.mrb[5].mxu0 }
 0x508   :  { %v6786_v61 = vmax.f32 %v6784_v26, %v6785_v43  ;;  %8807 = vrcp.f32 %v6385_v52  ;;  %v14505_v48 = vadd.f32 %v14226_v5, %v6062_v4  ;;  %v5999_v10 = vadd.f32 %v5743_v44, %v14301_v42  ;;  %v15927_v52 = vld [vmem:[#allocation90_spill] sm:$0xff]  ;;  %v15928_v42 = vld [vmem:[#allocation125_spill] sm:$0xff] }
 0x509   :  { %v8800_v31 = vpop.eup %8799  ;;  %v6789_v1 = vrot.slane %v6788_v49, 2  ;;  %8809 = vpow2.f32 %v7306_v39  ;;  %v5663_v34 = vsel %vm1172_vm0, %v5615_v59, %v5616_v63  ;;  %v6793_v16 = vrot.slane %v6574_v23, 4  ;;  %v15929_v44 = vld [vmem:[#allocation89_spill] sm:$0xff] }
 0x50a   :  { %v7087_v18 = vsel %vm7063_vm6, %v6786_v61, %v7086_v50  ;;  %v6386_v26 = vadd.f32 1.0, %v8800_v31  ;;  %v7307_v36 = vmul.f32 -1.442695, %v14505_v48  ;;  %v6063_v43 = vadd.f32 %v5999_v10, %v5935_v62  ;;  %v14516_v40 = vpop.f32.mrb[6].mxu0 }
 0x50b   :  { %v6790_v6 = vmax.f32 %v6788_v49, %v6789_v1  ;;  %v5744_v4 = vmul.f32 %v5663_v34, %v15927_v52  ;;  %v5617_v2 = vrot.slane %v14341_v54, 7  ;;  %v6794_v39 = vmax.f32 %v6574_v23, %v6793_v16  ;;  %v14521_v50 = vpop.f32.mrb[7].mxu0 }
 0x50c   :  { %8811 = vrcp.f32 %v6386_v26  ;;  %v5937_v27 = vmul.f32 %v15929_v44, %v15928_v42  ;;  %v15198_v59 = vrot.slane %v14361_v30, 7  ;;  %v14524_v62 = vadd.f32 %v14226_v5, %v6063_v43 }
 0x50d   :  { %v8802_v21 = vpop.eup %8801  ;;  %v6791_v61 = vrot.slane %v6790_v6, 1  ;;  %8813 = vpow2.f32 %v7307_v36  ;;  %v6000_v49 = vadd.f32 %v5744_v4, %v14324_v29  ;;  %v6795_v31 = vrot.slane %v6794_v39, 2  ;;  %v15930_v4 = vld [vmem:[#allocation94_spill] sm:$0xff] }
 0x50e   :  { %v8804_v54 = vpop.eup %8803  ;;  %v6575_v23 = vmul.f32 %v8802_v21, %v14414_v17  ;;  %v5662_v1 = vsel %vm1172_vm0, %v5616_v63, %v5617_v2  ;;  %v5661_v10 = vsel %vm1172_vm0, %v5617_v2, %v15198_v59  ;;  %v7308_v26 = vmul.f32 -1.442695, %v14524_v62  ;;  %v14535_v43 = vpop.f32.mrb[8].mxu0  ;;  %v15931_v17 = vld [vmem:[#allocation96_spill] sm:$0xff]  ;;  %v15932_v2 = vld [vmem:[#allocation129_spill] sm:$0xff] }
 0x50f   :  { %v6792_v34 = vmax.f32 %v6790_v6, %v6791_v61  ;;  %v6387_v16 = vadd.f32 1.0, %v8804_v54  ;;  %v6064_v36 = vadd.f32 %v6000_v49, %v5936_v28  ;;  %v6796_v29 = vmax.f32 %v6794_v39, %v6795_v31  ;;  %v14539_v21 = vpop.f32.mrb[9].mxu0  ;;  %v15933_v61 = vld [vmem:[#allocation83_spill] sm:$0xff] }
 0x510   :  { %v6799_v52 = vrot.slane %v6575_v23, 4  ;;  %v5745_v42 = vmul.f32 %v5662_v1, %v15930_v4  ;;  %v5746_v44 = vmul.f32 %v5661_v10, %v15931_v17  ;;  %v5938_v28 = vmul.f32 %v15933_v61, %v15932_v2 }
 0x511   :  { %v8806_v63 = vpop.eup %8805  ;;  %v7088_v58 = vsel %vm7065_vm7, %v6792_v34, %v7087_v18  ;;  %8815 = vrcp.f32 %v6387_v16  ;;  %v14543_v6 = vadd.f32 %v14226_v5, %v6064_v36  ;;  %v6797_v54 = vrot.slane %v6796_v29, 1 }
 0x512   :  { %v8808_v49 = vpop.eup %8807  ;;  %v6800_v39 = vmax.f32 %v6575_v23, %v6799_v52  ;;  %v6576_v31 = vmul.f32 %v8806_v63, %v14432_v3  ;;  %8817 = vpow2.f32 %v7308_v26  ;;  %v6001_v18 = vadd.f32 %v5745_v42, %v14347_v22  ;;  %v14552_v16 = vpop.f32.mrb[10].mxu0 }
 0x513   :  { %v8810_v1 = vpop.eup %8809  ;;  %v6577_v10 = vmul.f32 %v8808_v49, %v14437_v45  ;;  %v7309_v4 = vmul.f32 -1.442695, %v14543_v6  ;;  %v6002_v34 = vadd.f32 %v5746_v44, %v14375_v57  ;;  %v6798_v36 = vmax.f32 %v6796_v29, %v6797_v54  ;;  %v14554_v59 = vpop.f32.mrb[11].mxu0 }
 0x514   :  { %v6801_v17 = vrot.slane %v6800_v39, 2  ;;  %v6805_v2 = vrot.slane %v6576_v31, 4  ;;  %v6388_v61 = vadd.f32 1.0, %v8810_v1  ;;  %v6065_v3 = vadd.f32 %v6001_v18, %v5937_v27 }
 0x515   :  { %v6811_v23 = vrot.slane %v6577_v10, 4  ;;  %8819 = vpow2.f32 %v7309_v4  ;;  %v6066_v26 = vadd.f32 %v6002_v34, %v5938_v28  ;;  %v7089_v45 = vsel %vm7067_vm8, %v6798_v36, %v7088_v58 }
 0x516   :  { %v8812_v52 = vpop.eup %8811  ;;  %v6802_v63 = vmax.f32 %v6800_v39, %v6801_v17  ;;  %v6806_v49 = vmax.f32 %v6576_v31, %v6805_v2  ;;  %8821 = vrcp.f32 %v6388_v61  ;;  %7129 = vst [vmem:[%s14960_s9 + $0x18] sm:$0xff] %v7089_v45  ;;  %v14562_v42 = vadd.f32 %v14226_v5, %v6065_v3  ;;  %v14567_v44 = vpop.f32.mrb[12].mxu0 }
 0x517   :  { %v8814_v22 = vpop.eup %8813  ;;  %v6812_v57 = vmax.f32 %v6577_v10, %v6811_v23  ;;  %v6578_v29 = vmul.f32 %v8812_v52, %v14453_v25  ;;  %v14565_v27 = vadd.f32 %v14226_v5, %v6066_v26  ;;  %v5619_v39 = vrot.slane %v14384_v47, 7  ;;  %v14570_v31 = vpop.f32.mrb[13].mxu0  ;;  %v15936_v47 = vld [vmem:[#allocation101_spill] sm:$0xff] }
 0x518   :  { %v6803_v58 = vrot.slane %v6802_v63, 1  ;;  %v6807_v28 = vrot.slane %v6806_v49, 2  ;;  %v6389_v54 = vadd.f32 1.0, %v8814_v22  ;;  %15934 = vst [vmem:[#allocation13_spill] sm:$0xff] %v14570_v31  ;;  %v7310_v10 = vmul.f32 -1.442695, %v14562_v42 }
 0x519   :  { %v6813_v1 = vrot.slane %v6812_v57, 2  ;;  %v6817_v4 = vrot.slane %v6578_v29, 4  ;;  %v7311_v25 = vmul.f32 -1.442695, %v14565_v27  ;;  %v15935_v36 = vrot.slane %v14361_v30, 7 }
 0x51a   :  { %v6804_v18 = vmax.f32 %v6802_v63, %v6803_v58  ;;  %v6808_v34 = vmax.f32 %v6806_v49, %v6807_v28  ;;  %8823 = vrcp.f32 %v6389_v54  ;;  %v14579_v26 = vpop.f32.mrb[14].mxu0  ;;  %v15938_v63 = vld [vmem:[#allocation132_spill] sm:$0xff] }
 0x51b   :  { %v5660_v17 = vsel %vm1172_vm0, %v15935_v36, %v5619_v39  ;;  %v8816_v2 = vpop.eup %8815  ;;  %v6814_v61 = vmax.f32 %v6812_v57, %v6813_v1  ;;  %v6818_v23 = vmax.f32 %v6578_v29, %v6817_v4  ;;  %8825 = vpow2.f32 %v7310_v10  ;;  %15937 = vst [vmem:[#allocation12_spill] sm:$0xff] %v14579_v26  ;;  %v15939_v49 = vld [vmem:[#allocation100_spill] sm:$0xff]  ;;  %v14584_v30 = vpop.f32.mrb[15].mxu0  ;;  %v15941_v10 = vld [vmem:[#allocation135_spill] sm:$0xff] }
 0x51c   :  { %v5747_v3 = vmul.f32 %v5660_v17, %v15936_v47  ;;  %v8818_v52 = vpop.eup %8817  ;;  %v6809_v45 = vrot.slane %v6808_v34, 1  ;;  %v6579_v22 = vmul.f32 %v8816_v2, %v14473_v8  ;;  %8827 = vpow2.f32 %v7311_v25  ;;  %15940 = vst [vmem:[#allocation15_spill] sm:$0xff] %v14584_v30  ;;  %v15942_v17 = vld [vmem:[#allocation88_spill] sm:$0xff] }
 0x51d   :  { %v5939_v58 = vmul.f32 %v15939_v49, %v15938_v63  ;;  %v6815_v28 = vrot.slane %v6814_v61, 1  ;;  %v6819_v54 = vrot.slane %v6818_v23, 2  ;;  %v6390_v36 = vadd.f32 1.0, %v8818_v52 }
 0x51e   :  { %v6003_v57 = vadd.f32 %v5747_v3, %v14390_v12  ;;  %v6810_v29 = vmax.f32 %v6808_v34, %v6809_v45  ;;  %v6823_v1 = vrot.slane %v6579_v22, 4  ;;  %v5620_v4 = vrot.slane %v14404_v41, 7  ;;  %v14590_v63 = vpop.f32.mrb[16].mxu0 }
 0x51f   :  { %v5940_v47 = vmul.f32 %v15942_v17, %v15941_v10  ;;  %v8820_v31 = vpop.eup %8819  ;;  %v6816_v8 = vmax.f32 %v6814_v61, %v6815_v28  ;;  %v6820_v25 = vmax.f32 %v6818_v23, %v6819_v54  ;;  %8829 = vrcp.f32 %v6390_v36  ;;  %v14595_v34 = vpop.f32.mrb[17].mxu0  ;;  %v15944_v54 = vld [vmem:[#allocation93_spill] sm:$0xff] }
 0x520   :  { %v6067_v2 = vadd.f32 %v6003_v57, %v5939_v58  ;;  %v8822_v49 = vpop.eup %8821  ;;  %v7090_v30 = vsel %vm7055_vm2, %v6810_v29, %v6804_v18  ;;  %v6824_v52 = vmax.f32 %v6579_v22, %v6823_v1  ;;  %v6391_v26 = vadd.f32 1.0, %v8820_v31  ;;  %v15943_v58 = vld [vmem:[#allocation103_spill] sm:$0xff] }
 0x521   :  { %v5659_v12 = vsel %vm1172_vm0, %v5619_v39, %v5620_v4  ;;  %v7091_v41 = vsel %vm7057_vm3, %v6816_v8, %v7090_v30  ;;  %v6821_v3 = vrot.slane %v6820_v25, 1  ;;  %v6580_v61 = vmul.f32 %v8822_v49, %v14486_v35 }
 0x522   :  { %v14600_v23 = vadd.f32 %v14226_v5, %v6067_v2  ;;  %v6825_v45 = vrot.slane %v6824_v52, 2  ;;  %8831 = vrcp.f32 %v6391_v26  ;;  %v5748_v28 = vmul.f32 %v5659_v12, %v15943_v58  ;;  %v14607_v30 = vpop.f32.mrb[18].mxu0  ;;  %v15945_v12 = vld [vmem:[#allocation107_spill] sm:$0xff] }
 0x523   :  { %v5621_v18 = vrot.slane %v14422_v13, 7  ;;  %v6822_v31 = vmax.f32 %v6820_v25, %v6821_v3  ;;  %v6829_v22 = vrot.slane %v6580_v61, 4  ;;  %v5941_v36 = vmul.f32 %v14128_v33, %v15944_v54  ;;  %v14613_v10 = vpop.f32.mrb[19].mxu0 }
 0x524   :  { %v7312_v39 = vmul.f32 -1.442695, %v14600_v23  ;;  %v8824_v57 = vpop.eup %8823  ;;  %v6826_v35 = vmax.f32 %v6824_v52, %v6825_v45  ;;  %v6004_v29 = vadd.f32 %v5748_v28, %v14407_v56  ;;  %v5622_v1 = vrot.slane %v14440_v51, 7 }
 0x525   :  { %v5658_v26 = vsel %vm1172_vm0, %v5620_v4, %v5621_v18  ;;  %v8826_v13 = vpop.eup %8825  ;;  %v7092_v17 = vsel %vm7059_vm4, %v6822_v31, %v7091_v41  ;;  %v6830_v8 = vmax.f32 %v6580_v61, %v6829_v22  ;;  %v6581_v25 = vmul.f32 %v8824_v57, %v14505_v48 }
 0x526   :  { %8833 = vpow2.f32 %v7312_v39  ;;  %v8828_v33 = vpop.eup %8827  ;;  %v6827_v2 = vrot.slane %v6826_v35, 1  ;;  %v6392_v49 = vadd.f32 1.0, %v8826_v13  ;;  %v6068_v52 = vadd.f32 %v6004_v29, %v5940_v47  ;;  %v14620_v58 = vpop.f32.mrb[20].mxu0  ;;  %v15946_v39 = vld [vmem:[#allocation111_spill] sm:$0xff] }
 0x527   :  { %v5749_v56 = vmul.f32 %v5658_v26, %v15945_v12  ;;  %v6831_v3 = vrot.slane %v6830_v8, 2  ;;  %v6835_v45 = vrot.slane %v6581_v25, 4  ;;  %v6393_v4 = vadd.f32 1.0, %v8828_v33  ;;  %v14626_v61 = vpop.f32.mrb[21].mxu0  ;;  %v15947_v33 = vld [vmem:[#allocation140_spill] sm:$0xff] }
 0x528   :  { %v5657_v51 = vsel %vm1172_vm0, %v5621_v18, %v5622_v1  ;;  %v6828_v28 = vmax.f32 %v6826_v35, %v6827_v2  ;;  %8835 = vrcp.f32 %v6392_v49  ;;  %v14623_v41 = vadd.f32 %v14226_v5, %v6068_v52  ;;  %v15948_v2 = vld [vmem:[#allocation102_spill] sm:$0xff] }
 0x529   :  { %v6005_v48 = vadd.f32 %v5749_v56, %v14426_v14  ;;  %v8830_v47 = vpop.eup %8829  ;;  %v6832_v31 = vmax.f32 %v6830_v8, %v6831_v3  ;;  %v6836_v22 = vmax.f32 %v6581_v25, %v6835_v45  ;;  %8837 = vrcp.f32 %v6393_v4 }
 0x52a   :  { %v5750_v54 = vmul.f32 %v5657_v51, %v15946_v39  ;;  %v7093_v57 = vsel %vm7061_vm5, %v6828_v28, %v7092_v17  ;;  %v6582_v18 = vmul.f32 %v8830_v47, %v14524_v62  ;;  %v7313_v35 = vmul.f32 -1.442695, %v14623_v41  ;;  %v14635_v52 = vpop.f32.mrb[22].mxu0  ;;  %v15949_v28 = vld [vmem:[#allocation106_spill] sm:$0xff] }
 0x52b   :  { %v6069_v29 = vadd.f32 %v6005_v48, %v5941_v36  ;;  %v6833_v26 = vrot.slane %v6832_v31, 1  ;;  %v6837_v13 = vrot.slane %v6836_v22, 2  ;;  %v5942_v14 = vmul.f32 %v15948_v2, %v15947_v33  ;;  %v14641_v17 = vpop.f32.mrb[23].mxu0 }
 0x52c   :  { %v6006_v49 = vadd.f32 %v5750_v54, %v14445_v46  ;;  %v8832_v8 = vpop.eup %8831  ;;  %v6841_v25 = vrot.slane %v6582_v18, 4  ;;  %8839 = vpow2.f32 %v7313_v35  ;;  %v5623_v62 = vrot.slane %v14455_v20, 7  ;;  %v15950_v35 = vld [vmem:[#allocation114_spill] sm:$0xff] }
 0x52d   :  { %v14638_v12 = vadd.f32 %v14226_v5, %v6069_v29  ;;  %v6834_v36 = vmax.f32 %v6832_v31, %v6833_v26  ;;  %v6838_v56 = vmax.f32 %v6836_v22, %v6837_v13  ;;  %v6583_v3 = vmul.f32 %v8832_v8, %v14543_v6 }
 0x52e   :  { %v6070_v45 = vadd.f32 %v6006_v49, %v5942_v14  ;;  %v6842_v4 = vmax.f32 %v6582_v18, %v6841_v25  ;;  %v5656_v51 = vsel %vm1172_vm0, %v5622_v1, %v5623_v62  ;;  %v5943_v48 = vmul.f32 %v14162_v53, %v15949_v28  ;;  %v14653_v22 = vpop.f32.mrb[24].mxu0  ;;  %v15951_v14 = vld [vmem:[#allocation110_spill] sm:$0xff]  ;;  %v15952_v49 = vld [vmem:[#allocation113_spill] sm:$0xff] }
 0x52f   :  { %v7314_v46 = vmul.f32 -1.442695, %v14638_v12  ;;  %v7094_v39 = vsel %vm7063_vm6, %v6834_v36, %v7093_v57  ;;  %v6839_v20 = vrot.slane %v6838_v56, 1  ;;  %v6847_v54 = vrot.slane %v6583_v3, 4  ;;  %v14656_v26 = vpop.f32.mrb[25].mxu0 }
 0x530   :  { %v8834_v47 = vpop.eup %8833  ;;  %v14651_v31 = vadd.f32 %v14226_v5, %v6070_v45  ;;  %v6843_v6 = vrot.slane %v6842_v4, 2  ;;  %v5751_v29 = vmul.f32 %v5656_v51, %v15950_v35  ;;  %v5624_v57 = vrot.slane %v14469_v11, 7  ;;  %v14677_v35 = vld [vmem:[%s14959_s8] ss:$0 sm:$0xff] }
 0x531   :  { %v6394_v18 = vadd.f32 1.0, %v8834_v47  ;;  %8841 = vpow2.f32 %v7314_v46  ;;  %v6840_v1 = vmax.f32 %v6838_v56, %v6839_v20  ;;  %v6848_v13 = vmax.f32 %v6583_v3, %v6847_v54  ;;  %v15953_v20 = vld [vmem:[#allocation115_spill] sm:$0xff] }
 0x532   :  { %v7315_v53 = vmul.f32 -1.442695, %v14651_v31  ;;  %v8836_v33 = vpop.eup %8835  ;;  %v6844_v2 = vmax.f32 %v6842_v4, %v6843_v6  ;;  %v6007_v5 = vadd.f32 %v5751_v29, %v14461_v15  ;;  %v5944_v8 = vmul.f32 %v15952_v49, %v15951_v14  ;;  %v14665_v56 = vpop.f32.mrb[26].mxu0 }
 0x533   :  { %8843 = vrcp.f32 %v6394_v18  ;;  %v8838_v25 = vpop.eup %8837  ;;  %v7095_v36 = vsel %vm7065_vm7, %v6840_v1, %v7094_v39  ;;  %v6849_v45 = vrot.slane %v6848_v13, 2  ;;  %v6584_v46 = vmul.f32 %v8836_v33, %v14562_v42  ;;  %v14670_v15 = vpop.f32.mrb[27].mxu0 }
 0x534   :  { %8845 = vpow2.f32 %v7315_v53  ;;  %v6845_v3 = vrot.slane %v6844_v2, 1  ;;  %v6585_v11 = vmul.f32 %v8838_v25, %v14565_v27  ;;  %v6071_v51 = vadd.f32 %v6007_v5, %v5943_v48 }
 0x535   :  { %v5655_v4 = vsel %vm1172_vm0, %v5623_v62, %v5624_v57  ;;  %v6850_v28 = vmax.f32 %v6848_v13, %v6849_v45  ;;  %v6853_v47 = vrot.slane %v6584_v46, 4  ;;  %v5625_v39 = vrot.slane %v14488_v60, 7  ;;  %v15954_v62 = vld [vmem:[#allocation148_spill] sm:$0xff] }
 0x536   :  { %v5752_v54 = vmul.f32 %v5655_v4, %v15953_v20  ;;  %v8840_v6 = vpop.eup %8839  ;;  %v6846_v42 = vmax.f32 %v6844_v2, %v6845_v3  ;;  %v6859_v18 = vrot.slane %v6585_v11, 4  ;;  %v14680_v27 = vadd.f32 %v14677_v35, %v6071_v51  ;;  %v14685_v60 = vpop.f32.mrb[28].mxu0  ;;  %v15957_v20 = vld [vmem:[#allocation105_spill] sm:$0xff] }
 0x537   :  { %v5945_v48 = vmul.f32 %v14189_v0, %v15954_v62  ;;  %v6851_v29 = vrot.slane %v6850_v28, 1  ;;  %v6854_v1 = vmax.f32 %v6584_v46, %v6853_v47  ;;  %v6395_v13 = vadd.f32 1.0, %v8840_v6  ;;  %v14691_v49 = vpop.f32.mrb[29].mxu0  ;;  %v15956_v47 = vld [vmem:[#allocation150_spill] sm:$0xff] }
 0x538   :  { %v6008_v53 = vadd.f32 %v5752_v54, %v14477_v19  ;;  %v7096_v33 = vsel %vm7067_vm8, %v6846_v42, %v7095_v36  ;;  %v6860_v2 = vmax.f32 %v6585_v11, %v6859_v18  ;;  %v7316_v5 = vmul.f32 -1.442695, %v14680_v27  ;;  %v15955_v36 = vld [vmem:[#allocation117_spill] sm:$0xff] }
 0x539   :  { %v5654_v14 = vsel %vm1172_vm0, %v5624_v57, %v5625_v39  ;;  %7130 = vst [vmem:[%s14960_s9 + $0x20] sm:$0xff] %v7096_v33  ;;  %v6852_v0 = vmax.f32 %v6850_v28, %v6851_v29  ;;  %v6855_v25 = vrot.slane %v6854_v1, 2  ;;  %8847 = vrcp.f32 %v6395_v13 }
 0x53a   :  { %v6072_v19 = vadd.f32 %v6008_v53, %v5944_v8  ;;  %v6861_v46 = vrot.slane %v6860_v2, 2  ;;  %8849 = vpow2.f32 %v7316_v5  ;;  %v5753_v3 = vmul.f32 %v5654_v14, %v15955_v36  ;;  %v14703_v6 = vpop.f32.mrb[30].mxu0 }
 0x53b   :  { %v8842_v45 = vpop.eup %8841  ;;  %v5626_v11 = vrot.slane %v14501_v7, 7  ;;  %v6856_v51 = vmax.f32 %v6854_v1, %v6855_v25  ;;  %v5946_v54 = vmul.f32 %v15957_v20, %v15956_v47  ;;  %v5627_v62 = vrot.slane %v14516_v40, 7  ;;  %v14709_v7 = vpop.f32.mrb[31].mxu0 }
 0x53c   :  { %v6396_v4 = vadd.f32 1.0, %v8842_v45  ;;  %v14699_v57 = vadd.f32 %v14677_v35, %v6072_v19  ;;  %v6862_v42 = vmax.f32 %v6860_v2, %v6861_v46  ;;  %v6009_v8 = vadd.f32 %v5753_v3, %v14493_v38  ;;  %v15958_v2 = vld [vmem:[#allocation119_spill] sm:$0xff]  ;;  %v15959_v3 = vld [vmem:[#allocation122_spill] sm:$0xff] }
 0x53d   :  { %v8844_v28 = vpop.eup %8843  ;;  %v5653_v18 = vsel %vm1172_vm0, %v5625_v39, %v5626_v11  ;;  %v6857_v1 = vrot.slane %v6856_v51, 1  ;;  %v5652_v40 = vsel %vm1172_vm0, %v5626_v11, %v5627_v62 }
 0x53e   :  { %v8846_v29 = vpop.eup %8845  ;;  %v6586_v13 = vmul.f32 %v8844_v28, %v14600_v23  ;;  %8851 = vrcp.f32 %v6396_v4  ;;  %v7317_v53 = vmul.f32 -1.442695, %v14699_v57  ;;  %v6863_v33 = vrot.slane %v6862_v42, 1  ;;  %v15960_v4 = vld [vmem:[#allocation155_spill] sm:$0xff] }
 0x53f   :  { %v6397_v5 = vadd.f32 1.0, %v8846_v29  ;;  %v6073_v14 = vadd.f32 %v6009_v8, %v5945_v48  ;;  %v5754_v25 = vmul.f32 %v5653_v18, %v15958_v2  ;;  %v6858_v38 = vmax.f32 %v6856_v51, %v6857_v1  ;;  %v15963_v2 = vld [vmem:[#allocation166_spill] sm:$0xff] }
 0x540   :  { %v6865_v19 = vrot.slane %v6586_v13, 4  ;;  %8853 = vpow2.f32 %v7317_v53  ;;  %v6864_v39 = vmax.f32 %v6862_v42, %v6863_v33  ;;  %v5755_v48 = vmul.f32 %v5652_v40, %v15959_v3 }
 0x541   :  { %8855 = vrcp.f32 %v6397_v5  ;;  %v14717_v45 = vadd.f32 %v14677_v35, %v6073_v14  ;;  %v6010_v23 = vadd.f32 %v5754_v25, %v14507_v24  ;;  %v7097_v46 = vsel %vm7055_vm2, %v6858_v38, %v6852_v0  ;;  %v15961_v24 = vld [vmem:[#allocation160_spill] sm:$0xff] }
 0x542   :  { %v6866_v36 = vmax.f32 %v6586_v13, %v6865_v19  ;;  %v5947_v51 = vmul.f32 %v14217_v32, %v15960_v4  ;;  %v7098_v47 = vsel %vm7057_vm3, %v6864_v39, %v7097_v46  ;;  %v5628_v28 = vrot.slane %v14535_v43, 7  ;;  %v15962_v5 = vld [vmem:[#allocation124_spill] sm:$0xff] }
 0x543   :  { %v7318_v20 = vmul.f32 -1.442695, %v14717_v45  ;;  %v6074_v11 = vadd.f32 %v6010_v23, %v5946_v54  ;;  %v8848_v42 = vpop.eup %8847  ;;  %v6011_v18 = vadd.f32 %v5755_v48, %v14521_v50  ;;  %v5948_v0 = vmul.f32 %v14213_v55, %v15961_v24  ;;  %v15964_v23 = vld [vmem:[#allocation127_spill] sm:$0xff] }
 0x544   :  { %v6867_v8 = vrot.slane %v6866_v36, 2  ;;  %v5629_v29 = vrot.slane %v14552_v16, 7  ;;  %v8850_v1 = vpop.eup %8849  ;;  %v6587_v13 = vmul.f32 %v8848_v42, %v14623_v41  ;;  %v5651_v54 = vsel %vm1172_vm0, %v5627_v62, %v5628_v28 }
 0x545   :  { %8857 = vpow2.f32 %v7318_v20  ;;  %v14733_v32 = vadd.f32 %v14677_v35, %v6074_v11  ;;  %v6398_v53 = vadd.f32 1.0, %v8850_v1  ;;  %v6075_v33 = vadd.f32 %v6011_v18, %v5947_v51 }
 0x546   :  { %v6868_v43 = vmax.f32 %v6866_v36, %v6867_v8  ;;  %v5756_v50 = vmul.f32 %v5651_v54, %v15962_v5  ;;  %v6871_v14 = vrot.slane %v6587_v13, 4  ;;  %v5650_v16 = vsel %vm1172_vm0, %v5628_v28, %v5629_v29  ;;  %v15965_v54 = vld [vmem:[#allocation169_spill] sm:$0xff]  ;;  %v15967_v5 = vld [vmem:[#allocation128_spill] sm:$0xff] }
 0x547   :  { %v7319_v55 = vmul.f32 -1.442695, %v14733_v32  ;;  %v5949_v41 = vmul.f32 %v14254_v9, %v15963_v2  ;;  %8859 = vrcp.f32 %v6398_v53  ;;  %v14744_v19 = vadd.f32 %v14677_v35, %v6075_v33 }
 0x548   :  { %v8852_v25 = vpop.eup %8851  ;;  %v6869_v38 = vrot.slane %v6868_v43, 1  ;;  %v6012_v62 = vadd.f32 %v5756_v50, %v14539_v21  ;;  %v6872_v40 = vmax.f32 %v6587_v13, %v6871_v14  ;;  %v5757_v46 = vmul.f32 %v5650_v16, %v15964_v23  ;;  %v15968_v16 = vld [vmem:[#allocation12_spill] sm:$0xff] }
 0x549   :  { %v6588_v39 = vmul.f32 %v8852_v25, %v14638_v12  ;;  %8861 = vpow2.f32 %v7319_v55  ;;  %v7320_v48 = vmul.f32 -1.442695, %v14744_v19  ;;  %v5630_v9 = vrot.slane %v14567_v44, 7 }
 0x54a   :  { %v8854_v36 = vpop.eup %8853  ;;  %v6870_v3 = vmax.f32 %v6868_v43, %v6869_v38  ;;  %v6076_v4 = vadd.f32 %v6012_v62, %v5948_v0  ;;  %v6873_v20 = vrot.slane %v6872_v40, 2  ;;  %v6013_v42 = vadd.f32 %v5757_v46, %v14554_v59  ;;  %v15966_v59 = vld [vmem:[#allocation156_spill] sm:$0xff]  ;;  %v15969_v38 = vld [vmem:[#allocation13_spill] sm:$0xff] }
 0x54b   :  { %v8856_v51 = vpop.eup %8855  ;;  %v6877_v11 = vrot.slane %v6588_v39, 4  ;;  %v6399_v28 = vadd.f32 1.0, %v8854_v36  ;;  %8863 = vpow2.f32 %v7320_v48  ;;  %v5649_v13 = vsel %vm1172_vm0, %v5629_v29, %v5630_v9  ;;  %v15970_v46 = vld [vmem:[#allocation144_spill] sm:$0xff]  ;;  %v15971_v36 = vld [vmem:[#allocation2_spill] sm:$0xff] }
 0x54c   :  { %v7099_v21 = vsel %vm7059_vm4, %v6870_v3, %v7098_v47  ;;  %v6589_v12 = vmul.f32 %v8856_v51, %v14651_v31  ;;  %v14755_v8 = vadd.f32 %v14677_v35, %v6076_v4  ;;  %v6874_v18 = vmax.f32 %v6872_v40, %v6873_v20 }
 0x54d   :  { %v6878_v24 = vmax.f32 %v6588_v39, %v6877_v11  ;;  %8865 = vrcp.f32 %v6399_v28  ;;  %v6077_v0 = vadd.f32 %v6013_v42, %v5949_v41  ;;  %v5950_v43 = vmul.f32 %v15966_v59, %v15965_v54 }
 0x54e   :  { %v6883_v1 = vrot.slane %v6589_v12, 4  ;;  %v7321_v44 = vmul.f32 -1.442695, %v14755_v8  ;;  %v6875_v53 = vrot.slane %v6874_v18, 1  ;;  %v5758_v50 = vmul.f32 %v5649_v13, %v15967_v5 }
 0x54f   :  { %v8858_v47 = vpop.eup %8857  ;;  %v6879_v31 = vrot.slane %v6878_v24, 2  ;;  %v14763_v33 = vadd.f32 %v14677_v35, %v6077_v0  ;;  %v5631_v2 = vrot.slane %v15968_v16, 7  ;;  %v5951_v3 = vmul.f32 %v15971_v36, %v15970_v46 }
 0x550   :  { %v6884_v14 = vmax.f32 %v6589_v12, %v6883_v1  ;;  %v6400_v55 = vadd.f32 1.0, %v8858_v47  ;;  %8867 = vpow2.f32 %v7321_v44  ;;  %v6876_v41 = vmax.f32 %v6874_v18, %v6875_v53  ;;  %v15972_v12 = vld [vmem:[#allocation75_spill] sm:$0xff] }
 0x551   :  { %v6880_v25 = vmax.f32 %v6878_v24, %v6879_v31  ;;  %v7322_v29 = vmul.f32 -1.442695, %v14763_v33  ;;  %v6014_v62 = vadd.f32 %v5758_v50, %v15969_v38  ;;  %v8860_v40 = vpop.eup %8859  ;;  %v5648_v23 = vsel %vm1172_vm0, %v5630_v9, %v5631_v2  ;;  %v15973_v9 = vld [vmem:[#allocation99_spill] sm:$0xff] }
 0x552   :  { %v6885_v39 = vrot.slane %v6884_v14, 2  ;;  %8869 = vrcp.f32 %v6400_v55  ;;  %v7100_v4 = vsel %vm7061_vm5, %v6876_v41, %v7099_v21  ;;  %v6590_v20 = vmul.f32 %v8860_v40, %v14680_v27  ;;  %v15974_v44 = vld [vmem:[#allocation63_spill] sm:$0xff] }
 0x553   :  { %v8862_v48 = vpop.eup %8861  ;;  %v6881_v51 = vrot.slane %v6880_v25, 1  ;;  %8871 = vpow2.f32 %v7322_v29  ;;  %v6078_v42 = vadd.f32 %v6014_v62, %v5950_v43  ;;  %v5759_v18 = vmul.f32 %v5648_v23, %v15972_v12  ;;  %v15975_v27 = vld [vmem:[#allocation15_spill] sm:$0xff] }
 0x554   :  { %v6886_v11 = vmax.f32 %v6884_v14, %v6885_v39  ;;  %v6401_v28 = vadd.f32 1.0, %v8862_v48  ;;  %v6889_v0 = vrot.slane %v6590_v20, 4  ;;  %v5632_v1 = vrot.slane %v14590_v63, 7 }
 0x555   :  { %v6882_v24 = vmax.f32 %v6880_v25, %v6881_v51  ;;  %v5952_v13 = vmul.f32 %v15974_v44, %v15973_v9  ;;  %v8864_v54 = vpop.eup %8863  ;;  %v14780_v21 = vadd.f32 %v14677_v35, %v6078_v42  ;;  %v6015_v47 = vadd.f32 %v5759_v18, %v15975_v27  ;;  %v15976_v25 = vld [vmem:[#allocation131_spill] sm:$0xff] }
 0x556   :  { %v6887_v59 = vrot.slane %v6886_v11, 1  ;;  %8873 = vrcp.f32 %v6401_v28  ;;  %v6890_v31 = vmax.f32 %v6590_v20, %v6889_v0  ;;  %v6402_v5 = vadd.f32 1.0, %v8864_v54  ;;  %v15978_v20 = vld [vmem:[#allocation149_spill] sm:$0xff] }
 0x557   :  { %v8866_v53 = vpop.eup %8865  ;;  %v7101_v43 = vsel %vm7063_vm6, %v6882_v24, %v7100_v4  ;;  %v5647_v50 = vsel %vm1172_vm0, %v5631_v2, %v5632_v1  ;;  %v7323_v55 = vmul.f32 -1.442695, %v14780_v21  ;;  %v6079_v16 = vadd.f32 %v6015_v47, %v5951_v3 }
 0x558   :  { %v6888_v63 = vmax.f32 %v6886_v11, %v6887_v59  ;;  %v6591_v14 = vmul.f32 %v8866_v53, %v14699_v57  ;;  %v6891_v41 = vrot.slane %v6890_v31, 2  ;;  %8875 = vrcp.f32 %v6402_v5  ;;  %v15979_v11 = vld [vmem:[#allocation7_spill] sm:$0xff] }
 0x559   :  { %v5760_v29 = vmul.f32 %v5647_v50, %v15976_v25  ;;  %v5633_v38 = vrot.slane %v14607_v30, 7  ;;  %8877 = vpow2.f32 %v7323_v55  ;;  %v14792_v23 = vadd.f32 %v14677_v35, %v6079_v16  ;;  %v15977_v30 = vld [vmem:[#allocation133_spill] sm:$0xff] }
 0x55a   :  { %v8868_v62 = vpop.eup %8867  ;;  %v7102_v40 = vsel %vm7065_vm7, %v6888_v63, %v7101_v43  ;;  %v6895_v39 = vrot.slane %v6591_v14, 4  ;;  %v6892_v2 = vmax.f32 %v6890_v31, %v6891_v41  ;;  %v5953_v28 = vmul.f32 %v15979_v11, %v15978_v20  ;;  %v15980_v43 = vld [vmem:[#allocation138_spill] sm:$0xff] }
 0x55b   :  { %v6403_v46 = vadd.f32 1.0, %v8868_v62  ;;  %v6016_v57 = vadd.f32 %v5760_v29, %v14595_v34  ;;  %v5646_v36 = vsel %vm1172_vm0, %v5632_v1, %v5633_v38  ;;  %v7324_v4 = vmul.f32 -1.442695, %v14792_v23 }
 0x55c   :  { %v8870_v3 = vpop.eup %8869  ;;  %v6896_v48 = vmax.f32 %v6591_v14, %v6895_v39  ;;  %v5761_v51 = vmul.f32 %v5646_v36, %v15977_v30  ;;  %v6893_v12 = vrot.slane %v6892_v2, 1  ;;  %v5634_v59 = vrot.slane %v14620_v58, 7  ;;  %v15984_v30 = vld [vmem:[#allocation145_spill] sm:$0xff] }
 0x55d   :  { %v8872_v42 = vpop.eup %8871  ;;  %v6592_v18 = vmul.f32 %v8870_v3, %v14717_v45  ;;  %8879 = vrcp.f32 %v6403_v46  ;;  %v6080_v24 = vadd.f32 %v6016_v57, %v5952_v13  ;;  %v15981_v45 = vld [vmem:[#allocation4_spill] sm:$0xff]  ;;  %v5635_v55 = vrot.slane %v14635_v52, 7 }
 0x55e   :  { %v6897_v0 = vrot.slane %v6896_v48, 2  ;;  %v6404_v34 = vadd.f32 1.0, %v8872_v42  ;;  %8881 = vpow2.f32 %v7324_v4  ;;  %v6017_v1 = vadd.f32 %v5761_v51, %v14613_v10  ;;  %v15985_v51 = vld [vmem:[#allocation9_spill] sm:$0xff] }
 0x55f   :  { %v6894_v9 = vmax.f32 %v6892_v2, %v6893_v12  ;;  %v6901_v44 = vrot.slane %v6592_v18, 4  ;;  %v14804_v54 = vadd.f32 %v14677_v35, %v6080_v24  ;;  %v5954_v31 = vmul.f32 %v15981_v45, %v15980_v43 }
 0x560   :  { %v8874_v27 = vpop.eup %8873  ;;  %v6898_v47 = vmax.f32 %v6896_v48, %v6897_v0  ;;  %8883 = vrcp.f32 %v6404_v34  ;;  %v6081_v53 = vadd.f32 %v6017_v1, %v5953_v28  ;;  %v5645_v14 = vsel %vm1172_vm0, %v5633_v38, %v5634_v59  ;;  %v15983_v48 = vld [vmem:[#allocation137_spill] sm:$0xff] }
 0x561   :  { %v7103_v13 = vsel %vm7067_vm8, %v6894_v9, %v7102_v40  ;;  %v6902_v5 = vmax.f32 %v6592_v18, %v6901_v44  ;;  %v6593_v50 = vmul.f32 %v8874_v27, %v14733_v32  ;;  %v7325_v10 = vmul.f32 -1.442695, %v14804_v54  ;;  %v15982_v32 = vld [vmem:[#allocation134_spill] sm:$0xff] }
 0x562   :  { %7131 = vst [vmem:[%s14960_s9 + $0x28] sm:$0xff] %v7103_v13  ;;  %v6899_v63 = vrot.slane %v6898_v47, 1  ;;  %v14816_v58 = vadd.f32 %v14677_v35, %v6081_v53  ;;  %v8876_v16 = vpop.eup %8875  ;;  %v5762_v29 = vmul.f32 %v5645_v14, %v15982_v32  ;;  %v5644_v46 = vsel %vm1172_vm0, %v5634_v59, %v5635_v55  ;;  %v15986_v14 = vld [vmem:[#allocation91_spill] sm:$0xff] }
 0x563   :  { %v6903_v41 = vrot.slane %v6902_v5, 2  ;;  %v6907_v25 = vrot.slane %v6593_v50, 4  ;;  %8885 = vpow2.f32 %v7325_v10  ;;  %v8878_v62 = vpop.eup %8877  ;;  %v6594_v39 = vmul.f32 %v8876_v16, %v14744_v19 }
 0x564   :  { %v6900_v40 = vmax.f32 %v6898_v47, %v6899_v63  ;;  %v7326_v2 = vmul.f32 -1.442695, %v14816_v58  ;;  %v6405_v38 = vadd.f32 1.0, %v8878_v62  ;;  %v6018_v52 = vadd.f32 %v5762_v29, %v14626_v61 }
 0x565   :  { %v6904_v57 = vmax.f32 %v6902_v5, %v6903_v41  ;;  %v6908_v36 = vmax.f32 %v6593_v50, %v6907_v25  ;;  %v6913_v3 = vrot.slane %v6594_v39, 4  ;;  %v5763_v4 = vmul.f32 %v5644_v46, %v15983_v48  ;;  %v15987_v41 = vld [vmem:[#allocation143_spill] sm:$0xff] }
 0x566   :  { %8887 = vpow2.f32 %v7326_v2  ;;  %v5955_v20 = vmul.f32 %v15985_v51, %v15984_v30  ;;  %v6082_v42 = vadd.f32 %v6018_v52, %v5954_v31  ;;  %v5636_v61 = vrot.slane %v14653_v22, 7 }
 0x567   :  { %v8880_v11 = vpop.eup %8879  ;;  %v6905_v28 = vrot.slane %v6904_v57, 1  ;;  %v6909_v19 = vrot.slane %v6908_v36, 2  ;;  %8889 = vrcp.f32 %v6405_v38  ;;  %v6914_v18 = vmax.f32 %v6594_v39, %v6913_v3 }
 0x568   :  { %v8882_v12 = vpop.eup %8881  ;;  %v6595_v24 = vmul.f32 %v8880_v11, %v14755_v8  ;;  %v6019_v0 = vadd.f32 %v5763_v4, %v14641_v17  ;;  %v14834_v44 = vadd.f32 %v14677_v35, %v6082_v42  ;;  %v5643_v43 = vsel %vm1172_vm0, %v5635_v55, %v5636_v61  ;;  %v15988_v55 = vld [vmem:[#allocation6_spill] sm:$0xff] }
 0x569   :  { %v6906_v34 = vmax.f32 %v6904_v57, %v6905_v28  ;;  %v6910_v1 = vmax.f32 %v6908_v36, %v6909_v19  ;;  %v6406_v9 = vadd.f32 1.0, %v8882_v12  ;;  %v6915_v27 = vrot.slane %v6914_v18, 2  ;;  %v15989_v19 = vld [vmem:[#allocation95_spill] sm:$0xff] }
 0x56a   :  { %v8884_v59 = vpop.eup %8883  ;;  %v6919_v47 = vrot.slane %v6595_v24, 4  ;;  %v6083_v53 = vadd.f32 %v6019_v0, %v5955_v20  ;;  %v7327_v13 = vmul.f32 -1.442695, %v14834_v44  ;;  %v5764_v16 = vmul.f32 %v5643_v43, %v15986_v14  ;;  %v15996_v14 = vld [vmem:[#allocation8_spill] sm:$0xff] }
 0x56b   :  { %v7104_v45 = vsel %vm7055_vm2, %v6906_v34, %v6900_v40  ;;  %v6911_v8 = vrot.slane %v6910_v1, 1  ;;  %v6596_v17 = vmul.f32 %v8884_v59, %v14763_v33  ;;  %8891 = vrcp.f32 %v6406_v9  ;;  %v15992_v59 = vld [vmem:[#allocation108_spill] sm:$0xff] }
 0x56c   :  { %v6916_v22 = vmax.f32 %v6914_v18, %v6915_v27  ;;  %v6920_v31 = vmax.f32 %v6595_v24, %v6919_v47  ;;  %v14842_v5 = vadd.f32 %v14677_v35, %v6083_v53  ;;  %v5956_v25 = vmul.f32 %v15988_v55, %v15987_v41  ;;  %v15990_v18 = vld [vmem:[#allocation154_spill] sm:$0xff]  ;;  %v15993_v27 = vld [vmem:[#allocation11_spill] sm:$0xff] }
 0x56d   :  { %v8886_v50 = vpop.eup %8885  ;;  %v6912_v10 = vmax.f32 %v6910_v1, %v6911_v8  ;;  %v6925_v63 = vrot.slane %v6596_v17, 4  ;;  %8893 = vpow2.f32 %v7327_v13  ;;  %v6020_v2 = vadd.f32 %v5764_v16, %v14656_v26  ;;  %v15991_v24 = vld [vmem:[#allocation10_spill] sm:$0xff] }
 0x56e   :  { %v6917_v32 = vrot.slane %v6916_v22, 1  ;;  %v6921_v29 = vrot.slane %v6920_v31, 2  ;;  %v6407_v62 = vadd.f32 1.0, %v8886_v50  ;;  %v7328_v39 = vmul.f32 -1.442695, %v14842_v5 }
 0x56f   :  { %v7105_v33 = vsel %vm7057_vm3, %v6912_v10, %v7104_v45  ;;  %v6926_v40 = vmax.f32 %v6596_v17, %v6925_v63  ;;  %v5637_v38 = vrot.slane %v14665_v56, 7  ;;  %v6084_v4 = vadd.f32 %v6020_v2, %v5956_v25  ;;  %v15995_v63 = vld [vmem:[#allocation153_spill] sm:$0xff] }
 0x570   :  { %v8888_v46 = vpop.eup %8887  ;;  %v6918_v57 = vmax.f32 %v6916_v22, %v6917_v32  ;;  %v6922_v36 = vmax.f32 %v6920_v31, %v6921_v29  ;;  %8895 = vrcp.f32 %v6407_v62  ;;  %v5957_v0 = vmul.f32 %v15991_v24, %v15990_v18  ;;  %v15994_v22 = vld [vmem:[#allocation139_spill] sm:$0xff]  ;;  %v16002_v24 = vld [vmem:[#allocation86_spill] sm:$0xff] }
 0x571   :  { %v8890_v52 = vpop.eup %8889  ;;  %v6927_v3 = vrot.slane %v6926_v40, 2  ;;  %v6408_v48 = vadd.f32 1.0, %v8888_v46  ;;  %8897 = vpow2.f32 %v7328_v39  ;;  %v5642_v11 = vsel %vm1172_vm0, %v5636_v61, %v5637_v38 }
 0x572   :  { %v7106_v30 = vsel %vm7059_vm4, %v6918_v57, %v7105_v33  ;;  %v6923_v51 = vrot.slane %v6922_v36, 1  ;;  %v6597_v20 = vmul.f32 %v8890_v52, %v14780_v21  ;;  %v14856_v28 = vadd.f32 %v14677_v35, %v6084_v4  ;;  %v15997_v33 = vld [vmem:[#allocation158_spill] sm:$0xff] }
 0x573   :  { %v6928_v26 = vmax.f32 %v6926_v40, %v6927_v3  ;;  %8899 = vrcp.f32 %v6408_v48  ;;  %v5765_v56 = vmul.f32 %v5642_v11, %v15989_v19  ;;  %v5638_v34 = vrot.slane %v14685_v60, 7  ;;  %v15999_v3 = vld [vmem:[#allocation3_spill] sm:$0xff] }
 0x574   :  { %v6924_v42 = vmax.f32 %v6922_v36, %v6923_v51  ;;  %v6931_v12 = vrot.slane %v6597_v20, 4  ;;  %v7329_v21 = vmul.f32 -1.442695, %v14856_v28  ;;  %v5958_v47 = vmul.f32 %v15993_v27, %v15992_v59  ;;  %v16003_v59 = vld [vmem:[#allocation141_spill] sm:$0xff] }
 0x575   :  { %v8892_v1 = vpop.eup %8891  ;;  %v6929_v9 = vrot.slane %v6928_v26, 1  ;;  %v6021_v61 = vadd.f32 %v5765_v56, %v14670_v15  ;;  %v5641_v8 = vsel %vm1172_vm0, %v5637_v38, %v5638_v34  ;;  %v5639_v15 = vrot.slane %v14703_v6, 7 }
 0x576   :  { %v7107_v53 = vsel %vm7061_vm5, %v6924_v42, %v7106_v30  ;;  %v6932_v43 = vmax.f32 %v6597_v20, %v6931_v12  ;;  %v6598_v45 = vmul.f32 %v8892_v1, %v14792_v23  ;;  %8901 = vpow2.f32 %v7329_v21  ;;  %v16001_v42 = vld [vmem:[#allocation159_spill] sm:$0xff] }
 0x577   :  { %v6930_v17 = vmax.f32 %v6928_v26, %v6929_v9  ;;  %v6085_v60 = vadd.f32 %v6021_v61, %v5957_v0  ;;  %v5766_v31 = vmul.f32 %v5641_v8, %v15994_v22  ;;  %v8894_v13 = vpop.eup %8893  ;;  %v5959_v16 = vmul.f32 %v15996_v14, %v15995_v63 }
 0x578   :  { %v6933_v50 = vrot.slane %v6932_v43, 2  ;;  %v6937_v10 = vrot.slane %v6598_v45, 4  ;;  %v6409_v55 = vadd.f32 1.0, %v8894_v13  ;;  %v15998_v40 = vrot.slane %v15997_v33, 7 }
 0x579   :  { %v7108_v41 = vsel %vm7063_vm6, %v6930_v17, %v7107_v53  ;;  %v14876_v23 = vadd.f32 %v14677_v35, %v6085_v60  ;;  %v6022_v25 = vadd.f32 %v5766_v31, %v14691_v49  ;;  %v5640_v6 = vsel %vm1172_vm0, %v5638_v34, %v5639_v15  ;;  %v16005_v17 = vld [vmem:[#allocation162_spill] sm:$0xff] }
 0x57a   :  { %v8896_v32 = vpop.eup %8895  ;;  %v6934_v29 = vmax.f32 %v6932_v43, %v6933_v50  ;;  %v6938_v62 = vmax.f32 %v6598_v45, %v6937_v10  ;;  %v5703_v39 = vsel %vm1172_vm0, %v5639_v15, %v15998_v40  ;;  %8903 = vrcp.f32 %v6409_v55  ;;  %v16006_v10 = vld [vmem:[#allocation157_spill] sm:$0xff] }
 0x57b   :  { %v8898_v2 = vpop.eup %8897  ;;  %v6599_v46 = vmul.f32 %v8896_v32, %v14804_v54  ;;  %v7330_v57 = vmul.f32 -1.442695, %v14876_v23  ;;  %v6086_v36 = vadd.f32 %v6022_v25, %v5958_v47  ;;  %v5704_v48 = vmul.f32 %v5703_v39, %v15999_v3  ;;  %v16004_v47 = vld [vmem:[#allocation142_spill] sm:$0xff] }
 0x57c   :  { %v6935_v38 = vrot.slane %v6934_v29, 1  ;;  %v6939_v49 = vrot.slane %v6938_v62, 2  ;;  %v6410_v52 = vadd.f32 1.0, %v8898_v2  ;;  %v5767_v20 = vmul.f32 %v5640_v6, %v16000_v37  ;;  %v16007_v25 = vld [vmem:[#allocation118_spill] sm:$0xff] }
 0x57d   :  { %v8900_v4 = vpop.eup %8899  ;;  %v6943_v30 = vrot.slane %v6599_v46, 4  ;;  %8905 = vpow2.f32 %v7330_v57  ;;  %v14889_v51 = vadd.f32 %v14677_v35, %v6086_v36  ;;  %v5960_v12 = vadd.f32 %v5704_v48, %v16001_v42 }
 0x57e   :  { %v6936_v11 = vmax.f32 %v6934_v29, %v6935_v38  ;;  %v6940_v26 = vmax.f32 %v6938_v62, %v6939_v49  ;;  %v6600_v54 = vmul.f32 %v8900_v4, %v14816_v58  ;;  %8907 = vrcp.f32 %v6410_v52  ;;  %v16008_v29 = vld [vmem:[#allocation121_spill] sm:$0xff] }
 0x57f   :  { %v6944_v19 = vmax.f32 %v6599_v46, %v6943_v30  ;;  %v7331_v56 = vmul.f32 -1.442695, %v14889_v51  ;;  %v6023_v18 = vadd.f32 %v5767_v20, %v14709_v7  ;;  %v6354_v0 = vadd.f32 1.0, %v16002_v24  ;;  %v16010_v24 = vld [vmem:[#allocation152_spill] sm:$0xff] }
 0x580   :  { %v7109_v34 = vsel %vm7065_vm7, %v6936_v11, %v7108_v41  ;;  %v6941_v1 = vrot.slane %v6940_v26, 1  ;;  %v6949_v9 = vrot.slane %v6600_v54, 4  ;;  %v8902_v21 = vpop.eup %8901  ;;  %v6024_v27 = vadd.f32 %v5960_v12, %v16003_v59 }
 0x581   :  { %v6945_v61 = vrot.slane %v6944_v19, 2  ;;  %8909 = vpow2.f32 %v7331_v56  ;;  %v6087_v58 = vadd.f32 %v6023_v18, %v5959_v16  ;;  %v6355_v53 = vadd.f32 1.0, %v16004_v47  ;;  %v16009_v18 = vld [vmem:[#allocation147_spill] sm:$0xff] }
 0x582   :  { %v6942_v43 = vmax.f32 %v6940_v26, %v6941_v1  ;;  %v6950_v45 = vmax.f32 %v6600_v54, %v6949_v9  ;;  %v6411_v8 = vadd.f32 1.0, %v8902_v21  ;;  %8911 = vrcp.f32 %v16005_v17 }
 0x583   :  { %v6946_v7 = vmax.f32 %v6944_v19, %v6945_v61  ;;  %v14902_v60 = vadd.f32 %v14677_v35, %v6024_v27  ;;  %v14905_v22 = vadd.f32 %v14677_v35, %v6087_v58  ;;  %v6356_v15 = vadd.f32 1.0, %v16006_v10  ;;  %v16011_v58 = vld [vmem:[#allocation130_spill] sm:$0xff] }
 0x584   :  { %v7110_v31 = vsel %vm7067_vm8, %v6942_v43, %v7109_v34  ;;  %v6951_v13 = vrot.slane %v6950_v45, 2  ;;  %8913 = vrcp.f32 %v6411_v8  ;;  %v8904_v50 = vpop.eup %8903  ;;  %v6357_v32 = vadd.f32 1.0, %v16007_v25 }
 0x585   :  { %8915 = vrcp.f32 %v6354_v0  ;;  %7132 = vst [vmem:[%s14960_s9 + $0x30] sm:$0xff] %v7110_v31  ;;  %v7269_v63 = vmul.f32 -1.442695, %v14902_v60  ;;  %v7332_v14 = vmul.f32 -1.442695, %v14905_v22  ;;  %v6947_v16 = vrot.slane %v6946_v7, 1 }
 0x586   :  { %8917 = vrcp.f32 %v6355_v53  ;;  %v6952_v35 = vmax.f32 %v6950_v45, %v6951_v13  ;;  %v6601_v41 = vmul.f32 %v8904_v50, %v14834_v44  ;;  %v6358_v62 = vadd.f32 1.0, %v16008_v29  ;;  %v16012_v53 = vld [vmem:[#allocation161_spill] sm:$0xff]  ;;  %v16013_v50 = vld [vmem:[#allocation164_spill] sm:$0xff] }
 0x587   :  { %v8906_v55 = vpop.eup %8905  ;;  %8919 = vpow2.f32 %v7269_v63  ;;  %v6948_v46 = vmax.f32 %v6946_v7, %v6947_v16  ;;  %v6544_v0 = vmul.f32 %v16010_v24, %v16009_v18 }
 0x588   :  { %v8908_v33 = vpop.eup %8907  ;;  %v6953_v40 = vrot.slane %v6952_v35, 1  ;;  %v6955_v39 = vrot.slane %v6601_v41, 4  ;;  %v6412_v6 = vadd.f32 1.0, %v8906_v55  ;;  %8921 = vpow2.f32 %v7332_v14 }
 0x589   :  { %8923 = vrcp.f32 %v6356_v15  ;;  %v6602_v2 = vmul.f32 %v8908_v33, %v14842_v5  ;;  %v6613_v13 = vrot.slane %v6544_v0, 4  ;;  %v16014_v15 = vld [vmem:[#allocation165_spill] sm:$0xff] }
 0x58a   :  { %v6954_v57 = vmax.f32 %v6952_v35, %v6953_v40  ;;  %v6956_v36 = vmax.f32 %v6601_v41, %v6955_v39  ;;  %8925 = vrcp.f32 %v6412_v6 }
 0x58b   :  { %v8910_v38 = vpop.eup %8909  ;;  %8927 = vrcp.f32 %v6357_v32  ;;  %v6961_v44 = vrot.slane %v6602_v2, 4  ;;  %v16015_v32 = vld [vmem:[#allocation151_spill] sm:$0xff]  ;;  %v6614_v6 = vmax.f32 %v6544_v0, %v6613_v13 }
 0x58c   :  { %8929 = vrcp.f32 %v6358_v62  ;;  %v7111_v49 = vsel %vm7055_vm2, %v6954_v57, %v6948_v46  ;;  %v6957_v52 = vrot.slane %v6956_v36, 2  ;;  %v6413_v3 = vadd.f32 1.0, %v8910_v38  ;;  %v8912_v48 = vpop.eup %8911  ;;  %v16016_v62 = vld [vmem:[#allocation62_spill] sm:$0xff] }
 0x58d   :  { %v6962_v4 = vmax.f32 %v6602_v2, %v6961_v44  ;;  %v6545_v47 = vmul.f32 %v8912_v48, %v16011_v58 }
 0x58e   :  { %v8914_v30 = vpop.eup %8913  ;;  %v6958_v37 = vmax.f32 %v6956_v36, %v6957_v52  ;;  %8931 = vrcp.f32 %v6413_v3 }
 0x58f   :  { %v8916_v20 = vpop.eup %8915  ;;  %v6963_v11 = vrot.slane %v6962_v4, 2  ;;  %v6603_v5 = vmul.f32 %v8914_v30, %v14856_v28  ;;  %v6619_v55 = vrot.slane %v6545_v47, 4 }
 0x590   :  { %v8918_v26 = vpop.eup %8917  ;;  %v6959_v54 = vrot.slane %v6958_v37, 1  ;;  %v6546_v28 = vmul.f32 %v8916_v20, %v16012_v53  ;;  %v6615_v20 = vrot.slane %v6614_v6, 2 }
 0x591   :  { %v8920_v19 = vpop.eup %8919  ;;  %v6964_v56 = vmax.f32 %v6962_v4, %v6963_v11  ;;  %v6967_v42 = vrot.slane %v6603_v5, 4  ;;  %v6547_v10 = vmul.f32 %v8918_v26, %v16013_v50  ;;  %v6620_v44 = vmax.f32 %v6545_v47, %v6619_v55 }
 0x592   :  { %v8922_v12 = vpop.eup %8921  ;;  %v6960_v34 = vmax.f32 %v6958_v37, %v6959_v54  ;;  %v6351_v1 = vadd.f32 1.0, %v8920_v19  ;;  %v6625_v25 = vrot.slane %v6546_v28, 4 }
 0x593   :  { %v8924_v9 = vpop.eup %8923  ;;  %v6965_v21 = vrot.slane %v6964_v56, 1  ;;  %v6968_v61 = vmax.f32 %v6603_v5, %v6967_v42  ;;  %v6414_v59 = vadd.f32 1.0, %v8922_v12  ;;  %v6631_v2 = vrot.slane %v6547_v10, 4 }
 0x594   :  { %v8926_v27 = vpop.eup %8925  ;;  %v7112_v43 = vsel %vm7057_vm3, %v6960_v34, %v7111_v49  ;;  %8933 = vrcp.f32 %v6351_v1  ;;  %v6548_v63 = vmul.f32 %v8924_v9, %v16014_v15  ;;  %v6626_v49 = vmax.f32 %v6546_v28, %v6625_v25 }
 0x595   :  { %v8928_v45 = vpop.eup %8927  ;;  %v6966_v8 = vmax.f32 %v6964_v56, %v6965_v21  ;;  %v6969_v17 = vrot.slane %v6968_v61, 2  ;;  %v6604_v7 = vmul.f32 %v8926_v27, %v14876_v23  ;;  %8935 = vrcp.f32 %v6414_v59 }
 0x596   :  { %v8930_v31 = vpop.eup %8929  ;;  %v6549_v29 = vmul.f32 %v8928_v45, %v16015_v32  ;;  %v6637_v46 = vrot.slane %v6548_v63, 4  ;;  %v6632_v11 = vmax.f32 %v6547_v10, %v6631_v2  ;;  %v6621_v56 = vrot.slane %v6620_v44, 2 }
 0x597   :  { %v7113_v14 = vsel %vm7059_vm4, %v6966_v8, %v7112_v43  ;;  %v6970_v16 = vmax.f32 %v6968_v61, %v6969_v17  ;;  %v6973_v35 = vrot.slane %v6604_v7, 4  ;;  %v6550_v33 = vmul.f32 %v8930_v31, %v16016_v62 }
 0x598   :  { %v8932_v41 = vpop.eup %8931  ;;  %v6643_v52 = vrot.slane %v6549_v29, 4  ;;  %v6638_v26 = vmax.f32 %v6548_v63, %v6637_v46  ;;  %v6627_v42 = vrot.slane %v6626_v49, 2  ;;  %v6616_v9 = vmax.f32 %v6614_v6, %v6615_v20 }
 0x599   :  { %v6971_v40 = vrot.slane %v6970_v16, 1  ;;  %v6974_v23 = vmax.f32 %v6604_v7, %v6973_v35  ;;  %v6605_v39 = vmul.f32 %v8932_v41, %v14889_v51  ;;  %v6649_v3 = vrot.slane %v6550_v33, 4 }
 0x59a   :  { %v6644_v12 = vmax.f32 %v6549_v29, %v6643_v52  ;;  %v6633_v21 = vrot.slane %v6632_v11, 2  ;;  %v6639_v59 = vrot.slane %v6638_v26, 2  ;;  %v6622_v53 = vmax.f32 %v6620_v44, %v6621_v56 }
 0x59b   :  { %v6972_v57 = vmax.f32 %v6970_v16, %v6971_v40  ;;  %v6975_v36 = vrot.slane %v6974_v23, 2  ;;  %v6979_v38 = vrot.slane %v6605_v39, 4  ;;  %v6650_v24 = vmax.f32 %v6550_v33, %v6649_v3 }
 0x59c   :  { %v6645_v28 = vrot.slane %v6644_v12, 2  ;;  %v6628_v43 = vmax.f32 %v6626_v49, %v6627_v42  ;;  %v6617_v31 = vrot.slane %v6616_v9, 1  ;;  %v6640_v13 = vmax.f32 %v6638_v26, %v6639_v59 }
 0x59d   :  { %v7114_v48 = vsel %vm7061_vm5, %v6972_v57, %v7113_v14  ;;  %v6976_v4 = vmax.f32 %v6974_v23, %v6975_v36  ;;  %v6980_v30 = vmax.f32 %v6605_v39, %v6979_v38  ;;  %v6651_v45 = vrot.slane %v6650_v24, 2 }
 0x59e   :  { %v8934_v37 = vpop.eup %8933  ;;  %v6623_v15 = vrot.slane %v6622_v53, 1  ;;  %v6646_v63 = vmax.f32 %v6644_v12, %v6645_v28  ;;  %v6629_v16 = vrot.slane %v6628_v43, 1  ;;  %v6618_v32 = vmax.f32 %v6616_v9, %v6617_v31 }
 0x59f   :  { %v8936_v5 = vpop.eup %8935  ;;  %v6977_v51 = vrot.slane %v6976_v4, 1  ;;  %v6981_v54 = vrot.slane %v6980_v30, 2  ;;  %v6543_v19 = vmul.f32 %v8934_v37, %v14902_v60  ;;  %v6652_v35 = vmax.f32 %v6650_v24, %v6651_v45 }
 0x5a0   :  { %v6606_v18 = vmul.f32 %v8936_v5, %v14905_v22  ;;  %v6634_v22 = vmax.f32 %v6632_v11, %v6633_v21  ;;  %v6641_v29 = vrot.slane %v6640_v13, 1  ;;  %v6624_v33 = vmax.f32 %v6622_v53, %v6623_v15 }
 0x5a1   :  { %v6978_v0 = vmax.f32 %v6976_v4, %v6977_v51  ;;  %v6982_v34 = vmax.f32 %v6980_v30, %v6981_v54  ;;  %v6607_v1 = vrot.slane %v6543_v19, 4  ;;  %v6647_v40 = vrot.slane %v6646_v63, 1 }
 0x5a2   :  { %v6985_v61 = vrot.slane %v6606_v18, 4  ;;  %v6635_v55 = vrot.slane %v6634_v22, 1  ;;  %v6630_v39 = vmax.f32 %v6628_v43, %v6629_v16  ;;  %v6653_v6 = vrot.slane %v6652_v35, 1 }
 0x5a3   :  { %v7115_v27 = vsel %vm7063_vm6, %v6978_v0, %v7114_v48  ;;  %v6983_v58 = vrot.slane %v6982_v34, 1  ;;  %v6608_v47 = vmax.f32 %v6543_v19, %v6607_v1  ;;  %v6642_v38 = vmax.f32 %v6640_v13, %v6641_v29 }
 0x5a4   :  { %v6986_v60 = vmax.f32 %v6606_v18, %v6985_v61  ;;  %v6636_v46 = vmax.f32 %v6634_v22, %v6635_v55  ;;  %v6648_v49 = vmax.f32 %v6646_v63, %v6647_v40  ;;  %v6654_v3 = vmax.f32 %v6652_v35, %v6653_v6 }
 0x5a5   :  { %v6984_v8 = vmax.f32 %v6982_v34, %v6983_v58  ;;  %v6609_v17 = vrot.slane %v6608_v47, 2 }
 0x5a6   :  { %v6987_v7 = vrot.slane %v6986_v60, 2 }
 0x5a7   :  { %v7116_v50 = vsel %vm7065_vm7, %v6984_v8, %v7115_v27  ;;  %v6610_v10 = vmax.f32 %v6608_v47, %v6609_v17 }
 0x5a8   :  { %v6988_v14 = vmax.f32 %v6986_v60, %v6987_v7 }
 0x5a9   :  { %v6611_v41 = vrot.slane %v6610_v10, 1 }
 0x5aa   :  { %v6989_v25 = vrot.slane %v6988_v14, 1 }
 0x5ab   :  { %v6612_v62 = vmax.f32 %v6610_v10, %v6611_v41 }
 0x5ac   :  { %v6990_v23 = vmax.f32 %v6988_v14, %v6989_v25 }
 0x5ad   :  { %v7056_v2 = vsel %vm7055_vm2, %v6618_v32, %v6612_v62 }
 0x5ae   :  { %v7058_v57 = vsel %vm7057_vm3, %v6624_v33, %v7056_v2  ;;  %v7117_v36 = vsel %vm7067_vm8, %v6990_v23, %v7116_v50 }
 0x5af   :  { %v7060_v44 = vsel %vm7059_vm4, %v6630_v39, %v7058_v57  ;;  %7133 = vst [vmem:[%s14960_s9 + $0x38] sm:$0xff] %v7117_v36 }
 0x5b0   :  { %v7062_v52 = vsel %vm7061_vm5, %v6636_v46, %v7060_v44 }
 0x5b1   :  { %v7064_v48 = vsel %vm7063_vm6, %v6642_v38, %v7062_v52 }
 0x5b2   :  { %v7066_v4 = vsel %vm7065_vm7, %v6648_v49, %v7064_v48 }
 0x5b3   :  { %v7068_v30 = vsel %vm7067_vm8, %v6654_v3, %v7066_v4 }
 0x5b4   :  { %7126 = vst [vmem:[%s14960_s9] sm:$0xff] %v7068_v30 }

</bundles_post_ra>
